<compile_context>
chip_gen: v6e
topology: v6e:2x2x1
jax: 0.10.0
libtpu: 0.0.40
codegen_flags: <defaults>
</compile_context>

<pallas_src>
import functools

import jax
import jax.numpy as jnp
from jax.experimental import pallas as pl
from jax.experimental.pallas import tpu as pltpu


# Image interior is stored at this sublane-aligned offset inside the padded W axis of the
# VMEM scratch, so the interior *store* is fully aligned; only the 9 window *loads* are at
# unaligned (offset +/-1) sublane positions, which Mosaic handles cheaply.
_PAD_OFF = 8


# ---------------------------------------------------------------------------
# Single fused kernel: conv3x3+ReLU -> conv3x3+ReLU -> GAP -> Linear
# ---------------------------------------------------------------------------
def _fused_forward_kernel(x_ref, w1_ref, b1_ref, w2_ref, b2_ref, w3_ref, b3_ref,
                          o_ref, pad1_ref, pad2_ref, patch1_ref, patch2_ref, *, H, W):
    N = x_ref.shape[0]
    C1 = x_ref.shape[3]          # 4
    C2 = w1_ref.shape[1]         # 8   (w1 packed as (9*C1, C2))
    C3 = w2_ref.shape[1]         # 16  (w2 packed as (9*C2, C3))
    M = N * H * W

    wlo = _PAD_OFF - 1           # leftmost accessed padded-W index
    whi = _PAD_OFF + W           # rightmost accessed padded-W index

    def zero_halo(pad_ref, cin):
        # Zero ONLY the halo actually read by the 9 shifted windows:
        #   rows 0 and H+1 over W in [wlo, whi], and W columns wlo / whi over rows 1..H.
        zrow = jnp.zeros((N, 1, whi - wlo + 1, cin), jnp.float32)
        pad_ref[:, 0:1, wlo:whi + 1, :] = zrow
        pad_ref[:, H + 1:H + 2, wlo:whi + 1, :] = zrow
        zcol = jnp.zeros((N, H, 1, cin), jnp.float32)
        pad_ref[:, 1:H + 1, wlo:wlo + 1, :] = zcol
        pad_ref[:, 1:H + 1, whi:whi + 1, :] = zcol

    def conv3x3_relu(pad_ref, patch_ref, x_nhwc, w_ref, b_ref, cin, cout):
        # 1) halo zeros + aligned interior store of the NHWC activation.
        zero_halo(pad_ref, cin)
        pad_ref[:, 1:H + 1, _PAD_OFF:_PAD_OFF + W, :] = x_nhwc
        # 2) stage the im2col patch (M, 9*cin): tap t = di*3 + dj occupies lane columns
        #    [t*cin, (t+1)*cin), matching the host-packed (9*cin, cout) weight rows.
        for di in range(3):
            for dj in range(3):
                t = di * 3 + dj
                w0 = _PAD_OFF - 1 + dj
                win = pad_ref[:, di:di + H, w0:w0 + W, :]          # (N, H, W, cin)
                patch_ref[:, t * cin:(t + 1) * cin] = win.reshape(M, cin)
        # 3) one MXU matmul with contraction depth 9*cin, then bias + ReLU.
        y = jnp.dot(patch_ref[...], w_ref[...], preferred_element_type=jnp.float32)
        return jnp.maximum(y + b_ref[...], 0.0)                     # (M, cout)

    h1 = conv3x3_relu(pad1_ref, patch1_ref, x_ref[...], w1_ref, b1_ref, C1, C2)
    h2 = conv3x3_relu(pad2_ref, patch2_ref, h1.reshape(N, H, W, C2), w2_ref, b2_ref,
                      C2, C3)

    # Global average pool fused with the final Linear: (mean_hw h2) @ w3 + b3.
    pooled = jnp.mean(h2.reshape(N, H * W, C3), axis=1)             # (N, C3)
    logits = jnp.dot(pooled, w3_ref[...],
                     preferred_element_type=jnp.float32) + b3_ref[...]
    o_ref[...] = logits.astype(o_ref.dtype)


# ---------------------------------------------------------------------------
# DeepClassifier forward (PyTorch feeds NCHW; kernel runs NHWC)
# ---------------------------------------------------------------------------
def deep_classifier_forward(params, x_nchw):
    x = jnp.transpose(x_nchw, (0, 2, 3, 1)).astype(jnp.float32)     # (N, H, W, C)
    N, H, W, C1 = x.shape
    C2 = params["w1"].shape[-1]
    C3 = params["w2"].shape[-1]
    NCLS = params["w3"].shape[-1]
    WP = _PAD_OFF + W + _PAD_OFF                                     # padded W axis
    M = N * H * W

    # Host-side weight packing: HWIO -> (9*Cin, Cout); row index t*Cin + c with
    # t = di*3 + dj matches the kernel's patch column layout.  Zero runtime cost.
    w1p = params["w1"].reshape(9 * C1, C2)
    w2p = params["w2"].reshape(9 * C2, C3)
    b1 = params["b1"].reshape(1, C2)
    b2 = params["b2"].reshape(1, C3)
    w3 = params["w3"]
    b3 = params["b3"].reshape(1, NCLS)

    kernel = functools.partial(_fused_forward_kernel, H=H, W=W)
    return pl.pallas_call(
        kernel,
        out_shape=jax.ShapeDtypeStruct((N, NCLS), jnp.float32),
        grid_spec=pltpu.PrefetchScalarGridSpec(
            num_scalar_prefetch=0,
            grid=(1,),                                  # single invocation, all-VMEM
            in_specs=[
                pl.BlockSpec((N, H, W, C1), lambda i: (0, 0, 0, 0)),
                pl.BlockSpec((9 * C1, C2), lambda i: (0, 0)),
                pl.BlockSpec((1, C2), lambda i: (0, 0)),
                pl.BlockSpec((9 * C2, C3), lambda i: (0, 0)),
                pl.BlockSpec((1, C3), lambda i: (0, 0)),
                pl.BlockSpec((C3, NCLS), lambda i: (0, 0)),
                pl.BlockSpec((1, NCLS), lambda i: (0, 0)),
            ],
            out_specs=pl.BlockSpec((N, NCLS), lambda i: (0, 0)),
            scratch_shapes=[
                pltpu.VMEM((N, H + 2, WP, C1), jnp.float32),   # padded input
                pltpu.VMEM((N, H + 2, WP, C2), jnp.float32),   # padded h1
                pltpu.VMEM((M, 9 * C1), jnp.float32),          # im2col patch, conv1
                pltpu.VMEM((M, 9 * C2), jnp.float32),          # im2col patch, conv2
            ],
        ),
        compiler_params=pltpu.CompilerParams(
            dimension_semantics=("arbitrary",),
        ),
    )(x, w1p, b1, w2p, b2, w3, b3)


# ---------------------------------------------------------------------------
# Deterministic parameter init
# ---------------------------------------------------------------------------
def init_params(key):
    k1, k2, k3 = jax.random.split(key, 3)
    return {
        # HWIO conv weights
        "w1": jax.random.normal(k1, (3, 3, 4, 8), jnp.float32) * 0.1,
        "b1": jnp.zeros((8,), jnp.float32),
        "w2": jax.random.normal(k2, (3, 3, 8, 16), jnp.float32) * 0.1,
        "b2": jnp.zeros((16,), jnp.float32),
        # final linear
        "w3": jax.random.normal(k3, (16, 10), jnp.float32) * 0.1,
        "b3": jnp.zeros((10,), jnp.float32),
    }


# ---------------------------------------------------------------------------
# Pure-JAX reference for correctness check
# ---------------------------------------------------------------------------
def reference_forward(params, x_nchw):
    x = jnp.transpose(x_nchw, (0, 2, 3, 1)).astype(jnp.float32)
    dn = ("NHWC", "HWIO", "NHWC")

    def conv(z, w, b):
        y = jax.lax.conv_general_dilated(z, w, (1, 1), "SAME", dimension_numbers=dn,
                                         precision=jax.lax.Precision.HIGHEST)
        return jax.nn.relu(y + b)

    h1 = conv(x, params["w1"], params["b1"])
    h2 = conv(h1, params["w2"], params["b2"])
    pooled = jnp.mean(h2, axis=(1, 2))
    return jnp.dot(pooled, params["w3"],
                   precision=jax.lax.Precision.HIGHEST) + params["b3"]


if __name__ == "__main__":
    key = jax.random.PRNGKey(0)
    kp, kx = jax.random.split(key)
    params = init_params(kp)
    x = jax.random.normal(kx, (2, 4, 16, 16), jnp.float32)   # NCHW, as PyTorch would give

    fwd = jax.jit(deep_classifier_forward)
    out = jax.block_until_ready(fwd(params, x))

    ref = reference_forward(params, x)
    assert out.shape == (2, 10)
    assert jnp.allclose(out, ref, atol=2e-3, rtol=2e-3), "mismatch vs JAX reference"

    print("KERNEL_OK")
</pallas_src>

<mosaic_0001>
module attributes {stable_mosaic.version = 11 : i64} {
  func.func @_fused_forward_kernel(%arg0: i32, %arg1: memref<2x16x16x4xf32, #tpu.memory_space<vmem>>, %arg2: memref<36x8xf32, #tpu.memory_space<vmem>>, %arg3: memref<1x8xf32, #tpu.memory_space<vmem>>, %arg4: memref<72x16xf32, #tpu.memory_space<vmem>>, %arg5: memref<1x16xf32, #tpu.memory_space<vmem>>, %arg6: memref<16x10xf32, #tpu.memory_space<vmem>>, %arg7: memref<1x10xf32, #tpu.memory_space<vmem>>, %arg8: memref<2x10xf32, #tpu.memory_space<vmem>>, %arg9: memref<2x18x32x4xf32, #tpu.memory_space<vmem>>, %arg10: memref<2x18x32x8xf32, #tpu.memory_space<vmem>>, %arg11: memref<512x36xf32, #tpu.memory_space<vmem>>, %arg12: memref<512x72xf32, #tpu.memory_space<vmem>>) attributes {dimension_semantics = [#tpu.dimension_semantics<arbitrary>], iteration_bounds = array<i64: 1>, scalar_prefetch = 0 : i64, scratch_operands = 4 : i64, tpu.core_type = #tpu.core_type<tc>, window_params = [{pipeline_mode = #tpu.pipeline_mode<synchronous>, transform_indices = @transform_0, window_bounds = array<i64: 2, 16, 16, 4>}, {pipeline_mode = #tpu.pipeline_mode<synchronous>, transform_indices = @transform_1, window_bounds = array<i64: 36, 8>}, {pipeline_mode = #tpu.pipeline_mode<synchronous>, transform_indices = @transform_2, window_bounds = array<i64: 1, 8>}, {pipeline_mode = #tpu.pipeline_mode<synchronous>, transform_indices = @transform_3, window_bounds = array<i64: 72, 16>}, {pipeline_mode = #tpu.pipeline_mode<synchronous>, transform_indices = @transform_4, window_bounds = array<i64: 1, 16>}, {pipeline_mode = #tpu.pipeline_mode<synchronous>, transform_indices = @transform_5, window_bounds = array<i64: 16, 10>}, {pipeline_mode = #tpu.pipeline_mode<synchronous>, transform_indices = @transform_6, window_bounds = array<i64: 1, 10>}, {pipeline_mode = #tpu.pipeline_mode<synchronous>, transform_indices = @transform_7, window_bounds = array<i64: 2, 10>}]} {
    %c0 = arith.constant 0 : index
    %c0_0 = arith.constant 0 : index
    %c0_1 = arith.constant 0 : index
    %c0_2 = arith.constant 0 : index
    %0 = vector.load %arg1[%c0, %c0_0, %c0_1, %c0_2] : memref<2x16x16x4xf32, #tpu.memory_space<vmem>>, vector<2x16x16x4xf32>
    %cst = arith.constant 0.000000e+00 : f32
    %1 = vector.broadcast %cst : f32 to vector<2x1x18x4xf32>
    %c0_3 = arith.constant 0 : index
    %c0_4 = arith.constant 0 : index
    %c7 = arith.constant 7 : index
    %c0_5 = arith.constant 0 : index
    %2 = vector.load %arg9[%c0_3, %c0_4, %c7, %c0_5] : memref<2x18x32x4xf32, #tpu.memory_space<vmem>>, vector<2x1x18x4xf32>
    tpu.vector_store %arg9[%c0_3, %c0_4, %c7, %c0_5], %1 {strides = array<i32>} : memref<2x18x32x4xf32, #tpu.memory_space<vmem>>, vector<2x1x18x4xf32>,
    %c0_6 = arith.constant 0 : index
    %c17 = arith.constant 17 : index
    %c7_7 = arith.constant 7 : index
    %c0_8 = arith.constant 0 : index
    %3 = vector.load %arg9[%c0_6, %c17, %c7_7, %c0_8] : memref<2x18x32x4xf32, #tpu.memory_space<vmem>>, vector<2x1x18x4xf32>
    tpu.vector_store %arg9[%c0_6, %c17, %c7_7, %c0_8], %1 {strides = array<i32>} : memref<2x18x32x4xf32, #tpu.memory_space<vmem>>, vector<2x1x18x4xf32>,
    %cst_9 = arith.constant 0.000000e+00 : f32
    %4 = vector.broadcast %cst_9 : f32 to vector<2x16x1x4xf32>
    %c0_10 = arith.constant 0 : index
    %c1 = arith.constant 1 : index
    %c7_11 = arith.constant 7 : index
    %c0_12 = arith.constant 0 : index
    %5 = vector.load %arg9[%c0_10, %c1, %c7_11, %c0_12] : memref<2x18x32x4xf32, #tpu.memory_space<vmem>>, vector<2x16x1x4xf32>
    tpu.vector_store %arg9[%c0_10, %c1, %c7_11, %c0_12], %4 {strides = array<i32>} : memref<2x18x32x4xf32, #tpu.memory_space<vmem>>, vector<2x16x1x4xf32>,
    %c0_13 = arith.constant 0 : index
    %c1_14 = arith.constant 1 : index
    %c24 = arith.constant 24 : index
    %c0_15 = arith.constant 0 : index
    %6 = vector.load %arg9[%c0_13, %c1_14, %c24, %c0_15] : memref<2x18x32x4xf32, #tpu.memory_space<vmem>>, vector<2x16x1x4xf32>
    tpu.vector_store %arg9[%c0_13, %c1_14, %c24, %c0_15], %4 {strides = array<i32>} : memref<2x18x32x4xf32, #tpu.memory_space<vmem>>, vector<2x16x1x4xf32>,
    %c0_16 = arith.constant 0 : index
    %c1_17 = arith.constant 1 : index
    %c8 = arith.constant 8 : index
    %c0_18 = arith.constant 0 : index
    %7 = vector.load %arg9[%c0_16, %c1_17, %c8, %c0_18] : memref<2x18x32x4xf32, #tpu.memory_space<vmem>>, vector<2x16x16x4xf32>
    tpu.vector_store %arg9[%c0_16, %c1_17, %c8, %c0_18], %0 {strides = array<i32>} : memref<2x18x32x4xf32, #tpu.memory_space<vmem>>, vector<2x16x16x4xf32>,
    %c0_19 = arith.constant 0 : index
    %c0_20 = arith.constant 0 : index
    %c7_21 = arith.constant 7 : index
    %c0_22 = arith.constant 0 : index
    %8 = vector.load %arg9[%c0_19, %c0_20, %c7_21, %c0_22] : memref<2x18x32x4xf32, #tpu.memory_space<vmem>>, vector<2x16x16x4xf32>
    %9 = vector.shape_cast %8 : vector<2x16x16x4xf32> to vector<512x4xf32>
    %c0_23 = arith.constant 0 : index
    %c0_24 = arith.constant 0 : index
    %10 = vector.load %arg11[%c0_23, %c0_24] : memref<512x36xf32, #tpu.memory_space<vmem>>, vector<512x4xf32>
    tpu.vector_store %arg11[%c0_23, %c0_24], %9 {strides = array<i32>} : memref<512x36xf32, #tpu.memory_space<vmem>>, vector<512x4xf32>,
    %c0_25 = arith.constant 0 : index
    %c0_26 = arith.constant 0 : index
    %c8_27 = arith.constant 8 : index
    %c0_28 = arith.constant 0 : index
    %11 = vector.load %arg9[%c0_25, %c0_26, %c8_27, %c0_28] : memref<2x18x32x4xf32, #tpu.memory_space<vmem>>, vector<2x16x16x4xf32>
    %12 = vector.shape_cast %11 : vector<2x16x16x4xf32> to vector<512x4xf32>
    %c0_29 = arith.constant 0 : index
    %c4 = arith.constant 4 : index
    %13 = vector.load %arg11[%c0_29, %c4] : memref<512x36xf32, #tpu.memory_space<vmem>>, vector<512x4xf32>
    tpu.vector_store %arg11[%c0_29, %c4], %12 {strides = array<i32>} : memref<512x36xf32, #tpu.memory_space<vmem>>, vector<512x4xf32>,
    %c0_30 = arith.constant 0 : index
    %c0_31 = arith.constant 0 : index
    %c9 = arith.constant 9 : index
    %c0_32 = arith.constant 0 : index
    %14 = vector.load %arg9[%c0_30, %c0_31, %c9, %c0_32] : memref<2x18x32x4xf32, #tpu.memory_space<vmem>>, vector<2x16x16x4xf32>
    %15 = vector.shape_cast %14 : vector<2x16x16x4xf32> to vector<512x4xf32>
    %c0_33 = arith.constant 0 : index
    %c8_34 = arith.constant 8 : index
    %16 = vector.load %arg11[%c0_33, %c8_34] : memref<512x36xf32, #tpu.memory_space<vmem>>, vector<512x4xf32>
    tpu.vector_store %arg11[%c0_33, %c8_34], %15 {strides = array<i32>} : memref<512x36xf32, #tpu.memory_space<vmem>>, vector<512x4xf32>,
    %c0_35 = arith.constant 0 : index
    %c1_36 = arith.constant 1 : index
    %c7_37 = arith.constant 7 : index
    %c0_38 = arith.constant 0 : index
    %17 = vector.load %arg9[%c0_35, %c1_36, %c7_37, %c0_38] : memref<2x18x32x4xf32, #tpu.memory_space<vmem>>, vector<2x16x16x4xf32>
    %18 = vector.shape_cast %17 : vector<2x16x16x4xf32> to vector<512x4xf32>
    %c0_39 = arith.constant 0 : index
    %c12 = arith.constant 12 : index
    %19 = vector.load %arg11[%c0_39, %c12] : memref<512x36xf32, #tpu.memory_space<vmem>>, vector<512x4xf32>
    tpu.vector_store %arg11[%c0_39, %c12], %18 {strides = array<i32>} : memref<512x36xf32, #tpu.memory_space<vmem>>, vector<512x4xf32>,
    %c0_40 = arith.constant 0 : index
    %c1_41 = arith.constant 1 : index
    %c8_42 = arith.constant 8 : index
    %c0_43 = arith.constant 0 : index
    %20 = vector.load %arg9[%c0_40, %c1_41, %c8_42, %c0_43] : memref<2x18x32x4xf32, #tpu.memory_space<vmem>>, vector<2x16x16x4xf32>
    %21 = vector.shape_cast %20 : vector<2x16x16x4xf32> to vector<512x4xf32>
    %c0_44 = arith.constant 0 : index
    %c16 = arith.constant 16 : index
    %22 = vector.load %arg11[%c0_44, %c16] : memref<512x36xf32, #tpu.memory_space<vmem>>, vector<512x4xf32>
    tpu.vector_store %arg11[%c0_44, %c16], %21 {strides = array<i32>} : memref<512x36xf32, #tpu.memory_space<vmem>>, vector<512x4xf32>,
    %c0_45 = arith.constant 0 : index
    %c1_46 = arith.constant 1 : index
    %c9_47 = arith.constant 9 : index
    %c0_48 = arith.constant 0 : index
    %23 = vector.load %arg9[%c0_45, %c1_46, %c9_47, %c0_48] : memref<2x18x32x4xf32, #tpu.memory_space<vmem>>, vector<2x16x16x4xf32>
    %24 = vector.shape_cast %23 : vector<2x16x16x4xf32> to vector<512x4xf32>
    %c0_49 = arith.constant 0 : index
    %c20 = arith.constant 20 : index
    %25 = vector.load %arg11[%c0_49, %c20] : memref<512x36xf32, #tpu.memory_space<vmem>>, vector<512x4xf32>
    tpu.vector_store %arg11[%c0_49, %c20], %24 {strides = array<i32>} : memref<512x36xf32, #tpu.memory_space<vmem>>, vector<512x4xf32>,
    %c0_50 = arith.constant 0 : index
    %c2 = arith.constant 2 : index
    %c7_51 = arith.constant 7 : index
    %c0_52 = arith.constant 0 : index
    %26 = vector.load %arg9[%c0_50, %c2, %c7_51, %c0_52] : memref<2x18x32x4xf32, #tpu.memory_space<vmem>>, vector<2x16x16x4xf32>
    %27 = vector.shape_cast %26 : vector<2x16x16x4xf32> to vector<512x4xf32>
    %c0_53 = arith.constant 0 : index
    %c24_54 = arith.constant 24 : index
    %28 = vector.load %arg11[%c0_53, %c24_54] : memref<512x36xf32, #tpu.memory_space<vmem>>, vector<512x4xf32>
    tpu.vector_store %arg11[%c0_53, %c24_54], %27 {strides = array<i32>} : memref<512x36xf32, #tpu.memory_space<vmem>>, vector<512x4xf32>,
    %c0_55 = arith.constant 0 : index
    %c2_56 = arith.constant 2 : index
    %c8_57 = arith.constant 8 : index
    %c0_58 = arith.constant 0 : index
    %29 = vector.load %arg9[%c0_55, %c2_56, %c8_57, %c0_58] : memref<2x18x32x4xf32, #tpu.memory_space<vmem>>, vector<2x16x16x4xf32>
    %30 = vector.shape_cast %29 : vector<2x16x16x4xf32> to vector<512x4xf32>
    %c0_59 = arith.constant 0 : index
    %c28 = arith.constant 28 : index
    %31 = vector.load %arg11[%c0_59, %c28] : memref<512x36xf32, #tpu.memory_space<vmem>>, vector<512x4xf32>
    tpu.vector_store %arg11[%c0_59, %c28], %30 {strides = array<i32>} : memref<512x36xf32, #tpu.memory_space<vmem>>, vector<512x4xf32>,
    %c0_60 = arith.constant 0 : index
    %c2_61 = arith.constant 2 : index
    %c9_62 = arith.constant 9 : index
    %c0_63 = arith.constant 0 : index
    %32 = vector.load %arg9[%c0_60, %c2_61, %c9_62, %c0_63] : memref<2x18x32x4xf32, #tpu.memory_space<vmem>>, vector<2x16x16x4xf32>
    %33 = vector.shape_cast %32 : vector<2x16x16x4xf32> to vector<512x4xf32>
    %c0_64 = arith.constant 0 : index
    %c32 = arith.constant 32 : index
    %34 = vector.load %arg11[%c0_64, %c32] : memref<512x36xf32, #tpu.memory_space<vmem>>, vector<512x4xf32>
    tpu.vector_store %arg11[%c0_64, %c32], %33 {strides = array<i32>} : memref<512x36xf32, #tpu.memory_space<vmem>>, vector<512x4xf32>,
    %c0_65 = arith.constant 0 : index
    %c0_66 = arith.constant 0 : index
    %35 = vector.load %arg11[%c0_65, %c0_66] : memref<512x36xf32, #tpu.memory_space<vmem>>, vector<512x36xf32>
    %c0_67 = arith.constant 0 : index
    %c0_68 = arith.constant 0 : index
    %36 = vector.load %arg2[%c0_67, %c0_68] : memref<36x8xf32, #tpu.memory_space<vmem>>, vector<36x8xf32>
    %cst_69 = arith.constant dense<0.000000e+00> : vector<512x8xf32>
    %37 = tpu.matmul %35, %36, %cst_69 {dimension_numbers = #tpu.dot_dimension_numbers<[1], [0], [0], [1], [0, 0, 1, 1], [], []>} : vector<512x36xf32>, vector<36x8xf32>, vector<512x8xf32> -> vector<512x8xf32>
    %c0_70 = arith.constant 0 : index
    %c0_71 = arith.constant 0 : index
    %38 = vector.load %arg3[%c0_70, %c0_71] : memref<1x8xf32, #tpu.memory_space<vmem>>, vector<1x8xf32>
    %39 = vector.broadcast %38 : vector<1x8xf32> to vector<512x8xf32>
    %40 = arith.addf %37, %39 : vector<512x8xf32>
    %cst_72 = arith.constant 0.000000e+00 : f32
    %41 = vector.broadcast %cst_72 : f32 to vector<512x8xf32>
    %42 = arith.maximumf %40, %41 : vector<512x8xf32>
    %43 = vector.shape_cast %42 : vector<512x8xf32> to vector<2x16x16x8xf32>
    %cst_73 = arith.constant 0.000000e+00 : f32
    %44 = vector.broadcast %cst_73 : f32 to vector<2x1x18x8xf32>
    %c0_74 = arith.constant 0 : index
    %c0_75 = arith.constant 0 : index
    %c7_76 = arith.constant 7 : index
    %c0_77 = arith.constant 0 : index
    %45 = vector.load %arg10[%c0_74, %c0_75, %c7_76, %c0_77] : memref<2x18x32x8xf32, #tpu.memory_space<vmem>>, vector<2x1x18x8xf32>
    tpu.vector_store %arg10[%c0_74, %c0_75, %c7_76, %c0_77], %44 {strides = array<i32>} : memref<2x18x32x8xf32, #tpu.memory_space<vmem>>, vector<2x1x18x8xf32>,
    %c0_78 = arith.constant 0 : index
    %c17_79 = arith.constant 17 : index
    %c7_80 = arith.constant 7 : index
    %c0_81 = arith.constant 0 : index
    %46 = vector.load %arg10[%c0_78, %c17_79, %c7_80, %c0_81] : memref<2x18x32x8xf32, #tpu.memory_space<vmem>>, vector<2x1x18x8xf32>
    tpu.vector_store %arg10[%c0_78, %c17_79, %c7_80, %c0_81], %44 {strides = array<i32>} : memref<2x18x32x8xf32, #tpu.memory_space<vmem>>, vector<2x1x18x8xf32>,
    %cst_82 = arith.constant 0.000000e+00 : f32
    %47 = vector.broadcast %cst_82 : f32 to vector<2x16x1x8xf32>
    %c0_83 = arith.constant 0 : index
    %c1_84 = arith.constant 1 : index
    %c7_85 = arith.constant 7 : index
    %c0_86 = arith.constant 0 : index
    %48 = vector.load %arg10[%c0_83, %c1_84, %c7_85, %c0_86] : memref<2x18x32x8xf32, #tpu.memory_space<vmem>>, vector<2x16x1x8xf32>
    tpu.vector_store %arg10[%c0_83, %c1_84, %c7_85, %c0_86], %47 {strides = array<i32>} : memref<2x18x32x8xf32, #tpu.memory_space<vmem>>, vector<2x16x1x8xf32>,
    %c0_87 = arith.constant 0 : index
    %c1_88 = arith.constant 1 : index
    %c24_89 = arith.constant 24 : index
    %c0_90 = arith.constant 0 : index
    %49 = vector.load %arg10[%c0_87, %c1_88, %c24_89, %c0_90] : memref<2x18x32x8xf32, #tpu.memory_space<vmem>>, vector<2x16x1x8xf32>
    tpu.vector_store %arg10[%c0_87, %c1_88, %c24_89, %c0_90], %47 {strides = array<i32>} : memref<2x18x32x8xf32, #tpu.memory_space<vmem>>, vector<2x16x1x8xf32>,
    %c0_91 = arith.constant 0 : index
    %c1_92 = arith.constant 1 : index
    %c8_93 = arith.constant 8 : index
    %c0_94 = arith.constant 0 : index
    %50 = vector.load %arg10[%c0_91, %c1_92, %c8_93, %c0_94] : memref<2x18x32x8xf32, #tpu.memory_space<vmem>>, vector<2x16x16x8xf32>
    tpu.vector_store %arg10[%c0_91, %c1_92, %c8_93, %c0_94], %43 {strides = array<i32>} : memref<2x18x32x8xf32, #tpu.memory_space<vmem>>, vector<2x16x16x8xf32>,
    %c0_95 = arith.constant 0 : index
    %c0_96 = arith.constant 0 : index
    %c7_97 = arith.constant 7 : index
    %c0_98 = arith.constant 0 : index
    %51 = vector.load %arg10[%c0_95, %c0_96, %c7_97, %c0_98] : memref<2x18x32x8xf32, #tpu.memory_space<vmem>>, vector<2x16x16x8xf32>
    %52 = vector.shape_cast %51 : vector<2x16x16x8xf32> to vector<512x8xf32>
    %c0_99 = arith.constant 0 : index
    %c0_100 = arith.constant 0 : index
    %53 = vector.load %arg12[%c0_99, %c0_100] : memref<512x72xf32, #tpu.memory_space<vmem>>, vector<512x8xf32>
    tpu.vector_store %arg12[%c0_99, %c0_100], %52 {strides = array<i32>} : memref<512x72xf32, #tpu.memory_space<vmem>>, vector<512x8xf32>,
    %c0_101 = arith.constant 0 : index
    %c0_102 = arith.constant 0 : index
    %c8_103 = arith.constant 8 : index
    %c0_104 = arith.constant 0 : index
    %54 = vector.load %arg10[%c0_101, %c0_102, %c8_103, %c0_104] : memref<2x18x32x8xf32, #tpu.memory_space<vmem>>, vector<2x16x16x8xf32>
    %55 = vector.shape_cast %54 : vector<2x16x16x8xf32> to vector<512x8xf32>
    %c0_105 = arith.constant 0 : index
    %c8_106 = arith.constant 8 : index
    %56 = vector.load %arg12[%c0_105, %c8_106] : memref<512x72xf32, #tpu.memory_space<vmem>>, vector<512x8xf32>
    tpu.vector_store %arg12[%c0_105, %c8_106], %55 {strides = array<i32>} : memref<512x72xf32, #tpu.memory_space<vmem>>, vector<512x8xf32>,
    %c0_107 = arith.constant 0 : index
    %c0_108 = arith.constant 0 : index
    %c9_109 = arith.constant 9 : index
    %c0_110 = arith.constant 0 : index
    %57 = vector.load %arg10[%c0_107, %c0_108, %c9_109, %c0_110] : memref<2x18x32x8xf32, #tpu.memory_space<vmem>>, vector<2x16x16x8xf32>
    %58 = vector.shape_cast %57 : vector<2x16x16x8xf32> to vector<512x8xf32>
    %c0_111 = arith.constant 0 : index
    %c16_112 = arith.constant 16 : index
    %59 = vector.load %arg12[%c0_111, %c16_112] : memref<512x72xf32, #tpu.memory_space<vmem>>, vector<512x8xf32>
    tpu.vector_store %arg12[%c0_111, %c16_112], %58 {strides = array<i32>} : memref<512x72xf32, #tpu.memory_space<vmem>>, vector<512x8xf32>,
    %c0_113 = arith.constant 0 : index
    %c1_114 = arith.constant 1 : index
    %c7_115 = arith.constant 7 : index
    %c0_116 = arith.constant 0 : index
    %60 = vector.load %arg10[%c0_113, %c1_114, %c7_115, %c0_116] : memref<2x18x32x8xf32, #tpu.memory_space<vmem>>, vector<2x16x16x8xf32>
    %61 = vector.shape_cast %60 : vector<2x16x16x8xf32> to vector<512x8xf32>
    %c0_117 = arith.constant 0 : index
    %c24_118 = arith.constant 24 : index
    %62 = vector.load %arg12[%c0_117, %c24_118] : memref<512x72xf32, #tpu.memory_space<vmem>>, vector<512x8xf32>
    tpu.vector_store %arg12[%c0_117, %c24_118], %61 {strides = array<i32>} : memref<512x72xf32, #tpu.memory_space<vmem>>, vector<512x8xf32>,
    %c0_119 = arith.constant 0 : index
    %c1_120 = arith.constant 1 : index
    %c8_121 = arith.constant 8 : index
    %c0_122 = arith.constant 0 : index
    %63 = vector.load %arg10[%c0_119, %c1_120, %c8_121, %c0_122] : memref<2x18x32x8xf32, #tpu.memory_space<vmem>>, vector<2x16x16x8xf32>
    %64 = vector.shape_cast %63 : vector<2x16x16x8xf32> to vector<512x8xf32>
    %c0_123 = arith.constant 0 : index
    %c32_124 = arith.constant 32 : index
    %65 = vector.load %arg12[%c0_123, %c32_124] : memref<512x72xf32, #tpu.memory_space<vmem>>, vector<512x8xf32>
    tpu.vector_store %arg12[%c0_123, %c32_124], %64 {strides = array<i32>} : memref<512x72xf32, #tpu.memory_space<vmem>>, vector<512x8xf32>,
    %c0_125 = arith.constant 0 : index
    %c1_126 = arith.constant 1 : index
    %c9_127 = arith.constant 9 : index
    %c0_128 = arith.constant 0 : index
    %66 = vector.load %arg10[%c0_125, %c1_126, %c9_127, %c0_128] : memref<2x18x32x8xf32, #tpu.memory_space<vmem>>, vector<2x16x16x8xf32>
    %67 = vector.shape_cast %66 : vector<2x16x16x8xf32> to vector<512x8xf32>
    %c0_129 = arith.constant 0 : index
    %c40 = arith.constant 40 : index
    %68 = vector.load %arg12[%c0_129, %c40] : memref<512x72xf32, #tpu.memory_space<vmem>>, vector<512x8xf32>
    tpu.vector_store %arg12[%c0_129, %c40], %67 {strides = array<i32>} : memref<512x72xf32, #tpu.memory_space<vmem>>, vector<512x8xf32>,
    %c0_130 = arith.constant 0 : index
    %c2_131 = arith.constant 2 : index
    %c7_132 = arith.constant 7 : index
    %c0_133 = arith.constant 0 : index
    %69 = vector.load %arg10[%c0_130, %c2_131, %c7_132, %c0_133] : memref<2x18x32x8xf32, #tpu.memory_space<vmem>>, vector<2x16x16x8xf32>
    %70 = vector.shape_cast %69 : vector<2x16x16x8xf32> to vector<512x8xf32>
    %c0_134 = arith.constant 0 : index
    %c48 = arith.constant 48 : index
    %71 = vector.load %arg12[%c0_134, %c48] : memref<512x72xf32, #tpu.memory_space<vmem>>, vector<512x8xf32>
    tpu.vector_store %arg12[%c0_134, %c48], %70 {strides = array<i32>} : memref<512x72xf32, #tpu.memory_space<vmem>>, vector<512x8xf32>,
    %c0_135 = arith.constant 0 : index
    %c2_136 = arith.constant 2 : index
    %c8_137 = arith.constant 8 : index
    %c0_138 = arith.constant 0 : index
    %72 = vector.load %arg10[%c0_135, %c2_136, %c8_137, %c0_138] : memref<2x18x32x8xf32, #tpu.memory_space<vmem>>, vector<2x16x16x8xf32>
    %73 = vector.shape_cast %72 : vector<2x16x16x8xf32> to vector<512x8xf32>
    %c0_139 = arith.constant 0 : index
    %c56 = arith.constant 56 : index
    %74 = vector.load %arg12[%c0_139, %c56] : memref<512x72xf32, #tpu.memory_space<vmem>>, vector<512x8xf32>
    tpu.vector_store %arg12[%c0_139, %c56], %73 {strides = array<i32>} : memref<512x72xf32, #tpu.memory_space<vmem>>, vector<512x8xf32>,
    %c0_140 = arith.constant 0 : index
    %c2_141 = arith.constant 2 : index
    %c9_142 = arith.constant 9 : index
    %c0_143 = arith.constant 0 : index
    %75 = vector.load %arg10[%c0_140, %c2_141, %c9_142, %c0_143] : memref<2x18x32x8xf32, #tpu.memory_space<vmem>>, vector<2x16x16x8xf32>
    %76 = vector.shape_cast %75 : vector<2x16x16x8xf32> to vector<512x8xf32>
    %c0_144 = arith.constant 0 : index
    %c64 = arith.constant 64 : index
    %77 = vector.load %arg12[%c0_144, %c64] : memref<512x72xf32, #tpu.memory_space<vmem>>, vector<512x8xf32>
    tpu.vector_store %arg12[%c0_144, %c64], %76 {strides = array<i32>} : memref<512x72xf32, #tpu.memory_space<vmem>>, vector<512x8xf32>,
    %c0_145 = arith.constant 0 : index
    %c0_146 = arith.constant 0 : index
    %78 = vector.load %arg12[%c0_145, %c0_146] : memref<512x72xf32, #tpu.memory_space<vmem>>, vector<512x72xf32>
    %c0_147 = arith.constant 0 : index
    %c0_148 = arith.constant 0 : index
    %79 = vector.load %arg4[%c0_147, %c0_148] : memref<72x16xf32, #tpu.memory_space<vmem>>, vector<72x16xf32>
    %cst_149 = arith.constant dense<0.000000e+00> : vector<512x16xf32>
    %80 = tpu.matmul %78, %79, %cst_149 {dimension_numbers = #tpu.dot_dimension_numbers<[1], [0], [0], [1], [0, 0, 1, 1], [], []>} : vector<512x72xf32>, vector<72x16xf32>, vector<512x16xf32> -> vector<512x16xf32>
    %c0_150 = arith.constant 0 : index
    %c0_151 = arith.constant 0 : index
    %81 = vector.load %arg5[%c0_150, %c0_151] : memref<1x16xf32, #tpu.memory_space<vmem>>, vector<1x16xf32>
    %82 = vector.broadcast %81 : vector<1x16xf32> to vector<512x16xf32>
    %83 = arith.addf %80, %82 : vector<512x16xf32>
    %cst_152 = arith.constant 0.000000e+00 : f32
    %84 = vector.broadcast %cst_152 : f32 to vector<512x16xf32>
    %85 = arith.maximumf %83, %84 : vector<512x16xf32>
    %86 = vector.shape_cast %85 : vector<512x16xf32> to vector<2x256x16xf32>
    %cst_153 = arith.constant dense<0.000000e+00> : vector<2x16xf32>
    %87 = vector.multi_reduction <add>, %86, %cst_153 [1] : vector<2x256x16xf32> to vector<2x16xf32>
    %cst_154 = arith.constant 2.560000e+02 : f32
    %88 = vector.broadcast %cst_154 : f32 to vector<2x16xf32>
    %89 = arith.divf %87, %88 : vector<2x16xf32>
    %c0_155 = arith.constant 0 : index
    %c0_156 = arith.constant 0 : index
    %90 = vector.load %arg6[%c0_155, %c0_156] : memref<16x10xf32, #tpu.memory_space<vmem>>, vector<16x10xf32>
    %cst_157 = arith.constant dense<0.000000e+00> : vector<2x10xf32>
    %91 = tpu.matmul %89, %90, %cst_157 {dimension_numbers = #tpu.dot_dimension_numbers<[1], [0], [0], [1], [0, 0, 1, 1], [], []>} : vector<2x16xf32>, vector<16x10xf32>, vector<2x10xf32> -> vector<2x10xf32>
    %c0_158 = arith.constant 0 : index
    %c0_159 = arith.constant 0 : index
    %92 = vector.load %arg7[%c0_158, %c0_159] : memref<1x10xf32, #tpu.memory_space<vmem>>, vector<1x10xf32>
    %93 = vector.broadcast %92 : vector<1x10xf32> to vector<2x10xf32>
    %94 = arith.addf %91, %93 : vector<2x10xf32>
    %c0_160 = arith.constant 0 : index
    %c0_161 = arith.constant 0 : index
    %95 = vector.load %arg8[%c0_160, %c0_161] : memref<2x10xf32, #tpu.memory_space<vmem>>, vector<2x10xf32>
    tpu.vector_store %arg8[%c0_160, %c0_161], %94 {strides = array<i32>} : memref<2x10xf32, #tpu.memory_space<vmem>>, vector<2x10xf32>,
    return
  }
  func.func @transform_0(%arg0: i32) -> (i32, i32, i32, i32) {
    %c0_i32 = arith.constant 0 : i32
    %c0_i32_0 = arith.constant 0 : i32
    %c0_i32_1 = arith.constant 0 : i32
    %c0_i32_2 = arith.constant 0 : i32
    %c0_i32_3 = arith.constant 0 : i32
    return %c0_i32, %c0_i32_0, %c0_i32_1, %c0_i32_2 : i32, i32, i32, i32
  }
  func.func @transform_1(%arg0: i32) -> (i32, i32) {
    %c0_i32 = arith.constant 0 : i32
    %c0_i32_0 = arith.constant 0 : i32
    %c0_i32_1 = arith.constant 0 : i32
    return %c0_i32, %c0_i32_0 : i32, i32
  }
  func.func @transform_2(%arg0: i32) -> (i32, i32) {
    %c0_i32 = arith.constant 0 : i32
    %c0_i32_0 = arith.constant 0 : i32
    %c0_i32_1 = arith.constant 0 : i32
    return %c0_i32, %c0_i32_0 : i32, i32
  }
  func.func @transform_3(%arg0: i32) -> (i32, i32) {
    %c0_i32 = arith.constant 0 : i32
    %c0_i32_0 = arith.constant 0 : i32
    %c0_i32_1 = arith.constant 0 : i32
    return %c0_i32, %c0_i32_0 : i32, i32
  }
  func.func @transform_4(%arg0: i32) -> (i32, i32) {
    %c0_i32 = arith.constant 0 : i32
    %c0_i32_0 = arith.constant 0 : i32
    %c0_i32_1 = arith.constant 0 : i32
    return %c0_i32, %c0_i32_0 : i32, i32
  }
  func.func @transform_5(%arg0: i32) -> (i32, i32) {
    %c0_i32 = arith.constant 0 : i32
    %c0_i32_0 = arith.constant 0 : i32
    %c0_i32_1 = arith.constant 0 : i32
    return %c0_i32, %c0_i32_0 : i32, i32
  }
  func.func @transform_6(%arg0: i32) -> (i32, i32) {
    %c0_i32 = arith.constant 0 : i32
    %c0_i32_0 = arith.constant 0 : i32
    %c0_i32_1 = arith.constant 0 : i32
    return %c0_i32, %c0_i32_0 : i32, i32
  }
  func.func @transform_7(%arg0: i32) -> (i32, i32) {
    %c0_i32 = arith.constant 0 : i32
    %c0_i32_0 = arith.constant 0 : i32
    %c0_i32_1 = arith.constant 0 : i32
    return %c0_i32, %c0_i32_0 : i32, i32
  }
}

</mosaic_0001>

<bundles_post_ra>
// kernel: deep_classifier_forward.1
= control target key start
LH: loop header
LB: loop body
LE: loop exit
PB: predicated region body
PF: predicated region fallthrough
CT: control target
= control target key end

     0   :  { %vm91_vm0 = vcmask 31744   ;;  %vm94_vm1 = vcmask 25600   ;;  %v12828_v2 = vmov 0.0   ;;  %vm107_vm2 = vcmask 24576   ;;  %s9031_s24 = smov 4   ;;  %s12820_s0 = inlined_call_operand.vmem [shape: f32[2,16,16,4], index: 0, kind: input, shape index: {}]   ;;  %s12821_s1 = inlined_call_operand.vmem [shape: f32[36,8], index: 1, kind: input, shape index: {}]   ;;  %s12822_s2 = inlined_call_operand.vmem [shape: f32[1,8], index: 2, kind: input, shape index: {}]   ;;  %s12823_s3 = inlined_call_operand.vmem [shape: f32[72,16], index: 3, kind: input, shape index: {}]   ;;  %s12824_s4 = inlined_call_operand.vmem [shape: f32[1,16], index: 4, kind: input, shape index: {}]   ;;  %s12825_s5 = inlined_call_operand.vmem [shape: f32[16,10], index: 5, kind: input, shape index: {}]   ;;  %s12826_s6 = inlined_call_operand.vmem [shape: f32[1,10], index: 6, kind: input, shape index: {}]   ;;  %s12827_s7 = inlined_call_operand.hbm [shape: f32[2,10], index: 7, kind: output, shape index: {}]  }
   0x1   :  { %v27_v0 = vld [vmem:[%s12820_s0] sm:$0xff]  ;;  %v28_v1 = vld [vmem:[%s12820_s0 + $0x8] sm:$0xff]  ;;  %92 = vst.msk [vmem:[#allocation2 + $0x7] sm:$0xff] %vm91_vm0, %v12828_v2  ;;  %93 = vst.msk [vmem:[#allocation2 + $0xf] sm:$0xff] %vm91_vm0, %v12828_v2 }
   0x2   :  { %96 = vst.msk [vmem:[#allocation2 + $0x247] sm:$0xff] %vm91_vm0, %v12828_v2  ;;  %97 = vst.msk [vmem:[#allocation2 + $0x24f] sm:$0xff] %vm91_vm0, %v12828_v2  ;;  %v29_v3 = vld [vmem:[%s12820_s0 + $0x10] sm:$0xff]  ;;  %v30_v4 = vld [vmem:[%s12820_s0 + $0x18] sm:$0xff] }
   0x3   :  { %100 = vst.msk [vmem:[#allocation2 + $0x227] sm:$0xff] %vm91_vm0, %v12828_v2  ;;  %101 = vst.msk [vmem:[#allocation2 + $0x22f] sm:$0xff] %vm91_vm0, %v12828_v2  ;;  %v31_v5 = vld [vmem:[%s12820_s0 + $0x20] sm:$0xff]  ;;  %v9128_v6 = vld [vmem:[%s12820_s0 + $0x28] sm:$0xff] }
   0x4   :  { %103 = vst.msk [vmem:[#allocation2 + $0x467] sm:$0xff] %vm91_vm0, %v12828_v2  ;;  %104 = vst.msk [vmem:[#allocation2 + $0x46f] sm:$0xff] %vm91_vm0, %v12828_v2  ;;  %v9133_v7 = vld [vmem:[%s12820_s0 + $0x30] sm:$0xff]  ;;  %v9138_v8 = vld [vmem:[%s12820_s0 + $0x38] sm:$0xff] }
   0x5   :  { %172 = vst.msk [vmem:[#allocation2 + $0x28] sm:$0xff] %vm91_vm0, %v27_v0  ;;  %173 = vst.msk [vmem:[#allocation2 + $0x30] sm:$0xff] %vm91_vm0, %v28_v1  ;;  %v35_v9 = vld [vmem:[%s12820_s0 + $0x40] sm:$0xff]  ;;  %v36_v10 = vld [vmem:[%s12820_s0 + $0x48] sm:$0xff] }
   0x6   :  { %95 = vst.msk [vmem:[#allocation2 + $0x17] sm:$0x3] %vm94_vm1, %v12828_v2  ;;  %98 = vst.msk [vmem:[#allocation2 + $0x257] sm:$0x3] %vm94_vm1, %v12828_v2  ;;  %v37_v11 = vld [vmem:[%s12820_s0 + $0x50] sm:$0xff]  ;;  %v38_v12 = vld [vmem:[%s12820_s0 + $0x58] sm:$0xff] }
   0x7   :  { %102 = vst.msk [vmem:[#allocation2 + $0x237] sm:$0x3] %vm94_vm1, %v12828_v2  ;;  %105 = vst.msk [vmem:[#allocation2 + $0x477] sm:$0x3] %vm94_vm1, %v12828_v2  ;;  %v39_v13 = vld [vmem:[%s12820_s0 + $0x60] sm:$0xff]  ;;  %v40_v14 = vld [vmem:[%s12820_s0 + $0x68] sm:$0xff] }
   0x8   :  { %174 = vst.msk [vmem:[#allocation2 + $0x48] sm:$0xff] %vm91_vm0, %v29_v3  ;;  %175 = vst.msk [vmem:[#allocation2 + $0x50] sm:$0xff] %vm91_vm0, %v30_v4  ;;  %v41_v15 = vld [vmem:[%s12820_s0 + $0x70] sm:$0xff]  ;;  %v42_v16 = vld [vmem:[%s12820_s0 + $0x78] sm:$0xff] }
   0x9   :  { %176 = vst.msk [vmem:[#allocation2 + $0x68] sm:$0xff] %vm91_vm0, %v31_v5  ;;  %177 = vst.msk [vmem:[#allocation2 + $0x70] sm:$0xff] %vm91_vm0, %v9128_v6  ;;  %v43_v17 = vld [vmem:[%s12820_s0 + $0x80] sm:$0xff]  ;;  %v44_v18 = vld [vmem:[%s12820_s0 + $0x88] sm:$0xff] }
   0xa   :  { %108 = vst.msk [vmem:[#allocation2 + $0x27] sm:$0x1] %vm107_vm2, %v12828_v2  ;;  %109 = vst.msk [vmem:[#allocation2 + $0x47] sm:$0x1] %vm107_vm2, %v12828_v2  ;;  %v45_v19 = vld [vmem:[%s12820_s0 + $0x90] sm:$0xff]  ;;  %v46_v20 = vld [vmem:[%s12820_s0 + $0x98] sm:$0xff] }
   0xb   :  { %110 = vst.msk [vmem:[#allocation2 + $0x67] sm:$0x1] %vm107_vm2, %v12828_v2  ;;  %111 = vst.msk [vmem:[#allocation2 + $0x87] sm:$0x1] %vm107_vm2, %v12828_v2  ;;  %v47_v21 = vld [vmem:[%s12820_s0 + $0xa0] sm:$0xff]  ;;  %v48_v22 = vld [vmem:[%s12820_s0 + $0xa8] sm:$0xff] }
   0xc   :  { %112 = vst.msk [vmem:[#allocation2 + $0xa7] sm:$0x1] %vm107_vm2, %v12828_v2  ;;  %113 = vst.msk [vmem:[#allocation2 + $0xc7] sm:$0x1] %vm107_vm2, %v12828_v2  ;;  %v49_v23 = vld [vmem:[%s12820_s0 + $0xb0] sm:$0xff]  ;;  %v364_v24 = vld [vmem:[#allocation2 + $0x8] sm:$0xff] }
   0xd   :  { %114 = vst.msk [vmem:[#allocation2 + $0xe7] sm:$0x1] %vm107_vm2, %v12828_v2  ;;  %115 = vst.msk [vmem:[#allocation2 + $0x107] sm:$0x1] %vm107_vm2, %v12828_v2  ;;  %v366_v25 = vld [vmem:[#allocation2 + $0x28] sm:$0xff]  ;;  %492 = vrot.lane.b32.xlu0 %v364_v24, %s9031_s24  ;;  %v365_v26 = vld [vmem:[#allocation2 + $0x10] sm:$0xff] }
   0xe   :  { %116 = vst.msk [vmem:[#allocation2 + $0x127] sm:$0x1] %vm107_vm2, %v12828_v2  ;;  %117 = vst.msk [vmem:[#allocation2 + $0x147] sm:$0x1] %vm107_vm2, %v12828_v2  ;;  %496 = vrot.lane.b32.xlu1 %v366_v25, %s9031_s24  ;;  %v367_v27 = vld [vmem:[#allocation2 + $0x30] sm:$0xff]  ;;  %v50_v31 = vld [vmem:[%s12820_s0 + $0xb8] sm:$0xff] }
   0xf   :  { %118 = vst.msk [vmem:[#allocation2 + $0x167] sm:$0x1] %vm107_vm2, %v12828_v2  ;;  %119 = vst.msk [vmem:[#allocation2 + $0x187] sm:$0x1] %vm107_vm2, %v12828_v2  ;;  %v368_v28 = vld [vmem:[#allocation2 + $0x48] sm:$0xff]  ;;  %v369_v29 = vld [vmem:[#allocation2 + $0x50] sm:$0xff] }
  0x10   :  { %120 = vst.msk [vmem:[#allocation2 + $0x1a7] sm:$0x1] %vm107_vm2, %v12828_v2  ;;  %121 = vst.msk [vmem:[#allocation2 + $0x1c7] sm:$0x1] %vm107_vm2, %v12828_v2  ;;  %v370_v30 = vld [vmem:[#allocation2 + $0x68] sm:$0xff]  ;;  %v51_v32 = vld [vmem:[%s12820_s0 + $0xc0] sm:$0xff] }
  0x11   :  { %122 = vst.msk [vmem:[#allocation2 + $0x1e7] sm:$0x1] %vm107_vm2, %v12828_v2  ;;  %123 = vst.msk [vmem:[#allocation2 + $0x207] sm:$0x1] %vm107_vm2, %v12828_v2  ;;  %494 = vrot.lane.b32.xlu0 %v365_v26, %s9031_s24  ;;  %v371_v33 = vld [vmem:[#allocation2 + $0x70] sm:$0xff]  ;;  %v52_v34 = vld [vmem:[%s12820_s0 + $0xc8] sm:$0xff] }
  0x12   :  { %124 = vst.msk [vmem:[#allocation2 + $0x267] sm:$0x1] %vm107_vm2, %v12828_v2  ;;  %125 = vst.msk [vmem:[#allocation2 + $0x287] sm:$0x1] %vm107_vm2, %v12828_v2  ;;  %498 = vrot.lane.b32.xlu1 %v367_v27, %s9031_s24  ;;  %v53_v35 = vld [vmem:[%s12820_s0 + $0xd0] sm:$0xff]  ;;  %v54_v36 = vld [vmem:[%s12820_s0 + $0xd8] sm:$0xff] }
  0x13   :  { %126 = vst.msk [vmem:[#allocation2 + $0x2a7] sm:$0x1] %vm107_vm2, %v12828_v2  ;;  %127 = vst.msk [vmem:[#allocation2 + $0x2c7] sm:$0x1] %vm107_vm2, %v12828_v2  ;;  %v55_v37 = vld [vmem:[%s12820_s0 + $0xe0] sm:$0xff]  ;;  %v56_v38 = vld [vmem:[%s12820_s0 + $0xe8] sm:$0xff] }
  0x14   :  { %128 = vst.msk [vmem:[#allocation2 + $0x2e7] sm:$0x1] %vm107_vm2, %v12828_v2  ;;  %129 = vst.msk [vmem:[#allocation2 + $0x307] sm:$0x1] %vm107_vm2, %v12828_v2  ;;  %v59_v39 = vld [vmem:[%s12820_s0 + $0x100] sm:$0xff]  ;;  %v60_v40 = vld [vmem:[%s12820_s0 + $0x108] sm:$0xff] }
  0x15   :  { %130 = vst.msk [vmem:[#allocation2 + $0x327] sm:$0x1] %vm107_vm2, %v12828_v2  ;;  %131 = vst.msk [vmem:[#allocation2 + $0x347] sm:$0x1] %vm107_vm2, %v12828_v2  ;;  %500 = vrot.lane.b32.xlu0 %v368_v28, %s9031_s24  ;;  %v61_v43 = vld [vmem:[%s12820_s0 + $0x110] sm:$0xff]  ;;  %v62_v44 = vld [vmem:[%s12820_s0 + $0x118] sm:$0xff] }
  0x16   :  { %132 = vst.msk [vmem:[#allocation2 + $0x367] sm:$0x1] %vm107_vm2, %v12828_v2  ;;  %133 = vst.msk [vmem:[#allocation2 + $0x387] sm:$0x1] %vm107_vm2, %v12828_v2  ;;  %502 = vrot.lane.b32.xlu1 %v369_v29, %s9031_s24  ;;  %v63_v45 = vld [vmem:[%s12820_s0 + $0x120] sm:$0xff]  ;;  %v64_v46 = vld [vmem:[%s12820_s0 + $0x128] sm:$0xff] }
  0x17   :  { %134 = vst.msk [vmem:[#allocation2 + $0x3a7] sm:$0x1] %vm107_vm2, %v12828_v2  ;;  %135 = vst.msk [vmem:[#allocation2 + $0x3c7] sm:$0x1] %vm107_vm2, %v12828_v2  ;;  %v65_v47 = vld [vmem:[%s12820_s0 + $0x130] sm:$0xff]  ;;  %v236_v48 = vld [vmem:[#allocation2 + $0x7] sm:$0xff] }
  0x18   :  { %136 = vst.msk [vmem:[#allocation2 + $0x3e7] sm:$0x1] %vm107_vm2, %v12828_v2  ;;  %137 = vst.msk [vmem:[#allocation2 + $0x407] sm:$0x1] %vm107_vm2, %v12828_v2  ;;  %v66_v49 = vld [vmem:[%s12820_s0 + $0x138] sm:$0xff]  ;;  %v67_v50 = vld [vmem:[%s12820_s0 + $0x140] sm:$0xff] }
  0x19   :  { %138 = vst.msk [vmem:[#allocation2 + $0x427] sm:$0x1] %vm107_vm2, %v12828_v2  ;;  %139 = vst.msk [vmem:[#allocation2 + $0x447] sm:$0x1] %vm107_vm2, %v12828_v2  ;;  %504 = vrot.lane.b32.xlu0 %v370_v30, %s9031_s24  ;;  %v68_v51 = vld [vmem:[%s12820_s0 + $0x148] sm:$0xff]  ;;  %v69_v52 = vld [vmem:[%s12820_s0 + $0x150] sm:$0xff] }
  0x1a   :  { %140 = vst.msk [vmem:[#allocation2 + $0x38] sm:$0x1] %vm107_vm2, %v12828_v2  ;;  %141 = vst.msk [vmem:[#allocation2 + $0x58] sm:$0x1] %vm107_vm2, %v12828_v2  ;;  %506 = vrot.lane.b32.xlu1 %v371_v33, %s9031_s24  ;;  %v70_v53 = vld [vmem:[%s12820_s0 + $0x158] sm:$0xff]  ;;  %v71_v54 = vld [vmem:[%s12820_s0 + $0x160] sm:$0xff] }
  0x1b   :  { %142 = vst.msk [vmem:[#allocation2 + $0x78] sm:$0x1] %vm107_vm2, %v12828_v2  ;;  %143 = vst.msk [vmem:[#allocation2 + $0x98] sm:$0x1] %vm107_vm2, %v12828_v2  ;;  %v72_v55 = vld [vmem:[%s12820_s0 + $0x168] sm:$0xff]  ;;  %v73_v56 = vld [vmem:[%s12820_s0 + $0x170] sm:$0xff] }
  0x1c   :  { %144 = vst.msk [vmem:[#allocation2 + $0xb8] sm:$0x1] %vm107_vm2, %v12828_v2  ;;  %145 = vst.msk [vmem:[#allocation2 + $0xd8] sm:$0x1] %vm107_vm2, %v12828_v2  ;;  %v74_v59 = vld [vmem:[%s12820_s0 + $0x178] sm:$0xff]  ;;  %v75_v60 = vld [vmem:[%s12820_s0 + $0x180] sm:$0xff] }
  0x1d   :  { %146 = vst.msk [vmem:[#allocation2 + $0xf8] sm:$0x1] %vm107_vm2, %v12828_v2  ;;  %147 = vst.msk [vmem:[#allocation2 + $0x118] sm:$0x1] %vm107_vm2, %v12828_v2  ;;  %v76_v0 = vld [vmem:[%s12820_s0 + $0x188] sm:$0xff]  ;;  %v77_v1 = vld [vmem:[%s12820_s0 + $0x190] sm:$0xff] }
  0x1e   :  { %148 = vst.msk [vmem:[#allocation2 + $0x138] sm:$0x1] %vm107_vm2, %v12828_v2  ;;  %149 = vst.msk [vmem:[#allocation2 + $0x158] sm:$0x1] %vm107_vm2, %v12828_v2  ;;  %v78_v4 = vld [vmem:[%s12820_s0 + $0x198] sm:$0xff]  ;;  %v79_v5 = vld [vmem:[%s12820_s0 + $0x1a0] sm:$0xff] }
  0x1f   :  { %150 = vst.msk [vmem:[#allocation2 + $0x178] sm:$0x1] %vm107_vm2, %v12828_v2  ;;  %151 = vst.msk [vmem:[#allocation2 + $0x198] sm:$0x1] %vm107_vm2, %v12828_v2  ;;  %v80_v6 = vld [vmem:[%s12820_s0 + $0x1a8] sm:$0xff] }
  0x20   :  { %152 = vst.msk [vmem:[#allocation2 + $0x1b8] sm:$0x1] %vm107_vm2, %v12828_v2  ;;  %153 = vst.msk [vmem:[#allocation2 + $0x1d8] sm:$0x1] %vm107_vm2, %v12828_v2 }
  0x21   :  { %154 = vst.msk [vmem:[#allocation2 + $0x1f8] sm:$0x1] %vm107_vm2, %v12828_v2  ;;  %155 = vst.msk [vmem:[#allocation2 + $0x218] sm:$0x1] %vm107_vm2, %v12828_v2 }
  0x22   :  { %156 = vst.msk [vmem:[#allocation2 + $0x278] sm:$0x1] %vm107_vm2, %v12828_v2  ;;  %157 = vst.msk [vmem:[#allocation2 + $0x298] sm:$0x1] %vm107_vm2, %v12828_v2 }
  0x23   :  { %158 = vst.msk [vmem:[#allocation2 + $0x2b8] sm:$0x1] %vm107_vm2, %v12828_v2  ;;  %159 = vst.msk [vmem:[#allocation2 + $0x2d8] sm:$0x1] %vm107_vm2, %v12828_v2 }
  0x24   :  { %160 = vst.msk [vmem:[#allocation2 + $0x2f8] sm:$0x1] %vm107_vm2, %v12828_v2  ;;  %161 = vst.msk [vmem:[#allocation2 + $0x318] sm:$0x1] %vm107_vm2, %v12828_v2 }
  0x25   :  { %162 = vst.msk [vmem:[#allocation2 + $0x338] sm:$0x1] %vm107_vm2, %v12828_v2  ;;  %163 = vst.msk [vmem:[#allocation2 + $0x358] sm:$0x1] %vm107_vm2, %v12828_v2 }
  0x26   :  { %164 = vst.msk [vmem:[#allocation2 + $0x378] sm:$0x1] %vm107_vm2, %v12828_v2  ;;  %165 = vst.msk [vmem:[#allocation2 + $0x398] sm:$0x1] %vm107_vm2, %v12828_v2 }
  0x27   :  { %166 = vst.msk [vmem:[#allocation2 + $0x3b8] sm:$0x1] %vm107_vm2, %v12828_v2  ;;  %167 = vst.msk [vmem:[#allocation2 + $0x3d8] sm:$0x1] %vm107_vm2, %v12828_v2 }
  0x28   :  { %168 = vst.msk [vmem:[#allocation2 + $0x3f8] sm:$0x1] %vm107_vm2, %v12828_v2  ;;  %169 = vst.msk [vmem:[#allocation2 + $0x418] sm:$0x1] %vm107_vm2, %v12828_v2 }
  0x29   :  { %170 = vst.msk [vmem:[#allocation2 + $0x438] sm:$0x1] %vm107_vm2, %v12828_v2  ;;  %171 = vst.msk [vmem:[#allocation2 + $0x458] sm:$0x1] %vm107_vm2, %v12828_v2 }
  0x2a   :  { %178 = vst.msk [vmem:[#allocation2 + $0x88] sm:$0xff] %vm91_vm0, %v9133_v7  ;;  %179 = vst.msk [vmem:[#allocation2 + $0x90] sm:$0xff] %vm91_vm0, %v9138_v8  ;;  %v81_v7 = vld [vmem:[%s12820_s0 + $0x1b0] sm:$0xff]  ;;  %v82_v8 = vld [vmem:[%s12820_s0 + $0x1b8] sm:$0xff] }
  0x2b   :  { %180 = vst.msk [vmem:[#allocation2 + $0xa8] sm:$0xff] %vm91_vm0, %v35_v9  ;;  %181 = vst.msk [vmem:[#allocation2 + $0xb0] sm:$0xff] %vm91_vm0, %v36_v10  ;;  %v9473_v9 = vld [vmem:[#allocation2 + $0x27] sm:$0xff] }
  0x2c   :  { %182 = vst.msk [vmem:[#allocation2 + $0xc8] sm:$0xff] %vm91_vm0, %v37_v11  ;;  %183 = vst.msk [vmem:[#allocation2 + $0xd0] sm:$0xff] %vm91_vm0, %v38_v12  ;;  %v83_v10 = vld [vmem:[%s12820_s0 + $0x1c0] sm:$0xff]  ;;  %v84_v12 = vld [vmem:[%s12820_s0 + $0x1c8] sm:$0xff] }
  0x2d   :  { %184 = vst.msk [vmem:[#allocation2 + $0xe8] sm:$0xff] %vm91_vm0, %v39_v13  ;;  %185 = vst.msk [vmem:[#allocation2 + $0xf0] sm:$0xff] %vm91_vm0, %v40_v14  ;;  %v237_v13 = vld [vmem:[#allocation2 + $0xf] sm:$0xff] }
  0x2e   :  { %186 = vst.msk [vmem:[#allocation2 + $0x108] sm:$0xff] %vm91_vm0, %v41_v15  ;;  %187 = vst.msk [vmem:[#allocation2 + $0x110] sm:$0xff] %vm91_vm0, %v42_v16  ;;  %v9484_v14 = vld [vmem:[#allocation2 + $0x2f] sm:$0xff] }
  0x2f   :  { %188 = vst.msk [vmem:[#allocation2 + $0x128] sm:$0xff] %vm91_vm0, %v43_v17  ;;  %189 = vst.msk [vmem:[#allocation2 + $0x130] sm:$0xff] %vm91_vm0, %v44_v18  ;;  %v85_v16 = vld [vmem:[%s12820_s0 + $0x1d0] sm:$0xff]  ;;  %v86_v17 = vld [vmem:[%s12820_s0 + $0x1d8] sm:$0xff] }
  0x30   :  { %190 = vst.msk [vmem:[#allocation2 + $0x148] sm:$0xff] %vm91_vm0, %v45_v19  ;;  %191 = vst.msk [vmem:[#allocation2 + $0x150] sm:$0xff] %vm91_vm0, %v46_v20  ;;  %v9500_v18 = vld [vmem:[#allocation2 + $0x47] sm:$0xff]  ;;  %v9502_v19 = vld [vmem:[#allocation2 + $0x4f] sm:$0xff] }
  0x31   :  { %192 = vst.msk [vmem:[#allocation2 + $0x168] sm:$0xff] %vm91_vm0, %v47_v21  ;;  %193 = vst.msk [vmem:[#allocation2 + $0x170] sm:$0xff] %vm91_vm0, %v48_v22  ;;  %v372_v41 = vld [vmem:[#allocation2 + $0x88] sm:$0xff]  ;;  %v373_v42 = vld [vmem:[#allocation2 + $0x90] sm:$0xff] }
  0x32   :  { %194 = vst.msk [vmem:[#allocation2 + $0x188] sm:$0xff] %vm91_vm0, %v49_v23  ;;  %195 = vst.msk [vmem:[#allocation2 + $0x190] sm:$0xff] %vm91_vm0, %v50_v31  ;;  %508 = vrot.lane.b32.xlu0 %v372_v41, %s9031_s24  ;;  %510 = vrot.lane.b32.xlu1 %v373_v42, %s9031_s24  ;;  %v374_v57 = vld [vmem:[#allocation2 + $0xa8] sm:$0xff]  ;;  %v375_v58 = vld [vmem:[#allocation2 + $0xb0] sm:$0xff] }
  0x33   :  { %196 = vst.msk [vmem:[#allocation2 + $0x1a8] sm:$0xff] %vm91_vm0, %v51_v32  ;;  %197 = vst.msk [vmem:[#allocation2 + $0x1b0] sm:$0xff] %vm91_vm0, %v52_v34  ;;  %v376_v61 = vld [vmem:[#allocation2 + $0xc8] sm:$0xff]  ;;  %v377_v62 = vld [vmem:[#allocation2 + $0xd0] sm:$0xff] }
  0x34   :  { %198 = vst.msk [vmem:[#allocation2 + $0x1c8] sm:$0xff] %vm91_vm0, %v53_v35  ;;  %199 = vst.msk [vmem:[#allocation2 + $0x1d0] sm:$0xff] %vm91_vm0, %v54_v36  ;;  %v378_v63 = vld [vmem:[#allocation2 + $0xe8] sm:$0xff]  ;;  %v379_v3 = vld [vmem:[#allocation2 + $0xf0] sm:$0xff] }
  0x35   :  { %200 = vst.msk [vmem:[#allocation2 + $0x1e8] sm:$0xff] %vm91_vm0, %v55_v37  ;;  %201 = vst.msk [vmem:[#allocation2 + $0x1f0] sm:$0xff] %vm91_vm0, %v56_v38  ;;  %v380_v11 = vld [vmem:[#allocation2 + $0x108] sm:$0xff]  ;;  %v381_v15 = vld [vmem:[#allocation2 + $0x110] sm:$0xff] }
  0x36   :  { %204 = vst.msk [vmem:[#allocation2 + $0x268] sm:$0xff] %vm91_vm0, %v59_v39  ;;  %205 = vst.msk [vmem:[#allocation2 + $0x270] sm:$0xff] %vm91_vm0, %v60_v40  ;;  %512 = vrot.lane.b32.xlu0 %v374_v57, %s9031_s24  ;;  %514 = vrot.lane.b32.xlu1 %v375_v58, %s9031_s24  ;;  %v87_v20 = vld [vmem:[%s12820_s0 + $0x1e0] sm:$0xff]  ;;  %v88_v21 = vld [vmem:[%s12820_s0 + $0x1e8] sm:$0xff] }
  0x37   :  { %206 = vst.msk [vmem:[#allocation2 + $0x288] sm:$0xff] %vm91_vm0, %v61_v43  ;;  %207 = vst.msk [vmem:[#allocation2 + $0x290] sm:$0xff] %vm91_vm0, %v62_v44  ;;  %v9515_v22 = vld [vmem:[#allocation2 + $0x67] sm:$0xff]  ;;  %v9517_v23 = vld [vmem:[#allocation2 + $0x6f] sm:$0xff] }
  0x38   :  { %208 = vst.msk [vmem:[#allocation2 + $0x2a8] sm:$0xff] %vm91_vm0, %v63_v45  ;;  %209 = vst.msk [vmem:[#allocation2 + $0x2b0] sm:$0xff] %vm91_vm0, %v64_v46  ;;  %v382_v24 = vld [vmem:[#allocation2 + $0x128] sm:$0xff]  ;;  %v383_v25 = vld [vmem:[#allocation2 + $0x130] sm:$0xff] }
  0x39   :  { %210 = vst.msk [vmem:[#allocation2 + $0x2c8] sm:$0xff] %vm91_vm0, %v65_v47  ;;  %300 = vst.msk [vmem:[#allocation4] sm:$0xff] %vm91_vm0, %v236_v48  ;;  %v9526_v26 = vld [vmem:[#allocation2 + $0x87] sm:$0xff]  ;;  %v9528_v27 = vld [vmem:[#allocation2 + $0x8f] sm:$0xff] }
  0x3a   :  { %211 = vst.msk [vmem:[#allocation2 + $0x2d0] sm:$0xff] %vm91_vm0, %v66_v49  ;;  %212 = vst.msk [vmem:[#allocation2 + $0x2e8] sm:$0xff] %vm91_vm0, %v67_v50  ;;  %516 = vrot.lane.b32.xlu0 %v376_v61, %s9031_s24  ;;  %518 = vrot.lane.b32.xlu1 %v377_v62, %s9031_s24  ;;  %v9536_v28 = vld [vmem:[#allocation2 + $0xa7] sm:$0xff]  ;;  %v385_v30 = vld [vmem:[#allocation2 + $0x150] sm:$0xff] }
  0x3b   :  { %213 = vst.msk [vmem:[#allocation2 + $0x2f0] sm:$0xff] %vm91_vm0, %v68_v51  ;;  %214 = vst.msk [vmem:[#allocation2 + $0x308] sm:$0xff] %vm91_vm0, %v69_v52  ;;  %v384_v29 = vld [vmem:[#allocation2 + $0x148] sm:$0xff]  ;;  %v387_v37 = vld [vmem:[#allocation2 + $0x170] sm:$0xff] }
  0x3c   :  { %215 = vst.msk [vmem:[#allocation2 + $0x310] sm:$0xff] %vm91_vm0, %v70_v53  ;;  %216 = vst.msk [vmem:[#allocation2 + $0x328] sm:$0xff] %vm91_vm0, %v71_v54  ;;  %v9540_v31 = vld [vmem:[#allocation2 + $0xaf] sm:$0xff]  ;;  %v9544_v32 = vld [vmem:[#allocation2 + $0xc7] sm:$0xff] }
  0x3d   :  { %217 = vst.msk [vmem:[#allocation2 + $0x330] sm:$0xff] %vm91_vm0, %v72_v55  ;;  %218 = vst.msk [vmem:[#allocation2 + $0x348] sm:$0xff] %vm91_vm0, %v73_v56  ;;  %v9548_v33 = vld [vmem:[#allocation2 + $0xcf] sm:$0xff]  ;;  %v9554_v35 = vld [vmem:[#allocation2 + $0xe7] sm:$0xff] }
  0x3e   :  { %219 = vst.msk [vmem:[#allocation2 + $0x350] sm:$0xff] %vm91_vm0, %v74_v59  ;;  %220 = vst.msk [vmem:[#allocation2 + $0x368] sm:$0xff] %vm91_vm0, %v75_v60  ;;  %520 = vrot.lane.b32.xlu0 %v378_v63, %s9031_s24  ;;  %522 = vrot.lane.b32.xlu1 %v379_v3, %s9031_s24  ;;  %v386_v34 = vld [vmem:[#allocation2 + $0x168] sm:$0xff]  ;;  %v389_v45 = vld [vmem:[#allocation2 + $0x190] sm:$0xff] }
  0x3f   :  { %221 = vst.msk [vmem:[#allocation2 + $0x370] sm:$0xff] %vm91_vm0, %v76_v0  ;;  %222 = vst.msk [vmem:[#allocation2 + $0x388] sm:$0xff] %vm91_vm0, %v77_v1  ;;  %v9556_v36 = vld [vmem:[#allocation2 + $0xef] sm:$0xff]  ;;  %v9562_v38 = vld [vmem:[#allocation2 + $0x107] sm:$0xff] }
  0x40   :  { %223 = vst.msk [vmem:[#allocation2 + $0x390] sm:$0xff] %vm91_vm0, %v78_v4  ;;  %224 = vst.msk [vmem:[#allocation2 + $0x3a8] sm:$0xff] %vm91_vm0, %v79_v5  ;;  %v9564_v39 = vld [vmem:[#allocation2 + $0x10f] sm:$0xff]  ;;  %v9570_v40 = vld [vmem:[#allocation2 + $0x127] sm:$0xff] }
  0x41   :  { %225 = vst.msk [vmem:[#allocation2 + $0x3b0] sm:$0xff] %vm91_vm0, %v80_v6  ;;  %226 = vst.msk [vmem:[#allocation2 + $0x3c8] sm:$0xff] %vm91_vm0, %v81_v7  ;;  %v9574_v41 = vld [vmem:[#allocation2 + $0x12f] sm:$0xff]  ;;  %v9580_v43 = vld [vmem:[#allocation2 + $0x147] sm:$0xff] }
  0x42   :  { %227 = vst.msk [vmem:[#allocation2 + $0x3d0] sm:$0xff] %vm91_vm0, %v82_v8  ;;  %302 = vst.msk [vmem:[#allocation4 + $0x10] sm:$0xff] %vm91_vm0, %v9473_v9  ;;  %524 = vrot.lane.b32.xlu0 %v380_v11, %s9031_s24  ;;  %526 = vrot.lane.b32.xlu1 %v381_v15, %s9031_s24  ;;  %v388_v42 = vld [vmem:[#allocation2 + $0x188] sm:$0xff]  ;;  %v391_v53 = vld [vmem:[#allocation2 + $0x1b0] sm:$0xff] }
  0x43   :  { %228 = vst.msk [vmem:[#allocation2 + $0x3e8] sm:$0xff] %vm91_vm0, %v83_v10  ;;  %229 = vst.msk [vmem:[#allocation2 + $0x3f0] sm:$0xff] %vm91_vm0, %v84_v12  ;;  %v9582_v44 = vld [vmem:[#allocation2 + $0x14f] sm:$0xff]  ;;  %v9588_v46 = vld [vmem:[#allocation2 + $0x167] sm:$0xff] }
  0x44   :  { %301 = vst.msk [vmem:[#allocation4 + $0x8] sm:$0xff] %vm91_vm0, %v237_v13  ;;  %303 = vst.msk [vmem:[#allocation4 + $0x18] sm:$0xff] %vm91_vm0, %v9484_v14  ;;  %v9590_v47 = vld [vmem:[#allocation2 + $0x16f] sm:$0xff]  ;;  %v9596_v48 = vld [vmem:[#allocation2 + $0x187] sm:$0xff] }
  0x45   :  { %230 = vst.msk [vmem:[#allocation2 + $0x408] sm:$0xff] %vm91_vm0, %v85_v16  ;;  %231 = vst.msk [vmem:[#allocation2 + $0x410] sm:$0xff] %vm91_vm0, %v86_v17  ;;  %v9600_v49 = vld [vmem:[#allocation2 + $0x18f] sm:$0xff]  ;;  %v9606_v51 = vld [vmem:[#allocation2 + $0x1a7] sm:$0xff] }
  0x46   :  { %304 = vst.msk [vmem:[#allocation4 + $0x20] sm:$0xff] %vm91_vm0, %v9500_v18  ;;  %305 = vst.msk [vmem:[#allocation4 + $0x28] sm:$0xff] %vm91_vm0, %v9502_v19  ;;  %528 = vrot.lane.b32.xlu0 %v382_v24, %s9031_s24  ;;  %530 = vrot.lane.b32.xlu1 %v383_v25, %s9031_s24  ;;  %v390_v50 = vld [vmem:[#allocation2 + $0x1a8] sm:$0xff]  ;;  %v393_v61 = vld [vmem:[#allocation2 + $0x1d0] sm:$0xff] }
  0x47   :  { %232 = vst.msk [vmem:[#allocation2 + $0x428] sm:$0xff] %vm91_vm0, %v87_v20  ;;  %233 = vst.msk [vmem:[#allocation2 + $0x430] sm:$0xff] %vm91_vm0, %v88_v21  ;;  %v9608_v52 = vld [vmem:[#allocation2 + $0x1af] sm:$0xff]  ;;  %v9614_v54 = vld [vmem:[#allocation2 + $0x1c7] sm:$0xff] }
  0x48   :  { %306 = vst.msk [vmem:[#allocation4 + $0x30] sm:$0xff] %vm91_vm0, %v9515_v22  ;;  %307 = vst.msk [vmem:[#allocation4 + $0x38] sm:$0xff] %vm91_vm0, %v9517_v23  ;;  %v9616_v55 = vld [vmem:[#allocation2 + $0x1cf] sm:$0xff]  ;;  %v9622_v56 = vld [vmem:[#allocation2 + $0x1e7] sm:$0xff] }
  0x49   :  { %308 = vst.msk [vmem:[#allocation4 + $0x40] sm:$0xff] %vm91_vm0, %v9526_v26  ;;  %309 = vst.msk [vmem:[#allocation4 + $0x48] sm:$0xff] %vm91_vm0, %v9528_v27  ;;  %v9626_v57 = vld [vmem:[#allocation2 + $0x1ef] sm:$0xff]  ;;  %v268_v59 = vld [vmem:[#allocation2 + $0x247] sm:$0xff] }
  0x4a   :  { %310 = vst.msk [vmem:[#allocation4 + $0x50] sm:$0xff] %vm91_vm0, %v9536_v28  ;;  %311 = vst.msk [vmem:[#allocation4 + $0x58] sm:$0xff] %vm91_vm0, %v9540_v31  ;;  %532 = vrot.lane.b32.xlu0 %v384_v29, %s9031_s24  ;;  %534 = vrot.lane.b32.xlu1 %v385_v30, %s9031_s24  ;;  %v392_v58 = vld [vmem:[#allocation2 + $0x1c8] sm:$0xff] }
  0x4b   :  { %312 = vst.msk [vmem:[#allocation4 + $0x60] sm:$0xff] %vm91_vm0, %v9544_v32  ;;  %313 = vst.msk [vmem:[#allocation4 + $0x68] sm:$0xff] %vm91_vm0, %v9548_v33  ;;  %v269_v60 = vld [vmem:[#allocation2 + $0x24f] sm:$0xff]  ;;  %v9634_v62 = vld [vmem:[#allocation2 + $0x267] sm:$0xff] }
  0x4c   :  { %314 = vst.msk [vmem:[#allocation4 + $0x70] sm:$0xff] %vm91_vm0, %v9554_v35  ;;  %315 = vst.msk [vmem:[#allocation4 + $0x78] sm:$0xff] %vm91_vm0, %v9556_v36 }
  0x4d   :  { %316 = vst.msk [vmem:[#allocation4 + $0x80] sm:$0xff] %vm91_vm0, %v9562_v38  ;;  %317 = vst.msk [vmem:[#allocation4 + $0x88] sm:$0xff] %vm91_vm0, %v9564_v39 }
  0x4e   :  { %318 = vst.msk [vmem:[#allocation4 + $0x90] sm:$0xff] %vm91_vm0, %v9570_v40  ;;  %536 = vrot.lane.b32.xlu0 %v386_v34, %s9031_s24  ;;  %538 = vrot.lane.b32.xlu1 %v387_v37, %s9031_s24  ;;  %319 = vst.msk [vmem:[#allocation4 + $0x98] sm:$0xff] %vm91_vm0, %v9574_v41 }
  0x4f   :  { %320 = vst.msk [vmem:[#allocation4 + $0xa0] sm:$0xff] %vm91_vm0, %v9580_v43  ;;  %321 = vst.msk [vmem:[#allocation4 + $0xa8] sm:$0xff] %vm91_vm0, %v9582_v44 }
  0x50   :  { %322 = vst.msk [vmem:[#allocation4 + $0xb0] sm:$0xff] %vm91_vm0, %v9588_v46  ;;  %323 = vst.msk [vmem:[#allocation4 + $0xb8] sm:$0xff] %vm91_vm0, %v9590_v47 }
  0x51   :  { %324 = vst.msk [vmem:[#allocation4 + $0xc0] sm:$0xff] %vm91_vm0, %v9596_v48  ;;  %325 = vst.msk [vmem:[#allocation4 + $0xc8] sm:$0xff] %vm91_vm0, %v9600_v49 }
  0x52   :  { %540 = vrot.lane.b32.xlu0 %v388_v42, %s9031_s24  ;;  %542 = vrot.lane.b32.xlu1 %v389_v45, %s9031_s24  ;;  %326 = vst.msk [vmem:[#allocation4 + $0xd0] sm:$0xff] %vm91_vm0, %v9606_v51  ;;  %327 = vst.msk [vmem:[#allocation4 + $0xd8] sm:$0xff] %vm91_vm0, %v9608_v52 }
  0x53   :  { %328 = vst.msk [vmem:[#allocation4 + $0xe0] sm:$0xff] %vm91_vm0, %v9614_v54  ;;  %329 = vst.msk [vmem:[#allocation4 + $0xe8] sm:$0xff] %vm91_vm0, %v9616_v55 }
  0x54   :  { %330 = vst.msk [vmem:[#allocation4 + $0xf0] sm:$0xff] %vm91_vm0, %v9622_v56  ;;  %331 = vst.msk [vmem:[#allocation4 + $0xf8] sm:$0xff] %vm91_vm0, %v9626_v57 }
  0x55   :  { %332 = vst.msk [vmem:[#allocation4 + $0x100] sm:$0xff] %vm91_vm0, %v268_v59  ;;  %333 = vst.msk [vmem:[#allocation4 + $0x108] sm:$0xff] %vm91_vm0, %v269_v60 }
  0x56   :  { %544 = vrot.lane.b32.xlu0 %v390_v50, %s9031_s24  ;;  %546 = vrot.lane.b32.xlu1 %v391_v53, %s9031_s24 }
  0x57   :  { %12 = vsyncpa [#allocation7], 0  ;;  %334 = vst.msk [vmem:[#allocation4 + $0x110] sm:$0xff] %vm91_vm0, %v9634_v62  ;;  %v9638_v63 = vld [vmem:[#allocation2 + $0x26f] sm:$0xff]  ;;  %v9644_v0 = vld [vmem:[#allocation2 + $0x287] sm:$0xff]  ;;  %vm684_vm3 = vcmask 64544  }
  0x58   :  { %335 = vst.msk [vmem:[#allocation4 + $0x118] sm:$0xff] %vm91_vm0, %v9638_v63  ;;  %v394_v1 = vld [vmem:[#allocation2 + $0x1e8] sm:$0xff]  ;;  %v395_v3 = vld [vmem:[#allocation2 + $0x1f0] sm:$0xff]  ;;  %336 = vst.msk [vmem:[#allocation4 + $0x120] sm:$0xff] %vm91_vm0, %v9644_v0  ;;  %s9032_s10 = smov 8   ;;  %vm1069_vm4 = vcmask 97344  }
  0x59   :  { %v9648_v4 = vld [vmem:[#allocation2 + $0x28f] sm:$0xff]  ;;  %v9654_v5 = vld [vmem:[#allocation2 + $0x2a7] sm:$0xff]  ;;  %vm1454_vm5 = vcmask 130144   ;;  %s9034_s18 = smov 16   ;;  %vm1839_vm6 = vcmask 162944   ;;  %s9035_s19 = smov 20  }
  0x5a   :  { %548 = vrot.lane.b32.xlu0 %v392_v58, %s9031_s24  ;;  %550 = vrot.lane.b32.xlu1 %v393_v61, %s9031_s24  ;;  %337 = vst.msk [vmem:[#allocation4 + $0x128] sm:$0xff] %vm91_vm0, %v9648_v4  ;;  %v396_v6 = vld [vmem:[#allocation2 + $0x248] sm:$0xff]  ;;  %v397_v7 = vld [vmem:[#allocation2 + $0x250] sm:$0xff]  ;;  %338 = vst.msk [vmem:[#allocation4 + $0x130] sm:$0xff] %vm91_vm0, %v9654_v5  ;;  %vm2224_vm7 = vcmask 195744   ;;  %s9036_s20 = smov 24  }
  0x5b   :  { %v9658_v8 = vld [vmem:[#allocation2 + $0x2af] sm:$0xff]  ;;  %v9664_v10 = vld [vmem:[#allocation2 + $0x2c7] sm:$0xff]  ;;  %vm2610_vm8 = vcmask 228544   ;;  %s9037_s21 = smov 28   ;;  %vm2995_vm9 = vcmask 261344   ;;  %vm3714_vm10 = vcmask 1043456  }
  0x5c   :  { %339 = vst.msk [vmem:[#allocation4 + $0x138] sm:$0xff] %vm91_vm0, %v9658_v8  ;;  %v398_v11 = vld [vmem:[#allocation2 + $0x268] sm:$0xff]  ;;  %v399_v12 = vld [vmem:[#allocation2 + $0x270] sm:$0xff]  ;;  %340 = vst.msk [vmem:[#allocation4 + $0x140] sm:$0xff] %vm91_vm0, %v9664_v10  ;;  %vm3380_vm11 = vcmask 294144   ;;  %vm3521_vm12 = vcmask 293888  }
  0x5d   :  { %v9668_v13 = vld [vmem:[#allocation2 + $0x2cf] sm:$0xff]  ;;  %v9674_v15 = vld [vmem:[#allocation2 + $0x2e7] sm:$0xff]  ;;  %vm4167_vm13 = vcmask 64512   ;;  %vm4170_vm14 = vcmask 58368   ;;  %vm4183_vm15 = vcmask 57344   ;;  %vm5145_vm1 = vcmask 195712  }
  0x5e   :  { %552 = vrot.lane.b32.xlu0 %v394_v1, %s9031_s24  ;;  %554 = vrot.lane.b32.xlu1 %v395_v3, %s9031_s24  ;;  %341 = vst.msk [vmem:[#allocation4 + $0x148] sm:$0xff] %vm91_vm0, %v9668_v13  ;;  %v400_v16 = vld [vmem:[#allocation2 + $0x288] sm:$0xff]  ;;  %v401_v17 = vld [vmem:[#allocation2 + $0x290] sm:$0xff]  ;;  %342 = vst.msk [vmem:[#allocation4 + $0x150] sm:$0xff] %vm91_vm0, %v9674_v15  ;;  %vm5530_vm2 = vcmask 261312   ;;  %s9040_s22 = smov 48  }
  0x5f   :  { %v9678_v20 = vld [vmem:[#allocation2 + $0x2ef] sm:$0xff]  ;;  %v9684_v21 = vld [vmem:[#allocation2 + $0x307] sm:$0xff]  ;;  %s9041_s28 = smov 56   ;;  %s9044_s15 = smov [#allocation6]  }
  0x60   :  { %343 = vst.msk [vmem:[#allocation4 + $0x158] sm:$0xff] %vm91_vm0, %v9678_v20  ;;  %v402_v24 = vld [vmem:[#allocation2 + $0x2a8] sm:$0xff]  ;;  %v403_v25 = vld [vmem:[#allocation2 + $0x2b0] sm:$0xff]  ;;  %344 = vst.msk [vmem:[#allocation4 + $0x160] sm:$0xff] %vm91_vm0, %v9684_v21  ;;  %s8478_s16 = sshll.u32 %s9044_s15, 4  ;;  %s8479_s16 = int_to_ptr.vmem [resolvable:$true] %s8478_s16 }
  0x61   :  { %v9688_v29 = vld [vmem:[#allocation2 + $0x30f] sm:$0xff]  ;;  %v9694_v30 = vld [vmem:[#allocation2 + $0x327] sm:$0xff]  ;;  %s9008_s17 = scalar_lea.vmem %s8479_s16, 32  ;;  %p9013_p1 = scmp.lt.s32.totalorder %s8479_s16, %s8479_s16 }
  0x62   :  { %556 = vrot.lane.b32.xlu0 %v396_v6, %s9031_s24  ;;  %558 = vrot.lane.b32.xlu1 %v397_v7, %s9031_s24  ;;  %345 = vst.msk [vmem:[#allocation4 + $0x168] sm:$0xff] %vm91_vm0, %v9688_v29  ;;  %v404_v34 = vld [vmem:[#allocation2 + $0x2c8] sm:$0xff]  ;;  %v405_v37 = vld [vmem:[#allocation2 + $0x2d0] sm:$0xff]  ;;  %346 = vst.msk [vmem:[#allocation4 + $0x170] sm:$0xff] %vm91_vm0, %v9694_v30  ;;  %p9009_p0 = scmp.ne.s32.totalorder %s8479_s16, %s9008_s17  ;;  %p9014_p2 = scmp.lt.s32.totalorder %s9008_s17, %s9008_s17 }
  0x63   :  { %v9698_v42 = vld [vmem:[#allocation2 + $0x32f] sm:$0xff]  ;;  %v9704_v45 = vld [vmem:[#allocation2 + $0x347] sm:$0xff] }
  0x64   :  { %347 = vst.msk [vmem:[#allocation4 + $0x178] sm:$0xff] %vm91_vm0, %v9698_v42  ;;  %v406_v50 = vld [vmem:[#allocation2 + $0x2e8] sm:$0xff]  ;;  %v407_v53 = vld [vmem:[#allocation2 + $0x2f0] sm:$0xff]  ;;  %348 = vst.msk [vmem:[#allocation4 + $0x180] sm:$0xff] %vm91_vm0, %v9704_v45  ;;  %p9015_p3 = por %p9014_p2, %p9013_p1 }
  0x65   :  { %v9708_v58 = vld [vmem:[#allocation2 + $0x34f] sm:$0xff]  ;;  %v9714_v59 = vld [vmem:[#allocation2 + $0x367] sm:$0xff] }
  0x66   :  { %560 = vrot.lane.b32.xlu0 %v398_v11, %s9031_s24  ;;  %562 = vrot.lane.b32.xlu1 %v399_v12, %s9031_s24  ;;  %349 = vst.msk [vmem:[#allocation4 + $0x188] sm:$0xff] %vm91_vm0, %v9708_v58  ;;  %v408_v60 = vld [vmem:[#allocation2 + $0x308] sm:$0xff]  ;;  %v409_v61 = vld [vmem:[#allocation2 + $0x310] sm:$0xff]  ;;  %350 = vst.msk [vmem:[#allocation4 + $0x190] sm:$0xff] %vm91_vm0, %v9714_v59  ;;  %p9016_p4 = pnand %p9015_p3, %p9009_p0 }
  0x67   :  { %v9718_v1 = vld [vmem:[#allocation2 + $0x36f] sm:$0xff]  ;;  %v9724_v3 = vld [vmem:[#allocation2 + $0x387] sm:$0xff] }
  0x68   :  { %351 = vst.msk [vmem:[#allocation4 + $0x198] sm:$0xff] %vm91_vm0, %v9718_v1  ;;  %v410_v6 = vld [vmem:[#allocation2 + $0x328] sm:$0xff]  ;;  %v411_v7 = vld [vmem:[#allocation2 + $0x330] sm:$0xff]  ;;  %352 = vst.msk [vmem:[#allocation4 + $0x1a0] sm:$0xff] %vm91_vm0, %v9724_v3 }
  0x69   :  { %v9728_v11 = vld [vmem:[#allocation2 + $0x38f] sm:$0xff]  ;;  %v9734_v12 = vld [vmem:[#allocation2 + $0x3a7] sm:$0xff] }
  0x6a   :  { %564 = vrot.lane.b32.xlu0 %v400_v16, %s9031_s24  ;;  %566 = vrot.lane.b32.xlu1 %v401_v17, %s9031_s24  ;;  %353 = vst.msk [vmem:[#allocation4 + $0x1a8] sm:$0xff] %vm91_vm0, %v9728_v11  ;;  %v412_v16 = vld [vmem:[#allocation2 + $0x348] sm:$0xff]  ;;  %v413_v17 = vld [vmem:[#allocation2 + $0x350] sm:$0xff]  ;;  %354 = vst.msk [vmem:[#allocation4 + $0x1b0] sm:$0xff] %vm91_vm0, %v9734_v12 }
  0x6b   :  { %v9778_v2 = vld [vmem:[#allocation2 + $0x42f] sm:$0xff] }
  0x6c   :  { %12851 = vst [vmem:[#allocation14_spill] sm:$0xff] %v9778_v2  ;;  %363 = vst.msk [vmem:[#allocation4 + $0x1f8] sm:$0xff] %vm91_vm0, %v9778_v2 }
  0x6e   :  { %568 = vrot.lane.b32.xlu0 %v402_v24, %s9031_s24  ;;  %570 = vrot.lane.b32.xlu1 %v403_v25, %s9031_s24  ;;  %v9738_v24 = vld [vmem:[#allocation2 + $0x3af] sm:$0xff]  ;;  %v9744_v25 = vld [vmem:[#allocation2 + $0x3c7] sm:$0xff] }
  0x6f   :  { %355 = vst.msk [vmem:[#allocation4 + $0x1b8] sm:$0xff] %vm91_vm0, %v9738_v24  ;;  %356 = vst.msk [vmem:[#allocation4 + $0x1c0] sm:$0xff] %vm91_vm0, %v9744_v25 }
  0x72   :  { %572 = vrot.lane.b32.xlu0 %v404_v34, %s9031_s24  ;;  %574 = vrot.lane.b32.xlu1 %v405_v37, %s9031_s24  ;;  %v414_v34 = vld [vmem:[#allocation2 + $0x368] sm:$0xff]  ;;  %v415_v37 = vld [vmem:[#allocation2 + $0x370] sm:$0xff] }
  0x76   :  { %576 = vrot.lane.b32.xlu0 %v406_v50, %s9031_s24  ;;  %578 = vrot.lane.b32.xlu1 %v407_v53, %s9031_s24  ;;  %v9748_v50 = vld [vmem:[#allocation2 + $0x3cf] sm:$0xff]  ;;  %v9754_v53 = vld [vmem:[#allocation2 + $0x3e7] sm:$0xff] }
  0x77   :  { %357 = vst.msk [vmem:[#allocation4 + $0x1c8] sm:$0xff] %vm91_vm0, %v9748_v50  ;;  %12846 = vst [vmem:[#allocation9_spill] sm:$0xff] %v9754_v53 }
  0x78   :  { %358 = vst.msk [vmem:[#allocation4 + $0x1d0] sm:$0xff] %vm91_vm0, %v9754_v53 }
  0x7a   :  { %580 = vrot.lane.b32.xlu0 %v408_v60, %s9031_s24  ;;  %582 = vrot.lane.b32.xlu1 %v409_v61, %s9031_s24  ;;  %v416_v60 = vld [vmem:[#allocation2 + $0x388] sm:$0xff]  ;;  %v417_v61 = vld [vmem:[#allocation2 + $0x390] sm:$0xff] }
  0x7e   :  { %584 = vrot.lane.b32.xlu0 %v410_v6, %s9031_s24  ;;  %586 = vrot.lane.b32.xlu1 %v411_v7, %s9031_s24  ;;  %v9758_v6 = vld [vmem:[#allocation2 + $0x3ef] sm:$0xff]  ;;  %v9764_v7 = vld [vmem:[#allocation2 + $0x407] sm:$0xff] }
  0x7f   :  { %12847 = vst [vmem:[#allocation10_spill] sm:$0xff] %v9758_v6  ;;  %359 = vst.msk [vmem:[#allocation4 + $0x1d8] sm:$0xff] %vm91_vm0, %v9758_v6  ;;  %v425_v6 = vld [vmem:[#allocation2 + $0x410] sm:$0xff] }
  0x80   :  { %12848 = vst [vmem:[#allocation11_spill] sm:$0xff] %v9764_v7  ;;  %360 = vst.msk [vmem:[#allocation4 + $0x1e0] sm:$0xff] %vm91_vm0, %v9764_v7  ;;  %v497_v7 = vpop.permute.xlu1 %496 }
  0x81   :  { %687 = vst.msk [vmem:[#allocation4 + $0x10] sm:$0xff] %vm684_vm3, %v497_v7 }
  0x82   :  { %588 = vrot.lane.b32.xlu0 %v412_v16, %s9031_s24  ;;  %590 = vrot.lane.b32.xlu1 %v413_v17, %s9031_s24  ;;  %v418_v16 = vld [vmem:[#allocation2 + $0x3a8] sm:$0xff]  ;;  %v419_v17 = vld [vmem:[#allocation2 + $0x3b0] sm:$0xff] }
  0x84   :  { %v499_v53 = vpop.permute.xlu1 %498 }
  0x85   :  { %688 = vst.msk [vmem:[#allocation4 + $0x18] sm:$0xff] %vm684_vm3, %v499_v53 }
  0x86   :  { %592 = vrot.lane.b32.xlu0 %v414_v34, %s9031_s24  ;;  %594 = vrot.lane.b32.xlu1 %v415_v37, %s9031_s24  ;;  %v9768_v34 = vld [vmem:[#allocation2 + $0x40f] sm:$0xff]  ;;  %v9774_v37 = vld [vmem:[#allocation2 + $0x427] sm:$0xff] }
  0x87   :  { %12849 = vst [vmem:[#allocation12_spill] sm:$0xff] %v9768_v34  ;;  %361 = vst.msk [vmem:[#allocation4 + $0x1e8] sm:$0xff] %vm91_vm0, %v9768_v34  ;;  %v423_v34 = vld [vmem:[#allocation2 + $0x3f0] sm:$0xff] }
  0x88   :  { %12850 = vst [vmem:[#allocation13_spill] sm:$0xff] %v9774_v37  ;;  %362 = vst.msk [vmem:[#allocation4 + $0x1f0] sm:$0xff] %vm91_vm0, %v9774_v37  ;;  %v424_v37 = vld [vmem:[#allocation2 + $0x408] sm:$0xff]  ;;  %v503_v7 = vpop.permute.xlu1 %502 }
  0x89   :  { %690 = vst.msk [vmem:[#allocation4 + $0x28] sm:$0xff] %vm684_vm3, %v503_v7 }
  0x8a   :  { %596 = vrot.lane.b32.xlu0 %v416_v60, %s9031_s24  ;;  %598 = vrot.lane.b32.xlu1 %v417_v61, %s9031_s24  ;;  %v420_v60 = vld [vmem:[#allocation2 + $0x3c8] sm:$0xff]  ;;  %v421_v61 = vld [vmem:[#allocation2 + $0x3d0] sm:$0xff] }
  0x8c   :  { %v507_v53 = vpop.permute.xlu1 %506 }
  0x8d   :  { %692 = vst.msk [vmem:[#allocation4 + $0x38] sm:$0xff] %vm684_vm3, %v507_v53 }
  0x8e   :  { %600 = vrot.lane.b32.xlu0 %v418_v16, %s9031_s24  ;;  %602 = vrot.lane.b32.xlu1 %v419_v17, %s9031_s24  ;;  %v422_v16 = vld [vmem:[#allocation2 + $0x3e8] sm:$0xff]  ;;  %v493_v17 = vpop.permute.xlu0 %492 }
  0x8f   :  { %685 = vst.msk [vmem:[#allocation4] sm:$0xff] %vm684_vm3, %v493_v17 }
  0x92   :  { %604 = vrot.lane.b32.xlu0 %v420_v60, %s9031_s24  ;;  %606 = vrot.lane.b32.xlu1 %v421_v61, %s9031_s24  ;;  %v495_v2 = vpop.permute.xlu0 %494  ;;  %v426_v60 = vld [vmem:[#allocation2 + $0x428] sm:$0xff]  ;;  %v427_v61 = vld [vmem:[#allocation2 + $0x430] sm:$0xff] }
  0x93   :  { %686 = vst.msk [vmem:[#allocation4 + $0x8] sm:$0xff] %vm684_vm3, %v495_v2  ;;  %v750_v2 = vld [vmem:[#allocation2 + $0x11] sm:$0xff] }
  0x96   :  { %608 = vrot.lane.b32.xlu0 %v422_v16, %s9031_s24  ;;  %610 = vrot.lane.b32.xlu1 %v423_v34, %s9031_s24  ;;  %v501_v17 = vpop.permute.xlu0 %500  ;;  %v749_v34 = vld [vmem:[#allocation2 + $0x9] sm:$0xff] }
  0x97   :  { %689 = vst.msk [vmem:[#allocation4 + $0x20] sm:$0xff] %vm684_vm3, %v501_v17 }
  0x9a   :  { %612 = vrot.lane.b32.xlu0 %v424_v37, %s9031_s24  ;;  %614 = vrot.lane.b32.xlu1 %v425_v6, %s9031_s24  ;;  %v505_v16 = vpop.permute.xlu0 %504  ;;  %v751_v6 = vld [vmem:[#allocation2 + $0x29] sm:$0xff]  ;;  %v752_v37 = vld [vmem:[#allocation2 + $0x31] sm:$0xff] }
  0x9b   :  { %691 = vst.msk [vmem:[#allocation4 + $0x30] sm:$0xff] %vm684_vm3, %v505_v16 }
  0x9e   :  { %616 = vrot.lane.b32.xlu0 %v426_v60, %s9031_s24  ;;  %618 = vrot.lane.b32.xlu1 %v427_v61, %s9031_s24  ;;  %v753_v60 = vld [vmem:[#allocation2 + $0x49] sm:$0xff]  ;;  %v754_v61 = vld [vmem:[#allocation2 + $0x51] sm:$0xff]  ;;  %s9042_s24 = smov 64  }
  0xa2   :  { %877 = vrot.lane.b32.xlu0 %v749_v34, %s9032_s10  ;;  %879 = vrot.lane.b32.xlu1 %v750_v2, %s9032_s10  ;;  %v755_v34 = vld [vmem:[#allocation2 + $0x69] sm:$0xff]  ;;  %v756_v2 = vld [vmem:[#allocation2 + $0x71] sm:$0xff] }
  0xa4   :  { %v509_v17 = vpop.permute.xlu0 %508  ;;  %v511_v7 = vpop.permute.xlu1 %510 }
  0xa5   :  { %693 = vst.msk [vmem:[#allocation4 + $0x40] sm:$0xff] %vm684_vm3, %v509_v17  ;;  %694 = vst.msk [vmem:[#allocation4 + $0x48] sm:$0xff] %vm684_vm3, %v511_v7 }
  0xa6   :  { %881 = vrot.lane.b32.xlu0 %v751_v6, %s9032_s10  ;;  %883 = vrot.lane.b32.xlu1 %v752_v37, %s9032_s10  ;;  %v757_v6 = vld [vmem:[#allocation2 + $0x89] sm:$0xff]  ;;  %v758_v37 = vld [vmem:[#allocation2 + $0x91] sm:$0xff] }
  0xa8   :  { %v513_v16 = vpop.permute.xlu0 %512  ;;  %v515_v53 = vpop.permute.xlu1 %514 }
  0xa9   :  { %695 = vst.msk [vmem:[#allocation4 + $0x50] sm:$0xff] %vm684_vm3, %v513_v16  ;;  %696 = vst.msk [vmem:[#allocation4 + $0x58] sm:$0xff] %vm684_vm3, %v515_v53 }
  0xaa   :  { %885 = vrot.lane.b32.xlu0 %v753_v60, %s9032_s10  ;;  %887 = vrot.lane.b32.xlu1 %v754_v61, %s9032_s10  ;;  %v759_v60 = vld [vmem:[#allocation2 + $0xa9] sm:$0xff]  ;;  %v760_v61 = vld [vmem:[#allocation2 + $0xb1] sm:$0xff] }
  0xac   :  { %v517_v17 = vpop.permute.xlu0 %516  ;;  %v519_v7 = vpop.permute.xlu1 %518 }
  0xad   :  { %697 = vst.msk [vmem:[#allocation4 + $0x60] sm:$0xff] %vm684_vm3, %v517_v17  ;;  %698 = vst.msk [vmem:[#allocation4 + $0x68] sm:$0xff] %vm684_vm3, %v519_v7 }
  0xae   :  { %889 = vrot.lane.b32.xlu0 %v755_v34, %s9032_s10  ;;  %891 = vrot.lane.b32.xlu1 %v756_v2, %s9032_s10  ;;  %v761_v34 = vld [vmem:[#allocation2 + $0xc9] sm:$0xff]  ;;  %v762_v2 = vld [vmem:[#allocation2 + $0xd1] sm:$0xff] }
  0xb0   :  { %v521_v16 = vpop.permute.xlu0 %520  ;;  %v523_v53 = vpop.permute.xlu1 %522 }
  0xb1   :  { %699 = vst.msk [vmem:[#allocation4 + $0x70] sm:$0xff] %vm684_vm3, %v521_v16  ;;  %700 = vst.msk [vmem:[#allocation4 + $0x78] sm:$0xff] %vm684_vm3, %v523_v53 }
  0xb2   :  { %893 = vrot.lane.b32.xlu0 %v757_v6, %s9032_s10  ;;  %895 = vrot.lane.b32.xlu1 %v758_v37, %s9032_s10  ;;  %v763_v6 = vld [vmem:[#allocation2 + $0xe9] sm:$0xff]  ;;  %v764_v37 = vld [vmem:[#allocation2 + $0xf1] sm:$0xff] }
  0xb4   :  { %v525_v17 = vpop.permute.xlu0 %524  ;;  %v527_v7 = vpop.permute.xlu1 %526 }
  0xb5   :  { %701 = vst.msk [vmem:[#allocation4 + $0x80] sm:$0xff] %vm684_vm3, %v525_v17  ;;  %702 = vst.msk [vmem:[#allocation4 + $0x88] sm:$0xff] %vm684_vm3, %v527_v7 }
  0xb6   :  { %897 = vrot.lane.b32.xlu0 %v759_v60, %s9032_s10  ;;  %899 = vrot.lane.b32.xlu1 %v760_v61, %s9032_s10  ;;  %v765_v60 = vld [vmem:[#allocation2 + $0x109] sm:$0xff]  ;;  %v766_v61 = vld [vmem:[#allocation2 + $0x111] sm:$0xff] }
  0xb8   :  { %v529_v16 = vpop.permute.xlu0 %528  ;;  %v531_v53 = vpop.permute.xlu1 %530 }
  0xb9   :  { %703 = vst.msk [vmem:[#allocation4 + $0x90] sm:$0xff] %vm684_vm3, %v529_v16  ;;  %704 = vst.msk [vmem:[#allocation4 + $0x98] sm:$0xff] %vm684_vm3, %v531_v53 }
  0xba   :  { %901 = vrot.lane.b32.xlu0 %v761_v34, %s9032_s10  ;;  %903 = vrot.lane.b32.xlu1 %v762_v2, %s9032_s10  ;;  %v767_v34 = vld [vmem:[#allocation2 + $0x129] sm:$0xff]  ;;  %v768_v2 = vld [vmem:[#allocation2 + $0x131] sm:$0xff] }
  0xbc   :  { %v533_v17 = vpop.permute.xlu0 %532  ;;  %v535_v7 = vpop.permute.xlu1 %534 }
  0xbd   :  { %705 = vst.msk [vmem:[#allocation4 + $0xa0] sm:$0xff] %vm684_vm3, %v533_v17  ;;  %706 = vst.msk [vmem:[#allocation4 + $0xa8] sm:$0xff] %vm684_vm3, %v535_v7 }
  0xbe   :  { %905 = vrot.lane.b32.xlu0 %v763_v6, %s9032_s10  ;;  %907 = vrot.lane.b32.xlu1 %v764_v37, %s9032_s10  ;;  %v769_v6 = vld [vmem:[#allocation2 + $0x149] sm:$0xff]  ;;  %v770_v37 = vld [vmem:[#allocation2 + $0x151] sm:$0xff] }
  0xc0   :  { %v537_v16 = vpop.permute.xlu0 %536  ;;  %v539_v53 = vpop.permute.xlu1 %538 }
  0xc1   :  { %707 = vst.msk [vmem:[#allocation4 + $0xb0] sm:$0xff] %vm684_vm3, %v537_v16  ;;  %708 = vst.msk [vmem:[#allocation4 + $0xb8] sm:$0xff] %vm684_vm3, %v539_v53 }
  0xc2   :  { %909 = vrot.lane.b32.xlu0 %v765_v60, %s9032_s10  ;;  %911 = vrot.lane.b32.xlu1 %v766_v61, %s9032_s10  ;;  %v771_v60 = vld [vmem:[#allocation2 + $0x169] sm:$0xff]  ;;  %v772_v61 = vld [vmem:[#allocation2 + $0x171] sm:$0xff] }
  0xc4   :  { %v541_v17 = vpop.permute.xlu0 %540  ;;  %v543_v7 = vpop.permute.xlu1 %542 }
  0xc5   :  { %709 = vst.msk [vmem:[#allocation4 + $0xc0] sm:$0xff] %vm684_vm3, %v541_v17  ;;  %710 = vst.msk [vmem:[#allocation4 + $0xc8] sm:$0xff] %vm684_vm3, %v543_v7 }
  0xc6   :  { %913 = vrot.lane.b32.xlu0 %v767_v34, %s9032_s10  ;;  %915 = vrot.lane.b32.xlu1 %v768_v2, %s9032_s10  ;;  %v773_v34 = vld [vmem:[#allocation2 + $0x189] sm:$0xff]  ;;  %v774_v2 = vld [vmem:[#allocation2 + $0x191] sm:$0xff] }
  0xc8   :  { %v545_v16 = vpop.permute.xlu0 %544  ;;  %v547_v53 = vpop.permute.xlu1 %546 }
  0xc9   :  { %711 = vst.msk [vmem:[#allocation4 + $0xd0] sm:$0xff] %vm684_vm3, %v545_v16  ;;  %712 = vst.msk [vmem:[#allocation4 + $0xd8] sm:$0xff] %vm684_vm3, %v547_v53 }
  0xca   :  { %917 = vrot.lane.b32.xlu0 %v769_v6, %s9032_s10  ;;  %919 = vrot.lane.b32.xlu1 %v770_v37, %s9032_s10  ;;  %v775_v6 = vld [vmem:[#allocation2 + $0x1a9] sm:$0xff]  ;;  %v776_v37 = vld [vmem:[#allocation2 + $0x1b1] sm:$0xff] }
  0xcc   :  { %v549_v17 = vpop.permute.xlu0 %548  ;;  %v551_v7 = vpop.permute.xlu1 %550 }
  0xcd   :  { %713 = vst.msk [vmem:[#allocation4 + $0xe0] sm:$0xff] %vm684_vm3, %v549_v17  ;;  %714 = vst.msk [vmem:[#allocation4 + $0xe8] sm:$0xff] %vm684_vm3, %v551_v7 }
  0xce   :  { %921 = vrot.lane.b32.xlu0 %v771_v60, %s9032_s10  ;;  %923 = vrot.lane.b32.xlu1 %v772_v61, %s9032_s10  ;;  %v57_v60 = vld [vmem:[%s12820_s0 + $0xf0] sm:$0xff]  ;;  %v58_v61 = vld [vmem:[%s12820_s0 + $0xf8] sm:$0xff] }
  0xcf   :  { %202 = vst.msk [vmem:[#allocation2 + $0x208] sm:$0xff] %vm91_vm0, %v57_v60  ;;  %203 = vst.msk [vmem:[#allocation2 + $0x210] sm:$0xff] %vm91_vm0, %v58_v61  ;;  %v781_v60 = vld [vmem:[#allocation2 + $0x249] sm:$0xff]  ;;  %v782_v61 = vld [vmem:[#allocation2 + $0x251] sm:$0xff] }
  0xd0   :  { %v553_v16 = vpop.permute.xlu0 %552  ;;  %v555_v53 = vpop.permute.xlu1 %554 }
  0xd1   :  { %715 = vst.msk [vmem:[#allocation4 + $0xf0] sm:$0xff] %vm684_vm3, %v553_v16  ;;  %716 = vst.msk [vmem:[#allocation4 + $0xf8] sm:$0xff] %vm684_vm3, %v555_v53 }
  0xd2   :  { %925 = vrot.lane.b32.xlu0 %v773_v34, %s9032_s10  ;;  %927 = vrot.lane.b32.xlu1 %v774_v2, %s9032_s10  ;;  %v777_v34 = vld [vmem:[#allocation2 + $0x1c9] sm:$0xff]  ;;  %v778_v2 = vld [vmem:[#allocation2 + $0x1d1] sm:$0xff] }
  0xd4   :  { %v557_v17 = vpop.permute.xlu0 %556  ;;  %v559_v7 = vpop.permute.xlu1 %558 }
  0xd5   :  { %717 = vst.msk [vmem:[#allocation4 + $0x100] sm:$0xff] %vm684_vm3, %v557_v17  ;;  %718 = vst.msk [vmem:[#allocation4 + $0x108] sm:$0xff] %vm684_vm3, %v559_v7 }
  0xd6   :  { %929 = vrot.lane.b32.xlu0 %v775_v6, %s9032_s10  ;;  %931 = vrot.lane.b32.xlu1 %v776_v37, %s9032_s10  ;;  %v779_v6 = vld [vmem:[#allocation2 + $0x1e9] sm:$0xff]  ;;  %v780_v37 = vld [vmem:[#allocation2 + $0x1f1] sm:$0xff] }
  0xd8   :  { %v561_v16 = vpop.permute.xlu0 %560  ;;  %v563_v53 = vpop.permute.xlu1 %562 }
  0xd9   :  { %719 = vst.msk [vmem:[#allocation4 + $0x110] sm:$0xff] %vm684_vm3, %v561_v16  ;;  %720 = vst.msk [vmem:[#allocation4 + $0x118] sm:$0xff] %vm684_vm3, %v563_v53 }
  0xda   :  { %933 = vrot.lane.b32.xlu0 %v777_v34, %s9032_s10  ;;  %935 = vrot.lane.b32.xlu1 %v778_v2, %s9032_s10  ;;  %v783_v34 = vld [vmem:[#allocation2 + $0x269] sm:$0xff]  ;;  %v784_v2 = vld [vmem:[#allocation2 + $0x271] sm:$0xff] }
  0xdc   :  { %v565_v17 = vpop.permute.xlu0 %564  ;;  %v567_v7 = vpop.permute.xlu1 %566 }
  0xdd   :  { %721 = vst.msk [vmem:[#allocation4 + $0x120] sm:$0xff] %vm684_vm3, %v565_v17  ;;  %722 = vst.msk [vmem:[#allocation4 + $0x128] sm:$0xff] %vm684_vm3, %v567_v7 }
  0xde   :  { %937 = vrot.lane.b32.xlu0 %v779_v6, %s9032_s10  ;;  %939 = vrot.lane.b32.xlu1 %v780_v37, %s9032_s10  ;;  %v785_v6 = vld [vmem:[#allocation2 + $0x289] sm:$0xff]  ;;  %v786_v37 = vld [vmem:[#allocation2 + $0x291] sm:$0xff] }
  0xe0   :  { %v569_v16 = vpop.permute.xlu0 %568  ;;  %v571_v53 = vpop.permute.xlu1 %570 }
  0xe1   :  { %723 = vst.msk [vmem:[#allocation4 + $0x130] sm:$0xff] %vm684_vm3, %v569_v16  ;;  %724 = vst.msk [vmem:[#allocation4 + $0x138] sm:$0xff] %vm684_vm3, %v571_v53 }
  0xe2   :  { %941 = vrot.lane.b32.xlu0 %v781_v60, %s9032_s10  ;;  %943 = vrot.lane.b32.xlu1 %v782_v61, %s9032_s10  ;;  %v787_v60 = vld [vmem:[#allocation2 + $0x2a9] sm:$0xff]  ;;  %v788_v61 = vld [vmem:[#allocation2 + $0x2b1] sm:$0xff] }
  0xe4   :  { %v573_v17 = vpop.permute.xlu0 %572  ;;  %v575_v7 = vpop.permute.xlu1 %574 }
  0xe5   :  { %725 = vst.msk [vmem:[#allocation4 + $0x140] sm:$0xff] %vm684_vm3, %v573_v17  ;;  %726 = vst.msk [vmem:[#allocation4 + $0x148] sm:$0xff] %vm684_vm3, %v575_v7 }
  0xe6   :  { %945 = vrot.lane.b32.xlu0 %v783_v34, %s9032_s10  ;;  %947 = vrot.lane.b32.xlu1 %v784_v2, %s9032_s10  ;;  %v789_v34 = vld [vmem:[#allocation2 + $0x2c9] sm:$0xff]  ;;  %v790_v2 = vld [vmem:[#allocation2 + $0x2d1] sm:$0xff] }
  0xe8   :  { %v577_v16 = vpop.permute.xlu0 %576  ;;  %v579_v53 = vpop.permute.xlu1 %578 }
  0xe9   :  { %727 = vst.msk [vmem:[#allocation4 + $0x150] sm:$0xff] %vm684_vm3, %v577_v16  ;;  %728 = vst.msk [vmem:[#allocation4 + $0x158] sm:$0xff] %vm684_vm3, %v579_v53 }
  0xea   :  { %949 = vrot.lane.b32.xlu0 %v785_v6, %s9032_s10  ;;  %951 = vrot.lane.b32.xlu1 %v786_v37, %s9032_s10  ;;  %v791_v6 = vld [vmem:[#allocation2 + $0x2e9] sm:$0xff]  ;;  %v792_v37 = vld [vmem:[#allocation2 + $0x2f1] sm:$0xff] }
  0xec   :  { %v581_v17 = vpop.permute.xlu0 %580  ;;  %v583_v7 = vpop.permute.xlu1 %582 }
  0xed   :  { %729 = vst.msk [vmem:[#allocation4 + $0x160] sm:$0xff] %vm684_vm3, %v581_v17  ;;  %730 = vst.msk [vmem:[#allocation4 + $0x168] sm:$0xff] %vm684_vm3, %v583_v7 }
  0xee   :  { %953 = vrot.lane.b32.xlu0 %v787_v60, %s9032_s10  ;;  %955 = vrot.lane.b32.xlu1 %v788_v61, %s9032_s10  ;;  %v793_v60 = vld [vmem:[#allocation2 + $0x309] sm:$0xff]  ;;  %v794_v61 = vld [vmem:[#allocation2 + $0x311] sm:$0xff] }
  0xf0   :  { %v585_v16 = vpop.permute.xlu0 %584  ;;  %v587_v53 = vpop.permute.xlu1 %586 }
  0xf1   :  { %731 = vst.msk [vmem:[#allocation4 + $0x170] sm:$0xff] %vm684_vm3, %v585_v16  ;;  %732 = vst.msk [vmem:[#allocation4 + $0x178] sm:$0xff] %vm684_vm3, %v587_v53 }
  0xf2   :  { %957 = vrot.lane.b32.xlu0 %v789_v34, %s9032_s10  ;;  %959 = vrot.lane.b32.xlu1 %v790_v2, %s9032_s10  ;;  %v795_v34 = vld [vmem:[#allocation2 + $0x329] sm:$0xff]  ;;  %v796_v2 = vld [vmem:[#allocation2 + $0x331] sm:$0xff] }
  0xf4   :  { %v589_v17 = vpop.permute.xlu0 %588  ;;  %v591_v7 = vpop.permute.xlu1 %590 }
  0xf5   :  { %733 = vst.msk [vmem:[#allocation4 + $0x180] sm:$0xff] %vm684_vm3, %v589_v17  ;;  %734 = vst.msk [vmem:[#allocation4 + $0x188] sm:$0xff] %vm684_vm3, %v591_v7 }
  0xf6   :  { %961 = vrot.lane.b32.xlu0 %v791_v6, %s9032_s10  ;;  %963 = vrot.lane.b32.xlu1 %v792_v37, %s9032_s10  ;;  %v797_v6 = vld [vmem:[#allocation2 + $0x349] sm:$0xff]  ;;  %v798_v37 = vld [vmem:[#allocation2 + $0x351] sm:$0xff] }
  0xf8   :  { %v593_v16 = vpop.permute.xlu0 %592  ;;  %v595_v53 = vpop.permute.xlu1 %594 }
  0xf9   :  { %735 = vst.msk [vmem:[#allocation4 + $0x190] sm:$0xff] %vm684_vm3, %v593_v16  ;;  %736 = vst.msk [vmem:[#allocation4 + $0x198] sm:$0xff] %vm684_vm3, %v595_v53 }
  0xfa   :  { %965 = vrot.lane.b32.xlu0 %v793_v60, %s9032_s10  ;;  %967 = vrot.lane.b32.xlu1 %v794_v61, %s9032_s10  ;;  %v799_v60 = vld [vmem:[#allocation2 + $0x369] sm:$0xff]  ;;  %v800_v61 = vld [vmem:[#allocation2 + $0x371] sm:$0xff] }
  0xfc   :  { %v597_v17 = vpop.permute.xlu0 %596  ;;  %v599_v7 = vpop.permute.xlu1 %598 }
  0xfd   :  { %737 = vst.msk [vmem:[#allocation4 + $0x1a0] sm:$0xff] %vm684_vm3, %v597_v17  ;;  %738 = vst.msk [vmem:[#allocation4 + $0x1a8] sm:$0xff] %vm684_vm3, %v599_v7 }
  0xfe   :  { %969 = vrot.lane.b32.xlu0 %v795_v34, %s9032_s10  ;;  %971 = vrot.lane.b32.xlu1 %v796_v2, %s9032_s10  ;;  %v801_v34 = vld [vmem:[#allocation2 + $0x389] sm:$0xff]  ;;  %v802_v2 = vld [vmem:[#allocation2 + $0x391] sm:$0xff] }
 0x100   :  { %v601_v16 = vpop.permute.xlu0 %600  ;;  %v603_v53 = vpop.permute.xlu1 %602 }
 0x101   :  { %739 = vst.msk [vmem:[#allocation4 + $0x1b0] sm:$0xff] %vm684_vm3, %v601_v16  ;;  %740 = vst.msk [vmem:[#allocation4 + $0x1b8] sm:$0xff] %vm684_vm3, %v603_v53 }
 0x102   :  { %973 = vrot.lane.b32.xlu0 %v797_v6, %s9032_s10  ;;  %975 = vrot.lane.b32.xlu1 %v798_v37, %s9032_s10  ;;  %v803_v6 = vld [vmem:[#allocation2 + $0x3a9] sm:$0xff]  ;;  %v804_v37 = vld [vmem:[#allocation2 + $0x3b1] sm:$0xff] }
 0x104   :  { %v605_v17 = vpop.permute.xlu0 %604  ;;  %v607_v7 = vpop.permute.xlu1 %606 }
 0x105   :  { %741 = vst.msk [vmem:[#allocation4 + $0x1c0] sm:$0xff] %vm684_vm3, %v605_v17  ;;  %742 = vst.msk [vmem:[#allocation4 + $0x1c8] sm:$0xff] %vm684_vm3, %v607_v7 }
 0x106   :  { %977 = vrot.lane.b32.xlu0 %v799_v60, %s9032_s10  ;;  %979 = vrot.lane.b32.xlu1 %v800_v61, %s9032_s10  ;;  %v805_v60 = vld [vmem:[#allocation2 + $0x3c9] sm:$0xff]  ;;  %v806_v61 = vld [vmem:[#allocation2 + $0x3d1] sm:$0xff] }
 0x108   :  { %v609_v16 = vpop.permute.xlu0 %608  ;;  %v611_v53 = vpop.permute.xlu1 %610 }
 0x109   :  { %743 = vst.msk [vmem:[#allocation4 + $0x1d0] sm:$0xff] %vm684_vm3, %v609_v16  ;;  %744 = vst.msk [vmem:[#allocation4 + $0x1d8] sm:$0xff] %vm684_vm3, %v611_v53 }
 0x10a   :  { %981 = vrot.lane.b32.xlu0 %v801_v34, %s9032_s10  ;;  %983 = vrot.lane.b32.xlu1 %v802_v2, %s9032_s10  ;;  %v807_v34 = vld [vmem:[#allocation2 + $0x3e9] sm:$0xff]  ;;  %v808_v2 = vld [vmem:[#allocation2 + $0x3f1] sm:$0xff] }
 0x10c   :  { %v613_v17 = vpop.permute.xlu0 %612  ;;  %v615_v7 = vpop.permute.xlu1 %614 }
 0x10d   :  { %745 = vst.msk [vmem:[#allocation4 + $0x1e0] sm:$0xff] %vm684_vm3, %v613_v17  ;;  %746 = vst.msk [vmem:[#allocation4 + $0x1e8] sm:$0xff] %vm684_vm3, %v615_v7 }
 0x10e   :  { %985 = vrot.lane.b32.xlu0 %v803_v6, %s9032_s10  ;;  %987 = vrot.lane.b32.xlu1 %v804_v37, %s9032_s10  ;;  %v89_v6 = vld [vmem:[%s12820_s0 + $0x1f0] sm:$0xff]  ;;  %v90_v37 = vld [vmem:[%s12820_s0 + $0x1f8] sm:$0xff]  ;;  %s9033_s0 = smov 12  }
 0x10f   :  { %234 = vst.msk [vmem:[#allocation2 + $0x448] sm:$0xff] %vm91_vm0, %v89_v6  ;;  %235 = vst.msk [vmem:[#allocation2 + $0x450] sm:$0xff] %vm91_vm0, %v90_v37  ;;  %vm4760_vm0 = vcmask 130112  }
 0x110   :  { %v617_v16 = vpop.permute.xlu0 %616  ;;  %v619_v53 = vpop.permute.xlu1 %618 }
 0x111   :  { %747 = vst.msk [vmem:[#allocation4 + $0x1f0] sm:$0xff] %vm684_vm3, %v617_v16  ;;  %748 = vst.msk [vmem:[#allocation4 + $0x1f8] sm:$0xff] %vm684_vm3, %v619_v53  ;;  %vm5915_vm3 = vcmask 326912  }
 0x112   :  { %989 = vrot.lane.b32.xlu0 %v805_v60, %s9032_s10  ;;  %991 = vrot.lane.b32.xlu1 %v806_v61, %s9032_s10  ;;  %v809_v60 = vld [vmem:[#allocation2 + $0x409] sm:$0xff]  ;;  %v810_v61 = vld [vmem:[#allocation2 + $0x411] sm:$0xff] }
 0x114   :  { %v878_v17 = vpop.permute.xlu0 %877  ;;  %v880_v7 = vpop.permute.xlu1 %879 }
 0x115   :  { %1070 = vst.msk [vmem:[#allocation4] sm:$0xff] %vm1069_vm4, %v878_v17  ;;  %1071 = vst.msk [vmem:[#allocation4 + $0x8] sm:$0xff] %vm1069_vm4, %v880_v7 }
 0x116   :  { %993 = vrot.lane.b32.xlu0 %v807_v34, %s9032_s10  ;;  %995 = vrot.lane.b32.xlu1 %v808_v2, %s9032_s10  ;;  %v811_v34 = vld [vmem:[#allocation2 + $0x429] sm:$0xff]  ;;  %v812_v2 = vld [vmem:[#allocation2 + $0x431] sm:$0xff] }
 0x118   :  { %v882_v16 = vpop.permute.xlu0 %881  ;;  %v884_v53 = vpop.permute.xlu1 %883 }
 0x119   :  { %1072 = vst.msk [vmem:[#allocation4 + $0x10] sm:$0xff] %vm1069_vm4, %v882_v16  ;;  %1073 = vst.msk [vmem:[#allocation4 + $0x18] sm:$0xff] %vm1069_vm4, %v884_v53 }
 0x11a   :  { %997 = vrot.lane.b32.xlu0 %v809_v60, %s9032_s10  ;;  %999 = vrot.lane.b32.xlu1 %v810_v61, %s9032_s10 }
 0x11c   :  { %v886_v17 = vpop.permute.xlu0 %885  ;;  %v888_v7 = vpop.permute.xlu1 %887 }
 0x11d   :  { %1074 = vst.msk [vmem:[#allocation4 + $0x20] sm:$0xff] %vm1069_vm4, %v886_v17  ;;  %1075 = vst.msk [vmem:[#allocation4 + $0x28] sm:$0xff] %vm1069_vm4, %v888_v7 }
 0x11e   :  { %1001 = vrot.lane.b32.xlu0 %v811_v34, %s9032_s10  ;;  %1003 = vrot.lane.b32.xlu1 %v812_v2, %s9032_s10 }
 0x120   :  { %v890_v6 = vpop.permute.xlu0 %889  ;;  %v892_v37 = vpop.permute.xlu1 %891 }
 0x121   :  { %1076 = vst.msk [vmem:[#allocation4 + $0x30] sm:$0xff] %vm1069_vm4, %v890_v6  ;;  %1077 = vst.msk [vmem:[#allocation4 + $0x38] sm:$0xff] %vm1069_vm4, %v892_v37 }
 0x122   :  { %1262 = vrot.lane.b32.xlu0 %v9473_v9, %s9033_s0  ;;  %1264 = vrot.lane.b32.xlu1 %v9484_v14, %s9033_s0 }
 0x124   :  { %v894_v60 = vpop.permute.xlu0 %893  ;;  %v896_v61 = vpop.permute.xlu1 %895 }
 0x125   :  { %1078 = vst.msk [vmem:[#allocation4 + $0x40] sm:$0xff] %vm1069_vm4, %v894_v60  ;;  %1079 = vst.msk [vmem:[#allocation4 + $0x48] sm:$0xff] %vm1069_vm4, %v896_v61 }
 0x126   :  { %1266 = vrot.lane.b32.xlu0 %v9500_v18, %s9033_s0  ;;  %1268 = vrot.lane.b32.xlu1 %v9502_v19, %s9033_s0 }
 0x128   :  { %v898_v16 = vpop.permute.xlu0 %897  ;;  %v900_v53 = vpop.permute.xlu1 %899 }
 0x129   :  { %1080 = vst.msk [vmem:[#allocation4 + $0x50] sm:$0xff] %vm1069_vm4, %v898_v16  ;;  %1081 = vst.msk [vmem:[#allocation4 + $0x58] sm:$0xff] %vm1069_vm4, %v900_v53  ;;  %v12856_v16 = vld [vmem:[#allocation13_spill] sm:$0xff]  ;;  %v12857_v53 = vld [vmem:[#allocation14_spill] sm:$0xff] }
 0x12a   :  { %1270 = vrot.lane.b32.xlu0 %v9515_v22, %s9033_s0  ;;  %1272 = vrot.lane.b32.xlu1 %v9517_v23, %s9033_s0 }
 0x12c   :  { %v902_v9 = vpop.permute.xlu0 %901  ;;  %v904_v14 = vpop.permute.xlu1 %903 }
 0x12d   :  { %1082 = vst.msk [vmem:[#allocation4 + $0x60] sm:$0xff] %vm1069_vm4, %v902_v9  ;;  %1083 = vst.msk [vmem:[#allocation4 + $0x68] sm:$0xff] %vm1069_vm4, %v904_v14  ;;  %v1196_v9 = vld [vmem:[#allocation2 + $0x447] sm:$0xff]  ;;  %v1197_v14 = vld [vmem:[#allocation2 + $0x44f] sm:$0xff] }
 0x12e   :  { %1274 = vrot.lane.b32.xlu0 %v9526_v26, %s9033_s0  ;;  %1276 = vrot.lane.b32.xlu1 %v9528_v27, %s9033_s0 }
 0x130   :  { %v906_v18 = vpop.permute.xlu0 %905  ;;  %v908_v19 = vpop.permute.xlu1 %907 }
 0x131   :  { %1084 = vst.msk [vmem:[#allocation4 + $0x70] sm:$0xff] %vm1069_vm4, %v906_v18  ;;  %1085 = vst.msk [vmem:[#allocation4 + $0x78] sm:$0xff] %vm1069_vm4, %v908_v19 }
 0x132   :  { %1278 = vrot.lane.b32.xlu0 %v9536_v28, %s9033_s0  ;;  %1280 = vrot.lane.b32.xlu1 %v9540_v31, %s9033_s0 }
 0x134   :  { %v910_v22 = vpop.permute.xlu0 %909  ;;  %v912_v23 = vpop.permute.xlu1 %911 }
 0x135   :  { %1086 = vst.msk [vmem:[#allocation4 + $0x80] sm:$0xff] %vm1069_vm4, %v910_v22  ;;  %1087 = vst.msk [vmem:[#allocation4 + $0x88] sm:$0xff] %vm1069_vm4, %v912_v23  ;;  %v1519_v22 = vld [vmem:[#allocation2 + $0x28] sm:$0xff]  ;;  %v1520_v23 = vld [vmem:[#allocation2 + $0x30] sm:$0xff] }
 0x136   :  { %1282 = vrot.lane.b32.xlu0 %v9544_v32, %s9033_s0  ;;  %1284 = vrot.lane.b32.xlu1 %v9548_v33, %s9033_s0 }
 0x138   :  { %v914_v26 = vpop.permute.xlu0 %913  ;;  %v916_v27 = vpop.permute.xlu1 %915 }
 0x139   :  { %1088 = vst.msk [vmem:[#allocation4 + $0x90] sm:$0xff] %vm1069_vm4, %v914_v26  ;;  %1089 = vst.msk [vmem:[#allocation4 + $0x98] sm:$0xff] %vm1069_vm4, %v916_v27 }
 0x13a   :  { %1286 = vrot.lane.b32.xlu0 %v9554_v35, %s9033_s0  ;;  %1288 = vrot.lane.b32.xlu1 %v9556_v36, %s9033_s0 }
 0x13c   :  { %v918_v28 = vpop.permute.xlu0 %917  ;;  %v920_v31 = vpop.permute.xlu1 %919 }
 0x13d   :  { %1090 = vst.msk [vmem:[#allocation4 + $0xa0] sm:$0xff] %vm1069_vm4, %v918_v28  ;;  %1091 = vst.msk [vmem:[#allocation4 + $0xa8] sm:$0xff] %vm1069_vm4, %v920_v31  ;;  %v1521_v28 = vld [vmem:[#allocation2 + $0x48] sm:$0xff]  ;;  %v1522_v31 = vld [vmem:[#allocation2 + $0x50] sm:$0xff] }
 0x13e   :  { %1290 = vrot.lane.b32.xlu0 %v9562_v38, %s9033_s0  ;;  %1292 = vrot.lane.b32.xlu1 %v9564_v39, %s9033_s0 }
 0x140   :  { %v922_v32 = vpop.permute.xlu0 %921  ;;  %v924_v33 = vpop.permute.xlu1 %923 }
 0x141   :  { %1092 = vst.msk [vmem:[#allocation4 + $0xb0] sm:$0xff] %vm1069_vm4, %v922_v32  ;;  %1093 = vst.msk [vmem:[#allocation4 + $0xb8] sm:$0xff] %vm1069_vm4, %v924_v33 }
 0x142   :  { %1294 = vrot.lane.b32.xlu0 %v9570_v40, %s9033_s0  ;;  %1296 = vrot.lane.b32.xlu1 %v9574_v41, %s9033_s0 }
 0x144   :  { %v926_v35 = vpop.permute.xlu0 %925  ;;  %v928_v36 = vpop.permute.xlu1 %927 }
 0x145   :  { %1094 = vst.msk [vmem:[#allocation4 + $0xc0] sm:$0xff] %vm1069_vm4, %v926_v35  ;;  %1095 = vst.msk [vmem:[#allocation4 + $0xc8] sm:$0xff] %vm1069_vm4, %v928_v36  ;;  %v1523_v35 = vld [vmem:[#allocation2 + $0x68] sm:$0xff]  ;;  %v1524_v36 = vld [vmem:[#allocation2 + $0x70] sm:$0xff] }
 0x146   :  { %1298 = vrot.lane.b32.xlu0 %v9580_v43, %s9033_s0  ;;  %1300 = vrot.lane.b32.xlu1 %v9582_v44, %s9033_s0 }
 0x148   :  { %v930_v38 = vpop.permute.xlu0 %929  ;;  %v932_v39 = vpop.permute.xlu1 %931 }
 0x149   :  { %1096 = vst.msk [vmem:[#allocation4 + $0xd0] sm:$0xff] %vm1069_vm4, %v930_v38  ;;  %1097 = vst.msk [vmem:[#allocation4 + $0xd8] sm:$0xff] %vm1069_vm4, %v932_v39 }
 0x14a   :  { %1302 = vrot.lane.b32.xlu0 %v9588_v46, %s9033_s0  ;;  %1304 = vrot.lane.b32.xlu1 %v9590_v47, %s9033_s0 }
 0x14c   :  { %v934_v40 = vpop.permute.xlu0 %933  ;;  %v936_v41 = vpop.permute.xlu1 %935 }
 0x14d   :  { %1098 = vst.msk [vmem:[#allocation4 + $0xe0] sm:$0xff] %vm1069_vm4, %v934_v40  ;;  %1099 = vst.msk [vmem:[#allocation4 + $0xe8] sm:$0xff] %vm1069_vm4, %v936_v41  ;;  %v1525_v40 = vld [vmem:[#allocation2 + $0x88] sm:$0xff]  ;;  %v1526_v41 = vld [vmem:[#allocation2 + $0x90] sm:$0xff] }
 0x14e   :  { %1306 = vrot.lane.b32.xlu0 %v9596_v48, %s9033_s0  ;;  %1308 = vrot.lane.b32.xlu1 %v9600_v49, %s9033_s0 }
 0x150   :  { %v938_v43 = vpop.permute.xlu0 %937  ;;  %v940_v44 = vpop.permute.xlu1 %939 }
 0x151   :  { %1100 = vst.msk [vmem:[#allocation4 + $0xf0] sm:$0xff] %vm1069_vm4, %v938_v43  ;;  %1101 = vst.msk [vmem:[#allocation4 + $0xf8] sm:$0xff] %vm1069_vm4, %v940_v44 }
 0x152   :  { %1310 = vrot.lane.b32.xlu0 %v9606_v51, %s9033_s0  ;;  %1312 = vrot.lane.b32.xlu1 %v9608_v52, %s9033_s0  ;;  %v1164_v51 = vld [vmem:[#allocation2 + $0x207] sm:$0xff]  ;;  %v1165_v52 = vld [vmem:[#allocation2 + $0x20f] sm:$0xff] }
 0x154   :  { %v942_v46 = vpop.permute.xlu0 %941  ;;  %v944_v47 = vpop.permute.xlu1 %943 }
 0x155   :  { %1102 = vst.msk [vmem:[#allocation4 + $0x100] sm:$0xff] %vm1069_vm4, %v942_v46  ;;  %1103 = vst.msk [vmem:[#allocation4 + $0x108] sm:$0xff] %vm1069_vm4, %v944_v47  ;;  %v1527_v46 = vld [vmem:[#allocation2 + $0xa8] sm:$0xff]  ;;  %v1528_v47 = vld [vmem:[#allocation2 + $0xb0] sm:$0xff] }
 0x156   :  { %1314 = vrot.lane.b32.xlu0 %v9614_v54, %s9033_s0  ;;  %1316 = vrot.lane.b32.xlu1 %v9616_v55, %s9033_s0 }
 0x158   :  { %v946_v48 = vpop.permute.xlu0 %945  ;;  %v948_v49 = vpop.permute.xlu1 %947 }
 0x159   :  { %1104 = vst.msk [vmem:[#allocation4 + $0x110] sm:$0xff] %vm1069_vm4, %v946_v48  ;;  %1105 = vst.msk [vmem:[#allocation4 + $0x118] sm:$0xff] %vm1069_vm4, %v948_v49 }
 0x15a   :  { %1318 = vrot.lane.b32.xlu0 %v9622_v56, %s9033_s0  ;;  %1320 = vrot.lane.b32.xlu1 %v9626_v57, %s9033_s0 }
 0x15c   :  { %v950_v34 = vpop.permute.xlu0 %949  ;;  %v952_v2 = vpop.permute.xlu1 %951 }
 0x15d   :  { %1106 = vst.msk [vmem:[#allocation4 + $0x120] sm:$0xff] %vm1069_vm4, %v950_v34  ;;  %1107 = vst.msk [vmem:[#allocation4 + $0x128] sm:$0xff] %vm1069_vm4, %v952_v2 }
 0x15e   :  { %1322 = vrot.lane.b32.xlu0 %v1164_v51, %s9033_s0  ;;  %1324 = vrot.lane.b32.xlu1 %v1165_v52, %s9033_s0  ;;  %v1529_v51 = vld [vmem:[#allocation2 + $0xc8] sm:$0xff]  ;;  %v1530_v52 = vld [vmem:[#allocation2 + $0xd0] sm:$0xff] }
 0x160   :  { %v954_v54 = vpop.permute.xlu0 %953  ;;  %v956_v55 = vpop.permute.xlu1 %955 }
 0x161   :  { %1108 = vst.msk [vmem:[#allocation4 + $0x130] sm:$0xff] %vm1069_vm4, %v954_v54  ;;  %1109 = vst.msk [vmem:[#allocation4 + $0x138] sm:$0xff] %vm1069_vm4, %v956_v55  ;;  %v1531_v54 = vld [vmem:[#allocation2 + $0xe8] sm:$0xff]  ;;  %v1532_v55 = vld [vmem:[#allocation2 + $0xf0] sm:$0xff] }
 0x162   :  { %1326 = vrot.lane.b32.xlu0 %v9634_v62, %s9033_s0  ;;  %1328 = vrot.lane.b32.xlu1 %v9638_v63, %s9033_s0 }
 0x164   :  { %v958_v56 = vpop.permute.xlu0 %957  ;;  %v960_v57 = vpop.permute.xlu1 %959 }
 0x165   :  { %1110 = vst.msk [vmem:[#allocation4 + $0x140] sm:$0xff] %vm1069_vm4, %v958_v56  ;;  %1111 = vst.msk [vmem:[#allocation4 + $0x148] sm:$0xff] %vm1069_vm4, %v960_v57 }
 0x166   :  { %1330 = vrot.lane.b32.xlu0 %v9644_v0, %s9033_s0  ;;  %1332 = vrot.lane.b32.xlu1 %v9648_v4, %s9033_s0 }
 0x168   :  { %v962_v17 = vpop.permute.xlu0 %961  ;;  %v964_v7 = vpop.permute.xlu1 %963 }
 0x169   :  { %1112 = vst.msk [vmem:[#allocation4 + $0x150] sm:$0xff] %vm1069_vm4, %v962_v17  ;;  %1113 = vst.msk [vmem:[#allocation4 + $0x158] sm:$0xff] %vm1069_vm4, %v964_v7  ;;  %v1533_v17 = vld [vmem:[#allocation2 + $0x108] sm:$0xff]  ;;  %v1534_v7 = vld [vmem:[#allocation2 + $0x110] sm:$0xff] }
 0x16a   :  { %1334 = vrot.lane.b32.xlu0 %v9654_v5, %s9033_s0  ;;  %1336 = vrot.lane.b32.xlu1 %v9658_v8, %s9033_s0 }
 0x16c   :  { %v966_v62 = vpop.permute.xlu0 %965  ;;  %v968_v63 = vpop.permute.xlu1 %967 }
 0x16d   :  { %1114 = vst.msk [vmem:[#allocation4 + $0x160] sm:$0xff] %vm1069_vm4, %v966_v62  ;;  %1115 = vst.msk [vmem:[#allocation4 + $0x168] sm:$0xff] %vm1069_vm4, %v968_v63 }
 0x16e   :  { %1338 = vrot.lane.b32.xlu0 %v9664_v10, %s9033_s0  ;;  %1340 = vrot.lane.b32.xlu1 %v9668_v13, %s9033_s0 }
 0x170   :  { %v970_v0 = vpop.permute.xlu0 %969  ;;  %v972_v4 = vpop.permute.xlu1 %971 }
 0x171   :  { %1116 = vst.msk [vmem:[#allocation4 + $0x170] sm:$0xff] %vm1069_vm4, %v970_v0  ;;  %1117 = vst.msk [vmem:[#allocation4 + $0x178] sm:$0xff] %vm1069_vm4, %v972_v4  ;;  %v1535_v0 = vld [vmem:[#allocation2 + $0x128] sm:$0xff]  ;;  %v1536_v4 = vld [vmem:[#allocation2 + $0x130] sm:$0xff] }
 0x172   :  { %1342 = vrot.lane.b32.xlu0 %v9674_v15, %s9033_s0  ;;  %1344 = vrot.lane.b32.xlu1 %v9678_v20, %s9033_s0 }
 0x174   :  { %v974_v5 = vpop.permute.xlu0 %973  ;;  %v976_v8 = vpop.permute.xlu1 %975 }
 0x175   :  { %1118 = vst.msk [vmem:[#allocation4 + $0x180] sm:$0xff] %vm1069_vm4, %v974_v5  ;;  %1119 = vst.msk [vmem:[#allocation4 + $0x188] sm:$0xff] %vm1069_vm4, %v976_v8 }
 0x176   :  { %1346 = vrot.lane.b32.xlu0 %v9684_v21, %s9033_s0  ;;  %1348 = vrot.lane.b32.xlu1 %v9688_v29, %s9033_s0 }
 0x178   :  { %v978_v10 = vpop.permute.xlu0 %977  ;;  %v980_v13 = vpop.permute.xlu1 %979 }
 0x179   :  { %1120 = vst.msk [vmem:[#allocation4 + $0x190] sm:$0xff] %vm1069_vm4, %v978_v10  ;;  %1121 = vst.msk [vmem:[#allocation4 + $0x198] sm:$0xff] %vm1069_vm4, %v980_v13  ;;  %v1537_v10 = vld [vmem:[#allocation2 + $0x148] sm:$0xff]  ;;  %v1538_v13 = vld [vmem:[#allocation2 + $0x150] sm:$0xff] }
 0x17a   :  { %1350 = vrot.lane.b32.xlu0 %v9694_v30, %s9033_s0  ;;  %1352 = vrot.lane.b32.xlu1 %v9698_v42, %s9033_s0 }
 0x17c   :  { %v982_v15 = vpop.permute.xlu0 %981  ;;  %v984_v20 = vpop.permute.xlu1 %983 }
 0x17d   :  { %1122 = vst.msk [vmem:[#allocation4 + $0x1a0] sm:$0xff] %vm1069_vm4, %v982_v15  ;;  %1123 = vst.msk [vmem:[#allocation4 + $0x1a8] sm:$0xff] %vm1069_vm4, %v984_v20 }
 0x17e   :  { %1354 = vrot.lane.b32.xlu0 %v9704_v45, %s9033_s0  ;;  %1356 = vrot.lane.b32.xlu1 %v9708_v58, %s9033_s0 }
 0x180   :  { %v986_v21 = vpop.permute.xlu0 %985  ;;  %v988_v29 = vpop.permute.xlu1 %987 }
 0x181   :  { %1124 = vst.msk [vmem:[#allocation4 + $0x1b0] sm:$0xff] %vm1069_vm4, %v986_v21  ;;  %1125 = vst.msk [vmem:[#allocation4 + $0x1b8] sm:$0xff] %vm1069_vm4, %v988_v29  ;;  %v1539_v21 = vld [vmem:[#allocation2 + $0x168] sm:$0xff]  ;;  %v1540_v29 = vld [vmem:[#allocation2 + $0x170] sm:$0xff] }
 0x182   :  { %1358 = vrot.lane.b32.xlu0 %v9714_v59, %s9033_s0  ;;  %1360 = vrot.lane.b32.xlu1 %v9718_v1, %s9033_s0 }
 0x184   :  { %v990_v30 = vpop.permute.xlu0 %989  ;;  %v992_v42 = vpop.permute.xlu1 %991 }
 0x185   :  { %1126 = vst.msk [vmem:[#allocation4 + $0x1c0] sm:$0xff] %vm1069_vm4, %v990_v30  ;;  %1127 = vst.msk [vmem:[#allocation4 + $0x1c8] sm:$0xff] %vm1069_vm4, %v992_v42 }
 0x186   :  { %1362 = vrot.lane.b32.xlu0 %v9724_v3, %s9033_s0  ;;  %1364 = vrot.lane.b32.xlu1 %v9728_v11, %s9033_s0 }
 0x188   :  { %v994_v45 = vpop.permute.xlu0 %993  ;;  %v996_v58 = vpop.permute.xlu1 %995 }
 0x189   :  { %1128 = vst.msk [vmem:[#allocation4 + $0x1d0] sm:$0xff] %vm1069_vm4, %v994_v45  ;;  %1129 = vst.msk [vmem:[#allocation4 + $0x1d8] sm:$0xff] %vm1069_vm4, %v996_v58  ;;  %v1541_v45 = vld [vmem:[#allocation2 + $0x188] sm:$0xff]  ;;  %v1542_v58 = vld [vmem:[#allocation2 + $0x190] sm:$0xff] }
 0x18a   :  { %1366 = vrot.lane.b32.xlu0 %v9734_v12, %s9033_s0  ;;  %1368 = vrot.lane.b32.xlu1 %v9738_v24, %s9033_s0  ;;  %v12852_v12 = vld [vmem:[#allocation9_spill] sm:$0xff]  ;;  %v12853_v24 = vld [vmem:[#allocation10_spill] sm:$0xff] }
 0x18c   :  { %v998_v59 = vpop.permute.xlu0 %997  ;;  %v1000_v1 = vpop.permute.xlu1 %999 }
 0x18d   :  { %1130 = vst.msk [vmem:[#allocation4 + $0x1e0] sm:$0xff] %vm1069_vm4, %v998_v59  ;;  %1131 = vst.msk [vmem:[#allocation4 + $0x1e8] sm:$0xff] %vm1069_vm4, %v1000_v1 }
 0x18e   :  { %1370 = vrot.lane.b32.xlu0 %v9744_v25, %s9033_s0  ;;  %1372 = vrot.lane.b32.xlu1 %v9748_v50, %s9033_s0  ;;  %v12854_v25 = vld [vmem:[#allocation11_spill] sm:$0xff]  ;;  %v12855_v50 = vld [vmem:[#allocation12_spill] sm:$0xff] }
 0x190   :  { %v1002_v3 = vpop.permute.xlu0 %1001  ;;  %v1004_v11 = vpop.permute.xlu1 %1003 }
 0x191   :  { %1132 = vst.msk [vmem:[#allocation4 + $0x1f0] sm:$0xff] %vm1069_vm4, %v1002_v3  ;;  %1133 = vst.msk [vmem:[#allocation4 + $0x1f8] sm:$0xff] %vm1069_vm4, %v1004_v11  ;;  %v1543_v3 = vld [vmem:[#allocation2 + $0x1a8] sm:$0xff]  ;;  %v1544_v11 = vld [vmem:[#allocation2 + $0x1b0] sm:$0xff]  ;;  %vm6300_vm4 = vcmask 392512  }
 0x192   :  { %1374 = vrot.lane.b32.xlu0 %v12852_v12, %s9033_s0  ;;  %1376 = vrot.lane.b32.xlu1 %v12853_v24, %s9033_s0 }
 0x194   :  { %v1263_v6 = vpop.permute.xlu0 %1262  ;;  %v1265_v37 = vpop.permute.xlu1 %1264 }
 0x195   :  { %1455 = vst.msk [vmem:[#allocation4] sm:$0xff] %vm1454_vm5, %v1263_v6  ;;  %1456 = vst.msk [vmem:[#allocation4 + $0x8] sm:$0xff] %vm1454_vm5, %v1265_v37  ;;  %v1545_v6 = vld [vmem:[#allocation2 + $0x1c8] sm:$0xff]  ;;  %v1546_v37 = vld [vmem:[#allocation2 + $0x1d0] sm:$0xff] }
 0x196   :  { %1378 = vrot.lane.b32.xlu0 %v12854_v25, %s9033_s0  ;;  %1380 = vrot.lane.b32.xlu1 %v12855_v50, %s9033_s0 }
 0x198   :  { %v1267_v60 = vpop.permute.xlu0 %1266  ;;  %v1269_v61 = vpop.permute.xlu1 %1268 }
 0x199   :  { %1457 = vst.msk [vmem:[#allocation4 + $0x10] sm:$0xff] %vm1454_vm5, %v1267_v60  ;;  %1458 = vst.msk [vmem:[#allocation4 + $0x18] sm:$0xff] %vm1454_vm5, %v1269_v61  ;;  %v1547_v60 = vld [vmem:[#allocation2 + $0x1e8] sm:$0xff]  ;;  %v1548_v61 = vld [vmem:[#allocation2 + $0x1f0] sm:$0xff] }
 0x19a   :  { %1382 = vrot.lane.b32.xlu0 %v12856_v16, %s9033_s0  ;;  %1384 = vrot.lane.b32.xlu1 %v12857_v53, %s9033_s0 }
 0x19c   :  { %v1271_v18 = vpop.permute.xlu0 %1270  ;;  %v1273_v19 = vpop.permute.xlu1 %1272 }
 0x19d   :  { %1459 = vst.msk [vmem:[#allocation4 + $0x20] sm:$0xff] %vm1454_vm5, %v1271_v18  ;;  %1460 = vst.msk [vmem:[#allocation4 + $0x28] sm:$0xff] %vm1454_vm5, %v1273_v19 }
 0x19e   :  { %1386 = vrot.lane.b32.xlu0 %v1196_v9, %s9033_s0  ;;  %1388 = vrot.lane.b32.xlu1 %v1197_v14, %s9033_s0  ;;  %v1549_v9 = vld [vmem:[#allocation2 + $0x208] sm:$0xff]  ;;  %v1550_v14 = vld [vmem:[#allocation2 + $0x210] sm:$0xff]  ;;  %s9039_s0 = smov 40  }
 0x1a0   :  { %v1275_v26 = vpop.permute.xlu0 %1274  ;;  %v1277_v27 = vpop.permute.xlu1 %1276 }
 0x1a1   :  { %1461 = vst.msk [vmem:[#allocation4 + $0x30] sm:$0xff] %vm1454_vm5, %v1275_v26  ;;  %1462 = vst.msk [vmem:[#allocation4 + $0x38] sm:$0xff] %vm1454_vm5, %v1277_v27 }
 0x1a2   :  { %1647 = vrot.lane.b32.xlu0 %v1519_v22, %s9034_s18  ;;  %1649 = vrot.lane.b32.xlu1 %v1520_v23, %s9034_s18  ;;  %v1551_v22 = vld [vmem:[#allocation2 + $0x268] sm:$0xff]  ;;  %v1552_v23 = vld [vmem:[#allocation2 + $0x270] sm:$0xff] }
 0x1a4   :  { %v1279_v32 = vpop.permute.xlu0 %1278  ;;  %v1281_v33 = vpop.permute.xlu1 %1280 }
 0x1a5   :  { %1463 = vst.msk [vmem:[#allocation4 + $0x40] sm:$0xff] %vm1454_vm5, %v1279_v32  ;;  %1464 = vst.msk [vmem:[#allocation4 + $0x48] sm:$0xff] %vm1454_vm5, %v1281_v33 }
 0x1a6   :  { %1651 = vrot.lane.b32.xlu0 %v1521_v28, %s9034_s18  ;;  %1653 = vrot.lane.b32.xlu1 %v1522_v31, %s9034_s18  ;;  %v1553_v28 = vld [vmem:[#allocation2 + $0x288] sm:$0xff]  ;;  %v1554_v31 = vld [vmem:[#allocation2 + $0x290] sm:$0xff] }
 0x1a8   :  { %v1283_v38 = vpop.permute.xlu0 %1282  ;;  %v1285_v39 = vpop.permute.xlu1 %1284 }
 0x1a9   :  { %1465 = vst.msk [vmem:[#allocation4 + $0x50] sm:$0xff] %vm1454_vm5, %v1283_v38  ;;  %1466 = vst.msk [vmem:[#allocation4 + $0x58] sm:$0xff] %vm1454_vm5, %v1285_v39 }
 0x1aa   :  { %1655 = vrot.lane.b32.xlu0 %v1523_v35, %s9034_s18  ;;  %1657 = vrot.lane.b32.xlu1 %v1524_v36, %s9034_s18  ;;  %v1555_v35 = vld [vmem:[#allocation2 + $0x2a8] sm:$0xff]  ;;  %v1556_v36 = vld [vmem:[#allocation2 + $0x2b0] sm:$0xff] }
 0x1ac   :  { %v1287_v43 = vpop.permute.xlu0 %1286  ;;  %v1289_v44 = vpop.permute.xlu1 %1288 }
 0x1ad   :  { %1467 = vst.msk [vmem:[#allocation4 + $0x60] sm:$0xff] %vm1454_vm5, %v1287_v43  ;;  %1468 = vst.msk [vmem:[#allocation4 + $0x68] sm:$0xff] %vm1454_vm5, %v1289_v44 }
 0x1ae   :  { %1659 = vrot.lane.b32.xlu0 %v1525_v40, %s9034_s18  ;;  %1661 = vrot.lane.b32.xlu1 %v1526_v41, %s9034_s18  ;;  %v1557_v40 = vld [vmem:[#allocation2 + $0x2c8] sm:$0xff]  ;;  %v1558_v41 = vld [vmem:[#allocation2 + $0x2d0] sm:$0xff] }
 0x1b0   :  { %v1291_v48 = vpop.permute.xlu0 %1290  ;;  %v1293_v49 = vpop.permute.xlu1 %1292 }
 0x1b1   :  { %1469 = vst.msk [vmem:[#allocation4 + $0x70] sm:$0xff] %vm1454_vm5, %v1291_v48  ;;  %1470 = vst.msk [vmem:[#allocation4 + $0x78] sm:$0xff] %vm1454_vm5, %v1293_v49 }
 0x1b2   :  { %1663 = vrot.lane.b32.xlu0 %v1527_v46, %s9034_s18  ;;  %1665 = vrot.lane.b32.xlu1 %v1528_v47, %s9034_s18  ;;  %v1559_v46 = vld [vmem:[#allocation2 + $0x2e8] sm:$0xff]  ;;  %v1560_v47 = vld [vmem:[#allocation2 + $0x2f0] sm:$0xff] }
 0x1b4   :  { %v1295_v34 = vpop.permute.xlu0 %1294  ;;  %v1297_v2 = vpop.permute.xlu1 %1296 }
 0x1b5   :  { %1471 = vst.msk [vmem:[#allocation4 + $0x80] sm:$0xff] %vm1454_vm5, %v1295_v34  ;;  %1472 = vst.msk [vmem:[#allocation4 + $0x88] sm:$0xff] %vm1454_vm5, %v1297_v2 }
 0x1b6   :  { %1667 = vrot.lane.b32.xlu0 %v1529_v51, %s9034_s18  ;;  %1669 = vrot.lane.b32.xlu1 %v1530_v52, %s9034_s18  ;;  %v1561_v51 = vld [vmem:[#allocation2 + $0x308] sm:$0xff]  ;;  %v1562_v52 = vld [vmem:[#allocation2 + $0x310] sm:$0xff] }
 0x1b8   :  { %v1299_v56 = vpop.permute.xlu0 %1298  ;;  %v1301_v57 = vpop.permute.xlu1 %1300 }
 0x1b9   :  { %1473 = vst.msk [vmem:[#allocation4 + $0x90] sm:$0xff] %vm1454_vm5, %v1299_v56  ;;  %1474 = vst.msk [vmem:[#allocation4 + $0x98] sm:$0xff] %vm1454_vm5, %v1301_v57 }
 0x1ba   :  { %1671 = vrot.lane.b32.xlu0 %v1531_v54, %s9034_s18  ;;  %1673 = vrot.lane.b32.xlu1 %v1532_v55, %s9034_s18  ;;  %v1563_v54 = vld [vmem:[#allocation2 + $0x328] sm:$0xff]  ;;  %v1564_v55 = vld [vmem:[#allocation2 + $0x330] sm:$0xff] }
 0x1bc   :  { %v1303_v62 = vpop.permute.xlu0 %1302  ;;  %v1305_v63 = vpop.permute.xlu1 %1304 }
 0x1bd   :  { %1475 = vst.msk [vmem:[#allocation4 + $0xa0] sm:$0xff] %vm1454_vm5, %v1303_v62  ;;  %1476 = vst.msk [vmem:[#allocation4 + $0xa8] sm:$0xff] %vm1454_vm5, %v1305_v63 }
 0x1be   :  { %1675 = vrot.lane.b32.xlu0 %v1533_v17, %s9034_s18  ;;  %1677 = vrot.lane.b32.xlu1 %v1534_v7, %s9034_s18  ;;  %v1565_v17 = vld [vmem:[#allocation2 + $0x348] sm:$0xff]  ;;  %v1566_v7 = vld [vmem:[#allocation2 + $0x350] sm:$0xff] }
 0x1c0   :  { %v1307_v5 = vpop.permute.xlu0 %1306  ;;  %v1309_v8 = vpop.permute.xlu1 %1308 }
 0x1c1   :  { %1477 = vst.msk [vmem:[#allocation4 + $0xb0] sm:$0xff] %vm1454_vm5, %v1307_v5  ;;  %1478 = vst.msk [vmem:[#allocation4 + $0xb8] sm:$0xff] %vm1454_vm5, %v1309_v8 }
 0x1c2   :  { %1679 = vrot.lane.b32.xlu0 %v1535_v0, %s9034_s18  ;;  %1681 = vrot.lane.b32.xlu1 %v1536_v4, %s9034_s18  ;;  %v1567_v0 = vld [vmem:[#allocation2 + $0x368] sm:$0xff]  ;;  %v1568_v4 = vld [vmem:[#allocation2 + $0x370] sm:$0xff] }
 0x1c4   :  { %v1311_v15 = vpop.permute.xlu0 %1310  ;;  %v1313_v20 = vpop.permute.xlu1 %1312 }
 0x1c5   :  { %1479 = vst.msk [vmem:[#allocation4 + $0xc0] sm:$0xff] %vm1454_vm5, %v1311_v15  ;;  %1480 = vst.msk [vmem:[#allocation4 + $0xc8] sm:$0xff] %vm1454_vm5, %v1313_v20 }
 0x1c6   :  { %1683 = vrot.lane.b32.xlu0 %v1537_v10, %s9034_s18  ;;  %1685 = vrot.lane.b32.xlu1 %v1538_v13, %s9034_s18  ;;  %v1569_v10 = vld [vmem:[#allocation2 + $0x388] sm:$0xff]  ;;  %v1570_v13 = vld [vmem:[#allocation2 + $0x390] sm:$0xff] }
 0x1c8   :  { %v1315_v30 = vpop.permute.xlu0 %1314  ;;  %v1317_v42 = vpop.permute.xlu1 %1316 }
 0x1c9   :  { %1481 = vst.msk [vmem:[#allocation4 + $0xd0] sm:$0xff] %vm1454_vm5, %v1315_v30  ;;  %1482 = vst.msk [vmem:[#allocation4 + $0xd8] sm:$0xff] %vm1454_vm5, %v1317_v42 }
 0x1ca   :  { %1687 = vrot.lane.b32.xlu0 %v1539_v21, %s9034_s18  ;;  %1689 = vrot.lane.b32.xlu1 %v1540_v29, %s9034_s18  ;;  %v1571_v21 = vld [vmem:[#allocation2 + $0x3a8] sm:$0xff]  ;;  %v1572_v29 = vld [vmem:[#allocation2 + $0x3b0] sm:$0xff] }
 0x1cc   :  { %v1319_v59 = vpop.permute.xlu0 %1318  ;;  %v1321_v1 = vpop.permute.xlu1 %1320 }
 0x1cd   :  { %1483 = vst.msk [vmem:[#allocation4 + $0xe0] sm:$0xff] %vm1454_vm5, %v1319_v59  ;;  %1484 = vst.msk [vmem:[#allocation4 + $0xe8] sm:$0xff] %vm1454_vm5, %v1321_v1 }
 0x1ce   :  { %1691 = vrot.lane.b32.xlu0 %v1541_v45, %s9034_s18  ;;  %1693 = vrot.lane.b32.xlu1 %v1542_v58, %s9034_s18  ;;  %v1573_v45 = vld [vmem:[#allocation2 + $0x3c8] sm:$0xff]  ;;  %v1574_v58 = vld [vmem:[#allocation2 + $0x3d0] sm:$0xff] }
 0x1d0   :  { %v1323_v12 = vpop.permute.xlu0 %1322  ;;  %v1325_v24 = vpop.permute.xlu1 %1324 }
 0x1d1   :  { %1485 = vst.msk [vmem:[#allocation4 + $0xf0] sm:$0xff] %vm1454_vm5, %v1323_v12  ;;  %1486 = vst.msk [vmem:[#allocation4 + $0xf8] sm:$0xff] %vm1454_vm5, %v1325_v24 }
 0x1d2   :  { %1695 = vrot.lane.b32.xlu0 %v1543_v3, %s9034_s18  ;;  %1697 = vrot.lane.b32.xlu1 %v1544_v11, %s9034_s18  ;;  %v1575_v3 = vld [vmem:[#allocation2 + $0x3e8] sm:$0xff]  ;;  %v1576_v11 = vld [vmem:[#allocation2 + $0x3f0] sm:$0xff] }
 0x1d4   :  { %v1327_v25 = vpop.permute.xlu0 %1326  ;;  %v1329_v50 = vpop.permute.xlu1 %1328 }
 0x1d5   :  { %1487 = vst.msk [vmem:[#allocation4 + $0x100] sm:$0xff] %vm1454_vm5, %v1327_v25  ;;  %1488 = vst.msk [vmem:[#allocation4 + $0x108] sm:$0xff] %vm1454_vm5, %v1329_v50 }
 0x1d6   :  { %1699 = vrot.lane.b32.xlu0 %v1545_v6, %s9034_s18  ;;  %1701 = vrot.lane.b32.xlu1 %v1546_v37, %s9034_s18  ;;  %v1577_v6 = vld [vmem:[#allocation2 + $0x408] sm:$0xff]  ;;  %v1578_v37 = vld [vmem:[#allocation2 + $0x410] sm:$0xff] }
 0x1d8   :  { %v1331_v16 = vpop.permute.xlu0 %1330  ;;  %v1333_v53 = vpop.permute.xlu1 %1332 }
 0x1d9   :  { %1489 = vst.msk [vmem:[#allocation4 + $0x110] sm:$0xff] %vm1454_vm5, %v1331_v16  ;;  %1490 = vst.msk [vmem:[#allocation4 + $0x118] sm:$0xff] %vm1454_vm5, %v1333_v53 }
 0x1da   :  { %1703 = vrot.lane.b32.xlu0 %v1547_v60, %s9034_s18  ;;  %1705 = vrot.lane.b32.xlu1 %v1548_v61, %s9034_s18  ;;  %v1579_v60 = vld [vmem:[#allocation2 + $0x428] sm:$0xff]  ;;  %v1580_v61 = vld [vmem:[#allocation2 + $0x430] sm:$0xff] }
 0x1dc   :  { %v1335_v18 = vpop.permute.xlu0 %1334  ;;  %v1337_v19 = vpop.permute.xlu1 %1336 }
 0x1dd   :  { %1491 = vst.msk [vmem:[#allocation4 + $0x120] sm:$0xff] %vm1454_vm5, %v1335_v18  ;;  %1492 = vst.msk [vmem:[#allocation4 + $0x128] sm:$0xff] %vm1454_vm5, %v1337_v19 }
 0x1de   :  { %1707 = vrot.lane.b32.xlu0 %v1549_v9, %s9034_s18  ;;  %1709 = vrot.lane.b32.xlu1 %v1550_v14, %s9034_s18  ;;  %v1581_v9 = vld [vmem:[#allocation2 + $0x448] sm:$0xff]  ;;  %v1582_v14 = vld [vmem:[#allocation2 + $0x450] sm:$0xff] }
 0x1e0   :  { %v1339_v26 = vpop.permute.xlu0 %1338  ;;  %v1341_v27 = vpop.permute.xlu1 %1340 }
 0x1e1   :  { %1493 = vst.msk [vmem:[#allocation4 + $0x130] sm:$0xff] %vm1454_vm5, %v1339_v26  ;;  %1494 = vst.msk [vmem:[#allocation4 + $0x138] sm:$0xff] %vm1454_vm5, %v1341_v27 }
 0x1e2   :  { %1711 = vrot.lane.b32.xlu0 %v1551_v22, %s9034_s18  ;;  %1713 = vrot.lane.b32.xlu1 %v1552_v23, %s9034_s18  ;;  %v1904_v22 = vld [vmem:[#allocation2 + $0x29] sm:$0xff]  ;;  %v1905_v23 = vld [vmem:[#allocation2 + $0x31] sm:$0xff] }
 0x1e4   :  { %v1343_v32 = vpop.permute.xlu0 %1342  ;;  %v1345_v33 = vpop.permute.xlu1 %1344 }
 0x1e5   :  { %1495 = vst.msk [vmem:[#allocation4 + $0x140] sm:$0xff] %vm1454_vm5, %v1343_v32  ;;  %1496 = vst.msk [vmem:[#allocation4 + $0x148] sm:$0xff] %vm1454_vm5, %v1345_v33 }
 0x1e6   :  { %1715 = vrot.lane.b32.xlu0 %v1553_v28, %s9034_s18  ;;  %1717 = vrot.lane.b32.xlu1 %v1554_v31, %s9034_s18  ;;  %v1906_v28 = vld [vmem:[#allocation2 + $0x49] sm:$0xff]  ;;  %v1907_v31 = vld [vmem:[#allocation2 + $0x51] sm:$0xff] }
 0x1e8   :  { %v1347_v38 = vpop.permute.xlu0 %1346  ;;  %v1349_v39 = vpop.permute.xlu1 %1348 }
 0x1e9   :  { %1497 = vst.msk [vmem:[#allocation4 + $0x150] sm:$0xff] %vm1454_vm5, %v1347_v38  ;;  %1498 = vst.msk [vmem:[#allocation4 + $0x158] sm:$0xff] %vm1454_vm5, %v1349_v39 }
 0x1ea   :  { %1719 = vrot.lane.b32.xlu0 %v1555_v35, %s9034_s18  ;;  %1721 = vrot.lane.b32.xlu1 %v1556_v36, %s9034_s18  ;;  %v1908_v35 = vld [vmem:[#allocation2 + $0x69] sm:$0xff]  ;;  %v1909_v36 = vld [vmem:[#allocation2 + $0x71] sm:$0xff] }
 0x1ec   :  { %v1351_v43 = vpop.permute.xlu0 %1350  ;;  %v1353_v44 = vpop.permute.xlu1 %1352 }
 0x1ed   :  { %1499 = vst.msk [vmem:[#allocation4 + $0x160] sm:$0xff] %vm1454_vm5, %v1351_v43  ;;  %1500 = vst.msk [vmem:[#allocation4 + $0x168] sm:$0xff] %vm1454_vm5, %v1353_v44 }
 0x1ee   :  { %1723 = vrot.lane.b32.xlu0 %v1557_v40, %s9034_s18  ;;  %1725 = vrot.lane.b32.xlu1 %v1558_v41, %s9034_s18  ;;  %v1910_v40 = vld [vmem:[#allocation2 + $0x89] sm:$0xff]  ;;  %v1911_v41 = vld [vmem:[#allocation2 + $0x91] sm:$0xff] }
 0x1f0   :  { %v1355_v48 = vpop.permute.xlu0 %1354  ;;  %v1357_v49 = vpop.permute.xlu1 %1356 }
 0x1f1   :  { %1501 = vst.msk [vmem:[#allocation4 + $0x170] sm:$0xff] %vm1454_vm5, %v1355_v48  ;;  %1502 = vst.msk [vmem:[#allocation4 + $0x178] sm:$0xff] %vm1454_vm5, %v1357_v49 }
 0x1f2   :  { %1727 = vrot.lane.b32.xlu0 %v1559_v46, %s9034_s18  ;;  %1729 = vrot.lane.b32.xlu1 %v1560_v47, %s9034_s18  ;;  %v1912_v46 = vld [vmem:[#allocation2 + $0xa9] sm:$0xff]  ;;  %v1913_v47 = vld [vmem:[#allocation2 + $0xb1] sm:$0xff] }
 0x1f4   :  { %v1359_v34 = vpop.permute.xlu0 %1358  ;;  %v1361_v2 = vpop.permute.xlu1 %1360 }
 0x1f5   :  { %1503 = vst.msk [vmem:[#allocation4 + $0x180] sm:$0xff] %vm1454_vm5, %v1359_v34  ;;  %1504 = vst.msk [vmem:[#allocation4 + $0x188] sm:$0xff] %vm1454_vm5, %v1361_v2 }
 0x1f6   :  { %1731 = vrot.lane.b32.xlu0 %v1561_v51, %s9034_s18  ;;  %1733 = vrot.lane.b32.xlu1 %v1562_v52, %s9034_s18  ;;  %v1914_v51 = vld [vmem:[#allocation2 + $0xc9] sm:$0xff]  ;;  %v1915_v52 = vld [vmem:[#allocation2 + $0xd1] sm:$0xff] }
 0x1f8   :  { %v1363_v56 = vpop.permute.xlu0 %1362  ;;  %v1365_v57 = vpop.permute.xlu1 %1364 }
 0x1f9   :  { %1505 = vst.msk [vmem:[#allocation4 + $0x190] sm:$0xff] %vm1454_vm5, %v1363_v56  ;;  %1506 = vst.msk [vmem:[#allocation4 + $0x198] sm:$0xff] %vm1454_vm5, %v1365_v57 }
 0x1fa   :  { %1735 = vrot.lane.b32.xlu0 %v1563_v54, %s9034_s18  ;;  %1737 = vrot.lane.b32.xlu1 %v1564_v55, %s9034_s18  ;;  %v1916_v54 = vld [vmem:[#allocation2 + $0xe9] sm:$0xff]  ;;  %v1917_v55 = vld [vmem:[#allocation2 + $0xf1] sm:$0xff] }
 0x1fc   :  { %v1367_v62 = vpop.permute.xlu0 %1366  ;;  %v1369_v63 = vpop.permute.xlu1 %1368 }
 0x1fd   :  { %1507 = vst.msk [vmem:[#allocation4 + $0x1a0] sm:$0xff] %vm1454_vm5, %v1367_v62  ;;  %1508 = vst.msk [vmem:[#allocation4 + $0x1a8] sm:$0xff] %vm1454_vm5, %v1369_v63 }
 0x1fe   :  { %1739 = vrot.lane.b32.xlu0 %v1565_v17, %s9034_s18  ;;  %1741 = vrot.lane.b32.xlu1 %v1566_v7, %s9034_s18  ;;  %v1918_v17 = vld [vmem:[#allocation2 + $0x109] sm:$0xff]  ;;  %v1919_v7 = vld [vmem:[#allocation2 + $0x111] sm:$0xff] }
 0x200   :  { %v1371_v5 = vpop.permute.xlu0 %1370  ;;  %v1373_v8 = vpop.permute.xlu1 %1372 }
 0x201   :  { %1509 = vst.msk [vmem:[#allocation4 + $0x1b0] sm:$0xff] %vm1454_vm5, %v1371_v5  ;;  %1510 = vst.msk [vmem:[#allocation4 + $0x1b8] sm:$0xff] %vm1454_vm5, %v1373_v8 }
 0x202   :  { %1743 = vrot.lane.b32.xlu0 %v1567_v0, %s9034_s18  ;;  %1745 = vrot.lane.b32.xlu1 %v1568_v4, %s9034_s18  ;;  %v1920_v0 = vld [vmem:[#allocation2 + $0x129] sm:$0xff]  ;;  %v1921_v4 = vld [vmem:[#allocation2 + $0x131] sm:$0xff] }
 0x204   :  { %v1375_v15 = vpop.permute.xlu0 %1374  ;;  %v1377_v20 = vpop.permute.xlu1 %1376 }
 0x205   :  { %1511 = vst.msk [vmem:[#allocation4 + $0x1c0] sm:$0xff] %vm1454_vm5, %v1375_v15  ;;  %1512 = vst.msk [vmem:[#allocation4 + $0x1c8] sm:$0xff] %vm1454_vm5, %v1377_v20 }
 0x206   :  { %1747 = vrot.lane.b32.xlu0 %v1569_v10, %s9034_s18  ;;  %1749 = vrot.lane.b32.xlu1 %v1570_v13, %s9034_s18  ;;  %v1922_v10 = vld [vmem:[#allocation2 + $0x149] sm:$0xff]  ;;  %v1923_v13 = vld [vmem:[#allocation2 + $0x151] sm:$0xff] }
 0x208   :  { %v1379_v30 = vpop.permute.xlu0 %1378  ;;  %v1381_v42 = vpop.permute.xlu1 %1380 }
 0x209   :  { %1513 = vst.msk [vmem:[#allocation4 + $0x1d0] sm:$0xff] %vm1454_vm5, %v1379_v30  ;;  %1514 = vst.msk [vmem:[#allocation4 + $0x1d8] sm:$0xff] %vm1454_vm5, %v1381_v42 }
 0x20a   :  { %1751 = vrot.lane.b32.xlu0 %v1571_v21, %s9034_s18  ;;  %1753 = vrot.lane.b32.xlu1 %v1572_v29, %s9034_s18  ;;  %v1924_v21 = vld [vmem:[#allocation2 + $0x169] sm:$0xff]  ;;  %v1925_v29 = vld [vmem:[#allocation2 + $0x171] sm:$0xff] }
 0x20c   :  { %v1383_v59 = vpop.permute.xlu0 %1382  ;;  %v1385_v1 = vpop.permute.xlu1 %1384 }
 0x20d   :  { %1515 = vst.msk [vmem:[#allocation4 + $0x1e0] sm:$0xff] %vm1454_vm5, %v1383_v59  ;;  %1516 = vst.msk [vmem:[#allocation4 + $0x1e8] sm:$0xff] %vm1454_vm5, %v1385_v1 }
 0x20e   :  { %1755 = vrot.lane.b32.xlu0 %v1573_v45, %s9034_s18  ;;  %1757 = vrot.lane.b32.xlu1 %v1574_v58, %s9034_s18  ;;  %v1926_v45 = vld [vmem:[#allocation2 + $0x189] sm:$0xff]  ;;  %v1927_v58 = vld [vmem:[#allocation2 + $0x191] sm:$0xff] }
 0x210   :  { %v1387_v12 = vpop.permute.xlu0 %1386  ;;  %v1389_v24 = vpop.permute.xlu1 %1388 }
 0x211   :  { %1517 = vst.msk [vmem:[#allocation4 + $0x1f0] sm:$0xff] %vm1454_vm5, %v1387_v12  ;;  %1518 = vst.msk [vmem:[#allocation4 + $0x1f8] sm:$0xff] %vm1454_vm5, %v1389_v24  ;;  %vm6686_vm5 = vcmask 458112  }
 0x212   :  { %1759 = vrot.lane.b32.xlu0 %v1575_v3, %s9034_s18  ;;  %1761 = vrot.lane.b32.xlu1 %v1576_v11, %s9034_s18  ;;  %v1928_v3 = vld [vmem:[#allocation2 + $0x1a9] sm:$0xff]  ;;  %v1929_v11 = vld [vmem:[#allocation2 + $0x1b1] sm:$0xff] }
 0x214   :  { %v1648_v25 = vpop.permute.xlu0 %1647  ;;  %v1650_v50 = vpop.permute.xlu1 %1649 }
 0x215   :  { %1840 = vst.msk [vmem:[#allocation4] sm:$0xff] %vm1839_vm6, %v1648_v25  ;;  %1841 = vst.msk [vmem:[#allocation4 + $0x8] sm:$0xff] %vm1839_vm6, %v1650_v50 }
 0x216   :  { %1763 = vrot.lane.b32.xlu0 %v1577_v6, %s9034_s18  ;;  %1765 = vrot.lane.b32.xlu1 %v1578_v37, %s9034_s18  ;;  %v1930_v6 = vld [vmem:[#allocation2 + $0x1c9] sm:$0xff]  ;;  %v1931_v37 = vld [vmem:[#allocation2 + $0x1d1] sm:$0xff] }
 0x218   :  { %v1652_v16 = vpop.permute.xlu0 %1651  ;;  %v1654_v53 = vpop.permute.xlu1 %1653 }
 0x219   :  { %1842 = vst.msk [vmem:[#allocation4 + $0x10] sm:$0xff] %vm1839_vm6, %v1652_v16  ;;  %1843 = vst.msk [vmem:[#allocation4 + $0x18] sm:$0xff] %vm1839_vm6, %v1654_v53 }
 0x21a   :  { %1767 = vrot.lane.b32.xlu0 %v1579_v60, %s9034_s18  ;;  %1769 = vrot.lane.b32.xlu1 %v1580_v61, %s9034_s18  ;;  %v1932_v60 = vld [vmem:[#allocation2 + $0x1e9] sm:$0xff]  ;;  %v1933_v61 = vld [vmem:[#allocation2 + $0x1f1] sm:$0xff] }
 0x21c   :  { %v1656_v18 = vpop.permute.xlu0 %1655  ;;  %v1658_v19 = vpop.permute.xlu1 %1657 }
 0x21d   :  { %1844 = vst.msk [vmem:[#allocation4 + $0x20] sm:$0xff] %vm1839_vm6, %v1656_v18  ;;  %1845 = vst.msk [vmem:[#allocation4 + $0x28] sm:$0xff] %vm1839_vm6, %v1658_v19 }
 0x21e   :  { %1771 = vrot.lane.b32.xlu0 %v1581_v9, %s9034_s18  ;;  %1773 = vrot.lane.b32.xlu1 %v1582_v14, %s9034_s18  ;;  %v1934_v9 = vld [vmem:[#allocation2 + $0x209] sm:$0xff]  ;;  %v1935_v14 = vld [vmem:[#allocation2 + $0x211] sm:$0xff] }
 0x220   :  { %v1660_v26 = vpop.permute.xlu0 %1659  ;;  %v1662_v27 = vpop.permute.xlu1 %1661 }
 0x221   :  { %1846 = vst.msk [vmem:[#allocation4 + $0x30] sm:$0xff] %vm1839_vm6, %v1660_v26  ;;  %1847 = vst.msk [vmem:[#allocation4 + $0x38] sm:$0xff] %vm1839_vm6, %v1662_v27 }
 0x222   :  { %2032 = vrot.lane.b32.xlu0 %v1904_v22, %s9035_s19  ;;  %2034 = vrot.lane.b32.xlu1 %v1905_v23, %s9035_s19  ;;  %v1936_v22 = vld [vmem:[#allocation2 + $0x269] sm:$0xff]  ;;  %v1937_v23 = vld [vmem:[#allocation2 + $0x271] sm:$0xff] }
 0x224   :  { %v1664_v32 = vpop.permute.xlu0 %1663  ;;  %v1666_v33 = vpop.permute.xlu1 %1665 }
 0x225   :  { %1848 = vst.msk [vmem:[#allocation4 + $0x40] sm:$0xff] %vm1839_vm6, %v1664_v32  ;;  %1849 = vst.msk [vmem:[#allocation4 + $0x48] sm:$0xff] %vm1839_vm6, %v1666_v33 }
 0x226   :  { %2036 = vrot.lane.b32.xlu0 %v1906_v28, %s9035_s19  ;;  %2038 = vrot.lane.b32.xlu1 %v1907_v31, %s9035_s19  ;;  %v1938_v28 = vld [vmem:[#allocation2 + $0x289] sm:$0xff]  ;;  %v1939_v31 = vld [vmem:[#allocation2 + $0x291] sm:$0xff] }
 0x228   :  { %v1668_v38 = vpop.permute.xlu0 %1667  ;;  %v1670_v39 = vpop.permute.xlu1 %1669 }
 0x229   :  { %1850 = vst.msk [vmem:[#allocation4 + $0x50] sm:$0xff] %vm1839_vm6, %v1668_v38  ;;  %1851 = vst.msk [vmem:[#allocation4 + $0x58] sm:$0xff] %vm1839_vm6, %v1670_v39 }
 0x22a   :  { %2040 = vrot.lane.b32.xlu0 %v1908_v35, %s9035_s19  ;;  %2042 = vrot.lane.b32.xlu1 %v1909_v36, %s9035_s19  ;;  %v1940_v35 = vld [vmem:[#allocation2 + $0x2a9] sm:$0xff]  ;;  %v1941_v36 = vld [vmem:[#allocation2 + $0x2b1] sm:$0xff] }
 0x22c   :  { %v1672_v43 = vpop.permute.xlu0 %1671  ;;  %v1674_v44 = vpop.permute.xlu1 %1673 }
 0x22d   :  { %1852 = vst.msk [vmem:[#allocation4 + $0x60] sm:$0xff] %vm1839_vm6, %v1672_v43  ;;  %1853 = vst.msk [vmem:[#allocation4 + $0x68] sm:$0xff] %vm1839_vm6, %v1674_v44 }
 0x22e   :  { %2044 = vrot.lane.b32.xlu0 %v1910_v40, %s9035_s19  ;;  %2046 = vrot.lane.b32.xlu1 %v1911_v41, %s9035_s19  ;;  %v1942_v40 = vld [vmem:[#allocation2 + $0x2c9] sm:$0xff]  ;;  %v1943_v41 = vld [vmem:[#allocation2 + $0x2d1] sm:$0xff] }
 0x230   :  { %v1676_v48 = vpop.permute.xlu0 %1675  ;;  %v1678_v49 = vpop.permute.xlu1 %1677 }
 0x231   :  { %1854 = vst.msk [vmem:[#allocation4 + $0x70] sm:$0xff] %vm1839_vm6, %v1676_v48  ;;  %1855 = vst.msk [vmem:[#allocation4 + $0x78] sm:$0xff] %vm1839_vm6, %v1678_v49 }
 0x232   :  { %2048 = vrot.lane.b32.xlu0 %v1912_v46, %s9035_s19  ;;  %2050 = vrot.lane.b32.xlu1 %v1913_v47, %s9035_s19  ;;  %v1944_v46 = vld [vmem:[#allocation2 + $0x2e9] sm:$0xff]  ;;  %v1945_v47 = vld [vmem:[#allocation2 + $0x2f1] sm:$0xff] }
 0x234   :  { %v1680_v34 = vpop.permute.xlu0 %1679  ;;  %v1682_v2 = vpop.permute.xlu1 %1681 }
 0x235   :  { %1856 = vst.msk [vmem:[#allocation4 + $0x80] sm:$0xff] %vm1839_vm6, %v1680_v34  ;;  %1857 = vst.msk [vmem:[#allocation4 + $0x88] sm:$0xff] %vm1839_vm6, %v1682_v2 }
 0x236   :  { %2052 = vrot.lane.b32.xlu0 %v1914_v51, %s9035_s19  ;;  %2054 = vrot.lane.b32.xlu1 %v1915_v52, %s9035_s19  ;;  %v1946_v51 = vld [vmem:[#allocation2 + $0x309] sm:$0xff]  ;;  %v1947_v52 = vld [vmem:[#allocation2 + $0x311] sm:$0xff] }
 0x238   :  { %v1684_v56 = vpop.permute.xlu0 %1683  ;;  %v1686_v57 = vpop.permute.xlu1 %1685 }
 0x239   :  { %1858 = vst.msk [vmem:[#allocation4 + $0x90] sm:$0xff] %vm1839_vm6, %v1684_v56  ;;  %1859 = vst.msk [vmem:[#allocation4 + $0x98] sm:$0xff] %vm1839_vm6, %v1686_v57 }
 0x23a   :  { %2056 = vrot.lane.b32.xlu0 %v1916_v54, %s9035_s19  ;;  %2058 = vrot.lane.b32.xlu1 %v1917_v55, %s9035_s19  ;;  %v1948_v54 = vld [vmem:[#allocation2 + $0x329] sm:$0xff]  ;;  %v1949_v55 = vld [vmem:[#allocation2 + $0x331] sm:$0xff] }
 0x23c   :  { %v1688_v62 = vpop.permute.xlu0 %1687  ;;  %v1690_v63 = vpop.permute.xlu1 %1689 }
 0x23d   :  { %1860 = vst.msk [vmem:[#allocation4 + $0xa0] sm:$0xff] %vm1839_vm6, %v1688_v62  ;;  %1861 = vst.msk [vmem:[#allocation4 + $0xa8] sm:$0xff] %vm1839_vm6, %v1690_v63 }
 0x23e   :  { %2060 = vrot.lane.b32.xlu0 %v1918_v17, %s9035_s19  ;;  %2062 = vrot.lane.b32.xlu1 %v1919_v7, %s9035_s19  ;;  %v1950_v17 = vld [vmem:[#allocation2 + $0x349] sm:$0xff]  ;;  %v1951_v7 = vld [vmem:[#allocation2 + $0x351] sm:$0xff] }
 0x240   :  { %v1692_v5 = vpop.permute.xlu0 %1691  ;;  %v1694_v8 = vpop.permute.xlu1 %1693 }
 0x241   :  { %1862 = vst.msk [vmem:[#allocation4 + $0xb0] sm:$0xff] %vm1839_vm6, %v1692_v5  ;;  %1863 = vst.msk [vmem:[#allocation4 + $0xb8] sm:$0xff] %vm1839_vm6, %v1694_v8 }
 0x242   :  { %2064 = vrot.lane.b32.xlu0 %v1920_v0, %s9035_s19  ;;  %2066 = vrot.lane.b32.xlu1 %v1921_v4, %s9035_s19  ;;  %v1952_v0 = vld [vmem:[#allocation2 + $0x369] sm:$0xff]  ;;  %v1953_v4 = vld [vmem:[#allocation2 + $0x371] sm:$0xff] }
 0x244   :  { %v1696_v15 = vpop.permute.xlu0 %1695  ;;  %v1698_v20 = vpop.permute.xlu1 %1697 }
 0x245   :  { %1864 = vst.msk [vmem:[#allocation4 + $0xc0] sm:$0xff] %vm1839_vm6, %v1696_v15  ;;  %1865 = vst.msk [vmem:[#allocation4 + $0xc8] sm:$0xff] %vm1839_vm6, %v1698_v20 }
 0x246   :  { %2068 = vrot.lane.b32.xlu0 %v1922_v10, %s9035_s19  ;;  %2070 = vrot.lane.b32.xlu1 %v1923_v13, %s9035_s19  ;;  %v1954_v10 = vld [vmem:[#allocation2 + $0x389] sm:$0xff]  ;;  %v1955_v13 = vld [vmem:[#allocation2 + $0x391] sm:$0xff] }
 0x248   :  { %v1700_v30 = vpop.permute.xlu0 %1699  ;;  %v1702_v42 = vpop.permute.xlu1 %1701 }
 0x249   :  { %1866 = vst.msk [vmem:[#allocation4 + $0xd0] sm:$0xff] %vm1839_vm6, %v1700_v30  ;;  %1867 = vst.msk [vmem:[#allocation4 + $0xd8] sm:$0xff] %vm1839_vm6, %v1702_v42 }
 0x24a   :  { %2072 = vrot.lane.b32.xlu0 %v1924_v21, %s9035_s19  ;;  %2074 = vrot.lane.b32.xlu1 %v1925_v29, %s9035_s19  ;;  %v1956_v21 = vld [vmem:[#allocation2 + $0x3a9] sm:$0xff]  ;;  %v1957_v29 = vld [vmem:[#allocation2 + $0x3b1] sm:$0xff] }
 0x24c   :  { %v1704_v59 = vpop.permute.xlu0 %1703  ;;  %v1706_v1 = vpop.permute.xlu1 %1705 }
 0x24d   :  { %1868 = vst.msk [vmem:[#allocation4 + $0xe0] sm:$0xff] %vm1839_vm6, %v1704_v59  ;;  %1869 = vst.msk [vmem:[#allocation4 + $0xe8] sm:$0xff] %vm1839_vm6, %v1706_v1 }
 0x24e   :  { %2076 = vrot.lane.b32.xlu0 %v1926_v45, %s9035_s19  ;;  %2078 = vrot.lane.b32.xlu1 %v1927_v58, %s9035_s19  ;;  %v1958_v45 = vld [vmem:[#allocation2 + $0x3c9] sm:$0xff]  ;;  %v1959_v58 = vld [vmem:[#allocation2 + $0x3d1] sm:$0xff] }
 0x250   :  { %v1708_v12 = vpop.permute.xlu0 %1707  ;;  %v1710_v24 = vpop.permute.xlu1 %1709 }
 0x251   :  { %1870 = vst.msk [vmem:[#allocation4 + $0xf0] sm:$0xff] %vm1839_vm6, %v1708_v12  ;;  %1871 = vst.msk [vmem:[#allocation4 + $0xf8] sm:$0xff] %vm1839_vm6, %v1710_v24 }
 0x252   :  { %2080 = vrot.lane.b32.xlu0 %v1928_v3, %s9035_s19  ;;  %2082 = vrot.lane.b32.xlu1 %v1929_v11, %s9035_s19  ;;  %v1960_v3 = vld [vmem:[#allocation2 + $0x3e9] sm:$0xff]  ;;  %v1961_v11 = vld [vmem:[#allocation2 + $0x3f1] sm:$0xff] }
 0x254   :  { %v1712_v25 = vpop.permute.xlu0 %1711  ;;  %v1714_v50 = vpop.permute.xlu1 %1713 }
 0x255   :  { %1872 = vst.msk [vmem:[#allocation4 + $0x100] sm:$0xff] %vm1839_vm6, %v1712_v25  ;;  %1873 = vst.msk [vmem:[#allocation4 + $0x108] sm:$0xff] %vm1839_vm6, %v1714_v50 }
 0x256   :  { %2084 = vrot.lane.b32.xlu0 %v1930_v6, %s9035_s19  ;;  %2086 = vrot.lane.b32.xlu1 %v1931_v37, %s9035_s19  ;;  %v1962_v6 = vld [vmem:[#allocation2 + $0x409] sm:$0xff]  ;;  %v1963_v37 = vld [vmem:[#allocation2 + $0x411] sm:$0xff] }
 0x258   :  { %v1716_v16 = vpop.permute.xlu0 %1715  ;;  %v1718_v53 = vpop.permute.xlu1 %1717 }
 0x259   :  { %1874 = vst.msk [vmem:[#allocation4 + $0x110] sm:$0xff] %vm1839_vm6, %v1716_v16  ;;  %1875 = vst.msk [vmem:[#allocation4 + $0x118] sm:$0xff] %vm1839_vm6, %v1718_v53 }
 0x25a   :  { %2088 = vrot.lane.b32.xlu0 %v1932_v60, %s9035_s19  ;;  %2090 = vrot.lane.b32.xlu1 %v1933_v61, %s9035_s19  ;;  %v1964_v60 = vld [vmem:[#allocation2 + $0x429] sm:$0xff]  ;;  %v1965_v61 = vld [vmem:[#allocation2 + $0x431] sm:$0xff] }
 0x25c   :  { %v1720_v18 = vpop.permute.xlu0 %1719  ;;  %v1722_v19 = vpop.permute.xlu1 %1721 }
 0x25d   :  { %1876 = vst.msk [vmem:[#allocation4 + $0x120] sm:$0xff] %vm1839_vm6, %v1720_v18  ;;  %1877 = vst.msk [vmem:[#allocation4 + $0x128] sm:$0xff] %vm1839_vm6, %v1722_v19 }
 0x25e   :  { %2092 = vrot.lane.b32.xlu0 %v1934_v9, %s9035_s19  ;;  %2094 = vrot.lane.b32.xlu1 %v1935_v14, %s9035_s19  ;;  %v1966_v9 = vld [vmem:[#allocation2 + $0x449] sm:$0xff]  ;;  %v1967_v14 = vld [vmem:[#allocation2 + $0x451] sm:$0xff] }
 0x260   :  { %v1724_v26 = vpop.permute.xlu0 %1723  ;;  %v1726_v27 = vpop.permute.xlu1 %1725 }
 0x261   :  { %1878 = vst.msk [vmem:[#allocation4 + $0x130] sm:$0xff] %vm1839_vm6, %v1724_v26  ;;  %1879 = vst.msk [vmem:[#allocation4 + $0x138] sm:$0xff] %vm1839_vm6, %v1726_v27 }
 0x262   :  { %2096 = vrot.lane.b32.xlu0 %v1936_v22, %s9035_s19  ;;  %2098 = vrot.lane.b32.xlu1 %v1937_v23, %s9035_s19  ;;  %v2290_v22 = vld [vmem:[#allocation2 + $0x47] sm:$0xff]  ;;  %v2291_v23 = vld [vmem:[#allocation2 + $0x4f] sm:$0xff] }
 0x264   :  { %v1728_v32 = vpop.permute.xlu0 %1727  ;;  %v1730_v33 = vpop.permute.xlu1 %1729 }
 0x265   :  { %1880 = vst.msk [vmem:[#allocation4 + $0x140] sm:$0xff] %vm1839_vm6, %v1728_v32  ;;  %1881 = vst.msk [vmem:[#allocation4 + $0x148] sm:$0xff] %vm1839_vm6, %v1730_v33 }
 0x266   :  { %2100 = vrot.lane.b32.xlu0 %v1938_v28, %s9035_s19  ;;  %2102 = vrot.lane.b32.xlu1 %v1939_v31, %s9035_s19  ;;  %v2292_v28 = vld [vmem:[#allocation2 + $0x67] sm:$0xff]  ;;  %v2293_v31 = vld [vmem:[#allocation2 + $0x6f] sm:$0xff] }
 0x268   :  { %v1732_v38 = vpop.permute.xlu0 %1731  ;;  %v1734_v39 = vpop.permute.xlu1 %1733 }
 0x269   :  { %1882 = vst.msk [vmem:[#allocation4 + $0x150] sm:$0xff] %vm1839_vm6, %v1732_v38  ;;  %1883 = vst.msk [vmem:[#allocation4 + $0x158] sm:$0xff] %vm1839_vm6, %v1734_v39 }
 0x26a   :  { %2104 = vrot.lane.b32.xlu0 %v1940_v35, %s9035_s19  ;;  %2106 = vrot.lane.b32.xlu1 %v1941_v36, %s9035_s19  ;;  %v2294_v35 = vld [vmem:[#allocation2 + $0x87] sm:$0xff]  ;;  %v2295_v36 = vld [vmem:[#allocation2 + $0x8f] sm:$0xff] }
 0x26c   :  { %v1736_v43 = vpop.permute.xlu0 %1735  ;;  %v1738_v44 = vpop.permute.xlu1 %1737 }
 0x26d   :  { %1884 = vst.msk [vmem:[#allocation4 + $0x160] sm:$0xff] %vm1839_vm6, %v1736_v43  ;;  %1885 = vst.msk [vmem:[#allocation4 + $0x168] sm:$0xff] %vm1839_vm6, %v1738_v44 }
 0x26e   :  { %2108 = vrot.lane.b32.xlu0 %v1942_v40, %s9035_s19  ;;  %2110 = vrot.lane.b32.xlu1 %v1943_v41, %s9035_s19  ;;  %v2296_v40 = vld [vmem:[#allocation2 + $0xa7] sm:$0xff]  ;;  %v2297_v41 = vld [vmem:[#allocation2 + $0xaf] sm:$0xff] }
 0x270   :  { %v1740_v48 = vpop.permute.xlu0 %1739  ;;  %v1742_v49 = vpop.permute.xlu1 %1741 }
 0x271   :  { %1886 = vst.msk [vmem:[#allocation4 + $0x170] sm:$0xff] %vm1839_vm6, %v1740_v48  ;;  %1887 = vst.msk [vmem:[#allocation4 + $0x178] sm:$0xff] %vm1839_vm6, %v1742_v49 }
 0x272   :  { %2112 = vrot.lane.b32.xlu0 %v1944_v46, %s9035_s19  ;;  %2114 = vrot.lane.b32.xlu1 %v1945_v47, %s9035_s19  ;;  %v2298_v46 = vld [vmem:[#allocation2 + $0xc7] sm:$0xff]  ;;  %v2299_v47 = vld [vmem:[#allocation2 + $0xcf] sm:$0xff] }
 0x274   :  { %v1744_v34 = vpop.permute.xlu0 %1743  ;;  %v1746_v2 = vpop.permute.xlu1 %1745 }
 0x275   :  { %1888 = vst.msk [vmem:[#allocation4 + $0x180] sm:$0xff] %vm1839_vm6, %v1744_v34  ;;  %1889 = vst.msk [vmem:[#allocation4 + $0x188] sm:$0xff] %vm1839_vm6, %v1746_v2 }
 0x276   :  { %2116 = vrot.lane.b32.xlu0 %v1946_v51, %s9035_s19  ;;  %2118 = vrot.lane.b32.xlu1 %v1947_v52, %s9035_s19  ;;  %v2300_v51 = vld [vmem:[#allocation2 + $0xe7] sm:$0xff]  ;;  %v2301_v52 = vld [vmem:[#allocation2 + $0xef] sm:$0xff] }
 0x278   :  { %v1748_v56 = vpop.permute.xlu0 %1747  ;;  %v1750_v57 = vpop.permute.xlu1 %1749 }
 0x279   :  { %1890 = vst.msk [vmem:[#allocation4 + $0x190] sm:$0xff] %vm1839_vm6, %v1748_v56  ;;  %1891 = vst.msk [vmem:[#allocation4 + $0x198] sm:$0xff] %vm1839_vm6, %v1750_v57 }
 0x27a   :  { %2120 = vrot.lane.b32.xlu0 %v1948_v54, %s9035_s19  ;;  %2122 = vrot.lane.b32.xlu1 %v1949_v55, %s9035_s19  ;;  %v2302_v54 = vld [vmem:[#allocation2 + $0x107] sm:$0xff]  ;;  %v2303_v55 = vld [vmem:[#allocation2 + $0x10f] sm:$0xff] }
 0x27c   :  { %v1752_v62 = vpop.permute.xlu0 %1751  ;;  %v1754_v63 = vpop.permute.xlu1 %1753 }
 0x27d   :  { %1892 = vst.msk [vmem:[#allocation4 + $0x1a0] sm:$0xff] %vm1839_vm6, %v1752_v62  ;;  %1893 = vst.msk [vmem:[#allocation4 + $0x1a8] sm:$0xff] %vm1839_vm6, %v1754_v63 }
 0x27e   :  { %2124 = vrot.lane.b32.xlu0 %v1950_v17, %s9035_s19  ;;  %2126 = vrot.lane.b32.xlu1 %v1951_v7, %s9035_s19  ;;  %v2304_v17 = vld [vmem:[#allocation2 + $0x127] sm:$0xff]  ;;  %v2305_v7 = vld [vmem:[#allocation2 + $0x12f] sm:$0xff] }
 0x280   :  { %v1756_v5 = vpop.permute.xlu0 %1755  ;;  %v1758_v8 = vpop.permute.xlu1 %1757 }
 0x281   :  { %1894 = vst.msk [vmem:[#allocation4 + $0x1b0] sm:$0xff] %vm1839_vm6, %v1756_v5  ;;  %1895 = vst.msk [vmem:[#allocation4 + $0x1b8] sm:$0xff] %vm1839_vm6, %v1758_v8 }
 0x282   :  { %2128 = vrot.lane.b32.xlu0 %v1952_v0, %s9035_s19  ;;  %2130 = vrot.lane.b32.xlu1 %v1953_v4, %s9035_s19  ;;  %v2306_v0 = vld [vmem:[#allocation2 + $0x147] sm:$0xff]  ;;  %v2307_v4 = vld [vmem:[#allocation2 + $0x14f] sm:$0xff] }
 0x284   :  { %v1760_v15 = vpop.permute.xlu0 %1759  ;;  %v1762_v20 = vpop.permute.xlu1 %1761 }
 0x285   :  { %1896 = vst.msk [vmem:[#allocation4 + $0x1c0] sm:$0xff] %vm1839_vm6, %v1760_v15  ;;  %1897 = vst.msk [vmem:[#allocation4 + $0x1c8] sm:$0xff] %vm1839_vm6, %v1762_v20 }
 0x286   :  { %2132 = vrot.lane.b32.xlu0 %v1954_v10, %s9035_s19  ;;  %2134 = vrot.lane.b32.xlu1 %v1955_v13, %s9035_s19  ;;  %v2308_v10 = vld [vmem:[#allocation2 + $0x167] sm:$0xff]  ;;  %v2309_v13 = vld [vmem:[#allocation2 + $0x16f] sm:$0xff] }
 0x288   :  { %v1764_v30 = vpop.permute.xlu0 %1763  ;;  %v1766_v42 = vpop.permute.xlu1 %1765 }
 0x289   :  { %1898 = vst.msk [vmem:[#allocation4 + $0x1d0] sm:$0xff] %vm1839_vm6, %v1764_v30  ;;  %1899 = vst.msk [vmem:[#allocation4 + $0x1d8] sm:$0xff] %vm1839_vm6, %v1766_v42 }
 0x28a   :  { %2136 = vrot.lane.b32.xlu0 %v1956_v21, %s9035_s19  ;;  %2138 = vrot.lane.b32.xlu1 %v1957_v29, %s9035_s19  ;;  %v2310_v21 = vld [vmem:[#allocation2 + $0x187] sm:$0xff]  ;;  %v2311_v29 = vld [vmem:[#allocation2 + $0x18f] sm:$0xff] }
 0x28c   :  { %v1768_v59 = vpop.permute.xlu0 %1767  ;;  %v1770_v1 = vpop.permute.xlu1 %1769 }
 0x28d   :  { %1900 = vst.msk [vmem:[#allocation4 + $0x1e0] sm:$0xff] %vm1839_vm6, %v1768_v59  ;;  %1901 = vst.msk [vmem:[#allocation4 + $0x1e8] sm:$0xff] %vm1839_vm6, %v1770_v1 }
 0x28e   :  { %2140 = vrot.lane.b32.xlu0 %v1958_v45, %s9035_s19  ;;  %2142 = vrot.lane.b32.xlu1 %v1959_v58, %s9035_s19  ;;  %v2312_v45 = vld [vmem:[#allocation2 + $0x1a7] sm:$0xff]  ;;  %v2313_v58 = vld [vmem:[#allocation2 + $0x1af] sm:$0xff] }
 0x290   :  { %v1772_v12 = vpop.permute.xlu0 %1771  ;;  %v1774_v24 = vpop.permute.xlu1 %1773 }
 0x291   :  { %1902 = vst.msk [vmem:[#allocation4 + $0x1f0] sm:$0xff] %vm1839_vm6, %v1772_v12  ;;  %1903 = vst.msk [vmem:[#allocation4 + $0x1f8] sm:$0xff] %vm1839_vm6, %v1774_v24  ;;  %vm7071_vm6 = vcmask 523712  }
 0x292   :  { %2144 = vrot.lane.b32.xlu0 %v1960_v3, %s9035_s19  ;;  %2146 = vrot.lane.b32.xlu1 %v1961_v11, %s9035_s19  ;;  %v2314_v3 = vld [vmem:[#allocation2 + $0x1c7] sm:$0xff]  ;;  %v2315_v11 = vld [vmem:[#allocation2 + $0x1cf] sm:$0xff] }
 0x294   :  { %v2033_v25 = vpop.permute.xlu0 %2032  ;;  %v2035_v50 = vpop.permute.xlu1 %2034 }
 0x295   :  { %2225 = vst.msk [vmem:[#allocation4] sm:$0xff] %vm2224_vm7, %v2033_v25  ;;  %2226 = vst.msk [vmem:[#allocation4 + $0x8] sm:$0xff] %vm2224_vm7, %v2035_v50 }
 0x296   :  { %2148 = vrot.lane.b32.xlu0 %v1962_v6, %s9035_s19  ;;  %2150 = vrot.lane.b32.xlu1 %v1963_v37, %s9035_s19  ;;  %v2316_v6 = vld [vmem:[#allocation2 + $0x1e7] sm:$0xff]  ;;  %v2317_v37 = vld [vmem:[#allocation2 + $0x1ef] sm:$0xff] }
 0x298   :  { %v2037_v16 = vpop.permute.xlu0 %2036  ;;  %v2039_v53 = vpop.permute.xlu1 %2038 }
 0x299   :  { %2227 = vst.msk [vmem:[#allocation4 + $0x10] sm:$0xff] %vm2224_vm7, %v2037_v16  ;;  %2228 = vst.msk [vmem:[#allocation4 + $0x18] sm:$0xff] %vm2224_vm7, %v2039_v53 }
 0x29a   :  { %2152 = vrot.lane.b32.xlu0 %v1964_v60, %s9035_s19  ;;  %2154 = vrot.lane.b32.xlu1 %v1965_v61, %s9035_s19  ;;  %v2318_v60 = vld [vmem:[#allocation2 + $0x207] sm:$0xff]  ;;  %v2319_v61 = vld [vmem:[#allocation2 + $0x20f] sm:$0xff] }
 0x29c   :  { %v2041_v18 = vpop.permute.xlu0 %2040  ;;  %v2043_v19 = vpop.permute.xlu1 %2042 }
 0x29d   :  { %2229 = vst.msk [vmem:[#allocation4 + $0x20] sm:$0xff] %vm2224_vm7, %v2041_v18  ;;  %2230 = vst.msk [vmem:[#allocation4 + $0x28] sm:$0xff] %vm2224_vm7, %v2043_v19 }
 0x29e   :  { %2156 = vrot.lane.b32.xlu0 %v1966_v9, %s9035_s19  ;;  %2158 = vrot.lane.b32.xlu1 %v1967_v14, %s9035_s19  ;;  %v2320_v9 = vld [vmem:[#allocation2 + $0x227] sm:$0xff]  ;;  %v2321_v14 = vld [vmem:[#allocation2 + $0x22f] sm:$0xff] }
 0x2a0   :  { %v2045_v26 = vpop.permute.xlu0 %2044  ;;  %v2047_v27 = vpop.permute.xlu1 %2046 }
 0x2a1   :  { %2231 = vst.msk [vmem:[#allocation4 + $0x30] sm:$0xff] %vm2224_vm7, %v2045_v26  ;;  %2232 = vst.msk [vmem:[#allocation4 + $0x38] sm:$0xff] %vm2224_vm7, %v2047_v27 }
 0x2a2   :  { %2418 = vrot.lane.b32.xlu0 %v2290_v22, %s9036_s20  ;;  %2420 = vrot.lane.b32.xlu1 %v2291_v23, %s9036_s20  ;;  %v2322_v22 = vld [vmem:[#allocation2 + $0x287] sm:$0xff]  ;;  %v2323_v23 = vld [vmem:[#allocation2 + $0x28f] sm:$0xff] }
 0x2a4   :  { %v2049_v32 = vpop.permute.xlu0 %2048  ;;  %v2051_v33 = vpop.permute.xlu1 %2050 }
 0x2a5   :  { %2233 = vst.msk [vmem:[#allocation4 + $0x40] sm:$0xff] %vm2224_vm7, %v2049_v32  ;;  %2234 = vst.msk [vmem:[#allocation4 + $0x48] sm:$0xff] %vm2224_vm7, %v2051_v33 }
 0x2a6   :  { %2422 = vrot.lane.b32.xlu0 %v2292_v28, %s9036_s20  ;;  %2424 = vrot.lane.b32.xlu1 %v2293_v31, %s9036_s20  ;;  %v2324_v28 = vld [vmem:[#allocation2 + $0x2a7] sm:$0xff]  ;;  %v2325_v31 = vld [vmem:[#allocation2 + $0x2af] sm:$0xff] }
 0x2a8   :  { %v2053_v38 = vpop.permute.xlu0 %2052  ;;  %v2055_v39 = vpop.permute.xlu1 %2054 }
 0x2a9   :  { %2235 = vst.msk [vmem:[#allocation4 + $0x50] sm:$0xff] %vm2224_vm7, %v2053_v38  ;;  %2236 = vst.msk [vmem:[#allocation4 + $0x58] sm:$0xff] %vm2224_vm7, %v2055_v39 }
 0x2aa   :  { %2426 = vrot.lane.b32.xlu0 %v2294_v35, %s9036_s20  ;;  %2428 = vrot.lane.b32.xlu1 %v2295_v36, %s9036_s20  ;;  %v2326_v35 = vld [vmem:[#allocation2 + $0x2c7] sm:$0xff]  ;;  %v2327_v36 = vld [vmem:[#allocation2 + $0x2cf] sm:$0xff] }
 0x2ac   :  { %v2057_v43 = vpop.permute.xlu0 %2056  ;;  %v2059_v44 = vpop.permute.xlu1 %2058 }
 0x2ad   :  { %2237 = vst.msk [vmem:[#allocation4 + $0x60] sm:$0xff] %vm2224_vm7, %v2057_v43  ;;  %2238 = vst.msk [vmem:[#allocation4 + $0x68] sm:$0xff] %vm2224_vm7, %v2059_v44 }
 0x2ae   :  { %2430 = vrot.lane.b32.xlu0 %v2296_v40, %s9036_s20  ;;  %2432 = vrot.lane.b32.xlu1 %v2297_v41, %s9036_s20  ;;  %v2328_v40 = vld [vmem:[#allocation2 + $0x2e7] sm:$0xff]  ;;  %v2329_v41 = vld [vmem:[#allocation2 + $0x2ef] sm:$0xff] }
 0x2b0   :  { %v2061_v48 = vpop.permute.xlu0 %2060  ;;  %v2063_v49 = vpop.permute.xlu1 %2062 }
 0x2b1   :  { %2239 = vst.msk [vmem:[#allocation4 + $0x70] sm:$0xff] %vm2224_vm7, %v2061_v48  ;;  %2240 = vst.msk [vmem:[#allocation4 + $0x78] sm:$0xff] %vm2224_vm7, %v2063_v49 }
 0x2b2   :  { %2434 = vrot.lane.b32.xlu0 %v2298_v46, %s9036_s20  ;;  %2436 = vrot.lane.b32.xlu1 %v2299_v47, %s9036_s20  ;;  %v2330_v46 = vld [vmem:[#allocation2 + $0x307] sm:$0xff]  ;;  %v2331_v47 = vld [vmem:[#allocation2 + $0x30f] sm:$0xff] }
 0x2b4   :  { %v2065_v34 = vpop.permute.xlu0 %2064  ;;  %v2067_v2 = vpop.permute.xlu1 %2066 }
 0x2b5   :  { %2241 = vst.msk [vmem:[#allocation4 + $0x80] sm:$0xff] %vm2224_vm7, %v2065_v34  ;;  %2242 = vst.msk [vmem:[#allocation4 + $0x88] sm:$0xff] %vm2224_vm7, %v2067_v2 }
 0x2b6   :  { %2438 = vrot.lane.b32.xlu0 %v2300_v51, %s9036_s20  ;;  %2440 = vrot.lane.b32.xlu1 %v2301_v52, %s9036_s20  ;;  %v2332_v51 = vld [vmem:[#allocation2 + $0x327] sm:$0xff]  ;;  %v2333_v52 = vld [vmem:[#allocation2 + $0x32f] sm:$0xff] }
 0x2b8   :  { %v2069_v56 = vpop.permute.xlu0 %2068  ;;  %v2071_v57 = vpop.permute.xlu1 %2070 }
 0x2b9   :  { %2243 = vst.msk [vmem:[#allocation4 + $0x90] sm:$0xff] %vm2224_vm7, %v2069_v56  ;;  %2244 = vst.msk [vmem:[#allocation4 + $0x98] sm:$0xff] %vm2224_vm7, %v2071_v57 }
 0x2ba   :  { %2442 = vrot.lane.b32.xlu0 %v2302_v54, %s9036_s20  ;;  %2444 = vrot.lane.b32.xlu1 %v2303_v55, %s9036_s20  ;;  %v2334_v54 = vld [vmem:[#allocation2 + $0x347] sm:$0xff]  ;;  %v2335_v55 = vld [vmem:[#allocation2 + $0x34f] sm:$0xff] }
 0x2bc   :  { %v2073_v62 = vpop.permute.xlu0 %2072  ;;  %v2075_v63 = vpop.permute.xlu1 %2074 }
 0x2bd   :  { %2245 = vst.msk [vmem:[#allocation4 + $0xa0] sm:$0xff] %vm2224_vm7, %v2073_v62  ;;  %2246 = vst.msk [vmem:[#allocation4 + $0xa8] sm:$0xff] %vm2224_vm7, %v2075_v63 }
 0x2be   :  { %2446 = vrot.lane.b32.xlu0 %v2304_v17, %s9036_s20  ;;  %2448 = vrot.lane.b32.xlu1 %v2305_v7, %s9036_s20  ;;  %v2336_v17 = vld [vmem:[#allocation2 + $0x367] sm:$0xff]  ;;  %v2337_v7 = vld [vmem:[#allocation2 + $0x36f] sm:$0xff] }
 0x2c0   :  { %v2077_v5 = vpop.permute.xlu0 %2076  ;;  %v2079_v8 = vpop.permute.xlu1 %2078 }
 0x2c1   :  { %2247 = vst.msk [vmem:[#allocation4 + $0xb0] sm:$0xff] %vm2224_vm7, %v2077_v5  ;;  %2248 = vst.msk [vmem:[#allocation4 + $0xb8] sm:$0xff] %vm2224_vm7, %v2079_v8 }
 0x2c2   :  { %2450 = vrot.lane.b32.xlu0 %v2306_v0, %s9036_s20  ;;  %2452 = vrot.lane.b32.xlu1 %v2307_v4, %s9036_s20  ;;  %v2338_v0 = vld [vmem:[#allocation2 + $0x387] sm:$0xff]  ;;  %v2339_v4 = vld [vmem:[#allocation2 + $0x38f] sm:$0xff] }
 0x2c4   :  { %v2081_v15 = vpop.permute.xlu0 %2080  ;;  %v2083_v20 = vpop.permute.xlu1 %2082 }
 0x2c5   :  { %2249 = vst.msk [vmem:[#allocation4 + $0xc0] sm:$0xff] %vm2224_vm7, %v2081_v15  ;;  %2250 = vst.msk [vmem:[#allocation4 + $0xc8] sm:$0xff] %vm2224_vm7, %v2083_v20 }
 0x2c6   :  { %2454 = vrot.lane.b32.xlu0 %v2308_v10, %s9036_s20  ;;  %2456 = vrot.lane.b32.xlu1 %v2309_v13, %s9036_s20  ;;  %v2340_v10 = vld [vmem:[#allocation2 + $0x3a7] sm:$0xff]  ;;  %v2341_v13 = vld [vmem:[#allocation2 + $0x3af] sm:$0xff] }
 0x2c8   :  { %v2085_v30 = vpop.permute.xlu0 %2084  ;;  %v2087_v42 = vpop.permute.xlu1 %2086 }
 0x2c9   :  { %2251 = vst.msk [vmem:[#allocation4 + $0xd0] sm:$0xff] %vm2224_vm7, %v2085_v30  ;;  %2252 = vst.msk [vmem:[#allocation4 + $0xd8] sm:$0xff] %vm2224_vm7, %v2087_v42 }
 0x2ca   :  { %2458 = vrot.lane.b32.xlu0 %v2310_v21, %s9036_s20  ;;  %2460 = vrot.lane.b32.xlu1 %v2311_v29, %s9036_s20  ;;  %v2342_v21 = vld [vmem:[#allocation2 + $0x3c7] sm:$0xff]  ;;  %v2343_v29 = vld [vmem:[#allocation2 + $0x3cf] sm:$0xff] }
 0x2cc   :  { %v2089_v59 = vpop.permute.xlu0 %2088  ;;  %v2091_v1 = vpop.permute.xlu1 %2090 }
 0x2cd   :  { %2253 = vst.msk [vmem:[#allocation4 + $0xe0] sm:$0xff] %vm2224_vm7, %v2089_v59  ;;  %2254 = vst.msk [vmem:[#allocation4 + $0xe8] sm:$0xff] %vm2224_vm7, %v2091_v1 }
 0x2ce   :  { %2462 = vrot.lane.b32.xlu0 %v2312_v45, %s9036_s20  ;;  %2464 = vrot.lane.b32.xlu1 %v2313_v58, %s9036_s20  ;;  %v2344_v45 = vld [vmem:[#allocation2 + $0x3e7] sm:$0xff]  ;;  %v2345_v58 = vld [vmem:[#allocation2 + $0x3ef] sm:$0xff] }
 0x2d0   :  { %v2093_v12 = vpop.permute.xlu0 %2092  ;;  %v2095_v24 = vpop.permute.xlu1 %2094 }
 0x2d1   :  { %2255 = vst.msk [vmem:[#allocation4 + $0xf0] sm:$0xff] %vm2224_vm7, %v2093_v12  ;;  %2256 = vst.msk [vmem:[#allocation4 + $0xf8] sm:$0xff] %vm2224_vm7, %v2095_v24 }
 0x2d2   :  { %2466 = vrot.lane.b32.xlu0 %v2314_v3, %s9036_s20  ;;  %2468 = vrot.lane.b32.xlu1 %v2315_v11, %s9036_s20  ;;  %v2346_v3 = vld [vmem:[#allocation2 + $0x407] sm:$0xff]  ;;  %v2347_v11 = vld [vmem:[#allocation2 + $0x40f] sm:$0xff] }
 0x2d4   :  { %v2097_v25 = vpop.permute.xlu0 %2096  ;;  %v2099_v50 = vpop.permute.xlu1 %2098 }
 0x2d5   :  { %2257 = vst.msk [vmem:[#allocation4 + $0x100] sm:$0xff] %vm2224_vm7, %v2097_v25  ;;  %2258 = vst.msk [vmem:[#allocation4 + $0x108] sm:$0xff] %vm2224_vm7, %v2099_v50 }
 0x2d6   :  { %2470 = vrot.lane.b32.xlu0 %v2316_v6, %s9036_s20  ;;  %2472 = vrot.lane.b32.xlu1 %v2317_v37, %s9036_s20  ;;  %v2348_v6 = vld [vmem:[#allocation2 + $0x427] sm:$0xff]  ;;  %v2349_v37 = vld [vmem:[#allocation2 + $0x42f] sm:$0xff] }
 0x2d8   :  { %v2101_v16 = vpop.permute.xlu0 %2100  ;;  %v2103_v53 = vpop.permute.xlu1 %2102 }
 0x2d9   :  { %2259 = vst.msk [vmem:[#allocation4 + $0x110] sm:$0xff] %vm2224_vm7, %v2101_v16  ;;  %2260 = vst.msk [vmem:[#allocation4 + $0x118] sm:$0xff] %vm2224_vm7, %v2103_v53 }
 0x2da   :  { %2474 = vrot.lane.b32.xlu0 %v2318_v60, %s9036_s20  ;;  %2476 = vrot.lane.b32.xlu1 %v2319_v61, %s9036_s20  ;;  %v2350_v60 = vld [vmem:[#allocation2 + $0x447] sm:$0xff]  ;;  %v2351_v61 = vld [vmem:[#allocation2 + $0x44f] sm:$0xff] }
 0x2dc   :  { %v2105_v18 = vpop.permute.xlu0 %2104  ;;  %v2107_v19 = vpop.permute.xlu1 %2106 }
 0x2dd   :  { %2261 = vst.msk [vmem:[#allocation4 + $0x120] sm:$0xff] %vm2224_vm7, %v2105_v18  ;;  %2262 = vst.msk [vmem:[#allocation4 + $0x128] sm:$0xff] %vm2224_vm7, %v2107_v19 }
 0x2de   :  { %2478 = vrot.lane.b32.xlu0 %v2320_v9, %s9036_s20  ;;  %2480 = vrot.lane.b32.xlu1 %v2321_v14, %s9036_s20  ;;  %v2352_v9 = vld [vmem:[#allocation2 + $0x467] sm:$0xff]  ;;  %v2353_v14 = vld [vmem:[#allocation2 + $0x46f] sm:$0xff] }
 0x2e0   :  { %v2109_v26 = vpop.permute.xlu0 %2108  ;;  %v2111_v27 = vpop.permute.xlu1 %2110 }
 0x2e1   :  { %2263 = vst.msk [vmem:[#allocation4 + $0x130] sm:$0xff] %vm2224_vm7, %v2109_v26  ;;  %2264 = vst.msk [vmem:[#allocation4 + $0x138] sm:$0xff] %vm2224_vm7, %v2111_v27 }
 0x2e2   :  { %2482 = vrot.lane.b32.xlu0 %v2322_v22, %s9036_s20  ;;  %2484 = vrot.lane.b32.xlu1 %v2323_v23, %s9036_s20  ;;  %v2675_v22 = vld [vmem:[#allocation2 + $0x48] sm:$0xff]  ;;  %v2676_v23 = vld [vmem:[#allocation2 + $0x50] sm:$0xff] }
 0x2e4   :  { %v2113_v32 = vpop.permute.xlu0 %2112  ;;  %v2115_v33 = vpop.permute.xlu1 %2114 }
 0x2e5   :  { %2265 = vst.msk [vmem:[#allocation4 + $0x140] sm:$0xff] %vm2224_vm7, %v2113_v32  ;;  %2266 = vst.msk [vmem:[#allocation4 + $0x148] sm:$0xff] %vm2224_vm7, %v2115_v33 }
 0x2e6   :  { %2486 = vrot.lane.b32.xlu0 %v2324_v28, %s9036_s20  ;;  %2488 = vrot.lane.b32.xlu1 %v2325_v31, %s9036_s20  ;;  %v2677_v28 = vld [vmem:[#allocation2 + $0x68] sm:$0xff]  ;;  %v2678_v31 = vld [vmem:[#allocation2 + $0x70] sm:$0xff] }
 0x2e8   :  { %v2117_v38 = vpop.permute.xlu0 %2116  ;;  %v2119_v39 = vpop.permute.xlu1 %2118 }
 0x2e9   :  { %2267 = vst.msk [vmem:[#allocation4 + $0x150] sm:$0xff] %vm2224_vm7, %v2117_v38  ;;  %2268 = vst.msk [vmem:[#allocation4 + $0x158] sm:$0xff] %vm2224_vm7, %v2119_v39 }
 0x2ea   :  { %2490 = vrot.lane.b32.xlu0 %v2326_v35, %s9036_s20  ;;  %2492 = vrot.lane.b32.xlu1 %v2327_v36, %s9036_s20  ;;  %v2679_v35 = vld [vmem:[#allocation2 + $0x88] sm:$0xff]  ;;  %v2680_v36 = vld [vmem:[#allocation2 + $0x90] sm:$0xff] }
 0x2ec   :  { %v2121_v43 = vpop.permute.xlu0 %2120  ;;  %v2123_v44 = vpop.permute.xlu1 %2122 }
 0x2ed   :  { %2269 = vst.msk [vmem:[#allocation4 + $0x160] sm:$0xff] %vm2224_vm7, %v2121_v43  ;;  %2270 = vst.msk [vmem:[#allocation4 + $0x168] sm:$0xff] %vm2224_vm7, %v2123_v44 }
 0x2ee   :  { %2494 = vrot.lane.b32.xlu0 %v2328_v40, %s9036_s20  ;;  %2496 = vrot.lane.b32.xlu1 %v2329_v41, %s9036_s20  ;;  %v2681_v40 = vld [vmem:[#allocation2 + $0xa8] sm:$0xff]  ;;  %v2682_v41 = vld [vmem:[#allocation2 + $0xb0] sm:$0xff] }
 0x2f0   :  { %v2125_v48 = vpop.permute.xlu0 %2124  ;;  %v2127_v49 = vpop.permute.xlu1 %2126 }
 0x2f1   :  { %2271 = vst.msk [vmem:[#allocation4 + $0x170] sm:$0xff] %vm2224_vm7, %v2125_v48  ;;  %2272 = vst.msk [vmem:[#allocation4 + $0x178] sm:$0xff] %vm2224_vm7, %v2127_v49 }
 0x2f2   :  { %2498 = vrot.lane.b32.xlu0 %v2330_v46, %s9036_s20  ;;  %2500 = vrot.lane.b32.xlu1 %v2331_v47, %s9036_s20  ;;  %v2683_v46 = vld [vmem:[#allocation2 + $0xc8] sm:$0xff]  ;;  %v2684_v47 = vld [vmem:[#allocation2 + $0xd0] sm:$0xff] }
 0x2f4   :  { %v2129_v34 = vpop.permute.xlu0 %2128  ;;  %v2131_v2 = vpop.permute.xlu1 %2130 }
 0x2f5   :  { %2273 = vst.msk [vmem:[#allocation4 + $0x180] sm:$0xff] %vm2224_vm7, %v2129_v34  ;;  %2274 = vst.msk [vmem:[#allocation4 + $0x188] sm:$0xff] %vm2224_vm7, %v2131_v2 }
 0x2f6   :  { %2502 = vrot.lane.b32.xlu0 %v2332_v51, %s9036_s20  ;;  %2504 = vrot.lane.b32.xlu1 %v2333_v52, %s9036_s20  ;;  %v2685_v51 = vld [vmem:[#allocation2 + $0xe8] sm:$0xff]  ;;  %v2686_v52 = vld [vmem:[#allocation2 + $0xf0] sm:$0xff] }
 0x2f8   :  { %v2133_v56 = vpop.permute.xlu0 %2132  ;;  %v2135_v57 = vpop.permute.xlu1 %2134 }
 0x2f9   :  { %2275 = vst.msk [vmem:[#allocation4 + $0x190] sm:$0xff] %vm2224_vm7, %v2133_v56  ;;  %2276 = vst.msk [vmem:[#allocation4 + $0x198] sm:$0xff] %vm2224_vm7, %v2135_v57 }
 0x2fa   :  { %2506 = vrot.lane.b32.xlu0 %v2334_v54, %s9036_s20  ;;  %2508 = vrot.lane.b32.xlu1 %v2335_v55, %s9036_s20  ;;  %v2687_v54 = vld [vmem:[#allocation2 + $0x108] sm:$0xff]  ;;  %v2688_v55 = vld [vmem:[#allocation2 + $0x110] sm:$0xff] }
 0x2fc   :  { %v2137_v62 = vpop.permute.xlu0 %2136  ;;  %v2139_v63 = vpop.permute.xlu1 %2138 }
 0x2fd   :  { %2277 = vst.msk [vmem:[#allocation4 + $0x1a0] sm:$0xff] %vm2224_vm7, %v2137_v62  ;;  %2278 = vst.msk [vmem:[#allocation4 + $0x1a8] sm:$0xff] %vm2224_vm7, %v2139_v63 }
 0x2fe   :  { %2510 = vrot.lane.b32.xlu0 %v2336_v17, %s9036_s20  ;;  %2512 = vrot.lane.b32.xlu1 %v2337_v7, %s9036_s20  ;;  %v2689_v17 = vld [vmem:[#allocation2 + $0x128] sm:$0xff]  ;;  %v2690_v7 = vld [vmem:[#allocation2 + $0x130] sm:$0xff] }
 0x300   :  { %v2141_v5 = vpop.permute.xlu0 %2140  ;;  %v2143_v8 = vpop.permute.xlu1 %2142 }
 0x301   :  { %2279 = vst.msk [vmem:[#allocation4 + $0x1b0] sm:$0xff] %vm2224_vm7, %v2141_v5  ;;  %2280 = vst.msk [vmem:[#allocation4 + $0x1b8] sm:$0xff] %vm2224_vm7, %v2143_v8 }
 0x302   :  { %2514 = vrot.lane.b32.xlu0 %v2338_v0, %s9036_s20  ;;  %2516 = vrot.lane.b32.xlu1 %v2339_v4, %s9036_s20  ;;  %v2691_v0 = vld [vmem:[#allocation2 + $0x148] sm:$0xff]  ;;  %v2692_v4 = vld [vmem:[#allocation2 + $0x150] sm:$0xff] }
 0x304   :  { %v2145_v15 = vpop.permute.xlu0 %2144  ;;  %v2147_v20 = vpop.permute.xlu1 %2146 }
 0x305   :  { %2281 = vst.msk [vmem:[#allocation4 + $0x1c0] sm:$0xff] %vm2224_vm7, %v2145_v15  ;;  %2282 = vst.msk [vmem:[#allocation4 + $0x1c8] sm:$0xff] %vm2224_vm7, %v2147_v20 }
 0x306   :  { %2518 = vrot.lane.b32.xlu0 %v2340_v10, %s9036_s20  ;;  %2520 = vrot.lane.b32.xlu1 %v2341_v13, %s9036_s20  ;;  %v2693_v10 = vld [vmem:[#allocation2 + $0x168] sm:$0xff]  ;;  %v2694_v13 = vld [vmem:[#allocation2 + $0x170] sm:$0xff] }
 0x308   :  { %v2149_v30 = vpop.permute.xlu0 %2148  ;;  %v2151_v42 = vpop.permute.xlu1 %2150 }
 0x309   :  { %2283 = vst.msk [vmem:[#allocation4 + $0x1d0] sm:$0xff] %vm2224_vm7, %v2149_v30  ;;  %2284 = vst.msk [vmem:[#allocation4 + $0x1d8] sm:$0xff] %vm2224_vm7, %v2151_v42 }
 0x30a   :  { %2522 = vrot.lane.b32.xlu0 %v2342_v21, %s9036_s20  ;;  %2524 = vrot.lane.b32.xlu1 %v2343_v29, %s9036_s20  ;;  %v2695_v21 = vld [vmem:[#allocation2 + $0x188] sm:$0xff]  ;;  %v2696_v29 = vld [vmem:[#allocation2 + $0x190] sm:$0xff] }
 0x30c   :  { %v2153_v59 = vpop.permute.xlu0 %2152  ;;  %v2155_v1 = vpop.permute.xlu1 %2154 }
 0x30d   :  { %2285 = vst.msk [vmem:[#allocation4 + $0x1e0] sm:$0xff] %vm2224_vm7, %v2153_v59  ;;  %2286 = vst.msk [vmem:[#allocation4 + $0x1e8] sm:$0xff] %vm2224_vm7, %v2155_v1 }
 0x30e   :  { %2526 = vrot.lane.b32.xlu0 %v2344_v45, %s9036_s20  ;;  %2528 = vrot.lane.b32.xlu1 %v2345_v58, %s9036_s20  ;;  %v2697_v45 = vld [vmem:[#allocation2 + $0x1a8] sm:$0xff]  ;;  %v2698_v58 = vld [vmem:[#allocation2 + $0x1b0] sm:$0xff] }
 0x310   :  { %v2157_v12 = vpop.permute.xlu0 %2156  ;;  %v2159_v24 = vpop.permute.xlu1 %2158 }
 0x311   :  { %2287 = vst.msk [vmem:[#allocation4 + $0x1f0] sm:$0xff] %vm2224_vm7, %v2157_v12  ;;  %2288 = vst.msk [vmem:[#allocation4 + $0x1f8] sm:$0xff] %vm2224_vm7, %v2159_v24  ;;  %vm7456_vm7 = vcmask 589312  }
 0x312   :  { %2530 = vrot.lane.b32.xlu0 %v2346_v3, %s9036_s20  ;;  %2532 = vrot.lane.b32.xlu1 %v2347_v11, %s9036_s20  ;;  %v2699_v3 = vld [vmem:[#allocation2 + $0x1c8] sm:$0xff]  ;;  %v2700_v11 = vld [vmem:[#allocation2 + $0x1d0] sm:$0xff] }
 0x314   :  { %v2419_v25 = vpop.permute.xlu0 %2418  ;;  %v2421_v50 = vpop.permute.xlu1 %2420 }
 0x315   :  { %2611 = vst.msk [vmem:[#allocation4] sm:$0xff] %vm2610_vm8, %v2419_v25  ;;  %2612 = vst.msk [vmem:[#allocation4 + $0x8] sm:$0xff] %vm2610_vm8, %v2421_v50 }
 0x316   :  { %2534 = vrot.lane.b32.xlu0 %v2348_v6, %s9036_s20  ;;  %2536 = vrot.lane.b32.xlu1 %v2349_v37, %s9036_s20  ;;  %v2701_v6 = vld [vmem:[#allocation2 + $0x1e8] sm:$0xff]  ;;  %v2702_v37 = vld [vmem:[#allocation2 + $0x1f0] sm:$0xff] }
 0x318   :  { %v2423_v16 = vpop.permute.xlu0 %2422  ;;  %v2425_v53 = vpop.permute.xlu1 %2424 }
 0x319   :  { %2613 = vst.msk [vmem:[#allocation4 + $0x10] sm:$0xff] %vm2610_vm8, %v2423_v16  ;;  %2614 = vst.msk [vmem:[#allocation4 + $0x18] sm:$0xff] %vm2610_vm8, %v2425_v53 }
 0x31a   :  { %2538 = vrot.lane.b32.xlu0 %v2350_v60, %s9036_s20  ;;  %2540 = vrot.lane.b32.xlu1 %v2351_v61, %s9036_s20  ;;  %v2703_v60 = vld [vmem:[#allocation2 + $0x208] sm:$0xff]  ;;  %v2704_v61 = vld [vmem:[#allocation2 + $0x210] sm:$0xff] }
 0x31c   :  { %v2427_v18 = vpop.permute.xlu0 %2426  ;;  %v2429_v19 = vpop.permute.xlu1 %2428 }
 0x31d   :  { %2615 = vst.msk [vmem:[#allocation4 + $0x20] sm:$0xff] %vm2610_vm8, %v2427_v18  ;;  %2616 = vst.msk [vmem:[#allocation4 + $0x28] sm:$0xff] %vm2610_vm8, %v2429_v19 }
 0x31e   :  { %2542 = vrot.lane.b32.xlu0 %v2352_v9, %s9036_s20  ;;  %2544 = vrot.lane.b32.xlu1 %v2353_v14, %s9036_s20  ;;  %v2705_v9 = vld [vmem:[#allocation2 + $0x228] sm:$0xff]  ;;  %v2706_v14 = vld [vmem:[#allocation2 + $0x230] sm:$0xff] }
 0x320   :  { %v2431_v26 = vpop.permute.xlu0 %2430  ;;  %v2433_v27 = vpop.permute.xlu1 %2432 }
 0x321   :  { %2617 = vst.msk [vmem:[#allocation4 + $0x30] sm:$0xff] %vm2610_vm8, %v2431_v26  ;;  %2618 = vst.msk [vmem:[#allocation4 + $0x38] sm:$0xff] %vm2610_vm8, %v2433_v27 }
 0x322   :  { %2803 = vrot.lane.b32.xlu0 %v2675_v22, %s9037_s21  ;;  %2805 = vrot.lane.b32.xlu1 %v2676_v23, %s9037_s21  ;;  %v2707_v22 = vld [vmem:[#allocation2 + $0x288] sm:$0xff]  ;;  %v2708_v23 = vld [vmem:[#allocation2 + $0x290] sm:$0xff] }
 0x324   :  { %v2435_v32 = vpop.permute.xlu0 %2434  ;;  %v2437_v33 = vpop.permute.xlu1 %2436 }
 0x325   :  { %2619 = vst.msk [vmem:[#allocation4 + $0x40] sm:$0xff] %vm2610_vm8, %v2435_v32  ;;  %2620 = vst.msk [vmem:[#allocation4 + $0x48] sm:$0xff] %vm2610_vm8, %v2437_v33 }
 0x326   :  { %2807 = vrot.lane.b32.xlu0 %v2677_v28, %s9037_s21  ;;  %2809 = vrot.lane.b32.xlu1 %v2678_v31, %s9037_s21  ;;  %v2709_v28 = vld [vmem:[#allocation2 + $0x2a8] sm:$0xff]  ;;  %v2710_v31 = vld [vmem:[#allocation2 + $0x2b0] sm:$0xff] }
 0x328   :  { %v2439_v38 = vpop.permute.xlu0 %2438  ;;  %v2441_v39 = vpop.permute.xlu1 %2440 }
 0x329   :  { %2621 = vst.msk [vmem:[#allocation4 + $0x50] sm:$0xff] %vm2610_vm8, %v2439_v38  ;;  %2622 = vst.msk [vmem:[#allocation4 + $0x58] sm:$0xff] %vm2610_vm8, %v2441_v39 }
 0x32a   :  { %2811 = vrot.lane.b32.xlu0 %v2679_v35, %s9037_s21  ;;  %2813 = vrot.lane.b32.xlu1 %v2680_v36, %s9037_s21  ;;  %v2711_v35 = vld [vmem:[#allocation2 + $0x2c8] sm:$0xff]  ;;  %v2712_v36 = vld [vmem:[#allocation2 + $0x2d0] sm:$0xff] }
 0x32c   :  { %v2443_v43 = vpop.permute.xlu0 %2442  ;;  %v2445_v44 = vpop.permute.xlu1 %2444 }
 0x32d   :  { %2623 = vst.msk [vmem:[#allocation4 + $0x60] sm:$0xff] %vm2610_vm8, %v2443_v43  ;;  %2624 = vst.msk [vmem:[#allocation4 + $0x68] sm:$0xff] %vm2610_vm8, %v2445_v44 }
 0x32e   :  { %2815 = vrot.lane.b32.xlu0 %v2681_v40, %s9037_s21  ;;  %2817 = vrot.lane.b32.xlu1 %v2682_v41, %s9037_s21  ;;  %v2713_v40 = vld [vmem:[#allocation2 + $0x2e8] sm:$0xff]  ;;  %v2714_v41 = vld [vmem:[#allocation2 + $0x2f0] sm:$0xff] }
 0x330   :  { %v2447_v48 = vpop.permute.xlu0 %2446  ;;  %v2449_v49 = vpop.permute.xlu1 %2448 }
 0x331   :  { %2625 = vst.msk [vmem:[#allocation4 + $0x70] sm:$0xff] %vm2610_vm8, %v2447_v48  ;;  %2626 = vst.msk [vmem:[#allocation4 + $0x78] sm:$0xff] %vm2610_vm8, %v2449_v49 }
 0x332   :  { %2819 = vrot.lane.b32.xlu0 %v2683_v46, %s9037_s21  ;;  %2821 = vrot.lane.b32.xlu1 %v2684_v47, %s9037_s21  ;;  %v2715_v46 = vld [vmem:[#allocation2 + $0x308] sm:$0xff]  ;;  %v2716_v47 = vld [vmem:[#allocation2 + $0x310] sm:$0xff] }
 0x334   :  { %v2451_v34 = vpop.permute.xlu0 %2450  ;;  %v2453_v2 = vpop.permute.xlu1 %2452 }
 0x335   :  { %2627 = vst.msk [vmem:[#allocation4 + $0x80] sm:$0xff] %vm2610_vm8, %v2451_v34  ;;  %2628 = vst.msk [vmem:[#allocation4 + $0x88] sm:$0xff] %vm2610_vm8, %v2453_v2 }
 0x336   :  { %2823 = vrot.lane.b32.xlu0 %v2685_v51, %s9037_s21  ;;  %2825 = vrot.lane.b32.xlu1 %v2686_v52, %s9037_s21  ;;  %v2717_v51 = vld [vmem:[#allocation2 + $0x328] sm:$0xff]  ;;  %v2718_v52 = vld [vmem:[#allocation2 + $0x330] sm:$0xff] }
 0x338   :  { %v2455_v56 = vpop.permute.xlu0 %2454  ;;  %v2457_v57 = vpop.permute.xlu1 %2456 }
 0x339   :  { %2629 = vst.msk [vmem:[#allocation4 + $0x90] sm:$0xff] %vm2610_vm8, %v2455_v56  ;;  %2630 = vst.msk [vmem:[#allocation4 + $0x98] sm:$0xff] %vm2610_vm8, %v2457_v57 }
 0x33a   :  { %2827 = vrot.lane.b32.xlu0 %v2687_v54, %s9037_s21  ;;  %2829 = vrot.lane.b32.xlu1 %v2688_v55, %s9037_s21  ;;  %v2719_v54 = vld [vmem:[#allocation2 + $0x348] sm:$0xff]  ;;  %v2720_v55 = vld [vmem:[#allocation2 + $0x350] sm:$0xff] }
 0x33c   :  { %v2459_v62 = vpop.permute.xlu0 %2458  ;;  %v2461_v63 = vpop.permute.xlu1 %2460 }
 0x33d   :  { %2631 = vst.msk [vmem:[#allocation4 + $0xa0] sm:$0xff] %vm2610_vm8, %v2459_v62  ;;  %2632 = vst.msk [vmem:[#allocation4 + $0xa8] sm:$0xff] %vm2610_vm8, %v2461_v63 }
 0x33e   :  { %2831 = vrot.lane.b32.xlu0 %v2689_v17, %s9037_s21  ;;  %2833 = vrot.lane.b32.xlu1 %v2690_v7, %s9037_s21  ;;  %v2721_v17 = vld [vmem:[#allocation2 + $0x368] sm:$0xff]  ;;  %v2722_v7 = vld [vmem:[#allocation2 + $0x370] sm:$0xff] }
 0x340   :  { %v2463_v5 = vpop.permute.xlu0 %2462  ;;  %v2465_v8 = vpop.permute.xlu1 %2464 }
 0x341   :  { %2633 = vst.msk [vmem:[#allocation4 + $0xb0] sm:$0xff] %vm2610_vm8, %v2463_v5  ;;  %2634 = vst.msk [vmem:[#allocation4 + $0xb8] sm:$0xff] %vm2610_vm8, %v2465_v8 }
 0x342   :  { %2835 = vrot.lane.b32.xlu0 %v2691_v0, %s9037_s21  ;;  %2837 = vrot.lane.b32.xlu1 %v2692_v4, %s9037_s21  ;;  %v2723_v0 = vld [vmem:[#allocation2 + $0x388] sm:$0xff]  ;;  %v2724_v4 = vld [vmem:[#allocation2 + $0x390] sm:$0xff] }
 0x344   :  { %v2467_v15 = vpop.permute.xlu0 %2466  ;;  %v2469_v20 = vpop.permute.xlu1 %2468 }
 0x345   :  { %2635 = vst.msk [vmem:[#allocation4 + $0xc0] sm:$0xff] %vm2610_vm8, %v2467_v15  ;;  %2636 = vst.msk [vmem:[#allocation4 + $0xc8] sm:$0xff] %vm2610_vm8, %v2469_v20 }
 0x346   :  { %2839 = vrot.lane.b32.xlu0 %v2693_v10, %s9037_s21  ;;  %2841 = vrot.lane.b32.xlu1 %v2694_v13, %s9037_s21  ;;  %v2725_v10 = vld [vmem:[#allocation2 + $0x3a8] sm:$0xff]  ;;  %v2726_v13 = vld [vmem:[#allocation2 + $0x3b0] sm:$0xff] }
 0x348   :  { %v2471_v30 = vpop.permute.xlu0 %2470  ;;  %v2473_v42 = vpop.permute.xlu1 %2472 }
 0x349   :  { %2637 = vst.msk [vmem:[#allocation4 + $0xd0] sm:$0xff] %vm2610_vm8, %v2471_v30  ;;  %2638 = vst.msk [vmem:[#allocation4 + $0xd8] sm:$0xff] %vm2610_vm8, %v2473_v42 }
 0x34a   :  { %2843 = vrot.lane.b32.xlu0 %v2695_v21, %s9037_s21  ;;  %2845 = vrot.lane.b32.xlu1 %v2696_v29, %s9037_s21  ;;  %v2727_v21 = vld [vmem:[#allocation2 + $0x3c8] sm:$0xff]  ;;  %v2728_v29 = vld [vmem:[#allocation2 + $0x3d0] sm:$0xff] }
 0x34c   :  { %v2475_v59 = vpop.permute.xlu0 %2474  ;;  %v2477_v1 = vpop.permute.xlu1 %2476 }
 0x34d   :  { %2639 = vst.msk [vmem:[#allocation4 + $0xe0] sm:$0xff] %vm2610_vm8, %v2475_v59  ;;  %2640 = vst.msk [vmem:[#allocation4 + $0xe8] sm:$0xff] %vm2610_vm8, %v2477_v1 }
 0x34e   :  { %2847 = vrot.lane.b32.xlu0 %v2697_v45, %s9037_s21  ;;  %2849 = vrot.lane.b32.xlu1 %v2698_v58, %s9037_s21  ;;  %v2729_v45 = vld [vmem:[#allocation2 + $0x3e8] sm:$0xff]  ;;  %v2730_v58 = vld [vmem:[#allocation2 + $0x3f0] sm:$0xff] }
 0x350   :  { %v2479_v12 = vpop.permute.xlu0 %2478  ;;  %v2481_v24 = vpop.permute.xlu1 %2480 }
 0x351   :  { %2641 = vst.msk [vmem:[#allocation4 + $0xf0] sm:$0xff] %vm2610_vm8, %v2479_v12  ;;  %2642 = vst.msk [vmem:[#allocation4 + $0xf8] sm:$0xff] %vm2610_vm8, %v2481_v24 }
 0x352   :  { %2851 = vrot.lane.b32.xlu0 %v2699_v3, %s9037_s21  ;;  %2853 = vrot.lane.b32.xlu1 %v2700_v11, %s9037_s21  ;;  %v2731_v3 = vld [vmem:[#allocation2 + $0x408] sm:$0xff]  ;;  %v2732_v11 = vld [vmem:[#allocation2 + $0x410] sm:$0xff] }
 0x354   :  { %v2483_v25 = vpop.permute.xlu0 %2482  ;;  %v2485_v50 = vpop.permute.xlu1 %2484 }
 0x355   :  { %2643 = vst.msk [vmem:[#allocation4 + $0x100] sm:$0xff] %vm2610_vm8, %v2483_v25  ;;  %2644 = vst.msk [vmem:[#allocation4 + $0x108] sm:$0xff] %vm2610_vm8, %v2485_v50  ;;  %v2734_v25 = vld [vmem:[#allocation2 + $0x430] sm:$0xff] }
 0x356   :  { %2855 = vrot.lane.b32.xlu0 %v2701_v6, %s9037_s21  ;;  %2857 = vrot.lane.b32.xlu1 %v2702_v37, %s9037_s21  ;;  %v3513_v6 = vld [vmem:[%s12821_s1 + $0x20] sm:$0xf]  ;;  %v2733_v37 = vld [vmem:[#allocation2 + $0x428] sm:$0xff] }
 0x357   :  { %8764 = vmatprep.subr.msk.mxu0 %vm3714_vm10, %v3513_v6 }
 0x358   :  { %v2487_v16 = vpop.permute.xlu0 %2486  ;;  %v2489_v53 = vpop.permute.xlu1 %2488  ;;  %8765 = vmatpush3.msk.msra.mxu0 %vm3714_vm10, %v3513_v6  ;;  %vm9043_vm10 = vmmov 0  }
 0x359   :  { %2645 = vst.msk [vmem:[#allocation4 + $0x110] sm:$0xff] %vm2610_vm8, %v2487_v16  ;;  %2646 = vst.msk [vmem:[#allocation4 + $0x118] sm:$0xff] %vm2610_vm8, %v2489_v53  ;;  %v3511_v16 = vld [vmem:[%s12821_s1 + $0x10] sm:$0xff]  ;;  %v2735_v53 = vld [vmem:[#allocation2 + $0x448] sm:$0xff] }
 0x35a   :  { %2859 = vrot.lane.b32.xlu0 %v2703_v60, %s9037_s21  ;;  %2861 = vrot.lane.b32.xlu1 %v2704_v61, %s9037_s21  ;;  %v3512_v61 = vld [vmem:[%s12821_s1 + $0x18] sm:$0xff] }
 0x35b   :  { %8766 = vmatprep.subr.mxu0 %v3512_v61 }
 0x35c   :  { %v2491_v18 = vpop.permute.xlu0 %2490  ;;  %v2493_v19 = vpop.permute.xlu1 %2492  ;;  %8767 = vmatpush3.msra.mxu0 %v3512_v61 }
 0x35d   :  { %2647 = vst.msk [vmem:[#allocation4 + $0x120] sm:$0xff] %vm2610_vm8, %v2491_v18  ;;  %2648 = vst.msk [vmem:[#allocation4 + $0x128] sm:$0xff] %vm2610_vm8, %v2493_v19  ;;  %8768 = vmatprep.subr.mxu0 %v3511_v16  ;;  %v3510_v19 = vld [vmem:[%s12821_s1 + $0x8] sm:$0xff] }
 0x35e   :  { %2863 = vrot.lane.b32.xlu0 %v2705_v9, %s9037_s21  ;;  %2865 = vrot.lane.b32.xlu1 %v2706_v14, %s9037_s21  ;;  %v2736_v9 = vld [vmem:[#allocation2 + $0x450] sm:$0xff] }
 0x35f   :  { %8769 = vmatpush3.msra.mxu0 %v3511_v16  ;;  %v3086_v16 = vld [vmem:[#allocation2 + $0x1e9] sm:$0xff] }
 0x360   :  { %v2495_v26 = vpop.permute.xlu0 %2494  ;;  %v2497_v27 = vpop.permute.xlu1 %2496  ;;  %8770 = vmatprep.subr.mxu0 %v3510_v19 }
 0x361   :  { %2649 = vst.msk [vmem:[#allocation4 + $0x130] sm:$0xff] %vm2610_vm8, %v2495_v26  ;;  %2650 = vst.msk [vmem:[#allocation4 + $0x138] sm:$0xff] %vm2610_vm8, %v2497_v27  ;;  %8771 = vmatpush3.msra.mxu0 %v3510_v19  ;;  %v3089_v19 = vld [vmem:[#allocation2 + $0x211] sm:$0xff] }
 0x362   :  { %2867 = vrot.lane.b32.xlu0 %v2707_v22, %s9037_s21  ;;  %2869 = vrot.lane.b32.xlu1 %v2708_v23, %s9037_s21  ;;  %v2737_v22 = vld [vmem:[#allocation2 + $0x468] sm:$0xff]  ;;  %v2738_v23 = vld [vmem:[#allocation2 + $0x470] sm:$0xff] }
 0x364   :  { %v2499_v32 = vpop.permute.xlu0 %2498  ;;  %v2501_v33 = vpop.permute.xlu1 %2500 }
 0x365   :  { %2651 = vst.msk [vmem:[#allocation4 + $0x140] sm:$0xff] %vm2610_vm8, %v2499_v32  ;;  %2652 = vst.msk [vmem:[#allocation4 + $0x148] sm:$0xff] %vm2610_vm8, %v2501_v33  ;;  %v3061_v32 = vld [vmem:[#allocation2 + $0x51] sm:$0xff] }
 0x366   :  { %2871 = vrot.lane.b32.xlu0 %v2709_v28, %s9037_s21  ;;  %2873 = vrot.lane.b32.xlu1 %v2710_v31, %s9037_s21  ;;  %v3509_v28 = vld [vmem:[%s12821_s1] sm:$0xff]  ;;  %v3060_v31 = vld [vmem:[#allocation2 + $0x49] sm:$0xff]  ;;  %s9038_s1 = smov 32  }
 0x367   :  { %8772 = vmatprep.subr.mxu0 %v3509_v28 }
 0x368   :  { %v2503_v38 = vpop.permute.xlu0 %2502  ;;  %v2505_v39 = vpop.permute.xlu1 %2504  ;;  %8773 = vmatpush3.msra.mxu0 %v3509_v28 }
 0x369   :  { %2653 = vst.msk [vmem:[#allocation4 + $0x150] sm:$0xff] %vm2610_vm8, %v2503_v38  ;;  %2654 = vst.msk [vmem:[#allocation4 + $0x158] sm:$0xff] %vm2610_vm8, %v2505_v39  ;;  %v3062_v38 = vld [vmem:[#allocation2 + $0x69] sm:$0xff]  ;;  %v3063_v39 = vld [vmem:[#allocation2 + $0x71] sm:$0xff] }
 0x36a   :  { %2875 = vrot.lane.b32.xlu0 %v2711_v35, %s9037_s21  ;;  %2877 = vrot.lane.b32.xlu1 %v2712_v36, %s9037_s21  ;;  %v12858_v36 = vmov 0.0  }
 0x36b   :  { %8984 = vmatprep.subr.mxu0 %v12858_v36  ;;  %4168 = vst.msk [vmem:[#allocation3 + $0x7] sm:$0xff] %vm4167_vm13, %v12858_v36  ;;  %4169 = vst.msk [vmem:[#allocation3 + $0xf] sm:$0xff] %vm4167_vm13, %v12858_v36 }
 0x36c   :  { %v2507_v43 = vpop.permute.xlu0 %2506  ;;  %v2509_v44 = vpop.permute.xlu1 %2508  ;;  %4172 = vst.msk [vmem:[#allocation3 + $0x247] sm:$0xff] %vm4167_vm13, %v12858_v36  ;;  %4173 = vst.msk [vmem:[#allocation3 + $0x24f] sm:$0xff] %vm4167_vm13, %v12858_v36 }
 0x36d   :  { %2655 = vst.msk [vmem:[#allocation4 + $0x160] sm:$0xff] %vm2610_vm8, %v2507_v43  ;;  %2656 = vst.msk [vmem:[#allocation4 + $0x168] sm:$0xff] %vm2610_vm8, %v2509_v44  ;;  %v3064_v43 = vld [vmem:[#allocation2 + $0x89] sm:$0xff]  ;;  %v3065_v44 = vld [vmem:[#allocation2 + $0x91] sm:$0xff] }
 0x36e   :  { %2879 = vrot.lane.b32.xlu0 %v2713_v40, %s9037_s21  ;;  %2881 = vrot.lane.b32.xlu1 %v2714_v41, %s9037_s21  ;;  %4176 = vst.msk [vmem:[#allocation3 + $0x227] sm:$0xff] %vm4167_vm13, %v12858_v36  ;;  %4177 = vst.msk [vmem:[#allocation3 + $0x22f] sm:$0xff] %vm4167_vm13, %v12858_v36 }
 0x36f   :  { %4179 = vst.msk [vmem:[#allocation3 + $0x467] sm:$0xff] %vm4167_vm13, %v12858_v36  ;;  %4180 = vst.msk [vmem:[#allocation3 + $0x46f] sm:$0xff] %vm4167_vm13, %v12858_v36 }
 0x370   :  { %v2511_v48 = vpop.permute.xlu0 %2510  ;;  %v2513_v49 = vpop.permute.xlu1 %2512  ;;  %4171 = vst.msk [vmem:[#allocation3 + $0x17] sm:$0x3] %vm4170_vm14, %v12858_v36  ;;  %4174 = vst.msk [vmem:[#allocation3 + $0x257] sm:$0x3] %vm4170_vm14, %v12858_v36 }
 0x371   :  { %2657 = vst.msk [vmem:[#allocation4 + $0x170] sm:$0xff] %vm2610_vm8, %v2511_v48  ;;  %2658 = vst.msk [vmem:[#allocation4 + $0x178] sm:$0xff] %vm2610_vm8, %v2513_v49  ;;  %v3066_v48 = vld [vmem:[#allocation2 + $0xa9] sm:$0xff]  ;;  %v3067_v49 = vld [vmem:[#allocation2 + $0xb1] sm:$0xff] }
 0x372   :  { %2883 = vrot.lane.b32.xlu0 %v2715_v46, %s9037_s21  ;;  %2885 = vrot.lane.b32.xlu1 %v2716_v47, %s9037_s21  ;;  %4178 = vst.msk [vmem:[#allocation3 + $0x237] sm:$0x3] %vm4170_vm14, %v12858_v36  ;;  %4181 = vst.msk [vmem:[#allocation3 + $0x477] sm:$0x3] %vm4170_vm14, %v12858_v36 }
 0x373   :  { %4184 = vst.msk [vmem:[#allocation3 + $0x27] sm:$0x1] %vm4183_vm15, %v12858_v36  ;;  %4185 = vst.msk [vmem:[#allocation3 + $0x47] sm:$0x1] %vm4183_vm15, %v12858_v36 }
 0x374   :  { %v2515_v34 = vpop.permute.xlu0 %2514  ;;  %v2517_v2 = vpop.permute.xlu1 %2516  ;;  %4186 = vst.msk [vmem:[#allocation3 + $0x67] sm:$0x1] %vm4183_vm15, %v12858_v36  ;;  %4187 = vst.msk [vmem:[#allocation3 + $0x87] sm:$0x1] %vm4183_vm15, %v12858_v36 }
 0x375   :  { %2659 = vst.msk [vmem:[#allocation4 + $0x180] sm:$0xff] %vm2610_vm8, %v2515_v34  ;;  %2660 = vst.msk [vmem:[#allocation4 + $0x188] sm:$0xff] %vm2610_vm8, %v2517_v2  ;;  %v3068_v34 = vld [vmem:[#allocation2 + $0xc9] sm:$0xff]  ;;  %v3069_v2 = vld [vmem:[#allocation2 + $0xd1] sm:$0xff] }
 0x376   :  { %2887 = vrot.lane.b32.xlu0 %v2717_v51, %s9037_s21  ;;  %2889 = vrot.lane.b32.xlu1 %v2718_v52, %s9037_s21  ;;  %4188 = vst.msk [vmem:[#allocation3 + $0xa7] sm:$0x1] %vm4183_vm15, %v12858_v36  ;;  %4189 = vst.msk [vmem:[#allocation3 + $0xc7] sm:$0x1] %vm4183_vm15, %v12858_v36 }
 0x377   :  { %4190 = vst.msk [vmem:[#allocation3 + $0xe7] sm:$0x1] %vm4183_vm15, %v12858_v36  ;;  %4191 = vst.msk [vmem:[#allocation3 + $0x107] sm:$0x1] %vm4183_vm15, %v12858_v36 }
 0x378   :  { %v2519_v56 = vpop.permute.xlu0 %2518  ;;  %v2521_v57 = vpop.permute.xlu1 %2520  ;;  %4192 = vst.msk [vmem:[#allocation3 + $0x127] sm:$0x1] %vm4183_vm15, %v12858_v36  ;;  %4193 = vst.msk [vmem:[#allocation3 + $0x147] sm:$0x1] %vm4183_vm15, %v12858_v36 }
 0x379   :  { %2661 = vst.msk [vmem:[#allocation4 + $0x190] sm:$0xff] %vm2610_vm8, %v2519_v56  ;;  %2662 = vst.msk [vmem:[#allocation4 + $0x198] sm:$0xff] %vm2610_vm8, %v2521_v57  ;;  %v3070_v56 = vld [vmem:[#allocation2 + $0xe9] sm:$0xff]  ;;  %v3071_v57 = vld [vmem:[#allocation2 + $0xf1] sm:$0xff] }
 0x37a   :  { %2891 = vrot.lane.b32.xlu0 %v2719_v54, %s9037_s21  ;;  %2893 = vrot.lane.b32.xlu1 %v2720_v55, %s9037_s21  ;;  %4194 = vst.msk [vmem:[#allocation3 + $0x167] sm:$0x1] %vm4183_vm15, %v12858_v36  ;;  %4195 = vst.msk [vmem:[#allocation3 + $0x187] sm:$0x1] %vm4183_vm15, %v12858_v36 }
 0x37b   :  { %4196 = vst.msk [vmem:[#allocation3 + $0x1a7] sm:$0x1] %vm4183_vm15, %v12858_v36  ;;  %4197 = vst.msk [vmem:[#allocation3 + $0x1c7] sm:$0x1] %vm4183_vm15, %v12858_v36 }
 0x37c   :  { %v2523_v62 = vpop.permute.xlu0 %2522  ;;  %v2525_v63 = vpop.permute.xlu1 %2524  ;;  %4198 = vst.msk [vmem:[#allocation3 + $0x1e7] sm:$0x1] %vm4183_vm15, %v12858_v36  ;;  %4199 = vst.msk [vmem:[#allocation3 + $0x207] sm:$0x1] %vm4183_vm15, %v12858_v36 }
 0x37d   :  { %2663 = vst.msk [vmem:[#allocation4 + $0x1a0] sm:$0xff] %vm2610_vm8, %v2523_v62  ;;  %2664 = vst.msk [vmem:[#allocation4 + $0x1a8] sm:$0xff] %vm2610_vm8, %v2525_v63  ;;  %v3072_v62 = vld [vmem:[#allocation2 + $0x109] sm:$0xff]  ;;  %v3073_v63 = vld [vmem:[#allocation2 + $0x111] sm:$0xff] }
 0x37e   :  { %2895 = vrot.lane.b32.xlu0 %v2721_v17, %s9037_s21  ;;  %2897 = vrot.lane.b32.xlu1 %v2722_v7, %s9037_s21  ;;  %4200 = vst.msk [vmem:[#allocation3 + $0x267] sm:$0x1] %vm4183_vm15, %v12858_v36  ;;  %4201 = vst.msk [vmem:[#allocation3 + $0x287] sm:$0x1] %vm4183_vm15, %v12858_v36 }
 0x37f   :  { %4202 = vst.msk [vmem:[#allocation3 + $0x2a7] sm:$0x1] %vm4183_vm15, %v12858_v36  ;;  %4203 = vst.msk [vmem:[#allocation3 + $0x2c7] sm:$0x1] %vm4183_vm15, %v12858_v36 }
 0x380   :  { %v2527_v5 = vpop.permute.xlu0 %2526  ;;  %v2529_v8 = vpop.permute.xlu1 %2528  ;;  %4204 = vst.msk [vmem:[#allocation3 + $0x2e7] sm:$0x1] %vm4183_vm15, %v12858_v36  ;;  %4205 = vst.msk [vmem:[#allocation3 + $0x307] sm:$0x1] %vm4183_vm15, %v12858_v36 }
 0x381   :  { %2665 = vst.msk [vmem:[#allocation4 + $0x1b0] sm:$0xff] %vm2610_vm8, %v2527_v5  ;;  %2666 = vst.msk [vmem:[#allocation4 + $0x1b8] sm:$0xff] %vm2610_vm8, %v2529_v8  ;;  %v3074_v5 = vld [vmem:[#allocation2 + $0x129] sm:$0xff]  ;;  %v3075_v8 = vld [vmem:[#allocation2 + $0x131] sm:$0xff] }
 0x382   :  { %2899 = vrot.lane.b32.xlu0 %v2723_v0, %s9037_s21  ;;  %2901 = vrot.lane.b32.xlu1 %v2724_v4, %s9037_s21  ;;  %4206 = vst.msk [vmem:[#allocation3 + $0x327] sm:$0x1] %vm4183_vm15, %v12858_v36  ;;  %4207 = vst.msk [vmem:[#allocation3 + $0x347] sm:$0x1] %vm4183_vm15, %v12858_v36 }
 0x383   :  { %4208 = vst.msk [vmem:[#allocation3 + $0x367] sm:$0x1] %vm4183_vm15, %v12858_v36  ;;  %4209 = vst.msk [vmem:[#allocation3 + $0x387] sm:$0x1] %vm4183_vm15, %v12858_v36 }
 0x384   :  { %v2531_v15 = vpop.permute.xlu0 %2530  ;;  %v2533_v20 = vpop.permute.xlu1 %2532  ;;  %4210 = vst.msk [vmem:[#allocation3 + $0x3a7] sm:$0x1] %vm4183_vm15, %v12858_v36  ;;  %4211 = vst.msk [vmem:[#allocation3 + $0x3c7] sm:$0x1] %vm4183_vm15, %v12858_v36 }
 0x385   :  { %2667 = vst.msk [vmem:[#allocation4 + $0x1c0] sm:$0xff] %vm2610_vm8, %v2531_v15  ;;  %2668 = vst.msk [vmem:[#allocation4 + $0x1c8] sm:$0xff] %vm2610_vm8, %v2533_v20  ;;  %v3076_v15 = vld [vmem:[#allocation2 + $0x149] sm:$0xff]  ;;  %v3077_v20 = vld [vmem:[#allocation2 + $0x151] sm:$0xff] }
 0x386   :  { %2903 = vrot.lane.b32.xlu0 %v2725_v10, %s9037_s21  ;;  %2905 = vrot.lane.b32.xlu1 %v2726_v13, %s9037_s21  ;;  %4212 = vst.msk [vmem:[#allocation3 + $0x3e7] sm:$0x1] %vm4183_vm15, %v12858_v36  ;;  %4213 = vst.msk [vmem:[#allocation3 + $0x407] sm:$0x1] %vm4183_vm15, %v12858_v36 }
 0x387   :  { %4214 = vst.msk [vmem:[#allocation3 + $0x427] sm:$0x1] %vm4183_vm15, %v12858_v36  ;;  %4215 = vst.msk [vmem:[#allocation3 + $0x447] sm:$0x1] %vm4183_vm15, %v12858_v36 }
 0x388   :  { %v2535_v30 = vpop.permute.xlu0 %2534  ;;  %v2537_v42 = vpop.permute.xlu1 %2536  ;;  %4216 = vst.msk [vmem:[#allocation3 + $0x38] sm:$0x1] %vm4183_vm15, %v12858_v36  ;;  %4217 = vst.msk [vmem:[#allocation3 + $0x58] sm:$0x1] %vm4183_vm15, %v12858_v36 }
 0x389   :  { %2669 = vst.msk [vmem:[#allocation4 + $0x1d0] sm:$0xff] %vm2610_vm8, %v2535_v30  ;;  %2670 = vst.msk [vmem:[#allocation4 + $0x1d8] sm:$0xff] %vm2610_vm8, %v2537_v42  ;;  %v3078_v30 = vld [vmem:[#allocation2 + $0x169] sm:$0xff]  ;;  %v3079_v42 = vld [vmem:[#allocation2 + $0x171] sm:$0xff] }
 0x38a   :  { %2907 = vrot.lane.b32.xlu0 %v2727_v21, %s9037_s21  ;;  %2909 = vrot.lane.b32.xlu1 %v2728_v29, %s9037_s21  ;;  %4218 = vst.msk [vmem:[#allocation3 + $0x78] sm:$0x1] %vm4183_vm15, %v12858_v36  ;;  %4219 = vst.msk [vmem:[#allocation3 + $0x98] sm:$0x1] %vm4183_vm15, %v12858_v36 }
 0x38b   :  { %4220 = vst.msk [vmem:[#allocation3 + $0xb8] sm:$0x1] %vm4183_vm15, %v12858_v36  ;;  %4221 = vst.msk [vmem:[#allocation3 + $0xd8] sm:$0x1] %vm4183_vm15, %v12858_v36 }
 0x38c   :  { %v2539_v59 = vpop.permute.xlu0 %2538  ;;  %v2541_v1 = vpop.permute.xlu1 %2540  ;;  %4222 = vst.msk [vmem:[#allocation3 + $0xf8] sm:$0x1] %vm4183_vm15, %v12858_v36  ;;  %4223 = vst.msk [vmem:[#allocation3 + $0x118] sm:$0x1] %vm4183_vm15, %v12858_v36 }
 0x38d   :  { %2671 = vst.msk [vmem:[#allocation4 + $0x1e0] sm:$0xff] %vm2610_vm8, %v2539_v59  ;;  %2672 = vst.msk [vmem:[#allocation4 + $0x1e8] sm:$0xff] %vm2610_vm8, %v2541_v1  ;;  %v3080_v59 = vld [vmem:[#allocation2 + $0x189] sm:$0xff]  ;;  %v3081_v1 = vld [vmem:[#allocation2 + $0x191] sm:$0xff] }
 0x38e   :  { %2911 = vrot.lane.b32.xlu0 %v2729_v45, %s9037_s21  ;;  %2913 = vrot.lane.b32.xlu1 %v2730_v58, %s9037_s21  ;;  %4224 = vst.msk [vmem:[#allocation3 + $0x138] sm:$0x1] %vm4183_vm15, %v12858_v36  ;;  %4225 = vst.msk [vmem:[#allocation3 + $0x158] sm:$0x1] %vm4183_vm15, %v12858_v36 }
 0x38f   :  { %4226 = vst.msk [vmem:[#allocation3 + $0x178] sm:$0x1] %vm4183_vm15, %v12858_v36  ;;  %4227 = vst.msk [vmem:[#allocation3 + $0x198] sm:$0x1] %vm4183_vm15, %v12858_v36 }
 0x390   :  { %v2543_v12 = vpop.permute.xlu0 %2542  ;;  %v2545_v24 = vpop.permute.xlu1 %2544  ;;  %4228 = vst.msk [vmem:[#allocation3 + $0x1b8] sm:$0x1] %vm4183_vm15, %v12858_v36  ;;  %4229 = vst.msk [vmem:[#allocation3 + $0x1d8] sm:$0x1] %vm4183_vm15, %v12858_v36 }
 0x391   :  { %2673 = vst.msk [vmem:[#allocation4 + $0x1f0] sm:$0xff] %vm2610_vm8, %v2543_v12  ;;  %2674 = vst.msk [vmem:[#allocation4 + $0x1f8] sm:$0xff] %vm2610_vm8, %v2545_v24  ;;  %v3082_v12 = vld [vmem:[#allocation2 + $0x1a9] sm:$0xff]  ;;  %v3083_v24 = vld [vmem:[#allocation2 + $0x1b1] sm:$0xff]  ;;  %vm7601_vm8 = vcmask 588800  }
 0x392   :  { %2915 = vrot.lane.b32.xlu0 %v2731_v3, %s9037_s21  ;;  %2917 = vrot.lane.b32.xlu1 %v2732_v11, %s9037_s21  ;;  %4230 = vst.msk [vmem:[#allocation3 + $0x1f8] sm:$0x1] %vm4183_vm15, %v12858_v36  ;;  %4231 = vst.msk [vmem:[#allocation3 + $0x218] sm:$0x1] %vm4183_vm15, %v12858_v36 }
 0x393   :  { %4232 = vst.msk [vmem:[#allocation3 + $0x278] sm:$0x1] %vm4183_vm15, %v12858_v36  ;;  %4233 = vst.msk [vmem:[#allocation3 + $0x298] sm:$0x1] %vm4183_vm15, %v12858_v36 }
 0x394   :  { %v2804_v50 = vpop.permute.xlu0 %2803  ;;  %v2806_v60 = vpop.permute.xlu1 %2805  ;;  %4234 = vst.msk [vmem:[#allocation3 + $0x2b8] sm:$0x1] %vm4183_vm15, %v12858_v36  ;;  %4235 = vst.msk [vmem:[#allocation3 + $0x2d8] sm:$0x1] %vm4183_vm15, %v12858_v36 }
 0x395   :  { %2996 = vst.msk [vmem:[#allocation4] sm:$0xff] %vm2995_vm9, %v2804_v50  ;;  %2997 = vst.msk [vmem:[#allocation4 + $0x8] sm:$0xff] %vm2995_vm9, %v2806_v60  ;;  %v3085_v50 = vld [vmem:[#allocation2 + $0x1d1] sm:$0xff] }
 0x396   :  { %2919 = vrot.lane.b32.xlu0 %v2733_v37, %s9037_s21  ;;  %2921 = vrot.lane.b32.xlu1 %v2734_v25, %s9037_s21  ;;  %v3084_v25 = vld [vmem:[#allocation2 + $0x1c9] sm:$0xff]  ;;  %4236 = vst.msk [vmem:[#allocation3 + $0x2f8] sm:$0x1] %vm4183_vm15, %v12858_v36  ;;  %4237 = vst.msk [vmem:[#allocation3 + $0x318] sm:$0x1] %vm4183_vm15, %v12858_v36 }
 0x397   :  { %4238 = vst.msk [vmem:[#allocation3 + $0x338] sm:$0x1] %vm4183_vm15, %v12858_v36  ;;  %4239 = vst.msk [vmem:[#allocation3 + $0x358] sm:$0x1] %vm4183_vm15, %v12858_v36 }
 0x398   :  { %v2808_v14 = vpop.permute.xlu0 %2807  ;;  %v2810_v18 = vpop.permute.xlu1 %2809  ;;  %4240 = vst.msk [vmem:[#allocation3 + $0x378] sm:$0x1] %vm4183_vm15, %v12858_v36  ;;  %4241 = vst.msk [vmem:[#allocation3 + $0x398] sm:$0x1] %vm4183_vm15, %v12858_v36 }
 0x399   :  { %2998 = vst.msk [vmem:[#allocation4 + $0x10] sm:$0xff] %vm2995_vm9, %v2808_v14  ;;  %2999 = vst.msk [vmem:[#allocation4 + $0x18] sm:$0xff] %vm2995_vm9, %v2810_v18  ;;  %v3088_v18 = vld [vmem:[#allocation2 + $0x209] sm:$0xff] }
 0x39a   :  { %2923 = vrot.lane.b32.xlu0 %v2735_v53, %s9037_s21  ;;  %2925 = vrot.lane.b32.xlu1 %v2736_v9, %s9037_s21  ;;  %v3087_v53 = vld [vmem:[#allocation2 + $0x1f1] sm:$0xff]  ;;  %4242 = vst.msk [vmem:[#allocation3 + $0x3b8] sm:$0x1] %vm4183_vm15, %v12858_v36  ;;  %4243 = vst.msk [vmem:[#allocation3 + $0x3d8] sm:$0x1] %vm4183_vm15, %v12858_v36 }
 0x39b   :  { %4244 = vst.msk [vmem:[#allocation3 + $0x3f8] sm:$0x1] %vm4183_vm15, %v12858_v36  ;;  %4245 = vst.msk [vmem:[#allocation3 + $0x418] sm:$0x1] %vm4183_vm15, %v12858_v36 }
 0x39c   :  { %v2812_v26 = vpop.permute.xlu0 %2811  ;;  %v2814_v27 = vpop.permute.xlu1 %2813  ;;  %4246 = vst.msk [vmem:[#allocation3 + $0x438] sm:$0x1] %vm4183_vm15, %v12858_v36  ;;  %4247 = vst.msk [vmem:[#allocation3 + $0x458] sm:$0x1] %vm4183_vm15, %v12858_v36 }
 0x39d   :  { %3000 = vst.msk [vmem:[#allocation4 + $0x20] sm:$0xff] %vm2995_vm9, %v2812_v26  ;;  %3001 = vst.msk [vmem:[#allocation4 + $0x28] sm:$0xff] %vm2995_vm9, %v2814_v27  ;;  %v3090_v26 = vld [vmem:[#allocation2 + $0x229] sm:$0xff]  ;;  %v3091_v27 = vld [vmem:[#allocation2 + $0x231] sm:$0xff] }
 0x39e   :  { %2927 = vrot.lane.b32.xlu0 %v2737_v22, %s9037_s21  ;;  %2929 = vrot.lane.b32.xlu1 %v2738_v23, %s9037_s21 }
 0x3a0   :  { %v2816_v33 = vpop.permute.xlu0 %2815  ;;  %v2818_v35 = vpop.permute.xlu1 %2817 }
 0x3a1   :  { %3002 = vst.msk [vmem:[#allocation4 + $0x30] sm:$0xff] %vm2995_vm9, %v2816_v33  ;;  %3003 = vst.msk [vmem:[#allocation4 + $0x38] sm:$0xff] %vm2995_vm9, %v2818_v35  ;;  %v3093_v33 = vld [vmem:[#allocation2 + $0x291] sm:$0xff] }
 0x3a2   :  { %3188 = vrot.lane.b32.xlu0 %v3060_v31, %s9038_s1  ;;  %3190 = vrot.lane.b32.xlu1 %v3061_v32, %s9038_s1  ;;  %v3092_v32 = vld [vmem:[#allocation2 + $0x289] sm:$0xff] }
 0x3a4   :  { %v2820_v40 = vpop.permute.xlu0 %2819  ;;  %v2822_v41 = vpop.permute.xlu1 %2821 }
 0x3a5   :  { %3004 = vst.msk [vmem:[#allocation4 + $0x40] sm:$0xff] %vm2995_vm9, %v2820_v40  ;;  %3005 = vst.msk [vmem:[#allocation4 + $0x48] sm:$0xff] %vm2995_vm9, %v2822_v41  ;;  %v3095_v40 = vld [vmem:[#allocation2 + $0x2b1] sm:$0xff] }
 0x3a6   :  { %3192 = vrot.lane.b32.xlu0 %v3062_v38, %s9038_s1  ;;  %3194 = vrot.lane.b32.xlu1 %v3063_v39, %s9038_s1  ;;  %v3094_v39 = vld [vmem:[#allocation2 + $0x2a9] sm:$0xff] }
 0x3a8   :  { %v2824_v46 = vpop.permute.xlu0 %2823  ;;  %v2826_v47 = vpop.permute.xlu1 %2825 }
 0x3a9   :  { %3006 = vst.msk [vmem:[#allocation4 + $0x50] sm:$0xff] %vm2995_vm9, %v2824_v46  ;;  %3007 = vst.msk [vmem:[#allocation4 + $0x58] sm:$0xff] %vm2995_vm9, %v2826_v47  ;;  %v3097_v46 = vld [vmem:[#allocation2 + $0x2d1] sm:$0xff] }
 0x3aa   :  { %3196 = vrot.lane.b32.xlu0 %v3064_v43, %s9038_s1  ;;  %3198 = vrot.lane.b32.xlu1 %v3065_v44, %s9038_s1  ;;  %v3096_v44 = vld [vmem:[#allocation2 + $0x2c9] sm:$0xff] }
 0x3ac   :  { %v2828_v51 = vpop.permute.xlu0 %2827  ;;  %v2830_v52 = vpop.permute.xlu1 %2829 }
 0x3ad   :  { %3008 = vst.msk [vmem:[#allocation4 + $0x60] sm:$0xff] %vm2995_vm9, %v2828_v51  ;;  %3009 = vst.msk [vmem:[#allocation4 + $0x68] sm:$0xff] %vm2995_vm9, %v2830_v52  ;;  %v3099_v51 = vld [vmem:[#allocation2 + $0x2f1] sm:$0xff] }
 0x3ae   :  { %3200 = vrot.lane.b32.xlu0 %v3066_v48, %s9038_s1  ;;  %3202 = vrot.lane.b32.xlu1 %v3067_v49, %s9038_s1  ;;  %v3098_v49 = vld [vmem:[#allocation2 + $0x2e9] sm:$0xff] }
 0x3b0   :  { %v2832_v54 = vpop.permute.xlu0 %2831  ;;  %v2834_v55 = vpop.permute.xlu1 %2833 }
 0x3b1   :  { %3010 = vst.msk [vmem:[#allocation4 + $0x70] sm:$0xff] %vm2995_vm9, %v2832_v54  ;;  %3011 = vst.msk [vmem:[#allocation4 + $0x78] sm:$0xff] %vm2995_vm9, %v2834_v55  ;;  %v3101_v54 = vld [vmem:[#allocation2 + $0x311] sm:$0xff] }
 0x3b2   :  { %3204 = vrot.lane.b32.xlu0 %v3068_v34, %s9038_s1  ;;  %3206 = vrot.lane.b32.xlu1 %v3069_v2, %s9038_s1  ;;  %v3100_v2 = vld [vmem:[#allocation2 + $0x309] sm:$0xff] }
 0x3b4   :  { %v2836_v17 = vpop.permute.xlu0 %2835  ;;  %v2838_v7 = vpop.permute.xlu1 %2837 }
 0x3b5   :  { %3012 = vst.msk [vmem:[#allocation4 + $0x80] sm:$0xff] %vm2995_vm9, %v2836_v17  ;;  %3013 = vst.msk [vmem:[#allocation4 + $0x88] sm:$0xff] %vm2995_vm9, %v2838_v7  ;;  %v3103_v17 = vld [vmem:[#allocation2 + $0x331] sm:$0xff] }
 0x3b6   :  { %3208 = vrot.lane.b32.xlu0 %v3070_v56, %s9038_s1  ;;  %3210 = vrot.lane.b32.xlu1 %v3071_v57, %s9038_s1  ;;  %v3102_v57 = vld [vmem:[#allocation2 + $0x329] sm:$0xff] }
 0x3b8   :  { %v2840_v0 = vpop.permute.xlu0 %2839  ;;  %v2842_v4 = vpop.permute.xlu1 %2841 }
 0x3b9   :  { %3014 = vst.msk [vmem:[#allocation4 + $0x90] sm:$0xff] %vm2995_vm9, %v2840_v0  ;;  %3015 = vst.msk [vmem:[#allocation4 + $0x98] sm:$0xff] %vm2995_vm9, %v2842_v4  ;;  %v3105_v0 = vld [vmem:[#allocation2 + $0x351] sm:$0xff] }
 0x3ba   :  { %3212 = vrot.lane.b32.xlu0 %v3072_v62, %s9038_s1  ;;  %3214 = vrot.lane.b32.xlu1 %v3073_v63, %s9038_s1  ;;  %v3104_v63 = vld [vmem:[#allocation2 + $0x349] sm:$0xff] }
 0x3bc   :  { %v2844_v10 = vpop.permute.xlu0 %2843  ;;  %v2846_v13 = vpop.permute.xlu1 %2845 }
 0x3bd   :  { %3016 = vst.msk [vmem:[#allocation4 + $0xa0] sm:$0xff] %vm2995_vm9, %v2844_v10  ;;  %3017 = vst.msk [vmem:[#allocation4 + $0xa8] sm:$0xff] %vm2995_vm9, %v2846_v13  ;;  %v3107_v10 = vld [vmem:[#allocation2 + $0x371] sm:$0xff] }
 0x3be   :  { %3216 = vrot.lane.b32.xlu0 %v3074_v5, %s9038_s1  ;;  %3218 = vrot.lane.b32.xlu1 %v3075_v8, %s9038_s1  ;;  %v3106_v8 = vld [vmem:[#allocation2 + $0x369] sm:$0xff] }
 0x3c0   :  { %v2848_v21 = vpop.permute.xlu0 %2847  ;;  %v2850_v29 = vpop.permute.xlu1 %2849 }
 0x3c1   :  { %3018 = vst.msk [vmem:[#allocation4 + $0xb0] sm:$0xff] %vm2995_vm9, %v2848_v21  ;;  %3019 = vst.msk [vmem:[#allocation4 + $0xb8] sm:$0xff] %vm2995_vm9, %v2850_v29  ;;  %v3109_v21 = vld [vmem:[#allocation2 + $0x391] sm:$0xff] }
 0x3c2   :  { %3220 = vrot.lane.b32.xlu0 %v3076_v15, %s9038_s1  ;;  %3222 = vrot.lane.b32.xlu1 %v3077_v20, %s9038_s1  ;;  %v3108_v20 = vld [vmem:[#allocation2 + $0x389] sm:$0xff] }
 0x3c4   :  { %v2852_v45 = vpop.permute.xlu0 %2851  ;;  %v2854_v58 = vpop.permute.xlu1 %2853 }
 0x3c5   :  { %3020 = vst.msk [vmem:[#allocation4 + $0xc0] sm:$0xff] %vm2995_vm9, %v2852_v45  ;;  %3021 = vst.msk [vmem:[#allocation4 + $0xc8] sm:$0xff] %vm2995_vm9, %v2854_v58  ;;  %v3111_v45 = vld [vmem:[#allocation2 + $0x3b1] sm:$0xff] }
 0x3c6   :  { %3224 = vrot.lane.b32.xlu0 %v3078_v30, %s9038_s1  ;;  %3226 = vrot.lane.b32.xlu1 %v3079_v42, %s9038_s1  ;;  %v3110_v42 = vld [vmem:[#allocation2 + $0x3a9] sm:$0xff] }
 0x3c8   :  { %v2856_v3 = vpop.permute.xlu0 %2855  ;;  %v2858_v11 = vpop.permute.xlu1 %2857 }
 0x3c9   :  { %3022 = vst.msk [vmem:[#allocation4 + $0xd0] sm:$0xff] %vm2995_vm9, %v2856_v3  ;;  %3023 = vst.msk [vmem:[#allocation4 + $0xd8] sm:$0xff] %vm2995_vm9, %v2858_v11  ;;  %v3113_v3 = vld [vmem:[#allocation2 + $0x3d1] sm:$0xff] }
 0x3ca   :  { %3228 = vrot.lane.b32.xlu0 %v3080_v59, %s9038_s1  ;;  %3230 = vrot.lane.b32.xlu1 %v3081_v1, %s9038_s1  ;;  %v3112_v1 = vld [vmem:[#allocation2 + $0x3c9] sm:$0xff] }
 0x3cc   :  { %v2860_v6 = vpop.permute.xlu0 %2859  ;;  %v2862_v37 = vpop.permute.xlu1 %2861 }
 0x3cd   :  { %3024 = vst.msk [vmem:[#allocation4 + $0xe0] sm:$0xff] %vm2995_vm9, %v2860_v6  ;;  %3025 = vst.msk [vmem:[#allocation4 + $0xe8] sm:$0xff] %vm2995_vm9, %v2862_v37  ;;  %v3115_v6 = vld [vmem:[#allocation2 + $0x3f1] sm:$0xff] }
 0x3ce   :  { %3232 = vrot.lane.b32.xlu0 %v3082_v12, %s9038_s1  ;;  %3234 = vrot.lane.b32.xlu1 %v3083_v24, %s9038_s1  ;;  %v3114_v24 = vld [vmem:[#allocation2 + $0x3e9] sm:$0xff] }
 0x3d0   :  { %v2864_v60 = vpop.permute.xlu0 %2863  ;;  %v2866_v61 = vpop.permute.xlu1 %2865 }
 0x3d1   :  { %3026 = vst.msk [vmem:[#allocation4 + $0xf0] sm:$0xff] %vm2995_vm9, %v2864_v60  ;;  %3027 = vst.msk [vmem:[#allocation4 + $0xf8] sm:$0xff] %vm2995_vm9, %v2866_v61  ;;  %v3117_v60 = vld [vmem:[#allocation2 + $0x411] sm:$0xff] }
 0x3d2   :  { %3236 = vrot.lane.b32.xlu0 %v3084_v25, %s9038_s1  ;;  %3238 = vrot.lane.b32.xlu1 %v3085_v50, %s9038_s1  ;;  %v3116_v50 = vld [vmem:[#allocation2 + $0x409] sm:$0xff] }
 0x3d4   :  { %v2868_v9 = vpop.permute.xlu0 %2867  ;;  %v2870_v14 = vpop.permute.xlu1 %2869 }
 0x3d5   :  { %3028 = vst.msk [vmem:[#allocation4 + $0x100] sm:$0xff] %vm2995_vm9, %v2868_v9  ;;  %3029 = vst.msk [vmem:[#allocation4 + $0x108] sm:$0xff] %vm2995_vm9, %v2870_v14  ;;  %v3119_v9 = vld [vmem:[#allocation2 + $0x431] sm:$0xff] }
 0x3d6   :  { %3240 = vrot.lane.b32.xlu0 %v3086_v16, %s9038_s1  ;;  %3242 = vrot.lane.b32.xlu1 %v3087_v53, %s9038_s1  ;;  %v3118_v53 = vld [vmem:[#allocation2 + $0x429] sm:$0xff] }
 0x3d8   :  { %v2872_v22 = vpop.permute.xlu0 %2871  ;;  %v2874_v23 = vpop.permute.xlu1 %2873 }
 0x3d9   :  { %3030 = vst.msk [vmem:[#allocation4 + $0x110] sm:$0xff] %vm2995_vm9, %v2872_v22  ;;  %3031 = vst.msk [vmem:[#allocation4 + $0x118] sm:$0xff] %vm2995_vm9, %v2874_v23  ;;  %v3121_v22 = vld [vmem:[#allocation2 + $0x451] sm:$0xff] }
 0x3da   :  { %3244 = vrot.lane.b32.xlu0 %v3088_v18, %s9038_s1  ;;  %3246 = vrot.lane.b32.xlu1 %v3089_v19, %s9038_s1  ;;  %v3120_v19 = vld [vmem:[#allocation2 + $0x449] sm:$0xff] }
 0x3dc   :  { %v2876_v28 = vpop.permute.xlu0 %2875  ;;  %v2878_v31 = vpop.permute.xlu1 %2877 }
 0x3dd   :  { %3032 = vst.msk [vmem:[#allocation4 + $0x120] sm:$0xff] %vm2995_vm9, %v2876_v28  ;;  %3033 = vst.msk [vmem:[#allocation4 + $0x128] sm:$0xff] %vm2995_vm9, %v2878_v31 }
 0x3de   :  { %3248 = vrot.lane.b32.xlu0 %v3090_v26, %s9038_s1  ;;  %3250 = vrot.lane.b32.xlu1 %v3091_v27, %s9038_s1 }
 0x3e0   :  { %v2880_v35 = vpop.permute.xlu0 %2879  ;;  %v2882_v38 = vpop.permute.xlu1 %2881 }
 0x3e1   :  { %3034 = vst.msk [vmem:[#allocation4 + $0x130] sm:$0xff] %vm2995_vm9, %v2880_v35  ;;  %3035 = vst.msk [vmem:[#allocation4 + $0x138] sm:$0xff] %vm2995_vm9, %v2882_v38 }
 0x3e2   :  { %3252 = vrot.lane.b32.xlu0 %v3092_v32, %s9038_s1  ;;  %3254 = vrot.lane.b32.xlu1 %v3093_v33, %s9038_s1 }
 0x3e4   :  { %v2884_v41 = vpop.permute.xlu0 %2883  ;;  %v2886_v43 = vpop.permute.xlu1 %2885 }
 0x3e5   :  { %3036 = vst.msk [vmem:[#allocation4 + $0x140] sm:$0xff] %vm2995_vm9, %v2884_v41  ;;  %3037 = vst.msk [vmem:[#allocation4 + $0x148] sm:$0xff] %vm2995_vm9, %v2886_v43 }
 0x3e6   :  { %3256 = vrot.lane.b32.xlu0 %v3094_v39, %s9038_s1  ;;  %3258 = vrot.lane.b32.xlu1 %v3095_v40, %s9038_s1 }
 0x3e8   :  { %v2888_v47 = vpop.permute.xlu0 %2887  ;;  %v2890_v48 = vpop.permute.xlu1 %2889 }
 0x3e9   :  { %3038 = vst.msk [vmem:[#allocation4 + $0x150] sm:$0xff] %vm2995_vm9, %v2888_v47  ;;  %3039 = vst.msk [vmem:[#allocation4 + $0x158] sm:$0xff] %vm2995_vm9, %v2890_v48 }
 0x3ea   :  { %3260 = vrot.lane.b32.xlu0 %v3096_v44, %s9038_s1  ;;  %3262 = vrot.lane.b32.xlu1 %v3097_v46, %s9038_s1 }
 0x3ec   :  { %v2892_v52 = vpop.permute.xlu0 %2891  ;;  %v2894_v34 = vpop.permute.xlu1 %2893 }
 0x3ed   :  { %3040 = vst.msk [vmem:[#allocation4 + $0x160] sm:$0xff] %vm2995_vm9, %v2892_v52  ;;  %3041 = vst.msk [vmem:[#allocation4 + $0x168] sm:$0xff] %vm2995_vm9, %v2894_v34 }
 0x3ee   :  { %3264 = vrot.lane.b32.xlu0 %v3098_v49, %s9038_s1  ;;  %3266 = vrot.lane.b32.xlu1 %v3099_v51, %s9038_s1 }
 0x3f0   :  { %v2896_v55 = vpop.permute.xlu0 %2895  ;;  %v2898_v56 = vpop.permute.xlu1 %2897 }
 0x3f1   :  { %3042 = vst.msk [vmem:[#allocation4 + $0x170] sm:$0xff] %vm2995_vm9, %v2896_v55  ;;  %3043 = vst.msk [vmem:[#allocation4 + $0x178] sm:$0xff] %vm2995_vm9, %v2898_v56 }
 0x3f2   :  { %3268 = vrot.lane.b32.xlu0 %v3100_v2, %s9038_s1  ;;  %3270 = vrot.lane.b32.xlu1 %v3101_v54, %s9038_s1 }
 0x3f4   :  { %v2900_v7 = vpop.permute.xlu0 %2899  ;;  %v2902_v62 = vpop.permute.xlu1 %2901 }
 0x3f5   :  { %3044 = vst.msk [vmem:[#allocation4 + $0x180] sm:$0xff] %vm2995_vm9, %v2900_v7  ;;  %3045 = vst.msk [vmem:[#allocation4 + $0x188] sm:$0xff] %vm2995_vm9, %v2902_v62 }
 0x3f6   :  { %3272 = vrot.lane.b32.xlu0 %v3102_v57, %s9038_s1  ;;  %3274 = vrot.lane.b32.xlu1 %v3103_v17, %s9038_s1 }
 0x3f8   :  { %v2904_v4 = vpop.permute.xlu0 %2903  ;;  %v2906_v5 = vpop.permute.xlu1 %2905 }
 0x3f9   :  { %3046 = vst.msk [vmem:[#allocation4 + $0x190] sm:$0xff] %vm2995_vm9, %v2904_v4  ;;  %3047 = vst.msk [vmem:[#allocation4 + $0x198] sm:$0xff] %vm2995_vm9, %v2906_v5 }
 0x3fa   :  { %3276 = vrot.lane.b32.xlu0 %v3104_v63, %s9038_s1  ;;  %3278 = vrot.lane.b32.xlu1 %v3105_v0, %s9038_s1 }
 0x3fc   :  { %v2908_v13 = vpop.permute.xlu0 %2907  ;;  %v2910_v15 = vpop.permute.xlu1 %2909 }
 0x3fd   :  { %3048 = vst.msk [vmem:[#allocation4 + $0x1a0] sm:$0xff] %vm2995_vm9, %v2908_v13  ;;  %3049 = vst.msk [vmem:[#allocation4 + $0x1a8] sm:$0xff] %vm2995_vm9, %v2910_v15 }
 0x3fe   :  { %3280 = vrot.lane.b32.xlu0 %v3106_v8, %s9038_s1  ;;  %3282 = vrot.lane.b32.xlu1 %v3107_v10, %s9038_s1 }
 0x400   :  { %v2912_v29 = vpop.permute.xlu0 %2911  ;;  %v2914_v30 = vpop.permute.xlu1 %2913 }
 0x401   :  { %3050 = vst.msk [vmem:[#allocation4 + $0x1b0] sm:$0xff] %vm2995_vm9, %v2912_v29  ;;  %3051 = vst.msk [vmem:[#allocation4 + $0x1b8] sm:$0xff] %vm2995_vm9, %v2914_v30 }
 0x402   :  { %3284 = vrot.lane.b32.xlu0 %v3108_v20, %s9038_s1  ;;  %3286 = vrot.lane.b32.xlu1 %v3109_v21, %s9038_s1 }
 0x404   :  { %v2916_v58 = vpop.permute.xlu0 %2915  ;;  %v2918_v59 = vpop.permute.xlu1 %2917 }
 0x405   :  { %3052 = vst.msk [vmem:[#allocation4 + $0x1c0] sm:$0xff] %vm2995_vm9, %v2916_v58  ;;  %3053 = vst.msk [vmem:[#allocation4 + $0x1c8] sm:$0xff] %vm2995_vm9, %v2918_v59 }
 0x406   :  { %3288 = vrot.lane.b32.xlu0 %v3110_v42, %s9038_s1  ;;  %3290 = vrot.lane.b32.xlu1 %v3111_v45, %s9038_s1 }
 0x408   :  { %v2920_v11 = vpop.permute.xlu0 %2919  ;;  %v2922_v12 = vpop.permute.xlu1 %2921 }
 0x409   :  { %3054 = vst.msk [vmem:[#allocation4 + $0x1d0] sm:$0xff] %vm2995_vm9, %v2920_v11  ;;  %3055 = vst.msk [vmem:[#allocation4 + $0x1d8] sm:$0xff] %vm2995_vm9, %v2922_v12 }
 0x40a   :  { %3292 = vrot.lane.b32.xlu0 %v3112_v1, %s9038_s1  ;;  %3294 = vrot.lane.b32.xlu1 %v3113_v3, %s9038_s1 }
 0x40c   :  { %v2924_v37 = vpop.permute.xlu0 %2923  ;;  %v2926_v25 = vpop.permute.xlu1 %2925 }
 0x40d   :  { %3056 = vst.msk [vmem:[#allocation4 + $0x1e0] sm:$0xff] %vm2995_vm9, %v2924_v37  ;;  %3057 = vst.msk [vmem:[#allocation4 + $0x1e8] sm:$0xff] %vm2995_vm9, %v2926_v25 }
 0x40e   :  { %3296 = vrot.lane.b32.xlu0 %v3114_v24, %s9038_s1  ;;  %3298 = vrot.lane.b32.xlu1 %v3115_v6, %s9038_s1 }
 0x410   :  { %v2928_v61 = vpop.permute.xlu0 %2927  ;;  %v2930_v16 = vpop.permute.xlu1 %2929 }
 0x411   :  { %3058 = vst.msk [vmem:[#allocation4 + $0x1f0] sm:$0xff] %vm2995_vm9, %v2928_v61  ;;  %3059 = vst.msk [vmem:[#allocation4 + $0x1f8] sm:$0xff] %vm2995_vm9, %v2930_v16  ;;  %vm8243_vm9 = vcmask 130048  }
 0x412   :  { %3300 = vrot.lane.b32.xlu0 %v3116_v50, %s9038_s1  ;;  %3302 = vrot.lane.b32.xlu1 %v3117_v60, %s9038_s1 }
 0x414   :  { %v3189_v14 = vpop.permute.xlu0 %3188  ;;  %v3191_v18 = vpop.permute.xlu1 %3190 }
 0x415   :  { %3381 = vst.msk [vmem:[#allocation4] sm:$0xff] %vm3380_vm11, %v3189_v14  ;;  %3382 = vst.msk [vmem:[#allocation4 + $0x8] sm:$0xff] %vm3380_vm11, %v3191_v18 }
 0x416   :  { %3304 = vrot.lane.b32.xlu0 %v3118_v53, %s9038_s1  ;;  %3306 = vrot.lane.b32.xlu1 %v3119_v9, %s9038_s1 }
 0x418   :  { %v3193_v23 = vpop.permute.xlu0 %3192  ;;  %v3195_v26 = vpop.permute.xlu1 %3194 }
 0x419   :  { %3383 = vst.msk [vmem:[#allocation4 + $0x10] sm:$0xff] %vm3380_vm11, %v3193_v23  ;;  %3384 = vst.msk [vmem:[#allocation4 + $0x18] sm:$0xff] %vm3380_vm11, %v3195_v26 }
 0x41a   :  { %3308 = vrot.lane.b32.xlu0 %v3120_v19, %s9038_s1  ;;  %3310 = vrot.lane.b32.xlu1 %v3121_v22, %s9038_s1 }
 0x41c   :  { %v3197_v27 = vpop.permute.xlu0 %3196  ;;  %v3445_v28 = vld [vmem:[#allocation4] sm:$0xff]  ;;  %v3199_v31 = vpop.permute.xlu1 %3198  ;;  %v3446_v32 = vld [vmem:[#allocation4 + $0x8] sm:$0xff] }
 0x41d   :  { %3385 = vst.msk [vmem:[#allocation4 + $0x20] sm:$0xff] %vm3380_vm11, %v3197_v27  ;;  %8774 = vmatprep.mubr.msk.f32.mxu0 %vm3521_vm12, %v3445_v28  ;;  %3386 = vst.msk [vmem:[#allocation4 + $0x28] sm:$0xff] %vm3380_vm11, %v3199_v31 }
 0x41e   :  { %8775 = vmatmul.mubr.msk.f32.vlgmr.msra.gmra.mxu0 %vm3521_vm12, %v3446_v32 }
 0x420   :  { %v3201_v33 = vpop.permute.xlu0 %3200  ;;  %v3203_v35 = vpop.permute.xlu1 %3202  ;;  %v3447_v38 = vld [vmem:[#allocation4 + $0x10] sm:$0xff]  ;;  %v3448_v39 = vld [vmem:[#allocation4 + $0x18] sm:$0xff] }
 0x421   :  { %3387 = vst.msk [vmem:[#allocation4 + $0x30] sm:$0xff] %vm3380_vm11, %v3201_v33  ;;  %3388 = vst.msk [vmem:[#allocation4 + $0x38] sm:$0xff] %vm3380_vm11, %v3203_v35  ;;  %8777 = vmatprep.mubr.msk.f32.mxu0 %vm3521_vm12, %v3447_v38 }
 0x422   :  { %8778 = vmatmul.mubr.msk.f32.gmra.mxu0 %vm3521_vm12, %v3448_v39 }
 0x424   :  { %v3205_v40 = vpop.permute.xlu0 %3204  ;;  %v3207_v41 = vpop.permute.xlu1 %3206  ;;  %v3449_v43 = vld [vmem:[#allocation4 + $0x20] sm:$0xff]  ;;  %v3450_v44 = vld [vmem:[#allocation4 + $0x28] sm:$0xff] }
 0x425   :  { %3389 = vst.msk [vmem:[#allocation4 + $0x40] sm:$0xff] %vm3380_vm11, %v3205_v40  ;;  %3390 = vst.msk [vmem:[#allocation4 + $0x48] sm:$0xff] %vm3380_vm11, %v3207_v41  ;;  %8780 = vmatprep.mubr.msk.f32.mxu0 %vm3521_vm12, %v3449_v43  ;;  %v3122_v41 = vld [vmem:[#allocation2 + $0x469] sm:$0xff]  ;;  %v3123_v43 = vld [vmem:[#allocation2 + $0x471] sm:$0xff] }
 0x426   :  { %8781 = vmatmul.mubr.msk.f32.gmra.mxu0 %vm3521_vm12, %v3450_v44  ;;  %3312 = vrot.lane.b32.xlu0 %v3122_v41, %s9038_s1 }
 0x427   :  { %3314 = vrot.lane.b32.xlu1 %v3123_v43, %s9038_s1 }
 0x428   :  { %v3209_v46 = vpop.permute.xlu0 %3208  ;;  %v3211_v47 = vpop.permute.xlu1 %3210  ;;  %v3451_v48 = vld [vmem:[#allocation4 + $0x30] sm:$0xff]  ;;  %v3452_v49 = vld [vmem:[#allocation4 + $0x38] sm:$0xff] }
 0x429   :  { %3391 = vst.msk [vmem:[#allocation4 + $0x50] sm:$0xff] %vm3380_vm11, %v3209_v46  ;;  %3392 = vst.msk [vmem:[#allocation4 + $0x58] sm:$0xff] %vm3380_vm11, %v3211_v47  ;;  %8783 = vmatprep.mubr.msk.f32.mxu0 %vm3521_vm12, %v3451_v48 }
 0x42a   :  { %8784 = vmatmul.mubr.msk.f32.gmra.mxu0 %vm3521_vm12, %v3452_v49  ;;  %v4441_v49 = vld [vmem:[#allocation3 + $0x10] sm:$0xff] }
 0x42b   :  { %4570 = vrot.lane.b32.xlu1 %v4441_v49, %s9032_s10 }
 0x42c   :  { %v3213_v51 = vpop.permute.xlu0 %3212  ;;  %v3215_v52 = vpop.permute.xlu1 %3214  ;;  %v3453_v34 = vld [vmem:[#allocation4 + $0x40] sm:$0xff]  ;;  %v3454_v2 = vld [vmem:[#allocation4 + $0x48] sm:$0xff] }
 0x42d   :  { %3393 = vst.msk [vmem:[#allocation4 + $0x60] sm:$0xff] %vm3380_vm11, %v3213_v51  ;;  %3394 = vst.msk [vmem:[#allocation4 + $0x68] sm:$0xff] %vm3380_vm11, %v3215_v52  ;;  %8786 = vmatprep.mubr.msk.f32.mxu0 %vm3521_vm12, %v3453_v34 }
 0x42e   :  { %8787 = vmatmul.mubr.msk.f32.gmra.mxu0 %vm3521_vm12, %v3454_v2 }
 0x430   :  { %v3217_v54 = vpop.permute.xlu0 %3216  ;;  %v3219_v55 = vpop.permute.xlu1 %3218  ;;  %v3455_v56 = vld [vmem:[#allocation4 + $0x50] sm:$0xff]  ;;  %v3456_v57 = vld [vmem:[#allocation4 + $0x58] sm:$0xff] }
 0x431   :  { %3395 = vst.msk [vmem:[#allocation4 + $0x70] sm:$0xff] %vm3380_vm11, %v3217_v54  ;;  %3396 = vst.msk [vmem:[#allocation4 + $0x78] sm:$0xff] %vm3380_vm11, %v3219_v55  ;;  %8789 = vmatprep.mubr.msk.f32.mxu0 %vm3521_vm12, %v3455_v56  ;;  %v4440_v54 = vld [vmem:[#allocation3 + $0x8] sm:$0xff] }
 0x432   :  { %8790 = vmatmul.mubr.msk.f32.gmra.mxu0 %vm3521_vm12, %v3456_v57  ;;  %4568 = vrot.lane.b32.xlu0 %v4440_v54, %s9032_s10 }
 0x434   :  { %v3221_v17 = vpop.permute.xlu0 %3220  ;;  %v3223_v7 = vpop.permute.xlu1 %3222  ;;  %v3457_v62 = vld [vmem:[#allocation4 + $0x60] sm:$0xff]  ;;  %v3458_v63 = vld [vmem:[#allocation4 + $0x68] sm:$0xff] }
 0x435   :  { %3397 = vst.msk [vmem:[#allocation4 + $0x80] sm:$0xff] %vm3380_vm11, %v3221_v17  ;;  %3398 = vst.msk [vmem:[#allocation4 + $0x88] sm:$0xff] %vm3380_vm11, %v3223_v7  ;;  %8792 = vmatprep.mubr.msk.f32.mxu0 %vm3521_vm12, %v3457_v62 }
 0x436   :  { %8793 = vmatmul.mubr.msk.f32.gmra.mxu0 %vm3521_vm12, %v3458_v63 }
 0x438   :  { %v3225_v0 = vpop.permute.xlu0 %3224  ;;  %v3227_v4 = vpop.permute.xlu1 %3226  ;;  %v3459_v5 = vld [vmem:[#allocation4 + $0x70] sm:$0xff]  ;;  %v3460_v8 = vld [vmem:[#allocation4 + $0x78] sm:$0xff] }
 0x439   :  { %3399 = vst.msk [vmem:[#allocation4 + $0x90] sm:$0xff] %vm3380_vm11, %v3225_v0  ;;  %3400 = vst.msk [vmem:[#allocation4 + $0x98] sm:$0xff] %vm3380_vm11, %v3227_v4  ;;  %8795 = vmatprep.mubr.msk.f32.mxu0 %vm3521_vm12, %v3459_v5 }
 0x43a   :  { %8796 = vmatmul.mubr.msk.f32.gmra.mxu0 %vm3521_vm12, %v3460_v8 }
 0x43c   :  { %v3229_v10 = vpop.permute.xlu0 %3228  ;;  %v3231_v13 = vpop.permute.xlu1 %3230  ;;  %v3461_v15 = vld [vmem:[#allocation4 + $0x80] sm:$0xff]  ;;  %v3462_v20 = vld [vmem:[#allocation4 + $0x88] sm:$0xff] }
 0x43d   :  { %3401 = vst.msk [vmem:[#allocation4 + $0xa0] sm:$0xff] %vm3380_vm11, %v3229_v10  ;;  %3402 = vst.msk [vmem:[#allocation4 + $0xa8] sm:$0xff] %vm3380_vm11, %v3231_v13  ;;  %8798 = vmatprep.mubr.msk.f32.mxu0 %vm3521_vm12, %v3461_v15 }
 0x43e   :  { %8799 = vmatmul.mubr.msk.f32.gmra.mxu0 %vm3521_vm12, %v3462_v20 }
 0x440   :  { %v3233_v21 = vpop.permute.xlu0 %3232  ;;  %v3235_v29 = vpop.permute.xlu1 %3234  ;;  %v3463_v30 = vld [vmem:[#allocation4 + $0x90] sm:$0xff]  ;;  %v3464_v42 = vld [vmem:[#allocation4 + $0x98] sm:$0xff] }
 0x441   :  { %3403 = vst.msk [vmem:[#allocation4 + $0xb0] sm:$0xff] %vm3380_vm11, %v3233_v21  ;;  %3404 = vst.msk [vmem:[#allocation4 + $0xb8] sm:$0xff] %vm3380_vm11, %v3235_v29  ;;  %8801 = vmatprep.mubr.msk.f32.mxu0 %vm3521_vm12, %v3463_v30 }
 0x442   :  { %8802 = vmatmul.mubr.msk.f32.gmra.mxu0 %vm3521_vm12, %v3464_v42 }
 0x444   :  { %v3237_v45 = vpop.permute.xlu0 %3236  ;;  %v3239_v58 = vpop.permute.xlu1 %3238  ;;  %v3465_v59 = vld [vmem:[#allocation4 + $0xa0] sm:$0xff]  ;;  %v3466_v1 = vld [vmem:[#allocation4 + $0xa8] sm:$0xff] }
 0x445   :  { %3405 = vst.msk [vmem:[#allocation4 + $0xc0] sm:$0xff] %vm3380_vm11, %v3237_v45  ;;  %3406 = vst.msk [vmem:[#allocation4 + $0xc8] sm:$0xff] %vm3380_vm11, %v3239_v58  ;;  %8804 = vmatprep.mubr.msk.f32.mxu0 %vm3521_vm12, %v3465_v59 }
 0x446   :  { %8805 = vmatmul.mubr.msk.f32.gmra.mxu0 %vm3521_vm12, %v3466_v1 }
 0x448   :  { %v3241_v3 = vpop.permute.xlu0 %3240  ;;  %v3243_v11 = vpop.permute.xlu1 %3242  ;;  %v3467_v12 = vld [vmem:[#allocation4 + $0xb0] sm:$0xff]  ;;  %v3468_v24 = vld [vmem:[#allocation4 + $0xb8] sm:$0xff] }
 0x449   :  { %3407 = vst.msk [vmem:[#allocation4 + $0xd0] sm:$0xff] %vm3380_vm11, %v3241_v3  ;;  %3408 = vst.msk [vmem:[#allocation4 + $0xd8] sm:$0xff] %vm3380_vm11, %v3243_v11  ;;  %8807 = vmatprep.mubr.msk.f32.mxu0 %vm3521_vm12, %v3467_v12 }
 0x44a   :  { %8808 = vmatmul.mubr.msk.f32.gmra.mxu0 %vm3521_vm12, %v3468_v24 }
 0x44c   :  { %v3245_v6 = vpop.permute.xlu0 %3244  ;;  %v3247_v37 = vpop.permute.xlu1 %3246  ;;  %v3469_v25 = vld [vmem:[#allocation4 + $0xc0] sm:$0xff]  ;;  %v3470_v50 = vld [vmem:[#allocation4 + $0xc8] sm:$0xff] }
 0x44d   :  { %3409 = vst.msk [vmem:[#allocation4 + $0xe0] sm:$0xff] %vm3380_vm11, %v3245_v6  ;;  %3410 = vst.msk [vmem:[#allocation4 + $0xe8] sm:$0xff] %vm3380_vm11, %v3247_v37  ;;  %8810 = vmatprep.mubr.msk.f32.mxu0 %vm3521_vm12, %v3469_v25 }
 0x44e   :  { %8811 = vmatmul.mubr.msk.f32.gmra.mxu0 %vm3521_vm12, %v3470_v50 }
 0x450   :  { %v3249_v60 = vpop.permute.xlu0 %3248  ;;  %v3251_v61 = vpop.permute.xlu1 %3250  ;;  %v3471_v16 = vld [vmem:[#allocation4 + $0xd0] sm:$0xff]  ;;  %v3472_v53 = vld [vmem:[#allocation4 + $0xd8] sm:$0xff] }
 0x451   :  { %3411 = vst.msk [vmem:[#allocation4 + $0xf0] sm:$0xff] %vm3380_vm11, %v3249_v60  ;;  %3412 = vst.msk [vmem:[#allocation4 + $0xf8] sm:$0xff] %vm3380_vm11, %v3251_v61  ;;  %8813 = vmatprep.mubr.msk.f32.mxu0 %vm3521_vm12, %v3471_v16 }
 0x452   :  { %8814 = vmatmul.mubr.msk.f32.gmra.mxu0 %vm3521_vm12, %v3472_v53 }
 0x454   :  { %v3253_v9 = vpop.permute.xlu0 %3252  ;;  %v3255_v14 = vpop.permute.xlu1 %3254  ;;  %v3473_v18 = vld [vmem:[#allocation4 + $0xe0] sm:$0xff]  ;;  %v3474_v19 = vld [vmem:[#allocation4 + $0xe8] sm:$0xff] }
 0x455   :  { %3413 = vst.msk [vmem:[#allocation4 + $0x100] sm:$0xff] %vm3380_vm11, %v3253_v9  ;;  %3414 = vst.msk [vmem:[#allocation4 + $0x108] sm:$0xff] %vm3380_vm11, %v3255_v14  ;;  %8816 = vmatprep.mubr.msk.f32.mxu0 %vm3521_vm12, %v3473_v18 }
 0x456   :  { %8817 = vmatmul.mubr.msk.f32.gmra.mxu0 %vm3521_vm12, %v3474_v19 }
 0x458   :  { %v3257_v22 = vpop.permute.xlu0 %3256  ;;  %v3259_v23 = vpop.permute.xlu1 %3258  ;;  %v3475_v26 = vld [vmem:[#allocation4 + $0xf0] sm:$0xff]  ;;  %v3476_v27 = vld [vmem:[#allocation4 + $0xf8] sm:$0xff] }
 0x459   :  { %3415 = vst.msk [vmem:[#allocation4 + $0x110] sm:$0xff] %vm3380_vm11, %v3257_v22  ;;  %3416 = vst.msk [vmem:[#allocation4 + $0x118] sm:$0xff] %vm3380_vm11, %v3259_v23  ;;  %8819 = vmatprep.mubr.msk.f32.mxu0 %vm3521_vm12, %v3475_v26 }
 0x45a   :  { %8820 = vmatmul.mubr.msk.f32.gmra.mxu0 %vm3521_vm12, %v3476_v27  ;;  %v4312_v27 = vld [vmem:[#allocation3 + $0x7] sm:$0xff] }
 0x45b   :  { %4376 = vst.msk [vmem:[#allocation5] sm:$0xff] %vm4167_vm13, %v4312_v27 }
 0x45c   :  { %v3261_v28 = vpop.permute.xlu0 %3260  ;;  %v3263_v31 = vpop.permute.xlu1 %3262  ;;  %v3477_v32 = vld [vmem:[#allocation4 + $0x100] sm:$0xff]  ;;  %v3478_v33 = vld [vmem:[#allocation4 + $0x108] sm:$0xff] }
 0x45d   :  { %3417 = vst.msk [vmem:[#allocation4 + $0x120] sm:$0xff] %vm3380_vm11, %v3261_v28  ;;  %3418 = vst.msk [vmem:[#allocation4 + $0x128] sm:$0xff] %vm3380_vm11, %v3263_v31  ;;  %8822 = vmatprep.mubr.msk.f32.mxu0 %vm3521_vm12, %v3477_v32  ;;  %v4313_v28 = vld [vmem:[#allocation3 + $0xf] sm:$0xff]  ;;  %v11058_v32 = vld [vmem:[%s12822_s2] ss:$0 sm:$0xff] }
 0x45e   :  { %8823 = vmatmul.mubr.msk.f32.gmra.mxu0 %vm3521_vm12, %v3478_v33  ;;  %4377 = vst.msk [vmem:[#allocation5 + $0x8] sm:$0xff] %vm4167_vm13, %v4313_v28 }
 0x460   :  { %v3265_v35 = vpop.permute.xlu0 %3264  ;;  %v3267_v38 = vpop.permute.xlu1 %3266  ;;  %v3479_v39 = vld [vmem:[#allocation4 + $0x110] sm:$0xff]  ;;  %v3480_v40 = vld [vmem:[#allocation4 + $0x118] sm:$0xff] }
 0x461   :  { %3419 = vst.msk [vmem:[#allocation4 + $0x130] sm:$0xff] %vm3380_vm11, %v3265_v35  ;;  %3420 = vst.msk [vmem:[#allocation4 + $0x138] sm:$0xff] %vm3380_vm11, %v3267_v38  ;;  %8825 = vmatprep.mubr.msk.f32.mxu0 %vm3521_vm12, %v3479_v39 }
 0x462   :  { %8826 = vmatmul.mubr.msk.f32.gmra.mxu0 %vm3521_vm12, %v3480_v40 }
 0x464   :  { %v3269_v44 = vpop.permute.xlu0 %3268  ;;  %v3271_v46 = vpop.permute.xlu1 %3270  ;;  %v3481_v47 = vld [vmem:[#allocation4 + $0x120] sm:$0xff]  ;;  %v3482_v48 = vld [vmem:[#allocation4 + $0x128] sm:$0xff] }
 0x465   :  { %3421 = vst.msk [vmem:[#allocation4 + $0x140] sm:$0xff] %vm3380_vm11, %v3269_v44  ;;  %3422 = vst.msk [vmem:[#allocation4 + $0x148] sm:$0xff] %vm3380_vm11, %v3271_v46  ;;  %8828 = vmatprep.mubr.msk.f32.mxu0 %vm3521_vm12, %v3481_v47 }
 0x466   :  { %8829 = vmatmul.mubr.msk.f32.gmra.mxu0 %vm3521_vm12, %v3482_v48 }
 0x468   :  { %v3273_v51 = vpop.permute.xlu0 %3272  ;;  %v3275_v52 = vpop.permute.xlu1 %3274  ;;  %v3483_v34 = vld [vmem:[#allocation4 + $0x130] sm:$0xff]  ;;  %v3484_v2 = vld [vmem:[#allocation4 + $0x138] sm:$0xff] }
 0x469   :  { %3423 = vst.msk [vmem:[#allocation4 + $0x150] sm:$0xff] %vm3380_vm11, %v3273_v51  ;;  %3424 = vst.msk [vmem:[#allocation4 + $0x158] sm:$0xff] %vm3380_vm11, %v3275_v52  ;;  %8831 = vmatprep.mubr.msk.f32.mxu0 %vm3521_vm12, %v3483_v34 }
 0x46a   :  { %8832 = vmatmul.mubr.msk.f32.gmra.mxu0 %vm3521_vm12, %v3484_v2 }
 0x46c   :  { %v3277_v55 = vpop.permute.xlu0 %3276  ;;  %v3279_v56 = vpop.permute.xlu1 %3278  ;;  %v3485_v57 = vld [vmem:[#allocation4 + $0x140] sm:$0xff]  ;;  %v3486_v17 = vld [vmem:[#allocation4 + $0x148] sm:$0xff] }
 0x46d   :  { %3425 = vst.msk [vmem:[#allocation4 + $0x160] sm:$0xff] %vm3380_vm11, %v3277_v55  ;;  %3426 = vst.msk [vmem:[#allocation4 + $0x168] sm:$0xff] %vm3380_vm11, %v3279_v56  ;;  %8834 = vmatprep.mubr.msk.f32.mxu0 %vm3521_vm12, %v3485_v57 }
 0x46e   :  { %8835 = vmatmul.mubr.msk.f32.gmra.mxu0 %vm3521_vm12, %v3486_v17 }
 0x470   :  { %v3281_v7 = vpop.permute.xlu0 %3280  ;;  %v3283_v62 = vpop.permute.xlu1 %3282  ;;  %v3487_v63 = vld [vmem:[#allocation4 + $0x150] sm:$0xff]  ;;  %v3488_v0 = vld [vmem:[#allocation4 + $0x158] sm:$0xff] }
 0x471   :  { %3427 = vst.msk [vmem:[#allocation4 + $0x170] sm:$0xff] %vm3380_vm11, %v3281_v7  ;;  %3428 = vst.msk [vmem:[#allocation4 + $0x178] sm:$0xff] %vm3380_vm11, %v3283_v62  ;;  %8837 = vmatprep.mubr.msk.f32.mxu0 %vm3521_vm12, %v3487_v63 }
 0x472   :  { %8838 = vmatmul.mubr.msk.f32.gmra.mxu0 %vm3521_vm12, %v3488_v0 }
 0x474   :  { %v3285_v4 = vpop.permute.xlu0 %3284  ;;  %v3287_v5 = vpop.permute.xlu1 %3286  ;;  %v3489_v8 = vld [vmem:[#allocation4 + $0x160] sm:$0xff]  ;;  %v3490_v10 = vld [vmem:[#allocation4 + $0x168] sm:$0xff] }
 0x475   :  { %3429 = vst.msk [vmem:[#allocation4 + $0x180] sm:$0xff] %vm3380_vm11, %v3285_v4  ;;  %3430 = vst.msk [vmem:[#allocation4 + $0x188] sm:$0xff] %vm3380_vm11, %v3287_v5  ;;  %8840 = vmatprep.mubr.msk.f32.mxu0 %vm3521_vm12, %v3489_v8 }
 0x476   :  { %8841 = vmatmul.mubr.msk.f32.gmra.mxu0 %vm3521_vm12, %v3490_v10 }
 0x478   :  { %v3289_v13 = vpop.permute.xlu0 %3288  ;;  %v3291_v15 = vpop.permute.xlu1 %3290  ;;  %v3491_v20 = vld [vmem:[#allocation4 + $0x170] sm:$0xff]  ;;  %v3492_v21 = vld [vmem:[#allocation4 + $0x178] sm:$0xff] }
 0x479   :  { %3431 = vst.msk [vmem:[#allocation4 + $0x190] sm:$0xff] %vm3380_vm11, %v3289_v13  ;;  %3432 = vst.msk [vmem:[#allocation4 + $0x198] sm:$0xff] %vm3380_vm11, %v3291_v15  ;;  %8843 = vmatprep.mubr.msk.f32.mxu0 %vm3521_vm12, %v3491_v20 }
 0x47a   :  { %8844 = vmatmul.mubr.msk.f32.gmra.mxu0 %vm3521_vm12, %v3492_v21 }
 0x47c   :  { %v3293_v29 = vpop.permute.xlu0 %3292  ;;  %v3295_v30 = vpop.permute.xlu1 %3294  ;;  %v3493_v42 = vld [vmem:[#allocation4 + $0x180] sm:$0xff]  ;;  %v3494_v45 = vld [vmem:[#allocation4 + $0x188] sm:$0xff] }
 0x47d   :  { %3433 = vst.msk [vmem:[#allocation4 + $0x1a0] sm:$0xff] %vm3380_vm11, %v3293_v29  ;;  %3434 = vst.msk [vmem:[#allocation4 + $0x1a8] sm:$0xff] %vm3380_vm11, %v3295_v30  ;;  %8846 = vmatprep.mubr.msk.f32.mxu0 %vm3521_vm12, %v3493_v42 }
 0x47e   :  { %8847 = vmatmul.mubr.msk.f32.gmra.mxu0 %vm3521_vm12, %v3494_v45 }
 0x480   :  { %v3297_v58 = vpop.permute.xlu0 %3296  ;;  %v3299_v59 = vpop.permute.xlu1 %3298  ;;  %v3495_v1 = vld [vmem:[#allocation4 + $0x190] sm:$0xff]  ;;  %v3496_v3 = vld [vmem:[#allocation4 + $0x198] sm:$0xff] }
 0x481   :  { %3435 = vst.msk [vmem:[#allocation4 + $0x1b0] sm:$0xff] %vm3380_vm11, %v3297_v58  ;;  %3436 = vst.msk [vmem:[#allocation4 + $0x1b8] sm:$0xff] %vm3380_vm11, %v3299_v59  ;;  %8849 = vmatprep.mubr.msk.f32.mxu0 %vm3521_vm12, %v3495_v1 }
 0x482   :  { %8850 = vmatmul.mubr.msk.f32.gmra.mxu0 %vm3521_vm12, %v3496_v3 }
 0x484   :  { %v3301_v11 = vpop.permute.xlu0 %3300  ;;  %v3303_v12 = vpop.permute.xlu1 %3302  ;;  %v3497_v24 = vld [vmem:[#allocation4 + $0x1a0] sm:$0xff]  ;;  %v3498_v6 = vld [vmem:[#allocation4 + $0x1a8] sm:$0xff] }
 0x485   :  { %3437 = vst.msk [vmem:[#allocation4 + $0x1c0] sm:$0xff] %vm3380_vm11, %v3301_v11  ;;  %3438 = vst.msk [vmem:[#allocation4 + $0x1c8] sm:$0xff] %vm3380_vm11, %v3303_v12  ;;  %8852 = vmatprep.mubr.msk.f32.mxu0 %vm3521_vm12, %v3497_v24 }
 0x486   :  { %8853 = vmatmul.mubr.msk.f32.gmra.mxu0 %vm3521_vm12, %v3498_v6 }
 0x488   :  { %v3305_v37 = vpop.permute.xlu0 %3304  ;;  %v3307_v25 = vpop.permute.xlu1 %3306  ;;  %v3499_v50 = vld [vmem:[#allocation4 + $0x1b0] sm:$0xff]  ;;  %v3500_v60 = vld [vmem:[#allocation4 + $0x1b8] sm:$0xff] }
 0x489   :  { %3439 = vst.msk [vmem:[#allocation4 + $0x1d0] sm:$0xff] %vm3380_vm11, %v3305_v37  ;;  %3440 = vst.msk [vmem:[#allocation4 + $0x1d8] sm:$0xff] %vm3380_vm11, %v3307_v25  ;;  %8855 = vmatprep.mubr.msk.f32.mxu0 %vm3521_vm12, %v3499_v50 }
 0x48a   :  { %8856 = vmatmul.mubr.msk.f32.gmra.mxu0 %vm3521_vm12, %v3500_v60 }
 0x48c   :  { %v3309_v61 = vpop.permute.xlu0 %3308  ;;  %v3311_v16 = vpop.permute.xlu1 %3310  ;;  %v3501_v53 = vld [vmem:[#allocation4 + $0x1c0] sm:$0xff]  ;;  %v3502_v9 = vld [vmem:[#allocation4 + $0x1c8] sm:$0xff] }
 0x48d   :  { %3441 = vst.msk [vmem:[#allocation4 + $0x1e0] sm:$0xff] %vm3380_vm11, %v3309_v61  ;;  %3442 = vst.msk [vmem:[#allocation4 + $0x1e8] sm:$0xff] %vm3380_vm11, %v3311_v16  ;;  %8858 = vmatprep.mubr.msk.f32.mxu0 %vm3521_vm12, %v3501_v53 }
 0x48e   :  { %8859 = vmatmul.mubr.msk.f32.gmra.mxu0 %vm3521_vm12, %v3502_v9 }
 0x490   :  { %v3503_v14 = vld [vmem:[#allocation4 + $0x1d0] sm:$0xff]  ;;  %v3504_v18 = vld [vmem:[#allocation4 + $0x1d8] sm:$0xff] }
 0x491   :  { %8861 = vmatprep.mubr.msk.f32.mxu0 %vm3521_vm12, %v3503_v14 }
 0x492   :  { %8862 = vmatmul.mubr.msk.f32.gmra.mxu0 %vm3521_vm12, %v3504_v18 }
 0x494   :  { %v3505_v19 = vld [vmem:[#allocation4 + $0x1e0] sm:$0xff]  ;;  %v3506_v22 = vld [vmem:[#allocation4 + $0x1e8] sm:$0xff] }
 0x495   :  { %8864 = vmatprep.mubr.msk.f32.mxu0 %vm3521_vm12, %v3505_v19 }
 0x496   :  { %8865 = vmatmul.mubr.msk.f32.gmra.mxu0 %vm3521_vm12, %v3506_v22 }
 0x498   :  { %v3313_v23 = vpop.permute.xlu0 %3312 }
 0x499   :  { %v3315_v26 = vpop.permute.xlu1 %3314  ;;  %3443 = vst.msk [vmem:[#allocation4 + $0x1f0] sm:$0xff] %vm3380_vm11, %v3313_v23 }
 0x49a   :  { %3444 = vst.msk [vmem:[#allocation4 + $0x1f8] sm:$0xff] %vm3380_vm11, %v3315_v26  ;;  %vm8396_vm11 = vcmask 1041409  }
 0x49d   :  { %v4571_v33 = vpop.permute.xlu1 %4570 }
 0x49e   :  { %4762 = vst.msk [vmem:[#allocation5 + $0x8] sm:$0xff] %vm4760_vm0, %v4571_v33 }
 0x4a0   :  { %v3507_v35 = vld [vmem:[#allocation4 + $0x1f0] sm:$0xff] }
 0x4a1   :  { %8867 = vmatprep.mubr.msk.f32.mxu0 %vm3521_vm12, %v3507_v35  ;;  %v3508_v39 = vld [vmem:[#allocation4 + $0x1f8] sm:$0xff] }
 0x4a2   :  { %8868 = vmatmul.mubr.msk.f32.gmra.mxu0 %vm3521_vm12, %v3508_v39  ;;  %vm8470_vm12 = vcmask 74752  }
 0x4a4   :  { %v4569_v31 = vpop.permute.xlu0 %4568 }
 0x4a5   :  { %4761 = vst.msk [vmem:[#allocation5] sm:$0xff] %vm4760_vm0, %v4569_v31 }
 0x4de   :  { %v8776_v38 = vpop.f32.mrf.mxu0 }
 0x4df   :  { %v3790_v40 = vadd.f32 %v8776_v38, %v11058_v32 }
 0x4e0   :  { %v3784_v41 = vpop.f32.mrf.mxu0 }
 0x4e1   :  { %v4104_v43 = vmax.f32 %v3790_v40, 0.0  ;;  %v3785_v44 = vadd.f32 %v11058_v32, %v3784_v41 }
 0x4e2   :  { %v8779_v46 = vpop.f32.mrf.mxu0 }
 0x4e3   :  { %4249 = vst.msk [vmem:[#allocation3 + $0x30] sm:$0xff] %vm4167_vm13, %v4104_v43  ;;  %v4103_v47 = vmax.f32 %v3785_v44, 0.0  ;;  %v3800_v48 = vadd.f32 %v8779_v46, %v11058_v32 }
 0x4e4   :  { %v3794_v49 = vpop.f32.mrf.mxu0 }
 0x4e5   :  { %4248 = vst.msk [vmem:[#allocation3 + $0x28] sm:$0xff] %vm4167_vm13, %v4103_v47  ;;  %v4106_v51 = vmax.f32 %v3800_v48, 0.0  ;;  %v3795_v52 = vadd.f32 %v11058_v32, %v3794_v49 }
 0x4e6   :  { %v8782_v34 = vpop.f32.mrf.mxu0 }
 0x4e7   :  { %4251 = vst.msk [vmem:[#allocation3 + $0x50] sm:$0xff] %vm4167_vm13, %v4106_v51  ;;  %v4105_v2 = vmax.f32 %v3795_v52, 0.0  ;;  %v3810_v54 = vadd.f32 %v8782_v34, %v11058_v32 }
 0x4e8   :  { %v3804_v55 = vpop.f32.mrf.mxu0 }
 0x4e9   :  { %4250 = vst.msk [vmem:[#allocation3 + $0x48] sm:$0xff] %vm4167_vm13, %v4105_v2  ;;  %v4108_v56 = vmax.f32 %v3810_v54, 0.0  ;;  %v3805_v57 = vadd.f32 %v11058_v32, %v3804_v55 }
 0x4ea   :  { %v8785_v17 = vpop.f32.mrf.mxu0  ;;  %v4443_v7 = vld [vmem:[#allocation3 + $0x30] sm:$0xff] }
 0x4eb   :  { %4253 = vst.msk [vmem:[#allocation3 + $0x70] sm:$0xff] %vm4167_vm13, %v4108_v56  ;;  %v4107_v62 = vmax.f32 %v3805_v57, 0.0  ;;  %v3820_v63 = vadd.f32 %v8785_v17, %v11058_v32  ;;  %4574 = vrot.lane.b32.xlu1 %v4443_v7, %s9032_s10 }
 0x4ec   :  { %v3814_v0 = vpop.f32.mrf.mxu0  ;;  %v4442_v4 = vld [vmem:[#allocation3 + $0x28] sm:$0xff] }
 0x4ed   :  { %v11078_v5 = vld [vmem:[#allocation3 + $0x2f] sm:$0xff]  ;;  %v11080_v8 = vld [vmem:[#allocation3 + $0x27] sm:$0xff]  ;;  %4252 = vst.msk [vmem:[#allocation3 + $0x68] sm:$0xff] %vm4167_vm13, %v4107_v62  ;;  %v4110_v10 = vmax.f32 %v3820_v63, 0.0  ;;  %v3815_v13 = vadd.f32 %v11058_v32, %v3814_v0  ;;  %4572 = vrot.lane.b32.xlu0 %v4442_v4, %s9032_s10 }
 0x4ee   :  { %4379 = vst.msk [vmem:[#allocation5 + $0x18] sm:$0xff] %vm4167_vm13, %v11078_v5  ;;  %4378 = vst.msk [vmem:[#allocation5 + $0x10] sm:$0xff] %vm4167_vm13, %v11080_v8  ;;  %v8788_v15 = vpop.f32.mrf.mxu0  ;;  %v4445_v20 = vld [vmem:[#allocation3 + $0x50] sm:$0xff] }
 0x4ef   :  { %4255 = vst.msk [vmem:[#allocation3 + $0x90] sm:$0xff] %vm4167_vm13, %v4110_v10  ;;  %v4109_v21 = vmax.f32 %v3815_v13, 0.0  ;;  %v3830_v29 = vadd.f32 %v8788_v15, %v11058_v32  ;;  %4578 = vrot.lane.b32.xlu1 %v4445_v20, %s9032_s10 }
 0x4f0   :  { %v3824_v30 = vpop.f32.mrf.mxu0  ;;  %v4444_v42 = vld [vmem:[#allocation3 + $0x48] sm:$0xff] }
 0x4f1   :  { %v11092_v45 = vld [vmem:[#allocation3 + $0x4f] sm:$0xff]  ;;  %v11094_v58 = vld [vmem:[#allocation3 + $0x47] sm:$0xff]  ;;  %4254 = vst.msk [vmem:[#allocation3 + $0x88] sm:$0xff] %vm4167_vm13, %v4109_v21  ;;  %v4112_v59 = vmax.f32 %v3830_v29, 0.0  ;;  %v3825_v1 = vadd.f32 %v11058_v32, %v3824_v30  ;;  %4576 = vrot.lane.b32.xlu0 %v4444_v42, %s9032_s10 }
 0x4f2   :  { %4381 = vst.msk [vmem:[#allocation5 + $0x28] sm:$0xff] %vm4167_vm13, %v11092_v45  ;;  %4380 = vst.msk [vmem:[#allocation5 + $0x20] sm:$0xff] %vm4167_vm13, %v11094_v58  ;;  %v8791_v3 = vpop.f32.mrf.mxu0  ;;  %v4447_v11 = vld [vmem:[#allocation3 + $0x70] sm:$0xff] }
 0x4f3   :  { %4257 = vst.msk [vmem:[#allocation3 + $0xb0] sm:$0xff] %vm4167_vm13, %v4112_v59  ;;  %v4111_v12 = vmax.f32 %v3825_v1, 0.0  ;;  %v3840_v24 = vadd.f32 %v8791_v3, %v11058_v32  ;;  %4582 = vrot.lane.b32.xlu1 %v4447_v11, %s9032_s10 }
 0x4f4   :  { %v3834_v6 = vpop.f32.mrf.mxu0  ;;  %v4446_v37 = vld [vmem:[#allocation3 + $0x68] sm:$0xff] }
 0x4f5   :  { %v11106_v25 = vld [vmem:[#allocation3 + $0x6f] sm:$0xff]  ;;  %v11108_v50 = vld [vmem:[#allocation3 + $0x67] sm:$0xff]  ;;  %4256 = vst.msk [vmem:[#allocation3 + $0xa8] sm:$0xff] %vm4167_vm13, %v4111_v12  ;;  %v4114_v60 = vmax.f32 %v3840_v24, 0.0  ;;  %v3835_v61 = vadd.f32 %v11058_v32, %v3834_v6  ;;  %4580 = vrot.lane.b32.xlu0 %v4446_v37, %s9032_s10 }
 0x4f6   :  { %4383 = vst.msk [vmem:[#allocation5 + $0x38] sm:$0xff] %vm4167_vm13, %v11106_v25  ;;  %4382 = vst.msk [vmem:[#allocation5 + $0x30] sm:$0xff] %vm4167_vm13, %v11108_v50  ;;  %v8794_v16 = vpop.f32.mrf.mxu0  ;;  %v4449_v53 = vld [vmem:[#allocation3 + $0x90] sm:$0xff] }
 0x4f7   :  { %4259 = vst.msk [vmem:[#allocation3 + $0xd0] sm:$0xff] %vm4167_vm13, %v4114_v60  ;;  %v4113_v9 = vmax.f32 %v3835_v61, 0.0  ;;  %v3850_v14 = vadd.f32 %v8794_v16, %v11058_v32  ;;  %4586 = vrot.lane.b32.xlu1 %v4449_v53, %s9032_s10 }
 0x4f8   :  { %v3844_v18 = vpop.f32.mrf.mxu0  ;;  %v4448_v19 = vld [vmem:[#allocation3 + $0x88] sm:$0xff] }
 0x4f9   :  { %v11120_v22 = vld [vmem:[#allocation3 + $0x8f] sm:$0xff]  ;;  %v11122_v23 = vld [vmem:[#allocation3 + $0x87] sm:$0xff]  ;;  %4258 = vst.msk [vmem:[#allocation3 + $0xc8] sm:$0xff] %vm4167_vm13, %v4113_v9  ;;  %v4116_v26 = vmax.f32 %v3850_v14, 0.0  ;;  %v3845_v27 = vadd.f32 %v11058_v32, %v3844_v18  ;;  %4584 = vrot.lane.b32.xlu0 %v4448_v19, %s9032_s10 }
 0x4fa   :  { %4385 = vst.msk [vmem:[#allocation5 + $0x48] sm:$0xff] %vm4167_vm13, %v11120_v22  ;;  %4384 = vst.msk [vmem:[#allocation5 + $0x40] sm:$0xff] %vm4167_vm13, %v11122_v23  ;;  %v8797_v28 = vpop.f32.mrf.mxu0  ;;  %v4451_v31 = vld [vmem:[#allocation3 + $0xb0] sm:$0xff] }
 0x4fb   :  { %4261 = vst.msk [vmem:[#allocation3 + $0xf0] sm:$0xff] %vm4167_vm13, %v4116_v26  ;;  %v4115_v33 = vmax.f32 %v3845_v27, 0.0  ;;  %v3860_v35 = vadd.f32 %v8797_v28, %v11058_v32  ;;  %4590 = vrot.lane.b32.xlu1 %v4451_v31, %s9032_s10 }
 0x4fc   :  { %v3854_v38 = vpop.f32.mrf.mxu0  ;;  %v4450_v39 = vld [vmem:[#allocation3 + $0xa8] sm:$0xff] }
 0x4fd   :  { %v11134_v40 = vld [vmem:[#allocation3 + $0xaf] sm:$0xff]  ;;  %v11136_v41 = vld [vmem:[#allocation3 + $0xa7] sm:$0xff]  ;;  %4260 = vst.msk [vmem:[#allocation3 + $0xe8] sm:$0xff] %vm4167_vm13, %v4115_v33  ;;  %v4118_v43 = vmax.f32 %v3860_v35, 0.0  ;;  %v3855_v44 = vadd.f32 %v11058_v32, %v3854_v38  ;;  %4588 = vrot.lane.b32.xlu0 %v4450_v39, %s9032_s10 }
 0x4fe   :  { %4387 = vst.msk [vmem:[#allocation5 + $0x58] sm:$0xff] %vm4167_vm13, %v11134_v40  ;;  %4386 = vst.msk [vmem:[#allocation5 + $0x50] sm:$0xff] %vm4167_vm13, %v11136_v41  ;;  %v8800_v46 = vpop.f32.mrf.mxu0  ;;  %v4453_v47 = vld [vmem:[#allocation3 + $0xd0] sm:$0xff] }
 0x4ff   :  { %4263 = vst.msk [vmem:[#allocation3 + $0x110] sm:$0xff] %vm4167_vm13, %v4118_v43  ;;  %v4117_v48 = vmax.f32 %v3855_v44, 0.0  ;;  %v3870_v49 = vadd.f32 %v8800_v46, %v11058_v32  ;;  %4594 = vrot.lane.b32.xlu1 %v4453_v47, %s9032_s10 }
 0x500   :  { %v3864_v51 = vpop.f32.mrf.mxu0  ;;  %v4452_v52 = vld [vmem:[#allocation3 + $0xc8] sm:$0xff] }
 0x501   :  { %v11148_v34 = vld [vmem:[#allocation3 + $0xcf] sm:$0xff]  ;;  %v11150_v2 = vld [vmem:[#allocation3 + $0xc7] sm:$0xff]  ;;  %4262 = vst.msk [vmem:[#allocation3 + $0x108] sm:$0xff] %vm4167_vm13, %v4117_v48  ;;  %v4120_v54 = vmax.f32 %v3870_v49, 0.0  ;;  %v3865_v55 = vadd.f32 %v11058_v32, %v3864_v51  ;;  %4592 = vrot.lane.b32.xlu0 %v4452_v52, %s9032_s10 }
 0x502   :  { %4389 = vst.msk [vmem:[#allocation5 + $0x68] sm:$0xff] %vm4167_vm13, %v11148_v34  ;;  %4388 = vst.msk [vmem:[#allocation5 + $0x60] sm:$0xff] %vm4167_vm13, %v11150_v2  ;;  %v8803_v56 = vpop.f32.mrf.mxu0  ;;  %v4455_v57 = vld [vmem:[#allocation3 + $0xf0] sm:$0xff] }
 0x503   :  { %4265 = vst.msk [vmem:[#allocation3 + $0x130] sm:$0xff] %vm4167_vm13, %v4120_v54  ;;  %v4119_v17 = vmax.f32 %v3865_v55, 0.0  ;;  %v3880_v7 = vadd.f32 %v8803_v56, %v11058_v32  ;;  %4598 = vrot.lane.b32.xlu1 %v4455_v57, %s9032_s10 }
 0x504   :  { %v3874_v62 = vpop.f32.mrf.mxu0  ;;  %v4454_v63 = vld [vmem:[#allocation3 + $0xe8] sm:$0xff] }
 0x505   :  { %v11162_v0 = vld [vmem:[#allocation3 + $0xef] sm:$0xff]  ;;  %v11164_v4 = vld [vmem:[#allocation3 + $0xe7] sm:$0xff]  ;;  %4264 = vst.msk [vmem:[#allocation3 + $0x128] sm:$0xff] %vm4167_vm13, %v4119_v17  ;;  %v4122_v10 = vmax.f32 %v3880_v7, 0.0  ;;  %v3875_v13 = vadd.f32 %v11058_v32, %v3874_v62  ;;  %4596 = vrot.lane.b32.xlu0 %v4454_v63, %s9032_s10 }
 0x506   :  { %4391 = vst.msk [vmem:[#allocation5 + $0x78] sm:$0xff] %vm4167_vm13, %v11162_v0  ;;  %4390 = vst.msk [vmem:[#allocation5 + $0x70] sm:$0xff] %vm4167_vm13, %v11164_v4  ;;  %v8806_v15 = vpop.f32.mrf.mxu0  ;;  %v4457_v20 = vld [vmem:[#allocation3 + $0x110] sm:$0xff] }
 0x507   :  { %4267 = vst.msk [vmem:[#allocation3 + $0x150] sm:$0xff] %vm4167_vm13, %v4122_v10  ;;  %v4121_v21 = vmax.f32 %v3875_v13, 0.0  ;;  %v3890_v29 = vadd.f32 %v8806_v15, %v11058_v32  ;;  %4602 = vrot.lane.b32.xlu1 %v4457_v20, %s9032_s10 }
 0x508   :  { %v3884_v30 = vpop.f32.mrf.mxu0  ;;  %v4456_v42 = vld [vmem:[#allocation3 + $0x108] sm:$0xff] }
 0x509   :  { %v11176_v59 = vld [vmem:[#allocation3 + $0x10f] sm:$0xff]  ;;  %v11178_v1 = vld [vmem:[#allocation3 + $0x107] sm:$0xff]  ;;  %4266 = vst.msk [vmem:[#allocation3 + $0x148] sm:$0xff] %vm4167_vm13, %v4121_v21  ;;  %v4124_v3 = vmax.f32 %v3890_v29, 0.0  ;;  %v3885_v11 = vadd.f32 %v11058_v32, %v3884_v30  ;;  %4600 = vrot.lane.b32.xlu0 %v4456_v42, %s9032_s10 }
 0x50a   :  { %4393 = vst.msk [vmem:[#allocation5 + $0x88] sm:$0xff] %vm4167_vm13, %v11176_v59  ;;  %4392 = vst.msk [vmem:[#allocation5 + $0x80] sm:$0xff] %vm4167_vm13, %v11178_v1  ;;  %v8809_v12 = vpop.f32.mrf.mxu0  ;;  %v4459_v24 = vld [vmem:[#allocation3 + $0x130] sm:$0xff] }
 0x50b   :  { %4269 = vst.msk [vmem:[#allocation3 + $0x170] sm:$0xff] %vm4167_vm13, %v4124_v3  ;;  %v4123_v6 = vmax.f32 %v3885_v11, 0.0  ;;  %v3900_v37 = vadd.f32 %v8809_v12, %v11058_v32  ;;  %4606 = vrot.lane.b32.xlu1 %v4459_v24, %s9032_s10  ;;  %v4345_v21 = vld [vmem:[#allocation3 + $0x24f] sm:$0xff]  ;;  %v4344_v11 = vld [vmem:[#allocation3 + $0x247] sm:$0xff] }
 0x50c   :  { %v3894_v60 = vpop.f32.mrf.mxu0  ;;  %v4458_v61 = vld [vmem:[#allocation3 + $0x128] sm:$0xff]  ;;  %4409 = vst.msk [vmem:[#allocation5 + $0x108] sm:$0xff] %vm4167_vm13, %v4345_v21  ;;  %4408 = vst.msk [vmem:[#allocation5 + $0x100] sm:$0xff] %vm4167_vm13, %v4344_v11 }
 0x50d   :  { %v11190_v16 = vld [vmem:[#allocation3 + $0x12f] sm:$0xff]  ;;  %v11192_v53 = vld [vmem:[#allocation3 + $0x127] sm:$0xff]  ;;  %4268 = vst.msk [vmem:[#allocation3 + $0x168] sm:$0xff] %vm4167_vm13, %v4123_v6  ;;  %v4126_v9 = vmax.f32 %v3900_v37, 0.0  ;;  %v3895_v14 = vadd.f32 %v11058_v32, %v3894_v60  ;;  %4604 = vrot.lane.b32.xlu0 %v4458_v61, %s9032_s10 }
 0x50e   :  { %4395 = vst.msk [vmem:[#allocation5 + $0x98] sm:$0xff] %vm4167_vm13, %v11190_v16  ;;  %4394 = vst.msk [vmem:[#allocation5 + $0x90] sm:$0xff] %vm4167_vm13, %v11192_v53  ;;  %v8812_v18 = vpop.f32.mrf.mxu0  ;;  %v4461_v19 = vld [vmem:[#allocation3 + $0x150] sm:$0xff] }
 0x50f   :  { %4271 = vst.msk [vmem:[#allocation3 + $0x190] sm:$0xff] %vm4167_vm13, %v4126_v9  ;;  %v4125_v26 = vmax.f32 %v3895_v14, 0.0  ;;  %v3910_v27 = vadd.f32 %v8812_v18, %v11058_v32  ;;  %4610 = vrot.lane.b32.xlu1 %v4461_v19, %s9032_s10 }
 0x510   :  { %v3904_v28 = vpop.f32.mrf.mxu0  ;;  %v4460_v31 = vld [vmem:[#allocation3 + $0x148] sm:$0xff] }
 0x511   :  { %v11204_v33 = vld [vmem:[#allocation3 + $0x14f] sm:$0xff]  ;;  %v11206_v35 = vld [vmem:[#allocation3 + $0x147] sm:$0xff]  ;;  %4270 = vst.msk [vmem:[#allocation3 + $0x188] sm:$0xff] %vm4167_vm13, %v4125_v26  ;;  %v4128_v38 = vmax.f32 %v3910_v27, 0.0  ;;  %v3905_v39 = vadd.f32 %v11058_v32, %v3904_v28  ;;  %4608 = vrot.lane.b32.xlu0 %v4460_v31, %s9032_s10 }
 0x512   :  { %4397 = vst.msk [vmem:[#allocation5 + $0xa8] sm:$0xff] %vm4167_vm13, %v11204_v33  ;;  %4396 = vst.msk [vmem:[#allocation5 + $0xa0] sm:$0xff] %vm4167_vm13, %v11206_v35  ;;  %v8815_v43 = vpop.f32.mrf.mxu0  ;;  %v4463_v44 = vld [vmem:[#allocation3 + $0x170] sm:$0xff] }
 0x513   :  { %4273 = vst.msk [vmem:[#allocation3 + $0x1b0] sm:$0xff] %vm4167_vm13, %v4128_v38  ;;  %v4127_v46 = vmax.f32 %v3905_v39, 0.0  ;;  %v3920_v47 = vadd.f32 %v8815_v43, %v11058_v32  ;;  %4614 = vrot.lane.b32.xlu1 %v4463_v44, %s9032_s10 }
 0x514   :  { %v3914_v48 = vpop.f32.mrf.mxu0  ;;  %v4462_v49 = vld [vmem:[#allocation3 + $0x168] sm:$0xff] }
 0x515   :  { %v11218_v51 = vld [vmem:[#allocation3 + $0x16f] sm:$0xff]  ;;  %v11220_v52 = vld [vmem:[#allocation3 + $0x167] sm:$0xff]  ;;  %4272 = vst.msk [vmem:[#allocation3 + $0x1a8] sm:$0xff] %vm4167_vm13, %v4127_v46  ;;  %v4130_v54 = vmax.f32 %v3920_v47, 0.0  ;;  %v3915_v55 = vadd.f32 %v11058_v32, %v3914_v48  ;;  %4612 = vrot.lane.b32.xlu0 %v4462_v49, %s9032_s10 }
 0x516   :  { %4399 = vst.msk [vmem:[#allocation5 + $0xb8] sm:$0xff] %vm4167_vm13, %v11218_v51  ;;  %4398 = vst.msk [vmem:[#allocation5 + $0xb0] sm:$0xff] %vm4167_vm13, %v11220_v52  ;;  %v8818_v56 = vpop.f32.mrf.mxu0  ;;  %v4465_v57 = vld [vmem:[#allocation3 + $0x190] sm:$0xff] }
 0x517   :  { %4275 = vst.msk [vmem:[#allocation3 + $0x1d0] sm:$0xff] %vm4167_vm13, %v4130_v54  ;;  %v4129_v17 = vmax.f32 %v3915_v55, 0.0  ;;  %v3930_v7 = vadd.f32 %v8818_v56, %v11058_v32  ;;  %4618 = vrot.lane.b32.xlu1 %v4465_v57, %s9032_s10  ;;  %v4473_v48 = vld [vmem:[#allocation3 + $0x250] sm:$0xff] }
 0x518   :  { %v3924_v62 = vpop.f32.mrf.mxu0  ;;  %v4464_v63 = vld [vmem:[#allocation3 + $0x188] sm:$0xff] }
 0x519   :  { %v11232_v10 = vld [vmem:[#allocation3 + $0x18f] sm:$0xff]  ;;  %v11234_v13 = vld [vmem:[#allocation3 + $0x187] sm:$0xff]  ;;  %4274 = vst.msk [vmem:[#allocation3 + $0x1c8] sm:$0xff] %vm4167_vm13, %v4129_v17  ;;  %v4132_v15 = vmax.f32 %v3930_v7, 0.0  ;;  %v3925_v20 = vadd.f32 %v11058_v32, %v3924_v62  ;;  %4616 = vrot.lane.b32.xlu0 %v4464_v63, %s9032_s10 }
 0x51a   :  { %4401 = vst.msk [vmem:[#allocation5 + $0xc8] sm:$0xff] %vm4167_vm13, %v11232_v10  ;;  %4400 = vst.msk [vmem:[#allocation5 + $0xc0] sm:$0xff] %vm4167_vm13, %v11234_v13  ;;  %v8821_v29 = vpop.f32.mrf.mxu0  ;;  %v4467_v30 = vld [vmem:[#allocation3 + $0x1b0] sm:$0xff]  ;;  %v4472_v62 = vld [vmem:[#allocation3 + $0x248] sm:$0xff] }
 0x51b   :  { %4277 = vst.msk [vmem:[#allocation3 + $0x1f0] sm:$0xff] %vm4167_vm13, %v4132_v15  ;;  %v4131_v42 = vmax.f32 %v3925_v20, 0.0  ;;  %v3940_v3 = vadd.f32 %v8821_v29, %v11058_v32  ;;  %4622 = vrot.lane.b32.xlu1 %v4467_v30, %s9032_s10 }
 0x51c   :  { %v3934_v12 = vpop.f32.mrf.mxu0  ;;  %v4466_v24 = vld [vmem:[#allocation3 + $0x1a8] sm:$0xff] }
 0x51d   :  { %v11247_v6 = vld [vmem:[#allocation3 + $0x1af] sm:$0xff]  ;;  %v11249_v37 = vld [vmem:[#allocation3 + $0x1a7] sm:$0xff]  ;;  %4276 = vst.msk [vmem:[#allocation3 + $0x1e8] sm:$0xff] %vm4167_vm13, %v4131_v42  ;;  %v4134_v60 = vmax.f32 %v3940_v3, 0.0  ;;  %v3935_v61 = vadd.f32 %v11058_v32, %v3934_v12  ;;  %4620 = vrot.lane.b32.xlu0 %v4466_v24, %s9032_s10 }
 0x51e   :  { %4403 = vst.msk [vmem:[#allocation5 + $0xd8] sm:$0xff] %vm4167_vm13, %v11247_v6  ;;  %4402 = vst.msk [vmem:[#allocation5 + $0xd0] sm:$0xff] %vm4167_vm13, %v11249_v37  ;;  %v8824_v9 = vpop.f32.mrf.mxu0  ;;  %v4469_v14 = vld [vmem:[#allocation3 + $0x1d0] sm:$0xff] }
 0x51f   :  { %4279 = vst.msk [vmem:[#allocation3 + $0x210] sm:$0xff] %vm4167_vm13, %v4134_v60  ;;  %v4133_v18 = vmax.f32 %v3935_v61, 0.0  ;;  %v3950_v19 = vadd.f32 %v8824_v9, %v11058_v32  ;;  %4626 = vrot.lane.b32.xlu1 %v4469_v14, %s9032_s10 }
 0x520   :  { %v3944_v26 = vpop.f32.mrf.mxu0  ;;  %v4468_v27 = vld [vmem:[#allocation3 + $0x1c8] sm:$0xff] }
 0x521   :  { %v11262_v28 = vld [vmem:[#allocation3 + $0x1cf] sm:$0xff]  ;;  %v11264_v31 = vld [vmem:[#allocation3 + $0x1c7] sm:$0xff]  ;;  %4278 = vst.msk [vmem:[#allocation3 + $0x208] sm:$0xff] %vm4167_vm13, %v4133_v18  ;;  %v4136_v38 = vmax.f32 %v3950_v19, 0.0  ;;  %v3945_v39 = vadd.f32 %v11058_v32, %v3944_v26  ;;  %4624 = vrot.lane.b32.xlu0 %v4468_v27, %s9032_s10 }
 0x522   :  { %4405 = vst.msk [vmem:[#allocation5 + $0xe8] sm:$0xff] %vm4167_vm13, %v11262_v28  ;;  %4404 = vst.msk [vmem:[#allocation5 + $0xe0] sm:$0xff] %vm4167_vm13, %v11264_v31  ;;  %v8827_v43 = vpop.f32.mrf.mxu0  ;;  %v4471_v44 = vld [vmem:[#allocation3 + $0x1f0] sm:$0xff] }
 0x523   :  { %4281 = vst.msk [vmem:[#allocation3 + $0x270] sm:$0xff] %vm4167_vm13, %v4136_v38  ;;  %v4135_v46 = vmax.f32 %v3945_v39, 0.0  ;;  %v3960_v47 = vadd.f32 %v8827_v43, %v11058_v32  ;;  %4630 = vrot.lane.b32.xlu1 %v4471_v44, %s9032_s10 }
 0x524   :  { %v3954_v49 = vpop.f32.mrf.mxu0  ;;  %v4470_v54 = vld [vmem:[#allocation3 + $0x1e8] sm:$0xff] }
 0x525   :  { %v11276_v55 = vld [vmem:[#allocation3 + $0x1ef] sm:$0xff]  ;;  %v11278_v56 = vld [vmem:[#allocation3 + $0x1e7] sm:$0xff]  ;;  %4280 = vst.msk [vmem:[#allocation3 + $0x268] sm:$0xff] %vm4167_vm13, %v4135_v46  ;;  %v4138_v57 = vmax.f32 %v3960_v47, 0.0  ;;  %v3955_v17 = vadd.f32 %v11058_v32, %v3954_v49  ;;  %4628 = vrot.lane.b32.xlu0 %v4470_v54, %s9032_s10 }
 0x526   :  { %4407 = vst.msk [vmem:[#allocation5 + $0xf8] sm:$0xff] %vm4167_vm13, %v11276_v55  ;;  %4406 = vst.msk [vmem:[#allocation5 + $0xf0] sm:$0xff] %vm4167_vm13, %v11278_v56  ;;  %v8830_v7 = vpop.f32.mrf.mxu0 }
 0x527   :  { %4283 = vst.msk [vmem:[#allocation3 + $0x290] sm:$0xff] %vm4167_vm13, %v4138_v57  ;;  %v4137_v63 = vmax.f32 %v3955_v17, 0.0  ;;  %v3970_v15 = vadd.f32 %v8830_v7, %v11058_v32  ;;  %4634 = vrot.lane.b32.xlu1 %v4473_v48, %s9032_s10 }
 0x528   :  { %v3964_v20 = vpop.f32.mrf.mxu0 }
 0x529   :  { %4282 = vst.msk [vmem:[#allocation3 + $0x288] sm:$0xff] %vm4167_vm13, %v4137_v63  ;;  %v4140_v21 = vmax.f32 %v3970_v15, 0.0  ;;  %v3965_v29 = vadd.f32 %v11058_v32, %v3964_v20  ;;  %4632 = vrot.lane.b32.xlu0 %v4472_v62, %s9032_s10 }
 0x52a   :  { %v8833_v30 = vpop.f32.mrf.mxu0  ;;  %v4475_v42 = vld [vmem:[#allocation3 + $0x270] sm:$0xff] }
 0x52b   :  { %4285 = vst.msk [vmem:[#allocation3 + $0x2b0] sm:$0xff] %vm4167_vm13, %v4140_v21  ;;  %v4139_v3 = vmax.f32 %v3965_v29, 0.0  ;;  %v3980_v11 = vadd.f32 %v8833_v30, %v11058_v32  ;;  %4638 = vrot.lane.b32.xlu1 %v4475_v42, %s9032_s10 }
 0x52c   :  { %v3974_v12 = vpop.f32.mrf.mxu0  ;;  %v4474_v24 = vld [vmem:[#allocation3 + $0x268] sm:$0xff] }
 0x52d   :  { %v11296_v60 = vld [vmem:[#allocation3 + $0x26f] sm:$0xff]  ;;  %v11298_v61 = vld [vmem:[#allocation3 + $0x267] sm:$0xff]  ;;  %4284 = vst.msk [vmem:[#allocation3 + $0x2a8] sm:$0xff] %vm4167_vm13, %v4139_v3  ;;  %v4142_v9 = vmax.f32 %v3980_v11, 0.0  ;;  %v3975_v14 = vadd.f32 %v11058_v32, %v3974_v12  ;;  %4636 = vrot.lane.b32.xlu0 %v4474_v24, %s9032_s10 }
 0x52e   :  { %4411 = vst.msk [vmem:[#allocation5 + $0x118] sm:$0xff] %vm4167_vm13, %v11296_v60  ;;  %4410 = vst.msk [vmem:[#allocation5 + $0x110] sm:$0xff] %vm4167_vm13, %v11298_v61  ;;  %v8836_v18 = vpop.f32.mrf.mxu0  ;;  %v4477_v19 = vld [vmem:[#allocation3 + $0x290] sm:$0xff] }
 0x52f   :  { %4287 = vst.msk [vmem:[#allocation3 + $0x2d0] sm:$0xff] %vm4167_vm13, %v4142_v9  ;;  %v4141_v26 = vmax.f32 %v3975_v14, 0.0  ;;  %v3990_v27 = vadd.f32 %v8836_v18, %v11058_v32  ;;  %4642 = vrot.lane.b32.xlu1 %v4477_v19, %s9032_s10 }
 0x530   :  { %v3984_v38 = vpop.f32.mrf.mxu0  ;;  %v4476_v39 = vld [vmem:[#allocation3 + $0x288] sm:$0xff] }
 0x531   :  { %v11310_v43 = vld [vmem:[#allocation3 + $0x28f] sm:$0xff]  ;;  %v11312_v44 = vld [vmem:[#allocation3 + $0x287] sm:$0xff]  ;;  %4286 = vst.msk [vmem:[#allocation3 + $0x2c8] sm:$0xff] %vm4167_vm13, %v4141_v26  ;;  %v4144_v46 = vmax.f32 %v3990_v27, 0.0  ;;  %v3985_v47 = vadd.f32 %v11058_v32, %v3984_v38  ;;  %4640 = vrot.lane.b32.xlu0 %v4476_v39, %s9032_s10 }
 0x532   :  { %4413 = vst.msk [vmem:[#allocation5 + $0x128] sm:$0xff] %vm4167_vm13, %v11310_v43  ;;  %4412 = vst.msk [vmem:[#allocation5 + $0x120] sm:$0xff] %vm4167_vm13, %v11312_v44  ;;  %v8839_v48 = vpop.f32.mrf.mxu0  ;;  %v4479_v49 = vld [vmem:[#allocation3 + $0x2b0] sm:$0xff] }
 0x533   :  { %4289 = vst.msk [vmem:[#allocation3 + $0x2f0] sm:$0xff] %vm4167_vm13, %v4144_v46  ;;  %v4143_v54 = vmax.f32 %v3985_v47, 0.0  ;;  %v4000_v57 = vadd.f32 %v8839_v48, %v11058_v32  ;;  %4646 = vrot.lane.b32.xlu1 %v4479_v49, %s9032_s10 }
 0x534   :  { %v3994_v17 = vpop.f32.mrf.mxu0  ;;  %v4478_v7 = vld [vmem:[#allocation3 + $0x2a8] sm:$0xff] }
 0x535   :  { %v11324_v62 = vld [vmem:[#allocation3 + $0x2af] sm:$0xff]  ;;  %v11326_v63 = vld [vmem:[#allocation3 + $0x2a7] sm:$0xff]  ;;  %4288 = vst.msk [vmem:[#allocation3 + $0x2e8] sm:$0xff] %vm4167_vm13, %v4143_v54  ;;  %v4146_v15 = vmax.f32 %v4000_v57, 0.0  ;;  %v3995_v20 = vadd.f32 %v11058_v32, %v3994_v17  ;;  %4644 = vrot.lane.b32.xlu0 %v4478_v7, %s9032_s10 }
 0x536   :  { %4415 = vst.msk [vmem:[#allocation5 + $0x138] sm:$0xff] %vm4167_vm13, %v11324_v62  ;;  %4414 = vst.msk [vmem:[#allocation5 + $0x130] sm:$0xff] %vm4167_vm13, %v11326_v63  ;;  %v8842_v21 = vpop.f32.mrf.mxu0  ;;  %v4481_v29 = vld [vmem:[#allocation3 + $0x2d0] sm:$0xff] }
 0x537   :  { %4291 = vst.msk [vmem:[#allocation3 + $0x310] sm:$0xff] %vm4167_vm13, %v4146_v15  ;;  %v4145_v30 = vmax.f32 %v3995_v20, 0.0  ;;  %v4010_v42 = vadd.f32 %v8842_v21, %v11058_v32  ;;  %4650 = vrot.lane.b32.xlu1 %v4481_v29, %s9032_s10 }
 0x538   :  { %v4004_v3 = vpop.f32.mrf.mxu0  ;;  %v4480_v11 = vld [vmem:[#allocation3 + $0x2c8] sm:$0xff] }
 0x539   :  { %v11338_v12 = vld [vmem:[#allocation3 + $0x2cf] sm:$0xff]  ;;  %v11340_v24 = vld [vmem:[#allocation3 + $0x2c7] sm:$0xff]  ;;  %4290 = vst.msk [vmem:[#allocation3 + $0x308] sm:$0xff] %vm4167_vm13, %v4145_v30  ;;  %v4148_v9 = vmax.f32 %v4010_v42, 0.0  ;;  %v4005_v14 = vadd.f32 %v11058_v32, %v4004_v3  ;;  %4648 = vrot.lane.b32.xlu0 %v4480_v11, %s9032_s10 }
 0x53a   :  { %4417 = vst.msk [vmem:[#allocation5 + $0x148] sm:$0xff] %vm4167_vm13, %v11338_v12  ;;  %4416 = vst.msk [vmem:[#allocation5 + $0x140] sm:$0xff] %vm4167_vm13, %v11340_v24  ;;  %v8845_v18 = vpop.f32.mrf.mxu0  ;;  %v4483_v19 = vld [vmem:[#allocation3 + $0x2f0] sm:$0xff] }
 0x53b   :  { %4293 = vst.msk [vmem:[#allocation3 + $0x330] sm:$0xff] %vm4167_vm13, %v4148_v9  ;;  %v4147_v26 = vmax.f32 %v4005_v14, 0.0  ;;  %v4020_v27 = vadd.f32 %v8845_v18, %v11058_v32  ;;  %4654 = vrot.lane.b32.xlu1 %v4483_v19, %s9032_s10 }
 0x53c   :  { %v4014_v38 = vpop.f32.mrf.mxu0  ;;  %v4482_v39 = vld [vmem:[#allocation3 + $0x2e8] sm:$0xff] }
 0x53d   :  { %v11352_v46 = vld [vmem:[#allocation3 + $0x2ef] sm:$0xff]  ;;  %v11354_v47 = vld [vmem:[#allocation3 + $0x2e7] sm:$0xff]  ;;  %4292 = vst.msk [vmem:[#allocation3 + $0x328] sm:$0xff] %vm4167_vm13, %v4147_v26  ;;  %v4150_v48 = vmax.f32 %v4020_v27, 0.0  ;;  %v4015_v49 = vadd.f32 %v11058_v32, %v4014_v38  ;;  %4652 = vrot.lane.b32.xlu0 %v4482_v39, %s9032_s10 }
 0x53e   :  { %4419 = vst.msk [vmem:[#allocation5 + $0x158] sm:$0xff] %vm4167_vm13, %v11352_v46  ;;  %4418 = vst.msk [vmem:[#allocation5 + $0x150] sm:$0xff] %vm4167_vm13, %v11354_v47  ;;  %v8848_v54 = vpop.f32.mrf.mxu0  ;;  %v4485_v57 = vld [vmem:[#allocation3 + $0x310] sm:$0xff] }
 0x53f   :  { %4295 = vst.msk [vmem:[#allocation3 + $0x350] sm:$0xff] %vm4167_vm13, %v4150_v48  ;;  %v4149_v17 = vmax.f32 %v4015_v49, 0.0  ;;  %v4030_v7 = vadd.f32 %v8848_v54, %v11058_v32  ;;  %4658 = vrot.lane.b32.xlu1 %v4485_v57, %s9032_s10 }
 0x540   :  { %v4024_v15 = vpop.f32.mrf.mxu0  ;;  %v4484_v20 = vld [vmem:[#allocation3 + $0x308] sm:$0xff] }
 0x541   :  { %v11366_v21 = vld [vmem:[#allocation3 + $0x30f] sm:$0xff]  ;;  %v11368_v29 = vld [vmem:[#allocation3 + $0x307] sm:$0xff]  ;;  %4294 = vst.msk [vmem:[#allocation3 + $0x348] sm:$0xff] %vm4167_vm13, %v4149_v17  ;;  %v4152_v30 = vmax.f32 %v4030_v7, 0.0  ;;  %v4025_v42 = vadd.f32 %v11058_v32, %v4024_v15  ;;  %4656 = vrot.lane.b32.xlu0 %v4484_v20, %s9032_s10 }
 0x542   :  { %4421 = vst.msk [vmem:[#allocation5 + $0x168] sm:$0xff] %vm4167_vm13, %v11366_v21  ;;  %4420 = vst.msk [vmem:[#allocation5 + $0x160] sm:$0xff] %vm4167_vm13, %v11368_v29  ;;  %v8851_v3 = vpop.f32.mrf.mxu0  ;;  %v4487_v11 = vld [vmem:[#allocation3 + $0x330] sm:$0xff] }
 0x543   :  { %4297 = vst.msk [vmem:[#allocation3 + $0x370] sm:$0xff] %vm4167_vm13, %v4152_v30  ;;  %v4151_v9 = vmax.f32 %v4025_v42, 0.0  ;;  %v4040_v14 = vadd.f32 %v8851_v3, %v11058_v32  ;;  %4662 = vrot.lane.b32.xlu1 %v4487_v11, %s9032_s10 }
 0x544   :  { %v4034_v18 = vpop.f32.mrf.mxu0  ;;  %v4486_v19 = vld [vmem:[#allocation3 + $0x328] sm:$0xff] }
 0x545   :  { %v11380_v26 = vld [vmem:[#allocation3 + $0x32f] sm:$0xff]  ;;  %v11382_v27 = vld [vmem:[#allocation3 + $0x327] sm:$0xff]  ;;  %4296 = vst.msk [vmem:[#allocation3 + $0x368] sm:$0xff] %vm4167_vm13, %v4151_v9  ;;  %v4154_v38 = vmax.f32 %v4040_v14, 0.0  ;;  %v4035_v39 = vadd.f32 %v11058_v32, %v4034_v18  ;;  %4660 = vrot.lane.b32.xlu0 %v4486_v19, %s9032_s10 }
 0x546   :  { %4423 = vst.msk [vmem:[#allocation5 + $0x178] sm:$0xff] %vm4167_vm13, %v11380_v26  ;;  %4422 = vst.msk [vmem:[#allocation5 + $0x170] sm:$0xff] %vm4167_vm13, %v11382_v27  ;;  %v8854_v48 = vpop.f32.mrf.mxu0  ;;  %v4489_v49 = vld [vmem:[#allocation3 + $0x350] sm:$0xff] }
 0x547   :  { %4299 = vst.msk [vmem:[#allocation3 + $0x390] sm:$0xff] %vm4167_vm13, %v4154_v38  ;;  %v4153_v54 = vmax.f32 %v4035_v39, 0.0  ;;  %v4050_v57 = vadd.f32 %v8854_v48, %v11058_v32  ;;  %4666 = vrot.lane.b32.xlu1 %v4489_v49, %s9032_s10 }
 0x548   :  { %v4044_v17 = vpop.f32.mrf.mxu0  ;;  %v4488_v7 = vld [vmem:[#allocation3 + $0x348] sm:$0xff] }
 0x549   :  { %v11394_v15 = vld [vmem:[#allocation3 + $0x34f] sm:$0xff]  ;;  %v11396_v20 = vld [vmem:[#allocation3 + $0x347] sm:$0xff]  ;;  %4298 = vst.msk [vmem:[#allocation3 + $0x388] sm:$0xff] %vm4167_vm13, %v4153_v54  ;;  %v4156_v30 = vmax.f32 %v4050_v57, 0.0  ;;  %v4045_v42 = vadd.f32 %v11058_v32, %v4044_v17  ;;  %4664 = vrot.lane.b32.xlu0 %v4488_v7, %s9032_s10 }
 0x54a   :  { %4425 = vst.msk [vmem:[#allocation5 + $0x188] sm:$0xff] %vm4167_vm13, %v11394_v15  ;;  %4424 = vst.msk [vmem:[#allocation5 + $0x180] sm:$0xff] %vm4167_vm13, %v11396_v20  ;;  %v8857_v3 = vpop.f32.mrf.mxu0  ;;  %v4491_v11 = vld [vmem:[#allocation3 + $0x370] sm:$0xff] }
 0x54b   :  { %4301 = vst.msk [vmem:[#allocation3 + $0x3b0] sm:$0xff] %vm4167_vm13, %v4156_v30  ;;  %v4155_v9 = vmax.f32 %v4045_v42, 0.0  ;;  %v4060_v14 = vadd.f32 %v8857_v3, %v11058_v32  ;;  %4670 = vrot.lane.b32.xlu1 %v4491_v11, %s9032_s10 }
 0x54c   :  { %v4054_v18 = vpop.f32.mrf.mxu0  ;;  %v4490_v19 = vld [vmem:[#allocation3 + $0x368] sm:$0xff] }
 0x54d   :  { %v11408_v38 = vld [vmem:[#allocation3 + $0x36f] sm:$0xff]  ;;  %v11410_v39 = vld [vmem:[#allocation3 + $0x367] sm:$0xff]  ;;  %4300 = vst.msk [vmem:[#allocation3 + $0x3a8] sm:$0xff] %vm4167_vm13, %v4155_v9  ;;  %v4158_v48 = vmax.f32 %v4060_v14, 0.0  ;;  %v4055_v49 = vadd.f32 %v11058_v32, %v4054_v18  ;;  %4668 = vrot.lane.b32.xlu0 %v4490_v19, %s9032_s10 }
 0x54e   :  { %4427 = vst.msk [vmem:[#allocation5 + $0x198] sm:$0xff] %vm4167_vm13, %v11408_v38  ;;  %4426 = vst.msk [vmem:[#allocation5 + $0x190] sm:$0xff] %vm4167_vm13, %v11410_v39  ;;  %v8860_v54 = vpop.f32.mrf.mxu0  ;;  %v4493_v57 = vld [vmem:[#allocation3 + $0x390] sm:$0xff] }
 0x54f   :  { %4303 = vst.msk [vmem:[#allocation3 + $0x3d0] sm:$0xff] %vm4167_vm13, %v4158_v48  ;;  %v4157_v17 = vmax.f32 %v4055_v49, 0.0  ;;  %v4070_v7 = vadd.f32 %v8860_v54, %v11058_v32  ;;  %4674 = vrot.lane.b32.xlu1 %v4493_v57, %s9032_s10 }
 0x550   :  { %v4064_v30 = vpop.f32.mrf.mxu0  ;;  %v4492_v42 = vld [vmem:[#allocation3 + $0x388] sm:$0xff] }
 0x551   :  { %v11422_v3 = vld [vmem:[#allocation3 + $0x38f] sm:$0xff]  ;;  %v11424_v11 = vld [vmem:[#allocation3 + $0x387] sm:$0xff]  ;;  %4302 = vst.msk [vmem:[#allocation3 + $0x3c8] sm:$0xff] %vm4167_vm13, %v4157_v17  ;;  %v4160_v9 = vmax.f32 %v4070_v7, 0.0  ;;  %v4065_v14 = vadd.f32 %v11058_v32, %v4064_v30  ;;  %4672 = vrot.lane.b32.xlu0 %v4492_v42, %s9032_s10 }
 0x552   :  { %4429 = vst.msk [vmem:[#allocation5 + $0x1a8] sm:$0xff] %vm4167_vm13, %v11422_v3  ;;  %4428 = vst.msk [vmem:[#allocation5 + $0x1a0] sm:$0xff] %vm4167_vm13, %v11424_v11  ;;  %v8863_v18 = vpop.f32.mrf.mxu0  ;;  %v4495_v19 = vld [vmem:[#allocation3 + $0x3b0] sm:$0xff] }
 0x553   :  { %4305 = vst.msk [vmem:[#allocation3 + $0x3f0] sm:$0xff] %vm4167_vm13, %v4160_v9  ;;  %v4159_v48 = vmax.f32 %v4065_v14, 0.0  ;;  %v4080_v49 = vadd.f32 %v8863_v18, %v11058_v32  ;;  %4678 = vrot.lane.b32.xlu1 %v4495_v19, %s9032_s10 }
 0x554   :  { %v4074_v54 = vpop.f32.mrf.mxu0  ;;  %v4494_v57 = vld [vmem:[#allocation3 + $0x3a8] sm:$0xff] }
 0x555   :  { %v11436_v17 = vld [vmem:[#allocation3 + $0x3af] sm:$0xff]  ;;  %v11438_v7 = vld [vmem:[#allocation3 + $0x3a7] sm:$0xff]  ;;  %4304 = vst.msk [vmem:[#allocation3 + $0x3e8] sm:$0xff] %vm4167_vm13, %v4159_v48  ;;  %v4162_v30 = vmax.f32 %v4080_v49, 0.0  ;;  %v4075_v42 = vadd.f32 %v11058_v32, %v4074_v54  ;;  %4676 = vrot.lane.b32.xlu0 %v4494_v57, %s9032_s10 }
 0x556   :  { %12859 = vst [vmem:[#allocation9_spill] sm:$0xff] %v11438_v7  ;;  %4431 = vst.msk [vmem:[#allocation5 + $0x1b8] sm:$0xff] %vm4167_vm13, %v11436_v17  ;;  %v8866_v9 = vpop.f32.mrf.mxu0  ;;  %v4497_v14 = vld [vmem:[#allocation3 + $0x3d0] sm:$0xff] }
 0x557   :  { %4430 = vst.msk [vmem:[#allocation5 + $0x1b0] sm:$0xff] %vm4167_vm13, %v11438_v7  ;;  %4307 = vst.msk [vmem:[#allocation3 + $0x410] sm:$0xff] %vm4167_vm13, %v4162_v30  ;;  %v4161_v18 = vmax.f32 %v4075_v42, 0.0  ;;  %v4090_v19 = vadd.f32 %v8866_v9, %v11058_v32  ;;  %4682 = vrot.lane.b32.xlu1 %v4497_v14, %s9032_s10 }
 0x558   :  { %v4084_v48 = vpop.f32.mrf.mxu0  ;;  %v4496_v49 = vld [vmem:[#allocation3 + $0x3c8] sm:$0xff] }
 0x559   :  { %v11450_v54 = vld [vmem:[#allocation3 + $0x3cf] sm:$0xff]  ;;  %v11452_v57 = vld [vmem:[#allocation3 + $0x3c7] sm:$0xff]  ;;  %4306 = vst.msk [vmem:[#allocation3 + $0x408] sm:$0xff] %vm4167_vm13, %v4161_v18  ;;  %v4164_v36 = vmax.f32 %v4090_v19, 0.0  ;;  %v4085_v7 = vadd.f32 %v11058_v32, %v4084_v48  ;;  %4680 = vrot.lane.b32.xlu0 %v4496_v49, %s9032_s10 }
 0x55a   :  { %12860 = vst [vmem:[#allocation10_spill] sm:$0xff] %v11450_v54  ;;  %12861 = vst [vmem:[#allocation11_spill] sm:$0xff] %v11452_v57  ;;  %v4499_v30 = vld [vmem:[#allocation3 + $0x3f0] sm:$0xff] }
 0x55b   :  { %4433 = vst.msk [vmem:[#allocation5 + $0x1c8] sm:$0xff] %vm4167_vm13, %v11450_v54  ;;  %4432 = vst.msk [vmem:[#allocation5 + $0x1c0] sm:$0xff] %vm4167_vm13, %v11452_v57  ;;  %v4163_v42 = vmax.f32 %v4085_v7, 0.0  ;;  %4686 = vrot.lane.b32.xlu1 %v4499_v30, %s9032_s10  ;;  %v4858_v57 = vld [vmem:[#allocation3 + $0x251] sm:$0xff] }
 0x55c   :  { %4309 = vst.msk [vmem:[#allocation3 + $0x430] sm:$0xff] %vm4167_vm13, %v4164_v36  ;;  %v4498_v9 = vld [vmem:[#allocation3 + $0x3e8] sm:$0xff] }
 0x55d   :  { %v11463_v14 = vld [vmem:[#allocation3 + $0x3ef] sm:$0xff]  ;;  %v11465_v18 = vld [vmem:[#allocation3 + $0x3e7] sm:$0xff]  ;;  %4308 = vst.msk [vmem:[#allocation3 + $0x428] sm:$0xff] %vm4167_vm13, %v4163_v42  ;;  %v4575_v32 = vpop.permute.xlu1 %4574  ;;  %4684 = vrot.lane.b32.xlu0 %v4498_v9, %s9032_s10 }
 0x55e   :  { %12862 = vst [vmem:[#allocation12_spill] sm:$0xff] %v11463_v14  ;;  %12863 = vst [vmem:[#allocation13_spill] sm:$0xff] %v11465_v18  ;;  %v4501_v36 = vld [vmem:[#allocation3 + $0x410] sm:$0xff] }
 0x55f   :  { %4435 = vst.msk [vmem:[#allocation5 + $0x1d8] sm:$0xff] %vm4167_vm13, %v11463_v14  ;;  %4434 = vst.msk [vmem:[#allocation5 + $0x1d0] sm:$0xff] %vm4167_vm13, %v11465_v18  ;;  %v4573_v7 = vpop.permute.xlu0 %4572  ;;  %4690 = vrot.lane.b32.xlu1 %v4501_v36, %s9032_s10 }
 0x560   :  { %4764 = vst.msk [vmem:[#allocation5 + $0x18] sm:$0xff] %vm4760_vm0, %v4575_v32  ;;  %4763 = vst.msk [vmem:[#allocation5 + $0x10] sm:$0xff] %vm4760_vm0, %v4573_v7  ;;  %v4500_v19 = vld [vmem:[#allocation3 + $0x408] sm:$0xff]  ;;  %v4826_v32 = vld [vmem:[#allocation3 + $0x11] sm:$0xff] }
 0x561   :  { %v11476_v48 = vld [vmem:[#allocation3 + $0x40f] sm:$0xff]  ;;  %v11478_v49 = vld [vmem:[#allocation3 + $0x407] sm:$0xff]  ;;  %v4579_v30 = vpop.permute.xlu1 %4578  ;;  %4688 = vrot.lane.b32.xlu0 %v4500_v19, %s9032_s10 }
 0x562   :  { %12864 = vst [vmem:[#allocation14_spill] sm:$0xff] %v11476_v48  ;;  %12865 = vst [vmem:[#allocation15_spill] sm:$0xff] %v11478_v49 }
 0x563   :  { %4437 = vst.msk [vmem:[#allocation5 + $0x1e8] sm:$0xff] %vm4167_vm13, %v11476_v48  ;;  %4436 = vst.msk [vmem:[#allocation5 + $0x1e0] sm:$0xff] %vm4167_vm13, %v11478_v49  ;;  %v4503_v42 = vld [vmem:[#allocation3 + $0x430] sm:$0xff]  ;;  %v4577_v9 = vpop.permute.xlu0 %4576 }
 0x564   :  { %4766 = vst.msk [vmem:[#allocation5 + $0x28] sm:$0xff] %vm4760_vm0, %v4579_v30  ;;  %4694 = vrot.lane.b32.xlu1 %v4503_v42, %s9032_s10  ;;  %4765 = vst.msk [vmem:[#allocation5 + $0x20] sm:$0xff] %vm4760_vm0, %v4577_v9  ;;  %v4502_v36 = vld [vmem:[#allocation3 + $0x428] sm:$0xff] }
 0x565   :  { %v11488_v7 = vld [vmem:[#allocation3 + $0x42f] sm:$0xff]  ;;  %v11490_v18 = vld [vmem:[#allocation3 + $0x427] sm:$0xff]  ;;  %v4583_v19 = vpop.permute.xlu1 %4582  ;;  %4692 = vrot.lane.b32.xlu0 %v4502_v36, %s9032_s10 }
 0x566   :  { %12866 = vst [vmem:[#allocation16_spill] sm:$0xff] %v11488_v7  ;;  %12867 = vst [vmem:[#allocation17_spill] sm:$0xff] %v11490_v18  ;;  %v4825_v30 = vld [vmem:[#allocation3 + $0x9] sm:$0xff]  ;;  %v4828_v36 = vld [vmem:[#allocation3 + $0x31] sm:$0xff] }
 0x567   :  { %4439 = vst.msk [vmem:[#allocation5 + $0x1f8] sm:$0xff] %vm4167_vm13, %v11488_v7  ;;  %4438 = vst.msk [vmem:[#allocation5 + $0x1f0] sm:$0xff] %vm4167_vm13, %v11490_v18  ;;  %v4581_v42 = vpop.permute.xlu0 %4580  ;;  %v4827_v18 = vld [vmem:[#allocation3 + $0x29] sm:$0xff] }
 0x568   :  { %4768 = vst.msk [vmem:[#allocation5 + $0x38] sm:$0xff] %vm4760_vm0, %v4583_v19  ;;  %4955 = vrot.lane.b32.xlu1 %v4826_v32, %s9034_s18  ;;  %4767 = vst.msk [vmem:[#allocation5 + $0x30] sm:$0xff] %vm4760_vm0, %v4581_v42  ;;  %v4830_v32 = vld [vmem:[#allocation3 + $0x51] sm:$0xff] }
 0x569   :  { %v4587_v9 = vpop.permute.xlu1 %4586  ;;  %4953 = vrot.lane.b32.xlu0 %v4825_v30, %s9034_s18  ;;  %v4829_v30 = vld [vmem:[#allocation3 + $0x49] sm:$0xff] }
 0x56a   :  { %4770 = vst.msk [vmem:[#allocation5 + $0x48] sm:$0xff] %vm4760_vm0, %v4587_v9  ;;  %v4832_v9 = vld [vmem:[#allocation3 + $0x71] sm:$0xff] }
 0x56b   :  { %v4585_v7 = vpop.permute.xlu0 %4584 }
 0x56c   :  { %4959 = vrot.lane.b32.xlu1 %v4828_v36, %s9034_s18  ;;  %4769 = vst.msk [vmem:[#allocation5 + $0x40] sm:$0xff] %vm4760_vm0, %v4585_v7  ;;  %v4834_v36 = vld [vmem:[#allocation3 + $0x91] sm:$0xff] }
 0x56d   :  { %v4591_v49 = vpop.permute.xlu1 %4590  ;;  %4957 = vrot.lane.b32.xlu0 %v4827_v18, %s9034_s18  ;;  %v4831_v18 = vld [vmem:[#allocation3 + $0x69] sm:$0xff] }
 0x56e   :  { %4772 = vst.msk [vmem:[#allocation5 + $0x58] sm:$0xff] %vm4760_vm0, %v4591_v49 }
 0x56f   :  { %v4589_v19 = vpop.permute.xlu0 %4588 }
 0x570   :  { %4963 = vrot.lane.b32.xlu1 %v4830_v32, %s9034_s18  ;;  %4771 = vst.msk [vmem:[#allocation5 + $0x50] sm:$0xff] %vm4760_vm0, %v4589_v19  ;;  %v4833_v19 = vld [vmem:[#allocation3 + $0x89] sm:$0xff] }
 0x571   :  { %v4595_v42 = vpop.permute.xlu1 %4594  ;;  %4961 = vrot.lane.b32.xlu0 %v4829_v30, %s9034_s18 }
 0x572   :  { %4774 = vst.msk [vmem:[#allocation5 + $0x68] sm:$0xff] %vm4760_vm0, %v4595_v42  ;;  %v4836_v42 = vld [vmem:[#allocation3 + $0xb1] sm:$0xff] }
 0x573   :  { %v4593_v7 = vpop.permute.xlu0 %4592 }
 0x574   :  { %4967 = vrot.lane.b32.xlu1 %v4832_v9, %s9034_s18  ;;  %4773 = vst.msk [vmem:[#allocation5 + $0x60] sm:$0xff] %vm4760_vm0, %v4593_v7  ;;  %v4835_v7 = vld [vmem:[#allocation3 + $0xa9] sm:$0xff] }
 0x575   :  { %v4599_v49 = vpop.permute.xlu1 %4598  ;;  %4965 = vrot.lane.b32.xlu0 %v4831_v18, %s9034_s18 }
 0x576   :  { %4776 = vst.msk [vmem:[#allocation5 + $0x78] sm:$0xff] %vm4760_vm0, %v4599_v49  ;;  %v4838_v49 = vld [vmem:[#allocation3 + $0xd1] sm:$0xff] }
 0x577   :  { %v4597_v32 = vpop.permute.xlu0 %4596 }
 0x578   :  { %4971 = vrot.lane.b32.xlu1 %v4834_v36, %s9034_s18  ;;  %4775 = vst.msk [vmem:[#allocation5 + $0x70] sm:$0xff] %vm4760_vm0, %v4597_v32  ;;  %v4837_v32 = vld [vmem:[#allocation3 + $0xc9] sm:$0xff] }
 0x579   :  { %v4603_v30 = vpop.permute.xlu1 %4602  ;;  %4969 = vrot.lane.b32.xlu0 %v4833_v19, %s9034_s18 }
 0x57a   :  { %4778 = vst.msk [vmem:[#allocation5 + $0x88] sm:$0xff] %vm4760_vm0, %v4603_v30  ;;  %v4840_v30 = vld [vmem:[#allocation3 + $0xf1] sm:$0xff] }
 0x57b   :  { %v4601_v9 = vpop.permute.xlu0 %4600 }
 0x57c   :  { %4975 = vrot.lane.b32.xlu1 %v4836_v42, %s9034_s18  ;;  %4777 = vst.msk [vmem:[#allocation5 + $0x80] sm:$0xff] %vm4760_vm0, %v4601_v9  ;;  %v4839_v9 = vld [vmem:[#allocation3 + $0xe9] sm:$0xff] }
 0x57d   :  { %v4607_v18 = vpop.permute.xlu1 %4606  ;;  %4973 = vrot.lane.b32.xlu0 %v4835_v7, %s9034_s18 }
 0x57e   :  { %4780 = vst.msk [vmem:[#allocation5 + $0x98] sm:$0xff] %vm4760_vm0, %v4607_v18  ;;  %v4842_v18 = vld [vmem:[#allocation3 + $0x111] sm:$0xff] }
 0x57f   :  { %v4605_v36 = vpop.permute.xlu0 %4604 }
 0x580   :  { %4979 = vrot.lane.b32.xlu1 %v4838_v49, %s9034_s18  ;;  %4779 = vst.msk [vmem:[#allocation5 + $0x90] sm:$0xff] %vm4760_vm0, %v4605_v36  ;;  %v4841_v36 = vld [vmem:[#allocation3 + $0x109] sm:$0xff] }
 0x581   :  { %v4611_v19 = vpop.permute.xlu1 %4610  ;;  %4977 = vrot.lane.b32.xlu0 %v4837_v32, %s9034_s18 }
 0x582   :  { %4782 = vst.msk [vmem:[#allocation5 + $0xa8] sm:$0xff] %vm4760_vm0, %v4611_v19  ;;  %v4844_v19 = vld [vmem:[#allocation3 + $0x131] sm:$0xff] }
 0x583   :  { %v4609_v42 = vpop.permute.xlu0 %4608 }
 0x584   :  { %4983 = vrot.lane.b32.xlu1 %v4840_v30, %s9034_s18  ;;  %4781 = vst.msk [vmem:[#allocation5 + $0xa0] sm:$0xff] %vm4760_vm0, %v4609_v42  ;;  %v4843_v42 = vld [vmem:[#allocation3 + $0x129] sm:$0xff] }
 0x585   :  { %v4615_v7 = vpop.permute.xlu1 %4614  ;;  %4981 = vrot.lane.b32.xlu0 %v4839_v9, %s9034_s18 }
 0x586   :  { %4784 = vst.msk [vmem:[#allocation5 + $0xb8] sm:$0xff] %vm4760_vm0, %v4615_v7  ;;  %v4846_v7 = vld [vmem:[#allocation3 + $0x151] sm:$0xff] }
 0x587   :  { %v4613_v49 = vpop.permute.xlu0 %4612 }
 0x588   :  { %4987 = vrot.lane.b32.xlu1 %v4842_v18, %s9034_s18  ;;  %4783 = vst.msk [vmem:[#allocation5 + $0xb0] sm:$0xff] %vm4760_vm0, %v4613_v49  ;;  %v4845_v49 = vld [vmem:[#allocation3 + $0x149] sm:$0xff] }
 0x589   :  { %v4619_v32 = vpop.permute.xlu1 %4618  ;;  %4985 = vrot.lane.b32.xlu0 %v4841_v36, %s9034_s18 }
 0x58a   :  { %4786 = vst.msk [vmem:[#allocation5 + $0xc8] sm:$0xff] %vm4760_vm0, %v4619_v32  ;;  %v4848_v32 = vld [vmem:[#allocation3 + $0x171] sm:$0xff] }
 0x58b   :  { %v4617_v30 = vpop.permute.xlu0 %4616 }
 0x58c   :  { %4991 = vrot.lane.b32.xlu1 %v4844_v19, %s9034_s18  ;;  %4785 = vst.msk [vmem:[#allocation5 + $0xc0] sm:$0xff] %vm4760_vm0, %v4617_v30  ;;  %v4847_v30 = vld [vmem:[#allocation3 + $0x169] sm:$0xff] }
 0x58d   :  { %v4623_v9 = vpop.permute.xlu1 %4622  ;;  %4989 = vrot.lane.b32.xlu0 %v4843_v42, %s9034_s18 }
 0x58e   :  { %4788 = vst.msk [vmem:[#allocation5 + $0xd8] sm:$0xff] %vm4760_vm0, %v4623_v9  ;;  %v4850_v9 = vld [vmem:[#allocation3 + $0x191] sm:$0xff] }
 0x58f   :  { %v4621_v18 = vpop.permute.xlu0 %4620 }
 0x590   :  { %4995 = vrot.lane.b32.xlu1 %v4846_v7, %s9034_s18  ;;  %4787 = vst.msk [vmem:[#allocation5 + $0xd0] sm:$0xff] %vm4760_vm0, %v4621_v18  ;;  %v4849_v18 = vld [vmem:[#allocation3 + $0x189] sm:$0xff] }
 0x591   :  { %v4627_v36 = vpop.permute.xlu1 %4626  ;;  %4993 = vrot.lane.b32.xlu0 %v4845_v49, %s9034_s18 }
 0x592   :  { %4790 = vst.msk [vmem:[#allocation5 + $0xe8] sm:$0xff] %vm4760_vm0, %v4627_v36  ;;  %v4852_v36 = vld [vmem:[#allocation3 + $0x1b1] sm:$0xff] }
 0x593   :  { %v4625_v19 = vpop.permute.xlu0 %4624 }
 0x594   :  { %4999 = vrot.lane.b32.xlu1 %v4848_v32, %s9034_s18  ;;  %4789 = vst.msk [vmem:[#allocation5 + $0xe0] sm:$0xff] %vm4760_vm0, %v4625_v19  ;;  %v4851_v19 = vld [vmem:[#allocation3 + $0x1a9] sm:$0xff] }
 0x595   :  { %v4631_v42 = vpop.permute.xlu1 %4630  ;;  %4997 = vrot.lane.b32.xlu0 %v4847_v30, %s9034_s18 }
 0x596   :  { %4792 = vst.msk [vmem:[#allocation5 + $0xf8] sm:$0xff] %vm4760_vm0, %v4631_v42  ;;  %v4854_v42 = vld [vmem:[#allocation3 + $0x1d1] sm:$0xff] }
 0x597   :  { %v4629_v7 = vpop.permute.xlu0 %4628 }
 0x598   :  { %5003 = vrot.lane.b32.xlu1 %v4850_v9, %s9034_s18  ;;  %4791 = vst.msk [vmem:[#allocation5 + $0xf0] sm:$0xff] %vm4760_vm0, %v4629_v7  ;;  %v8869_v7 = vpop.f32.mrf.mxu0 }
 0x599   :  { %v4635_v49 = vpop.permute.xlu1 %4634  ;;  %5001 = vrot.lane.b32.xlu0 %v4849_v18, %s9034_s18  ;;  %v4853_v18 = vld [vmem:[#allocation3 + $0x1c9] sm:$0xff] }
 0x59a   :  { %4794 = vst.msk [vmem:[#allocation5 + $0x108] sm:$0xff] %vm4760_vm0, %v4635_v49  ;;  %v9006_v49 = vld [vmem:[%s12822_s2] ss:$0 sm:$0xff]  ;;  %v4094_v48 = vpop.f32.mrf.mxu0 }
 0x59b   :  { %v4633_v32 = vpop.permute.xlu0 %4632  ;;  %v4095_v14 = vadd.f32 %v9006_v49, %v4094_v48 }
 0x59c   :  { %5007 = vrot.lane.b32.xlu1 %v4852_v36, %s9034_s18  ;;  %4793 = vst.msk [vmem:[#allocation5 + $0x100] sm:$0xff] %vm4760_vm0, %v4633_v32  ;;  %v4100_v36 = vadd.f32 %v9006_v49, %v8869_v7  ;;  %v4860_v49 = vld [vmem:[#allocation3 + $0x271] sm:$0xff] }
 0x59d   :  { %v4639_v30 = vpop.permute.xlu1 %4638  ;;  %5005 = vrot.lane.b32.xlu0 %v4851_v19, %s9034_s18  ;;  %v4856_v19 = vld [vmem:[#allocation3 + $0x1f1] sm:$0xff]  ;;  %v4165_v7 = vmax.f32 %v4095_v14, 0.0 }
 0x59e   :  { %4796 = vst.msk [vmem:[#allocation5 + $0x118] sm:$0xff] %vm4760_vm0, %v4639_v30  ;;  %v4166_v30 = vmax.f32 %v4100_v36, 0.0 }
 0x59f   :  { %v4637_v9 = vpop.permute.xlu0 %4636  ;;  %4310 = vst.msk [vmem:[#allocation3 + $0x448] sm:$0xff] %vm4167_vm13, %v4165_v7 }
 0x5a0   :  { %5011 = vrot.lane.b32.xlu1 %v4854_v42, %s9034_s18  ;;  %4795 = vst.msk [vmem:[#allocation5 + $0x110] sm:$0xff] %vm4760_vm0, %v4637_v9  ;;  %v4855_v9 = vld [vmem:[#allocation3 + $0x1e9] sm:$0xff] }
 0x5a1   :  { %v4643_v32 = vpop.permute.xlu1 %4642  ;;  %5009 = vrot.lane.b32.xlu0 %v4853_v18, %s9034_s18  ;;  %4311 = vst.msk [vmem:[#allocation3 + $0x450] sm:$0xff] %vm4167_vm13, %v4166_v30  ;;  %v4857_v18 = vld [vmem:[#allocation3 + $0x249] sm:$0xff] }
 0x5a2   :  { %4798 = vst.msk [vmem:[#allocation5 + $0x128] sm:$0xff] %vm4760_vm0, %v4643_v32  ;;  %v4861_v30 = vld [vmem:[#allocation3 + $0x289] sm:$0xff] }
 0x5a3   :  { %v4641_v42 = vpop.permute.xlu0 %4640 }
 0x5a4   :  { %5015 = vrot.lane.b32.xlu1 %v4856_v19, %s9034_s18  ;;  %4797 = vst.msk [vmem:[#allocation5 + $0x120] sm:$0xff] %vm4760_vm0, %v4641_v42 }
 0x5a5   :  { %v4647_v54 = vpop.permute.xlu1 %4646  ;;  %5013 = vrot.lane.b32.xlu0 %v4855_v9, %s9034_s18  ;;  %v4864_v9 = vld [vmem:[#allocation3 + $0x2b1] sm:$0xff] }
 0x5a6   :  { %4800 = vst.msk [vmem:[#allocation5 + $0x138] sm:$0xff] %vm4760_vm0, %v4647_v54  ;;  %v4859_v54 = vld [vmem:[#allocation3 + $0x269] sm:$0xff] }
 0x5a7   :  { %v4645_v36 = vpop.permute.xlu0 %4644 }
 0x5a8   :  { %5019 = vrot.lane.b32.xlu1 %v4858_v57, %s9034_s18  ;;  %4799 = vst.msk [vmem:[#allocation5 + $0x130] sm:$0xff] %vm4760_vm0, %v4645_v36  ;;  %v4862_v57 = vld [vmem:[#allocation3 + $0x291] sm:$0xff] }
 0x5a9   :  { %v4651_v48 = vpop.permute.xlu1 %4650  ;;  %5017 = vrot.lane.b32.xlu0 %v4857_v18, %s9034_s18  ;;  %v4863_v18 = vld [vmem:[#allocation3 + $0x2a9] sm:$0xff] }
 0x5aa   :  { %4802 = vst.msk [vmem:[#allocation5 + $0x148] sm:$0xff] %vm4760_vm0, %v4651_v48  ;;  %v4866_v48 = vld [vmem:[#allocation3 + $0x2d1] sm:$0xff] }
 0x5ab   :  { %v4649_v32 = vpop.permute.xlu0 %4648 }
 0x5ac   :  { %5023 = vrot.lane.b32.xlu1 %v4860_v49, %s9034_s18  ;;  %4801 = vst.msk [vmem:[#allocation5 + $0x140] sm:$0xff] %vm4760_vm0, %v4649_v32  ;;  %v4865_v32 = vld [vmem:[#allocation3 + $0x2c9] sm:$0xff] }
 0x5ad   :  { %v4655_v14 = vpop.permute.xlu1 %4654  ;;  %5021 = vrot.lane.b32.xlu0 %v4859_v54, %s9034_s18 }
 0x5ae   :  { %4804 = vst.msk [vmem:[#allocation5 + $0x158] sm:$0xff] %vm4760_vm0, %v4655_v14  ;;  %v4868_v14 = vld [vmem:[#allocation3 + $0x2f1] sm:$0xff] }
 0x5af   :  { %v4653_v19 = vpop.permute.xlu0 %4652 }
 0x5b0   :  { %5027 = vrot.lane.b32.xlu1 %v4862_v57, %s9034_s18  ;;  %4803 = vst.msk [vmem:[#allocation5 + $0x150] sm:$0xff] %vm4760_vm0, %v4653_v19  ;;  %v4867_v19 = vld [vmem:[#allocation3 + $0x2e9] sm:$0xff] }
 0x5b1   :  { %v4659_v42 = vpop.permute.xlu1 %4658  ;;  %5025 = vrot.lane.b32.xlu0 %v4861_v30, %s9034_s18 }
 0x5b2   :  { %4806 = vst.msk [vmem:[#allocation5 + $0x168] sm:$0xff] %vm4760_vm0, %v4659_v42  ;;  %v4870_v42 = vld [vmem:[#allocation3 + $0x311] sm:$0xff] }
 0x5b3   :  { %v4657_v7 = vpop.permute.xlu0 %4656 }
 0x5b4   :  { %5031 = vrot.lane.b32.xlu1 %v4864_v9, %s9034_s18  ;;  %4805 = vst.msk [vmem:[#allocation5 + $0x160] sm:$0xff] %vm4760_vm0, %v4657_v7  ;;  %v4869_v7 = vld [vmem:[#allocation3 + $0x309] sm:$0xff] }
 0x5b5   :  { %v4663_v36 = vpop.permute.xlu1 %4662  ;;  %5029 = vrot.lane.b32.xlu0 %v4863_v18, %s9034_s18 }
 0x5b6   :  { %4808 = vst.msk [vmem:[#allocation5 + $0x178] sm:$0xff] %vm4760_vm0, %v4663_v36  ;;  %v4872_v36 = vld [vmem:[#allocation3 + $0x331] sm:$0xff] }
 0x5b7   :  { %v4661_v49 = vpop.permute.xlu0 %4660 }
 0x5b8   :  { %5035 = vrot.lane.b32.xlu1 %v4866_v48, %s9034_s18  ;;  %4807 = vst.msk [vmem:[#allocation5 + $0x170] sm:$0xff] %vm4760_vm0, %v4661_v49  ;;  %v4871_v49 = vld [vmem:[#allocation3 + $0x329] sm:$0xff] }
 0x5b9   :  { %v4667_v54 = vpop.permute.xlu1 %4666  ;;  %5033 = vrot.lane.b32.xlu0 %v4865_v32, %s9034_s18 }
 0x5ba   :  { %4810 = vst.msk [vmem:[#allocation5 + $0x188] sm:$0xff] %vm4760_vm0, %v4667_v54  ;;  %v4874_v54 = vld [vmem:[#allocation3 + $0x351] sm:$0xff] }
 0x5bb   :  { %v4665_v57 = vpop.permute.xlu0 %4664 }
 0x5bc   :  { %5039 = vrot.lane.b32.xlu1 %v4868_v14, %s9034_s18  ;;  %4809 = vst.msk [vmem:[#allocation5 + $0x180] sm:$0xff] %vm4760_vm0, %v4665_v57  ;;  %v4873_v57 = vld [vmem:[#allocation3 + $0x349] sm:$0xff] }
 0x5bd   :  { %v4671_v30 = vpop.permute.xlu1 %4670  ;;  %5037 = vrot.lane.b32.xlu0 %v4867_v19, %s9034_s18 }
 0x5be   :  { %4812 = vst.msk [vmem:[#allocation5 + $0x198] sm:$0xff] %vm4760_vm0, %v4671_v30  ;;  %v4876_v30 = vld [vmem:[#allocation3 + $0x371] sm:$0xff] }
 0x5bf   :  { %v4669_v9 = vpop.permute.xlu0 %4668 }
 0x5c0   :  { %5043 = vrot.lane.b32.xlu1 %v4870_v42, %s9034_s18  ;;  %4811 = vst.msk [vmem:[#allocation5 + $0x190] sm:$0xff] %vm4760_vm0, %v4669_v9  ;;  %v4875_v9 = vld [vmem:[#allocation3 + $0x369] sm:$0xff] }
 0x5c1   :  { %v4675_v18 = vpop.permute.xlu1 %4674  ;;  %5041 = vrot.lane.b32.xlu0 %v4869_v7, %s9034_s18 }
 0x5c2   :  { %4814 = vst.msk [vmem:[#allocation5 + $0x1a8] sm:$0xff] %vm4760_vm0, %v4675_v18  ;;  %v4878_v18 = vld [vmem:[#allocation3 + $0x391] sm:$0xff] }
 0x5c3   :  { %v4673_v48 = vpop.permute.xlu0 %4672 }
 0x5c4   :  { %5047 = vrot.lane.b32.xlu1 %v4872_v36, %s9034_s18  ;;  %4813 = vst.msk [vmem:[#allocation5 + $0x1a0] sm:$0xff] %vm4760_vm0, %v4673_v48  ;;  %v4877_v48 = vld [vmem:[#allocation3 + $0x389] sm:$0xff] }
 0x5c5   :  { %v4679_v32 = vpop.permute.xlu1 %4678  ;;  %5045 = vrot.lane.b32.xlu0 %v4871_v49, %s9034_s18 }
 0x5c6   :  { %4816 = vst.msk [vmem:[#allocation5 + $0x1b8] sm:$0xff] %vm4760_vm0, %v4679_v32  ;;  %v4880_v32 = vld [vmem:[#allocation3 + $0x3b1] sm:$0xff] }
 0x5c7   :  { %v4677_v14 = vpop.permute.xlu0 %4676 }
 0x5c8   :  { %5051 = vrot.lane.b32.xlu1 %v4874_v54, %s9034_s18  ;;  %4815 = vst.msk [vmem:[#allocation5 + $0x1b0] sm:$0xff] %vm4760_vm0, %v4677_v14  ;;  %v4879_v14 = vld [vmem:[#allocation3 + $0x3a9] sm:$0xff] }
 0x5c9   :  { %v4683_v19 = vpop.permute.xlu1 %4682  ;;  %5049 = vrot.lane.b32.xlu0 %v4873_v57, %s9034_s18 }
 0x5ca   :  { %4818 = vst.msk [vmem:[#allocation5 + $0x1c8] sm:$0xff] %vm4760_vm0, %v4683_v19  ;;  %v4882_v19 = vld [vmem:[#allocation3 + $0x3d1] sm:$0xff] }
 0x5cb   :  { %v4681_v42 = vpop.permute.xlu0 %4680 }
 0x5cc   :  { %5055 = vrot.lane.b32.xlu1 %v4876_v30, %s9034_s18  ;;  %4817 = vst.msk [vmem:[#allocation5 + $0x1c0] sm:$0xff] %vm4760_vm0, %v4681_v42  ;;  %v4881_v42 = vld [vmem:[#allocation3 + $0x3c9] sm:$0xff] }
 0x5cd   :  { %v4687_v7 = vpop.permute.xlu1 %4686  ;;  %5053 = vrot.lane.b32.xlu0 %v4875_v9, %s9034_s18 }
 0x5ce   :  { %4820 = vst.msk [vmem:[#allocation5 + $0x1d8] sm:$0xff] %vm4760_vm0, %v4687_v7  ;;  %v4884_v7 = vld [vmem:[#allocation3 + $0x3f1] sm:$0xff] }
 0x5cf   :  { %v4685_v36 = vpop.permute.xlu0 %4684 }
 0x5d0   :  { %5059 = vrot.lane.b32.xlu1 %v4878_v18, %s9034_s18  ;;  %4819 = vst.msk [vmem:[#allocation5 + $0x1d0] sm:$0xff] %vm4760_vm0, %v4685_v36  ;;  %v4883_v36 = vld [vmem:[#allocation3 + $0x3e9] sm:$0xff] }
 0x5d1   :  { %v4691_v49 = vpop.permute.xlu1 %4690  ;;  %5057 = vrot.lane.b32.xlu0 %v4877_v48, %s9034_s18 }
 0x5d2   :  { %4822 = vst.msk [vmem:[#allocation5 + $0x1e8] sm:$0xff] %vm4760_vm0, %v4691_v49  ;;  %v4886_v49 = vld [vmem:[#allocation3 + $0x411] sm:$0xff] }
 0x5d3   :  { %v4689_v54 = vpop.permute.xlu0 %4688 }
 0x5d4   :  { %5063 = vrot.lane.b32.xlu1 %v4880_v32, %s9034_s18  ;;  %4821 = vst.msk [vmem:[#allocation5 + $0x1e0] sm:$0xff] %vm4760_vm0, %v4689_v54  ;;  %v4885_v54 = vld [vmem:[#allocation3 + $0x409] sm:$0xff] }
 0x5d5   :  { %5061 = vrot.lane.b32.xlu0 %v4879_v14, %s9034_s18 }
 0x5d6   :  { %v4695_v57 = vpop.permute.xlu1 %4694 }
 0x5d7   :  { %4824 = vst.msk [vmem:[#allocation5 + $0x1f8] sm:$0xff] %vm4760_vm0, %v4695_v57  ;;  %v4693_v30 = vpop.permute.xlu0 %4692  ;;  %v4888_v57 = vld [vmem:[#allocation3 + $0x431] sm:$0xff] }
 0x5d8   :  { %5067 = vrot.lane.b32.xlu1 %v4882_v19, %s9034_s18  ;;  %4823 = vst.msk [vmem:[#allocation5 + $0x1f0] sm:$0xff] %vm4760_vm0, %v4693_v30  ;;  %v4887_v30 = vld [vmem:[#allocation3 + $0x429] sm:$0xff] }
 0x5d9   :  { %5065 = vrot.lane.b32.xlu0 %v4881_v42, %s9034_s18 }
 0x5da   :  { %v4956_v9 = vpop.permute.xlu1 %4955 }
 0x5db   :  { %5147 = vst.msk [vmem:[#allocation5 + $0x8] sm:$0xff] %vm5145_vm1, %v4956_v9  ;;  %v4954_v18 = vpop.permute.xlu0 %4953 }
 0x5dc   :  { %5071 = vrot.lane.b32.xlu1 %v4884_v7, %s9034_s18  ;;  %5146 = vst.msk [vmem:[#allocation5] sm:$0xff] %vm5145_vm1, %v4954_v18 }
 0x5dd   :  { %5069 = vrot.lane.b32.xlu0 %v4883_v36, %s9034_s18 }
 0x5de   :  { %v4960_v48 = vpop.permute.xlu1 %4959 }
 0x5df   :  { %5149 = vst.msk [vmem:[#allocation5 + $0x18] sm:$0xff] %vm5145_vm1, %v4960_v48  ;;  %v4958_v32 = vpop.permute.xlu0 %4957 }
 0x5e0   :  { %5075 = vrot.lane.b32.xlu1 %v4886_v49, %s9034_s18  ;;  %5148 = vst.msk [vmem:[#allocation5 + $0x10] sm:$0xff] %vm5145_vm1, %v4958_v32 }
 0x5e1   :  { %5073 = vrot.lane.b32.xlu0 %v4885_v54, %s9034_s18 }
 0x5e2   :  { %v4964_v14 = vpop.permute.xlu1 %4963 }
 0x5e3   :  { %5151 = vst.msk [vmem:[#allocation5 + $0x28] sm:$0xff] %vm5145_vm1, %v4964_v14  ;;  %v4962_v19 = vpop.permute.xlu0 %4961  ;;  %v12868_v14 = vld [vmem:[#allocation9_spill] sm:$0xff] }
 0x5e4   :  { %5079 = vrot.lane.b32.xlu1 %v4888_v57, %s9034_s18  ;;  %5150 = vst.msk [vmem:[#allocation5 + $0x20] sm:$0xff] %vm5145_vm1, %v4962_v19  ;;  %v12870_v19 = vld [vmem:[#allocation11_spill] sm:$0xff] }
 0x5e5   :  { %5077 = vrot.lane.b32.xlu0 %v4887_v30, %s9034_s18 }
 0x5e6   :  { %v4968_v42 = vpop.permute.xlu1 %4967 }
 0x5e7   :  { %5153 = vst.msk [vmem:[#allocation5 + $0x38] sm:$0xff] %vm5145_vm1, %v4968_v42  ;;  %v4966_v9 = vpop.permute.xlu0 %4965 }
 0x5e8   :  { %5340 = vrot.lane.b32.xlu1 %v11078_v5, %s9036_s20  ;;  %5152 = vst.msk [vmem:[#allocation5 + $0x30] sm:$0xff] %vm5145_vm1, %v4966_v9  ;;  %v12872_v9 = vld [vmem:[#allocation13_spill] sm:$0xff] }
 0x5e9   :  { %5338 = vrot.lane.b32.xlu0 %v11080_v8, %s9036_s20 }
 0x5ea   :  { %v4972_v7 = vpop.permute.xlu1 %4971 }
 0x5eb   :  { %5155 = vst.msk [vmem:[#allocation5 + $0x48] sm:$0xff] %vm5145_vm1, %v4972_v7  ;;  %v4970_v18 = vpop.permute.xlu0 %4969  ;;  %v12873_v7 = vld [vmem:[#allocation14_spill] sm:$0xff] }
 0x5ec   :  { %5344 = vrot.lane.b32.xlu1 %v11092_v45, %s9036_s20  ;;  %5154 = vst.msk [vmem:[#allocation5 + $0x40] sm:$0xff] %vm5145_vm1, %v4970_v18 }
 0x5ed   :  { %5342 = vrot.lane.b32.xlu0 %v11094_v58, %s9036_s20 }
 0x5ee   :  { %v4976_v36 = vpop.permute.xlu1 %4975 }
 0x5ef   :  { %5157 = vst.msk [vmem:[#allocation5 + $0x58] sm:$0xff] %vm5145_vm1, %v4976_v36  ;;  %v4974_v5 = vpop.permute.xlu0 %4973 }
 0x5f0   :  { %5348 = vrot.lane.b32.xlu1 %v11106_v25, %s9036_s20  ;;  %5156 = vst.msk [vmem:[#allocation5 + $0x50] sm:$0xff] %vm5145_vm1, %v4974_v5  ;;  %v12874_v5 = vld [vmem:[#allocation15_spill] sm:$0xff] }
 0x5f1   :  { %5346 = vrot.lane.b32.xlu0 %v11108_v50, %s9036_s20 }
 0x5f2   :  { %v4980_v8 = vpop.permute.xlu1 %4979 }
 0x5f3   :  { %5159 = vst.msk [vmem:[#allocation5 + $0x68] sm:$0xff] %vm5145_vm1, %v4980_v8  ;;  %v4978_v45 = vpop.permute.xlu0 %4977  ;;  %v12875_v8 = vld [vmem:[#allocation16_spill] sm:$0xff] }
 0x5f4   :  { %5352 = vrot.lane.b32.xlu1 %v11120_v22, %s9036_s20  ;;  %5158 = vst.msk [vmem:[#allocation5 + $0x60] sm:$0xff] %vm5145_vm1, %v4978_v45 }
 0x5f5   :  { %5350 = vrot.lane.b32.xlu0 %v11122_v23, %s9036_s20 }
 0x5f6   :  { %v4984_v58 = vpop.permute.xlu1 %4983 }
 0x5f7   :  { %5161 = vst.msk [vmem:[#allocation5 + $0x78] sm:$0xff] %vm5145_vm1, %v4984_v58  ;;  %v4982_v25 = vpop.permute.xlu0 %4981 }
 0x5f8   :  { %5356 = vrot.lane.b32.xlu1 %v11134_v40, %s9036_s20  ;;  %5160 = vst.msk [vmem:[#allocation5 + $0x70] sm:$0xff] %vm5145_vm1, %v4982_v25  ;;  %v12876_v25 = vld [vmem:[#allocation17_spill] sm:$0xff] }
 0x5f9   :  { %5354 = vrot.lane.b32.xlu0 %v11136_v41, %s9036_s20 }
 0x5fa   :  { %v4988_v50 = vpop.permute.xlu1 %4987 }
 0x5fb   :  { %5163 = vst.msk [vmem:[#allocation5 + $0x88] sm:$0xff] %vm5145_vm1, %v4988_v50  ;;  %v4986_v22 = vpop.permute.xlu0 %4985  ;;  %v5273_v50 = vld [vmem:[#allocation3 + $0x44f] sm:$0xff] }
 0x5fc   :  { %5360 = vrot.lane.b32.xlu1 %v11148_v34, %s9036_s20  ;;  %5162 = vst.msk [vmem:[#allocation5 + $0x80] sm:$0xff] %vm5145_vm1, %v4986_v22 }
 0x5fd   :  { %5358 = vrot.lane.b32.xlu0 %v11150_v2, %s9036_s20 }
 0x5fe   :  { %v4992_v23 = vpop.permute.xlu1 %4991 }
 0x5ff   :  { %5165 = vst.msk [vmem:[#allocation5 + $0x98] sm:$0xff] %vm5145_vm1, %v4992_v23  ;;  %v4990_v40 = vpop.permute.xlu0 %4989  ;;  %v5272_v23 = vld [vmem:[#allocation3 + $0x447] sm:$0xff] }
 0x600   :  { %5364 = vrot.lane.b32.xlu1 %v11162_v0, %s9036_s20  ;;  %5164 = vst.msk [vmem:[#allocation5 + $0x90] sm:$0xff] %vm5145_vm1, %v4990_v40 }
 0x601   :  { %5362 = vrot.lane.b32.xlu0 %v11164_v4, %s9036_s20 }
 0x602   :  { %v4996_v41 = vpop.permute.xlu1 %4995 }
 0x603   :  { %5167 = vst.msk [vmem:[#allocation5 + $0xa8] sm:$0xff] %vm5145_vm1, %v4996_v41  ;;  %v4994_v34 = vpop.permute.xlu0 %4993  ;;  %v5596_v41 = vld [vmem:[#allocation3 + $0x30] sm:$0xff] }
 0x604   :  { %5368 = vrot.lane.b32.xlu1 %v11176_v59, %s9036_s20  ;;  %5166 = vst.msk [vmem:[#allocation5 + $0xa0] sm:$0xff] %vm5145_vm1, %v4994_v34 }
 0x605   :  { %5366 = vrot.lane.b32.xlu0 %v11178_v1, %s9036_s20 }
 0x606   :  { %v5000_v2 = vpop.permute.xlu1 %4999 }
 0x607   :  { %5169 = vst.msk [vmem:[#allocation5 + $0xb8] sm:$0xff] %vm5145_vm1, %v5000_v2  ;;  %v4998_v0 = vpop.permute.xlu0 %4997  ;;  %v5595_v2 = vld [vmem:[#allocation3 + $0x28] sm:$0xff] }
 0x608   :  { %5372 = vrot.lane.b32.xlu1 %v11190_v16, %s9036_s20  ;;  %5168 = vst.msk [vmem:[#allocation5 + $0xb0] sm:$0xff] %vm5145_vm1, %v4998_v0 }
 0x609   :  { %5370 = vrot.lane.b32.xlu0 %v11192_v53, %s9036_s20 }
 0x60a   :  { %v5004_v4 = vpop.permute.xlu1 %5003 }
 0x60b   :  { %5171 = vst.msk [vmem:[#allocation5 + $0xc8] sm:$0xff] %vm5145_vm1, %v5004_v4  ;;  %v5002_v59 = vpop.permute.xlu0 %5001  ;;  %v11823_v4 = vld [vmem:[#allocation3 + $0x50] sm:$0xff] }
 0x60c   :  { %5376 = vrot.lane.b32.xlu1 %v11204_v33, %s9036_s20  ;;  %5170 = vst.msk [vmem:[#allocation5 + $0xc0] sm:$0xff] %vm5145_vm1, %v5002_v59 }
 0x60d   :  { %5374 = vrot.lane.b32.xlu0 %v11206_v35, %s9036_s20 }
 0x60e   :  { %v5008_v1 = vpop.permute.xlu1 %5007 }
 0x60f   :  { %5173 = vst.msk [vmem:[#allocation5 + $0xd8] sm:$0xff] %vm5145_vm1, %v5008_v1  ;;  %v5006_v16 = vpop.permute.xlu0 %5005  ;;  %v11828_v1 = vld [vmem:[#allocation3 + $0x48] sm:$0xff] }
 0x610   :  { %5380 = vrot.lane.b32.xlu1 %v11218_v51, %s9036_s20  ;;  %5172 = vst.msk [vmem:[#allocation5 + $0xd0] sm:$0xff] %vm5145_vm1, %v5006_v16 }
 0x611   :  { %5378 = vrot.lane.b32.xlu0 %v11220_v52, %s9036_s20 }
 0x612   :  { %v5012_v53 = vpop.permute.xlu1 %5011 }
 0x613   :  { %5175 = vst.msk [vmem:[#allocation5 + $0xe8] sm:$0xff] %vm5145_vm1, %v5012_v53  ;;  %v5010_v33 = vpop.permute.xlu0 %5009  ;;  %v11833_v53 = vld [vmem:[#allocation3 + $0x70] sm:$0xff] }
 0x614   :  { %5384 = vrot.lane.b32.xlu1 %v11232_v10, %s9036_s20  ;;  %5174 = vst.msk [vmem:[#allocation5 + $0xe0] sm:$0xff] %vm5145_vm1, %v5010_v33 }
 0x615   :  { %5382 = vrot.lane.b32.xlu0 %v11234_v13, %s9036_s20 }
 0x616   :  { %v5016_v35 = vpop.permute.xlu1 %5015 }
 0x617   :  { %5177 = vst.msk [vmem:[#allocation5 + $0xf8] sm:$0xff] %vm5145_vm1, %v5016_v35  ;;  %v5014_v51 = vpop.permute.xlu0 %5013  ;;  %v11838_v35 = vld [vmem:[#allocation3 + $0x68] sm:$0xff] }
 0x618   :  { %5388 = vrot.lane.b32.xlu1 %v11247_v6, %s9036_s20  ;;  %5176 = vst.msk [vmem:[#allocation5 + $0xf0] sm:$0xff] %vm5145_vm1, %v5014_v51 }
 0x619   :  { %5386 = vrot.lane.b32.xlu0 %v11249_v37, %s9036_s20 }
 0x61a   :  { %v5020_v52 = vpop.permute.xlu1 %5019 }
 0x61b   :  { %5179 = vst.msk [vmem:[#allocation5 + $0x108] sm:$0xff] %vm5145_vm1, %v5020_v52  ;;  %v5018_v10 = vpop.permute.xlu0 %5017  ;;  %v11843_v52 = vld [vmem:[#allocation3 + $0x90] sm:$0xff] }
 0x61c   :  { %5392 = vrot.lane.b32.xlu1 %v11262_v28, %s9036_s20  ;;  %5178 = vst.msk [vmem:[#allocation5 + $0x100] sm:$0xff] %vm5145_vm1, %v5018_v10  ;;  %v5241_v28 = vld [vmem:[#allocation3 + $0x20f] sm:$0xff] }
 0x61d   :  { %5390 = vrot.lane.b32.xlu0 %v11264_v31, %s9036_s20  ;;  %v5240_v31 = vld [vmem:[#allocation3 + $0x207] sm:$0xff] }
 0x61e   :  { %v5024_v13 = vpop.permute.xlu1 %5023 }
 0x61f   :  { %5181 = vst.msk [vmem:[#allocation5 + $0x118] sm:$0xff] %vm5145_vm1, %v5024_v13  ;;  %v5022_v6 = vpop.permute.xlu0 %5021  ;;  %v11848_v13 = vld [vmem:[#allocation3 + $0x88] sm:$0xff] }
 0x620   :  { %5396 = vrot.lane.b32.xlu1 %v11276_v55, %s9036_s20  ;;  %5180 = vst.msk [vmem:[#allocation5 + $0x110] sm:$0xff] %vm5145_vm1, %v5022_v6 }
 0x621   :  { %5394 = vrot.lane.b32.xlu0 %v11278_v56, %s9036_s20 }
 0x622   :  { %v5028_v37 = vpop.permute.xlu1 %5027 }
 0x623   :  { %5183 = vst.msk [vmem:[#allocation5 + $0x128] sm:$0xff] %vm5145_vm1, %v5028_v37  ;;  %v5026_v48 = vpop.permute.xlu0 %5025  ;;  %v11853_v37 = vld [vmem:[#allocation3 + $0xb0] sm:$0xff] }
 0x624   :  { %5400 = vrot.lane.b32.xlu1 %v5241_v28, %s9036_s20  ;;  %5182 = vst.msk [vmem:[#allocation5 + $0x120] sm:$0xff] %vm5145_vm1, %v5026_v48  ;;  %v11858_v48 = vld [vmem:[#allocation3 + $0xa8] sm:$0xff] }
 0x625   :  { %5398 = vrot.lane.b32.xlu0 %v5240_v31, %s9036_s20 }
 0x626   :  { %v5032_v49 = vpop.permute.xlu1 %5031 }
 0x627   :  { %5185 = vst.msk [vmem:[#allocation5 + $0x138] sm:$0xff] %vm5145_vm1, %v5032_v49  ;;  %v5030_v55 = vpop.permute.xlu0 %5029  ;;  %v11863_v49 = vld [vmem:[#allocation3 + $0xd0] sm:$0xff] }
 0x628   :  { %5404 = vrot.lane.b32.xlu1 %v11296_v60, %s9036_s20  ;;  %5184 = vst.msk [vmem:[#allocation5 + $0x130] sm:$0xff] %vm5145_vm1, %v5030_v55 }
 0x629   :  { %5402 = vrot.lane.b32.xlu0 %v11298_v61, %s9036_s20 }
 0x62a   :  { %v5036_v56 = vpop.permute.xlu1 %5035 }
 0x62b   :  { %5187 = vst.msk [vmem:[#allocation5 + $0x148] sm:$0xff] %vm5145_vm1, %v5036_v56  ;;  %v5034_v32 = vpop.permute.xlu0 %5033  ;;  %v11868_v56 = vld [vmem:[#allocation3 + $0xc8] sm:$0xff] }
 0x62c   :  { %5408 = vrot.lane.b32.xlu1 %v11310_v43, %s9036_s20  ;;  %5186 = vst.msk [vmem:[#allocation5 + $0x140] sm:$0xff] %vm5145_vm1, %v5034_v32 }
 0x62d   :  { %5406 = vrot.lane.b32.xlu0 %v11312_v44, %s9036_s20 }
 0x62e   :  { %v5040_v54 = vpop.permute.xlu1 %5039 }
 0x62f   :  { %5189 = vst.msk [vmem:[#allocation5 + $0x158] sm:$0xff] %vm5145_vm1, %v5040_v54  ;;  %v5038_v60 = vpop.permute.xlu0 %5037  ;;  %v11873_v54 = vld [vmem:[#allocation3 + $0xf0] sm:$0xff] }
 0x630   :  { %5412 = vrot.lane.b32.xlu1 %v11324_v62, %s9036_s20  ;;  %5188 = vst.msk [vmem:[#allocation5 + $0x150] sm:$0xff] %vm5145_vm1, %v5038_v60 }
 0x631   :  { %5410 = vrot.lane.b32.xlu0 %v11326_v63, %s9036_s20 }
 0x632   :  { %v5044_v61 = vpop.permute.xlu1 %5043 }
 0x633   :  { %5191 = vst.msk [vmem:[#allocation5 + $0x168] sm:$0xff] %vm5145_vm1, %v5044_v61  ;;  %v5042_v43 = vpop.permute.xlu0 %5041  ;;  %v11878_v61 = vld [vmem:[#allocation3 + $0xe8] sm:$0xff] }
 0x634   :  { %5416 = vrot.lane.b32.xlu1 %v11338_v12, %s9036_s20  ;;  %5190 = vst.msk [vmem:[#allocation5 + $0x160] sm:$0xff] %vm5145_vm1, %v5042_v43 }
 0x635   :  { %5414 = vrot.lane.b32.xlu0 %v11340_v24, %s9036_s20 }
 0x636   :  { %v5048_v44 = vpop.permute.xlu1 %5047 }
 0x637   :  { %5193 = vst.msk [vmem:[#allocation5 + $0x178] sm:$0xff] %vm5145_vm1, %v5048_v44  ;;  %v5046_v62 = vpop.permute.xlu0 %5045  ;;  %v11883_v44 = vld [vmem:[#allocation3 + $0x110] sm:$0xff] }
 0x638   :  { %5420 = vrot.lane.b32.xlu1 %v11352_v46, %s9036_s20  ;;  %5192 = vst.msk [vmem:[#allocation5 + $0x170] sm:$0xff] %vm5145_vm1, %v5046_v62  ;;  %v7593_v62 = vld [vmem:[%s12823_s3 + $0x40] sm:$0xff] }
 0x639   :  { %5418 = vrot.lane.b32.xlu0 %v11354_v47, %s9036_s20  ;;  %8870 = vmatprep.subr.mxu1 %v7593_v62 }
 0x63a   :  { %v5052_v63 = vpop.permute.xlu1 %5051  ;;  %8871 = vmatpush3.msra.mxu1 %v7593_v62 }
 0x63b   :  { %5195 = vst.msk [vmem:[#allocation5 + $0x188] sm:$0xff] %vm5145_vm1, %v5052_v63  ;;  %v5050_v12 = vpop.permute.xlu0 %5049 }
 0x63c   :  { %5424 = vrot.lane.b32.xlu1 %v11366_v21, %s9036_s20  ;;  %5194 = vst.msk [vmem:[#allocation5 + $0x180] sm:$0xff] %vm5145_vm1, %v5050_v12  ;;  %v11891_v12 = vld [vmem:[#allocation3 + $0x108] sm:$0xff] }
 0x63d   :  { %5422 = vrot.lane.b32.xlu0 %v11368_v29, %s9036_s20 }
 0x63e   :  { %v5056_v24 = vpop.permute.xlu1 %5055 }
 0x63f   :  { %5197 = vst.msk [vmem:[#allocation5 + $0x198] sm:$0xff] %vm5145_vm1, %v5056_v24  ;;  %v5054_v46 = vpop.permute.xlu0 %5053  ;;  %v7592_v24 = vld [vmem:[%s12823_s3 + $0x38] sm:$0xff] }
 0x640   :  { %5428 = vrot.lane.b32.xlu1 %v11380_v26, %s9036_s20  ;;  %5196 = vst.msk [vmem:[#allocation5 + $0x190] sm:$0xff] %vm5145_vm1, %v5054_v46  ;;  %8872 = vmatprep.subr.mxu1 %v7592_v24 }
 0x641   :  { %5426 = vrot.lane.b32.xlu0 %v11382_v27, %s9036_s20  ;;  %8873 = vmatpush3.msra.mxu1 %v7592_v24 }
 0x642   :  { %v5060_v47 = vpop.permute.xlu1 %5059 }
 0x643   :  { %5199 = vst.msk [vmem:[#allocation5 + $0x1a8] sm:$0xff] %vm5145_vm1, %v5060_v47  ;;  %v5058_v21 = vpop.permute.xlu0 %5057  ;;  %v5981_v47 = vld [vmem:[#allocation3 + $0x31] sm:$0xff] }
 0x644   :  { %5432 = vrot.lane.b32.xlu1 %v11394_v15, %s9036_s20  ;;  %5198 = vst.msk [vmem:[#allocation5 + $0x1a0] sm:$0xff] %vm5145_vm1, %v5058_v21  ;;  %v7591_v21 = vld [vmem:[%s12823_s3 + $0x30] sm:$0xff] }
 0x645   :  { %5430 = vrot.lane.b32.xlu0 %v11396_v20, %s9036_s20  ;;  %8874 = vmatprep.subr.mxu1 %v7591_v21 }
 0x646   :  { %v5064_v29 = vpop.permute.xlu1 %5063  ;;  %8875 = vmatpush3.msra.mxu1 %v7591_v21  ;;  %v6375_v21 = vld [vmem:[#allocation3 + $0xcf] sm:$0xff] }
 0x647   :  { %5201 = vst.msk [vmem:[#allocation5 + $0x1b8] sm:$0xff] %vm5145_vm1, %v5064_v29  ;;  %v5062_v26 = vpop.permute.xlu0 %5061 }
 0x648   :  { %5436 = vrot.lane.b32.xlu1 %v11408_v38, %s9036_s20  ;;  %5200 = vst.msk [vmem:[#allocation5 + $0x1b0] sm:$0xff] %vm5145_vm1, %v5062_v26  ;;  %v5980_v26 = vld [vmem:[#allocation3 + $0x29] sm:$0xff] }
 0x649   :  { %5434 = vrot.lane.b32.xlu0 %v11410_v39, %s9036_s20 }
 0x64a   :  { %v5068_v27 = vpop.permute.xlu1 %5067 }
 0x64b   :  { %5203 = vst.msk [vmem:[#allocation5 + $0x1c8] sm:$0xff] %vm5145_vm1, %v5068_v27  ;;  %v5066_v15 = vpop.permute.xlu0 %5065  ;;  %v7590_v27 = vld [vmem:[%s12823_s3 + $0x28] sm:$0xff] }
 0x64c   :  { %5440 = vrot.lane.b32.xlu1 %v11422_v3, %s9036_s20  ;;  %5202 = vst.msk [vmem:[#allocation5 + $0x1c0] sm:$0xff] %vm5145_vm1, %v5066_v15  ;;  %v12869_v3 = vld [vmem:[#allocation10_spill] sm:$0xff]  ;;  %8876 = vmatprep.subr.mxu1 %v7590_v27 }
 0x64d   :  { %5438 = vrot.lane.b32.xlu0 %v11424_v11, %s9036_s20  ;;  %8877 = vmatpush3.msra.mxu1 %v7590_v27 }
 0x64e   :  { %v5072_v20 = vpop.permute.xlu1 %5071 }
 0x64f   :  { %5205 = vst.msk [vmem:[#allocation5 + $0x1d8] sm:$0xff] %vm5145_vm1, %v5072_v20  ;;  %v5070_v38 = vpop.permute.xlu0 %5069  ;;  %v6367_v20 = vld [vmem:[#allocation3 + $0x4f] sm:$0xff] }
 0x650   :  { %5444 = vrot.lane.b32.xlu1 %v11436_v17, %s9036_s20  ;;  %5204 = vst.msk [vmem:[#allocation5 + $0x1d0] sm:$0xff] %vm5145_vm1, %v5070_v38  ;;  %v12871_v17 = vld [vmem:[#allocation12_spill] sm:$0xff] }
 0x651   :  { %5442 = vrot.lane.b32.xlu0 %v12868_v14, %s9036_s20  ;;  %v7589_v38 = vld [vmem:[%s12823_s3 + $0x20] sm:$0xff] }
 0x652   :  { %v5076_v39 = vpop.permute.xlu1 %5075  ;;  %8878 = vmatprep.subr.mxu1 %v7589_v38  ;;  %v6366_v14 = vld [vmem:[#allocation3 + $0x47] sm:$0xff] }
 0x653   :  { %5207 = vst.msk [vmem:[#allocation5 + $0x1e8] sm:$0xff] %vm5145_vm1, %v5076_v39  ;;  %v5074_v57 = vpop.permute.xlu0 %5073  ;;  %8879 = vmatpush3.msra.mxu1 %v7589_v38  ;;  %v5990_v38 = vld [vmem:[#allocation3 + $0xc9] sm:$0xff] }
 0x654   :  { %5448 = vrot.lane.b32.xlu1 %v12869_v3, %s9036_s20  ;;  %5206 = vst.msk [vmem:[#allocation5 + $0x1e0] sm:$0xff] %vm5145_vm1, %v5074_v57  ;;  %v7588_v3 = vld [vmem:[%s12823_s3 + $0x18] sm:$0xff] }
 0x655   :  { %5446 = vrot.lane.b32.xlu0 %v12870_v19, %s9036_s20  ;;  %8880 = vmatprep.subr.mxu1 %v7588_v3 }
 0x656   :  { %v5080_v11 = vpop.permute.xlu1 %5079  ;;  %8881 = vmatpush3.msra.mxu1 %v7588_v3 }
 0x657   :  { %5209 = vst.msk [vmem:[#allocation5 + $0x1f8] sm:$0xff] %vm5145_vm1, %v5080_v11  ;;  %v5078_v30 = vpop.permute.xlu0 %5077  ;;  %v7587_v11 = vld [vmem:[%s12823_s3 + $0x10] sm:$0xff] }
 0x658   :  { %5452 = vrot.lane.b32.xlu1 %v12871_v17, %s9036_s20  ;;  %5208 = vst.msk [vmem:[#allocation5 + $0x1f0] sm:$0xff] %vm5145_vm1, %v5078_v30  ;;  %8882 = vmatprep.subr.mxu1 %v7587_v11  ;;  %v7586_v17 = vld [vmem:[%s12823_s3 + $0x8] sm:$0xff] }
 0x659   :  { %5450 = vrot.lane.b32.xlu0 %v12872_v9, %s9036_s20  ;;  %8883 = vmatpush3.msra.mxu1 %v7587_v11  ;;  %v7585_v9 = vld [vmem:[%s12823_s3] sm:$0xff] }
 0x65a   :  { %v5341_v42 = vpop.permute.xlu1 %5340  ;;  %8884 = vmatprep.subr.mxu1 %v7586_v17 }
 0x65b   :  { %5532 = vst.msk [vmem:[#allocation5 + $0x8] sm:$0xff] %vm5530_vm2, %v5341_v42  ;;  %v5339_v18 = vpop.permute.xlu0 %5338  ;;  %v5982_v42 = vld [vmem:[#allocation3 + $0x49] sm:$0xff]  ;;  %8885 = vmatpush3.msra.mxu1 %v7586_v17 }
 0x65c   :  { %5456 = vrot.lane.b32.xlu1 %v12873_v7, %s9036_s20  ;;  %5531 = vst.msk [vmem:[#allocation5] sm:$0xff] %vm5530_vm2, %v5339_v18  ;;  %8886 = vmatprep.subr.mxu1 %v7585_v9 }
 0x65d   :  { %5454 = vrot.lane.b32.xlu0 %v12874_v5, %s9036_s20  ;;  %8887 = vmatpush3.msra.mxu1 %v7585_v9  ;;  %v5992_v9 = vld [vmem:[#allocation3 + $0xe9] sm:$0xff] }
 0x65e   :  { %v5345_v36 = vpop.permute.xlu1 %5344 }
 0x65f   :  { %5534 = vst.msk [vmem:[#allocation5 + $0x18] sm:$0xff] %vm5530_vm2, %v5345_v36  ;;  %v5343_v45 = vpop.permute.xlu0 %5342  ;;  %v5983_v36 = vld [vmem:[#allocation3 + $0x51] sm:$0xff] }
 0x660   :  { %5460 = vrot.lane.b32.xlu1 %v12875_v8, %s9036_s20  ;;  %5533 = vst.msk [vmem:[#allocation5 + $0x10] sm:$0xff] %vm5530_vm2, %v5343_v45  ;;  %v6369_v45 = vld [vmem:[#allocation3 + $0x6f] sm:$0xff] }
 0x661   :  { %5458 = vrot.lane.b32.xlu0 %v12876_v25, %s9036_s20  ;;  %v6368_v25 = vld [vmem:[#allocation3 + $0x67] sm:$0xff] }
 0x662   :  { %v5349_v58 = vpop.permute.xlu1 %5348 }
 0x663   :  { %5536 = vst.msk [vmem:[#allocation5 + $0x28] sm:$0xff] %vm5530_vm2, %v5349_v58  ;;  %v5347_v22 = vpop.permute.xlu0 %5346 }
 0x664   :  { %5464 = vrot.lane.b32.xlu1 %v5273_v50, %s9036_s20  ;;  %5535 = vst.msk [vmem:[#allocation5 + $0x20] sm:$0xff] %vm5530_vm2, %v5347_v22 }
 0x665   :  { %5462 = vrot.lane.b32.xlu0 %v5272_v23, %s9036_s20 }
 0x666   :  { %v5353_v40 = vpop.permute.xlu1 %5352 }
 0x667   :  { %5538 = vst.msk [vmem:[#allocation5 + $0x38] sm:$0xff] %vm5530_vm2, %v5353_v40  ;;  %v5351_v34 = vpop.permute.xlu0 %5350  ;;  %v5984_v40 = vld [vmem:[#allocation3 + $0x69] sm:$0xff] }
 0x668   :  { %5725 = vrot.lane.b32.xlu1 %v5596_v41, %s9038_s1  ;;  %5537 = vst.msk [vmem:[#allocation5 + $0x30] sm:$0xff] %vm5530_vm2, %v5351_v34 }
 0x669   :  { %5723 = vrot.lane.b32.xlu0 %v5595_v2, %s9038_s1  ;;  %v5985_v2 = vld [vmem:[#allocation3 + $0x71] sm:$0xff] }
 0x66a   :  { %v5357_v0 = vpop.permute.xlu1 %5356 }
 0x66b   :  { %5540 = vst.msk [vmem:[#allocation5 + $0x48] sm:$0xff] %vm5530_vm2, %v5357_v0  ;;  %v5355_v59 = vpop.permute.xlu0 %5354 }
 0x66c   :  { %5729 = vrot.lane.b32.xlu1 %v11823_v4, %s9038_s1  ;;  %5539 = vst.msk [vmem:[#allocation5 + $0x40] sm:$0xff] %vm5530_vm2, %v5355_v59  ;;  %v6371_v59 = vld [vmem:[#allocation3 + $0x8f] sm:$0xff] }
 0x66d   :  { %5727 = vrot.lane.b32.xlu0 %v11828_v1, %s9038_s1 }
 0x66e   :  { %v5361_v16 = vpop.permute.xlu1 %5360 }
 0x66f   :  { %5542 = vst.msk [vmem:[#allocation5 + $0x58] sm:$0xff] %vm5530_vm2, %v5361_v16  ;;  %v5359_v33 = vpop.permute.xlu0 %5358  ;;  %v6370_v16 = vld [vmem:[#allocation3 + $0x87] sm:$0xff] }
 0x670   :  { %5733 = vrot.lane.b32.xlu1 %v11833_v53, %s9038_s1  ;;  %5541 = vst.msk [vmem:[#allocation5 + $0x50] sm:$0xff] %vm5530_vm2, %v5359_v33 }
 0x671   :  { %5731 = vrot.lane.b32.xlu0 %v11838_v35, %s9038_s1 }
 0x672   :  { %v5365_v51 = vpop.permute.xlu1 %5364 }
 0x673   :  { %5544 = vst.msk [vmem:[#allocation5 + $0x68] sm:$0xff] %vm5530_vm2, %v5365_v51  ;;  %v5363_v10 = vpop.permute.xlu0 %5362  ;;  %v5986_v51 = vld [vmem:[#allocation3 + $0x89] sm:$0xff] }
 0x674   :  { %5737 = vrot.lane.b32.xlu1 %v11843_v52, %s9038_s1  ;;  %5543 = vst.msk [vmem:[#allocation5 + $0x60] sm:$0xff] %vm5530_vm2, %v5363_v10 }
 0x675   :  { %5735 = vrot.lane.b32.xlu0 %v11848_v13, %s9038_s1 }
 0x676   :  { %v5369_v6 = vpop.permute.xlu1 %5368 }
 0x677   :  { %5546 = vst.msk [vmem:[#allocation5 + $0x78] sm:$0xff] %vm5530_vm2, %v5369_v6  ;;  %v5367_v28 = vpop.permute.xlu0 %5366 }
 0x678   :  { %5741 = vrot.lane.b32.xlu1 %v11853_v37, %s9038_s1  ;;  %5545 = vst.msk [vmem:[#allocation5 + $0x70] sm:$0xff] %vm5530_vm2, %v5367_v28 }
 0x679   :  { %5739 = vrot.lane.b32.xlu0 %v11858_v48, %s9038_s1 }
 0x67a   :  { %v5373_v31 = vpop.permute.xlu1 %5372 }
 0x67b   :  { %5548 = vst.msk [vmem:[#allocation5 + $0x88] sm:$0xff] %vm5530_vm2, %v5373_v31  ;;  %v5371_v55 = vpop.permute.xlu0 %5370  ;;  %v6373_v31 = vld [vmem:[#allocation3 + $0xaf] sm:$0xff] }
 0x67c   :  { %5745 = vrot.lane.b32.xlu1 %v11863_v49, %s9038_s1  ;;  %5547 = vst.msk [vmem:[#allocation5 + $0x80] sm:$0xff] %vm5530_vm2, %v5371_v55 }
 0x67d   :  { %5743 = vrot.lane.b32.xlu0 %v11868_v56, %s9038_s1 }
 0x67e   :  { %v5377_v32 = vpop.permute.xlu1 %5376 }
 0x67f   :  { %5550 = vst.msk [vmem:[#allocation5 + $0x98] sm:$0xff] %vm5530_vm2, %v5377_v32  ;;  %v5375_v60 = vpop.permute.xlu0 %5374  ;;  %v6372_v32 = vld [vmem:[#allocation3 + $0xa7] sm:$0xff] }
 0x680   :  { %5749 = vrot.lane.b32.xlu1 %v11873_v54, %s9038_s1  ;;  %5549 = vst.msk [vmem:[#allocation5 + $0x90] sm:$0xff] %vm5530_vm2, %v5375_v60 }
 0x681   :  { %5747 = vrot.lane.b32.xlu0 %v11878_v61, %s9038_s1 }
 0x682   :  { %v5381_v43 = vpop.permute.xlu1 %5380 }
 0x683   :  { %5552 = vst.msk [vmem:[#allocation5 + $0xa8] sm:$0xff] %vm5530_vm2, %v5381_v43  ;;  %v5379_v63 = vpop.permute.xlu0 %5378 }
 0x684   :  { %5753 = vrot.lane.b32.xlu1 %v11883_v44, %s9038_s1  ;;  %5551 = vst.msk [vmem:[#allocation5 + $0xa0] sm:$0xff] %vm5530_vm2, %v5379_v63  ;;  %v5988_v63 = vld [vmem:[#allocation3 + $0xa9] sm:$0xff] }
 0x685   :  { %5751 = vrot.lane.b32.xlu0 %v11891_v12, %s9038_s1 }
 0x686   :  { %v5385_v46 = vpop.permute.xlu1 %5384 }
 0x687   :  { %5554 = vst.msk [vmem:[#allocation5 + $0xb8] sm:$0xff] %vm5530_vm2, %v5385_v46  ;;  %v5383_v29 = vpop.permute.xlu0 %5382 }
 0x688   :  { %6110 = vrot.lane.b32.xlu1 %v5981_v47, %s9039_s0  ;;  %5553 = vst.msk [vmem:[#allocation5 + $0xb0] sm:$0xff] %vm5530_vm2, %v5383_v29 }
 0x689   :  { %6108 = vrot.lane.b32.xlu0 %v5980_v26, %s9039_s0  ;;  %v6374_v26 = vld [vmem:[#allocation3 + $0xc7] sm:$0xff] }
 0x68a   :  { %v5389_v15 = vpop.permute.xlu1 %5388 }
 0x68b   :  { %5556 = vst.msk [vmem:[#allocation5 + $0xc8] sm:$0xff] %vm5530_vm2, %v5389_v15  ;;  %v5387_v39 = vpop.permute.xlu0 %5386 }
 0x68c   :  { %6496 = vrot.lane.b32.xlu1 %v6367_v20, %s9040_s22  ;;  %5555 = vst.msk [vmem:[#allocation5 + $0xc0] sm:$0xff] %vm5530_vm2, %v5387_v39 }
 0x68d   :  { %6494 = vrot.lane.b32.xlu0 %v6366_v14, %s9040_s22 }
 0x68e   :  { %v5393_v57 = vpop.permute.xlu1 %5392 }
 0x68f   :  { %5558 = vst.msk [vmem:[#allocation5 + $0xd8] sm:$0xff] %vm5530_vm2, %v5393_v57  ;;  %v5391_v19 = vpop.permute.xlu0 %5390  ;;  %v6377_v57 = vld [vmem:[#allocation3 + $0xef] sm:$0xff] }
 0x690   :  { %6881 = vrot.lane.b32.xlu1 %v11823_v4, %s9041_s28  ;;  %5557 = vst.msk [vmem:[#allocation5 + $0xd0] sm:$0xff] %vm5530_vm2, %v5391_v19  ;;  %v6376_v19 = vld [vmem:[#allocation3 + $0xe7] sm:$0xff] }
 0x691   :  { %6879 = vrot.lane.b32.xlu0 %v11828_v1, %s9041_s28 }
 0x692   :  { %v5397_v30 = vpop.permute.xlu1 %5396 }
 0x693   :  { %5560 = vst.msk [vmem:[#allocation5 + $0xe8] sm:$0xff] %vm5530_vm2, %v5397_v30  ;;  %v5395_v7 = vpop.permute.xlu0 %5394 }
 0x694   :  { %6112 = vrot.lane.b32.xlu1 %v5982_v42, %s9039_s0  ;;  %5559 = vst.msk [vmem:[#allocation5 + $0xe0] sm:$0xff] %vm5530_vm2, %v5395_v7 }
 0x695   :  { %7264 = vrot.lane.b32.xlu0 %v5982_v42, %s9042_s24 }
 0x696   :  { %v5401_v18 = vpop.permute.xlu1 %5400 }
 0x697   :  { %5562 = vst.msk [vmem:[#allocation5 + $0xf8] sm:$0xff] %vm5530_vm2, %v5401_v18  ;;  %v5399_v5 = vpop.permute.xlu0 %5398 }
 0x698   :  { %6114 = vrot.lane.b32.xlu1 %v5983_v36, %s9039_s0  ;;  %5561 = vst.msk [vmem:[#allocation5 + $0xf0] sm:$0xff] %vm5530_vm2, %v5399_v5  ;;  %v6379_v5 = vld [vmem:[#allocation3 + $0x10f] sm:$0xff] }
 0x699   :  { %7266 = vrot.lane.b32.xlu0 %v5983_v36, %s9042_s24 }
 0x69a   :  { %v5405_v8 = vpop.permute.xlu1 %5404 }
 0x69b   :  { %5564 = vst.msk [vmem:[#allocation5 + $0x108] sm:$0xff] %vm5530_vm2, %v5405_v8  ;;  %v5403_v58 = vpop.permute.xlu0 %5402 }
 0x69c   :  { %6500 = vrot.lane.b32.xlu1 %v6369_v45, %s9040_s22  ;;  %5563 = vst.msk [vmem:[#allocation5 + $0x100] sm:$0xff] %vm5530_vm2, %v5403_v58  ;;  %v6378_v45 = vld [vmem:[#allocation3 + $0x107] sm:$0xff] }
 0x69d   :  { %6498 = vrot.lane.b32.xlu0 %v6368_v25, %s9040_s22 }
 0x69e   :  { %v5409_v50 = vpop.permute.xlu1 %5408 }
 0x69f   :  { %5566 = vst.msk [vmem:[#allocation5 + $0x118] sm:$0xff] %vm5530_vm2, %v5409_v50  ;;  %v5407_v22 = vpop.permute.xlu0 %5406 }
 0x6a0   :  { %6885 = vrot.lane.b32.xlu1 %v11833_v53, %s9041_s28  ;;  %5565 = vst.msk [vmem:[#allocation5 + $0x110] sm:$0xff] %vm5530_vm2, %v5407_v22  ;;  %v5994_v22 = vld [vmem:[#allocation3 + $0x109] sm:$0xff] }
 0x6a1   :  { %6883 = vrot.lane.b32.xlu0 %v11838_v35, %s9041_s28 }
 0x6a2   :  { %v5413_v23 = vpop.permute.xlu1 %5412 }
 0x6a3   :  { %5568 = vst.msk [vmem:[#allocation5 + $0x128] sm:$0xff] %vm5530_vm2, %v5413_v23  ;;  %v5411_v41 = vpop.permute.xlu0 %5410 }
 0x6a4   :  { %6116 = vrot.lane.b32.xlu1 %v5984_v40, %s9039_s0  ;;  %5567 = vst.msk [vmem:[#allocation5 + $0x120] sm:$0xff] %vm5530_vm2, %v5411_v41 }
 0x6a5   :  { %7268 = vrot.lane.b32.xlu0 %v5984_v40, %s9042_s24 }
 0x6a6   :  { %v5417_v34 = vpop.permute.xlu1 %5416 }
 0x6a7   :  { %5570 = vst.msk [vmem:[#allocation5 + $0x138] sm:$0xff] %vm5530_vm2, %v5417_v34  ;;  %v5415_v0 = vpop.permute.xlu0 %5414  ;;  %v6381_v34 = vld [vmem:[#allocation3 + $0x12f] sm:$0xff] }
 0x6a8   :  { %6118 = vrot.lane.b32.xlu1 %v5985_v2, %s9039_s0  ;;  %5569 = vst.msk [vmem:[#allocation5 + $0x130] sm:$0xff] %vm5530_vm2, %v5415_v0  ;;  %v6380_v0 = vld [vmem:[#allocation3 + $0x127] sm:$0xff] }
 0x6a9   :  { %7270 = vrot.lane.b32.xlu0 %v5985_v2, %s9042_s24 }
 0x6aa   :  { %v5421_v4 = vpop.permute.xlu1 %5420 }
 0x6ab   :  { %5572 = vst.msk [vmem:[#allocation5 + $0x148] sm:$0xff] %vm5530_vm2, %v5421_v4  ;;  %v5419_v1 = vpop.permute.xlu0 %5418 }
 0x6ac   :  { %6504 = vrot.lane.b32.xlu1 %v6371_v59, %s9040_s22  ;;  %5571 = vst.msk [vmem:[#allocation5 + $0x140] sm:$0xff] %vm5530_vm2, %v5419_v1  ;;  %v5611_v59 = vld [vmem:[#allocation3 + $0x128] sm:$0xff] }
 0x6ad   :  { %6502 = vrot.lane.b32.xlu0 %v6370_v16, %s9040_s22 }
 0x6ae   :  { %v5425_v53 = vpop.permute.xlu1 %5424 }
 0x6af   :  { %5574 = vst.msk [vmem:[#allocation5 + $0x158] sm:$0xff] %vm5530_vm2, %v5425_v53  ;;  %v5423_v33 = vpop.permute.xlu0 %5422  ;;  %v7150_v53 = vld [vmem:[#allocation3 + $0x129] sm:$0xff] }
 0x6b0   :  { %6889 = vrot.lane.b32.xlu1 %v11843_v52, %s9041_s28  ;;  %5573 = vst.msk [vmem:[#allocation5 + $0x150] sm:$0xff] %vm5530_vm2, %v5423_v33  ;;  %v5987_v52 = vld [vmem:[#allocation3 + $0x91] sm:$0xff] }
 0x6b1   :  { %6887 = vrot.lane.b32.xlu0 %v11848_v13, %s9041_s28 }
 0x6b2   :  { %v5429_v35 = vpop.permute.xlu1 %5428 }
 0x6b3   :  { %5576 = vst.msk [vmem:[#allocation5 + $0x168] sm:$0xff] %vm5530_vm2, %v5429_v35  ;;  %v5427_v10 = vpop.permute.xlu0 %5426  ;;  %v6766_v35 = vld [vmem:[#allocation3 + $0x130] sm:$0xff] }
 0x6b4   :  { %6120 = vrot.lane.b32.xlu1 %v5986_v51, %s9039_s0  ;;  %5575 = vst.msk [vmem:[#allocation5 + $0x160] sm:$0xff] %vm5530_vm2, %v5427_v10 }
 0x6b5   :  { %7272 = vrot.lane.b32.xlu0 %v5986_v51, %s9042_s24 }
 0x6b6   :  { %v5433_v6 = vpop.permute.xlu1 %5432 }
 0x6b7   :  { %5578 = vst.msk [vmem:[#allocation5 + $0x178] sm:$0xff] %vm5530_vm2, %v5433_v6  ;;  %v5431_v28 = vpop.permute.xlu0 %5430 }
 0x6b8   :  { %6122 = vrot.lane.b32.xlu1 %v5987_v52, %s9039_s0  ;;  %5577 = vst.msk [vmem:[#allocation5 + $0x170] sm:$0xff] %vm5530_vm2, %v5431_v28 }
 0x6b9   :  { %7274 = vrot.lane.b32.xlu0 %v5987_v52, %s9042_s24  ;;  %v5997_v52 = vld [vmem:[#allocation3 + $0x131] sm:$0xff] }
 0x6ba   :  { %v5437_v13 = vpop.permute.xlu1 %5436 }
 0x6bb   :  { %5580 = vst.msk [vmem:[#allocation5 + $0x188] sm:$0xff] %vm5530_vm2, %v5437_v13  ;;  %v5435_v55 = vpop.permute.xlu0 %5434 }
 0x6bc   :  { %6508 = vrot.lane.b32.xlu1 %v6373_v31, %s9040_s22  ;;  %5579 = vst.msk [vmem:[#allocation5 + $0x180] sm:$0xff] %vm5530_vm2, %v5435_v55  ;;  %v6383_v31 = vld [vmem:[#allocation3 + $0x14f] sm:$0xff] }
 0x6bd   :  { %6506 = vrot.lane.b32.xlu0 %v6372_v32, %s9040_s22 }
 0x6be   :  { %v5441_v60 = vpop.permute.xlu1 %5440 }
 0x6bf   :  { %5582 = vst.msk [vmem:[#allocation5 + $0x198] sm:$0xff] %vm5530_vm2, %v5441_v60  ;;  %v5439_v43 = vpop.permute.xlu0 %5438  ;;  %v6382_v60 = vld [vmem:[#allocation3 + $0x147] sm:$0xff] }
 0x6c0   :  { %6893 = vrot.lane.b32.xlu1 %v11853_v37, %s9041_s28  ;;  %5581 = vst.msk [vmem:[#allocation5 + $0x190] sm:$0xff] %vm5530_vm2, %v5439_v43  ;;  %v5989_v37 = vld [vmem:[#allocation3 + $0xb1] sm:$0xff] }
 0x6c1   :  { %6891 = vrot.lane.b32.xlu0 %v11858_v48, %s9041_s28 }
 0x6c2   :  { %v5445_v62 = vpop.permute.xlu1 %5444 }
 0x6c3   :  { %5584 = vst.msk [vmem:[#allocation5 + $0x1a8] sm:$0xff] %vm5530_vm2, %v5445_v62  ;;  %v5443_v24 = vpop.permute.xlu0 %5442  ;;  %v5613_v62 = vld [vmem:[#allocation3 + $0x148] sm:$0xff] }
 0x6c4   :  { %6124 = vrot.lane.b32.xlu1 %v5988_v63, %s9039_s0  ;;  %5583 = vst.msk [vmem:[#allocation5 + $0x1a0] sm:$0xff] %vm5530_vm2, %v5443_v24 }
 0x6c5   :  { %7276 = vrot.lane.b32.xlu0 %v5988_v63, %s9042_s24 }
 0x6c6   :  { %v5449_v46 = vpop.permute.xlu1 %5448 }
 0x6c7   :  { %5586 = vst.msk [vmem:[#allocation5 + $0x1b8] sm:$0xff] %vm5530_vm2, %v5449_v46  ;;  %v5447_v47 = vpop.permute.xlu0 %5446 }
 0x6c8   :  { %6126 = vrot.lane.b32.xlu1 %v5989_v37, %s9039_s0  ;;  %5585 = vst.msk [vmem:[#allocation5 + $0x1b0] sm:$0xff] %vm5530_vm2, %v5447_v47 }
 0x6c9   :  { %7278 = vrot.lane.b32.xlu0 %v5989_v37, %s9042_s24  ;;  %v7152_v37 = vld [vmem:[#allocation3 + $0x149] sm:$0xff] }
 0x6ca   :  { %v5453_v48 = vpop.permute.xlu1 %5452 }
 0x6cb   :  { %5588 = vst.msk [vmem:[#allocation5 + $0x1c8] sm:$0xff] %vm5530_vm2, %v5453_v48  ;;  %v5451_v29 = vpop.permute.xlu0 %5450  ;;  %v6768_v48 = vld [vmem:[#allocation3 + $0x150] sm:$0xff] }
 0x6cc   :  { %6512 = vrot.lane.b32.xlu1 %v6375_v21, %s9040_s22  ;;  %5587 = vst.msk [vmem:[#allocation5 + $0x1c0] sm:$0xff] %vm5530_vm2, %v5451_v29 }
 0x6cd   :  { %6510 = vrot.lane.b32.xlu0 %v6374_v26, %s9040_s22 }
 0x6ce   :  { %v5457_v27 = vpop.permute.xlu1 %5456 }
 0x6cf   :  { %5590 = vst.msk [vmem:[#allocation5 + $0x1d8] sm:$0xff] %vm5530_vm2, %v5457_v27  ;;  %v5455_v15 = vpop.permute.xlu0 %5454  ;;  %v5999_v27 = vld [vmem:[#allocation3 + $0x151] sm:$0xff] }
 0x6d0   :  { %6897 = vrot.lane.b32.xlu1 %v11863_v49, %s9041_s28  ;;  %5589 = vst.msk [vmem:[#allocation5 + $0x1d0] sm:$0xff] %vm5530_vm2, %v5455_v15  ;;  %v5991_v49 = vld [vmem:[#allocation3 + $0xd1] sm:$0xff] }
 0x6d1   :  { %6895 = vrot.lane.b32.xlu0 %v11868_v56, %s9041_s28 }
 0x6d2   :  { %v5461_v20 = vpop.permute.xlu1 %5460 }
 0x6d3   :  { %5592 = vst.msk [vmem:[#allocation5 + $0x1e8] sm:$0xff] %vm5530_vm2, %v5461_v20  ;;  %v5459_v39 = vpop.permute.xlu0 %5458 }
 0x6d4   :  { %6128 = vrot.lane.b32.xlu1 %v5990_v38, %s9039_s0  ;;  %5591 = vst.msk [vmem:[#allocation5 + $0x1e0] sm:$0xff] %vm5530_vm2, %v5459_v39  ;;  %v6385_v39 = vld [vmem:[#allocation3 + $0x16f] sm:$0xff] }
 0x6d5   :  { %7280 = vrot.lane.b32.xlu0 %v5990_v38, %s9042_s24 }
 0x6d6   :  { %v5465_v14 = vpop.permute.xlu1 %5464 }
 0x6d7   :  { %5594 = vst.msk [vmem:[#allocation5 + $0x1f8] sm:$0xff] %vm5530_vm2, %v5465_v14  ;;  %v5463_v3 = vpop.permute.xlu0 %5462 }
 0x6d8   :  { %6130 = vrot.lane.b32.xlu1 %v5991_v49, %s9039_s0  ;;  %5593 = vst.msk [vmem:[#allocation5 + $0x1f0] sm:$0xff] %vm5530_vm2, %v5463_v3  ;;  %v6384_v3 = vld [vmem:[#allocation3 + $0x167] sm:$0xff] }
 0x6d9   :  { %7282 = vrot.lane.b32.xlu0 %v5991_v49, %s9042_s24 }
 0x6da   :  { %v5726_v56 = vpop.permute.xlu1 %5725 }
 0x6db   :  { %5917 = vst.msk [vmem:[#allocation5 + $0x8] sm:$0xff] %vm5915_vm3, %v5726_v56  ;;  %v5724_v11 = vpop.permute.xlu0 %5723 }
 0x6dc   :  { %6516 = vrot.lane.b32.xlu1 %v6377_v57, %s9040_s22  ;;  %5916 = vst.msk [vmem:[#allocation5] sm:$0xff] %vm5915_vm3, %v5724_v11  ;;  %v5615_v57 = vld [vmem:[#allocation3 + $0x168] sm:$0xff] }
 0x6dd   :  { %6514 = vrot.lane.b32.xlu0 %v6376_v19, %s9040_s22 }
 0x6de   :  { %v5730_v17 = vpop.permute.xlu1 %5729 }
 0x6df   :  { %5919 = vst.msk [vmem:[#allocation5 + $0x18] sm:$0xff] %vm5915_vm3, %v5730_v17  ;;  %v5728_v30 = vpop.permute.xlu0 %5727  ;;  %v7154_v17 = vld [vmem:[#allocation3 + $0x169] sm:$0xff] }
 0x6e0   :  { %6901 = vrot.lane.b32.xlu1 %v11873_v54, %s9041_s28  ;;  %5918 = vst.msk [vmem:[#allocation5 + $0x10] sm:$0xff] %vm5915_vm3, %v5728_v30  ;;  %v5993_v54 = vld [vmem:[#allocation3 + $0xf1] sm:$0xff] }
 0x6e1   :  { %6899 = vrot.lane.b32.xlu0 %v11878_v61, %s9041_s28 }
 0x6e2   :  { %v5734_v42 = vpop.permute.xlu1 %5733 }
 0x6e3   :  { %5921 = vst.msk [vmem:[#allocation5 + $0x28] sm:$0xff] %vm5915_vm3, %v5734_v42  ;;  %v5732_v7 = vpop.permute.xlu0 %5731  ;;  %v6770_v42 = vld [vmem:[#allocation3 + $0x170] sm:$0xff] }
 0x6e4   :  { %6132 = vrot.lane.b32.xlu1 %v5992_v9, %s9039_s0  ;;  %5920 = vst.msk [vmem:[#allocation5 + $0x20] sm:$0xff] %vm5915_vm3, %v5732_v7 }
 0x6e5   :  { %7284 = vrot.lane.b32.xlu0 %v5992_v9, %s9042_s24 }
 0x6e6   :  { %v5738_v18 = vpop.permute.xlu1 %5737 }
 0x6e7   :  { %5923 = vst.msk [vmem:[#allocation5 + $0x38] sm:$0xff] %vm5915_vm3, %v5738_v18  ;;  %v5736_v36 = vpop.permute.xlu0 %5735 }
 0x6e8   :  { %6134 = vrot.lane.b32.xlu1 %v5993_v54, %s9039_s0  ;;  %5922 = vst.msk [vmem:[#allocation5 + $0x30] sm:$0xff] %vm5915_vm3, %v5736_v36  ;;  %v6001_v36 = vld [vmem:[#allocation3 + $0x171] sm:$0xff] }
 0x6e9   :  { %7286 = vrot.lane.b32.xlu0 %v5993_v54, %s9042_s24 }
 0x6ea   :  { %v5742_v61 = vpop.permute.xlu1 %5741 }
 0x6eb   :  { %5925 = vst.msk [vmem:[#allocation5 + $0x48] sm:$0xff] %vm5915_vm3, %v5742_v61  ;;  %v5740_v8 = vpop.permute.xlu0 %5739 }
 0x6ec   :  { %6520 = vrot.lane.b32.xlu1 %v6379_v5, %s9040_s22  ;;  %5924 = vst.msk [vmem:[#allocation5 + $0x40] sm:$0xff] %vm5915_vm3, %v5740_v8 }
 0x6ed   :  { %6518 = vrot.lane.b32.xlu0 %v6378_v45, %s9040_s22  ;;  %v6387_v45 = vld [vmem:[#allocation3 + $0x18f] sm:$0xff] }
 0x6ee   :  { %v5746_v58 = vpop.permute.xlu1 %5745 }
 0x6ef   :  { %5927 = vst.msk [vmem:[#allocation5 + $0x58] sm:$0xff] %vm5915_vm3, %v5746_v58  ;;  %v5744_v25 = vpop.permute.xlu0 %5743 }
 0x6f0   :  { %6905 = vrot.lane.b32.xlu1 %v11883_v44, %s9041_s28  ;;  %5926 = vst.msk [vmem:[#allocation5 + $0x50] sm:$0xff] %vm5915_vm3, %v5744_v25  ;;  %v5995_v44 = vld [vmem:[#allocation3 + $0x111] sm:$0xff]  ;;  %v6386_v25 = vld [vmem:[#allocation3 + $0x187] sm:$0xff] }
 0x6f1   :  { %6903 = vrot.lane.b32.xlu0 %v11891_v12, %s9041_s28 }
 0x6f2   :  { %v5750_v50 = vpop.permute.xlu1 %5749 }
 0x6f3   :  { %5929 = vst.msk [vmem:[#allocation5 + $0x68] sm:$0xff] %vm5915_vm3, %v5750_v50  ;;  %v5748_v23 = vpop.permute.xlu0 %5747 }
 0x6f4   :  { %6136 = vrot.lane.b32.xlu1 %v5994_v22, %s9039_s0  ;;  %5928 = vst.msk [vmem:[#allocation5 + $0x60] sm:$0xff] %vm5915_vm3, %v5748_v23 }
 0x6f5   :  { %7288 = vrot.lane.b32.xlu0 %v5994_v22, %s9042_s24  ;;  %v5617_v22 = vld [vmem:[#allocation3 + $0x188] sm:$0xff] }
 0x6f6   :  { %v5754_v40 = vpop.permute.xlu1 %5753 }
 0x6f7   :  { %5931 = vst.msk [vmem:[#allocation5 + $0x78] sm:$0xff] %vm5915_vm3, %v5754_v40  ;;  %v5752_v41 = vpop.permute.xlu0 %5751 }
 0x6f8   :  { %6138 = vrot.lane.b32.xlu1 %v5995_v44, %s9039_s0  ;;  %5930 = vst.msk [vmem:[#allocation5 + $0x70] sm:$0xff] %vm5915_vm3, %v5752_v41 }
 0x6f9   :  { %7290 = vrot.lane.b32.xlu0 %v5995_v44, %s9042_s24  ;;  %v7156_v44 = vld [vmem:[#allocation3 + $0x189] sm:$0xff] }
 0x6fa   :  { %v6111_v12 = vpop.permute.xlu1 %6110 }
 0x6fb   :  { %6302 = vst.msk [vmem:[#allocation5 + $0x8] sm:$0xff] %vm6300_vm4, %v6111_v12  ;;  %v6109_v2 = vpop.permute.xlu0 %6108 }
 0x6fc   :  { %6524 = vrot.lane.b32.xlu1 %v6381_v34, %s9040_s22  ;;  %6301 = vst.msk [vmem:[#allocation5] sm:$0xff] %vm6300_vm4, %v6109_v2  ;;  %v6772_v34 = vld [vmem:[#allocation3 + $0x190] sm:$0xff] }
 0x6fd   :  { %6522 = vrot.lane.b32.xlu0 %v6380_v0, %s9040_s22 }
 0x6fe   :  { %v6497_v4 = vpop.permute.xlu1 %6496 }
 0x6ff   :  { %6688 = vst.msk [vmem:[#allocation5 + $0x8] sm:$0xff] %vm6686_vm5, %v6497_v4  ;;  %v6495_v1 = vpop.permute.xlu0 %6494 }
 0x700   :  { %5755 = vrot.lane.b32.xlu1 %v5611_v59, %s9038_s1  ;;  %6687 = vst.msk [vmem:[#allocation5] sm:$0xff] %vm6686_vm5, %v6495_v1  ;;  %v6003_v1 = vld [vmem:[#allocation3 + $0x191] sm:$0xff] }
 0x701   :  { %6907 = vrot.lane.b32.xlu0 %v5611_v59, %s9041_s28 }
 0x702   :  { %v6882_v16 = vpop.permute.xlu1 %6881 }
 0x703   :  { %7073 = vst.msk [vmem:[#allocation5 + $0x8] sm:$0xff] %vm7071_vm6, %v6882_v16  ;;  %v6880_v33 = vpop.permute.xlu0 %6879 }
 0x704   :  { %7292 = vrot.lane.b32.xlu1 %v7150_v53, %s9042_s24  ;;  %7072 = vst.msk [vmem:[#allocation5] sm:$0xff] %vm7071_vm6, %v6880_v33  ;;  %v6389_v33 = vld [vmem:[#allocation3 + $0x1af] sm:$0xff] }
 0x705   :  { %6909 = vrot.lane.b32.xlu0 %v6766_v35, %s9041_s28 }
 0x706   :  { %v6113_v51 = vpop.permute.xlu1 %6112 }
 0x707   :  { %6303 = vst.msk [vmem:[#allocation5 + $0x10] sm:$0xff] %vm6300_vm4, %v6113_v51  ;;  %v7265_v10 = vpop.permute.xlu0 %7264  ;;  %v6388_v51 = vld [vmem:[#allocation3 + $0x1a7] sm:$0xff] }
 0x708   :  { %6140 = vrot.lane.b32.xlu1 %v7150_v53, %s9039_s0  ;;  %7457 = vst.msk [vmem:[#allocation5] sm:$0xff] %vm7456_vm7, %v7265_v10 }
 0x709   :  { %5757 = vrot.lane.b32.xlu0 %v6766_v35, %s9038_s1 }
 0x70a   :  { %v6115_v6 = vpop.permute.xlu1 %6114 }
 0x70b   :  { %6304 = vst.msk [vmem:[#allocation5 + $0x18] sm:$0xff] %vm6300_vm4, %v6115_v6  ;;  %v7267_v28 = vpop.permute.xlu0 %7266  ;;  %v5619_v6 = vld [vmem:[#allocation3 + $0x1a8] sm:$0xff] }
 0x70c   :  { %6142 = vrot.lane.b32.xlu1 %v5997_v52, %s9039_s0  ;;  %7458 = vst.msk [vmem:[#allocation5 + $0x8] sm:$0xff] %vm7456_vm7, %v7267_v28 }
 0x70d   :  { %7294 = vrot.lane.b32.xlu0 %v5997_v52, %s9042_s24 }
 0x70e   :  { %v6501_v13 = vpop.permute.xlu1 %6500 }
 0x70f   :  { %6690 = vst.msk [vmem:[#allocation5 + $0x18] sm:$0xff] %vm6686_vm5, %v6501_v13  ;;  %v6499_v55 = vpop.permute.xlu0 %6498  ;;  %v7521_v32 = vld [vmem:[#allocation5] sm:$0xff] }
 0x710   :  { %6528 = vrot.lane.b32.xlu1 %v6383_v31, %s9040_s22  ;;  %6689 = vst.msk [vmem:[#allocation5 + $0x10] sm:$0xff] %vm6686_vm5, %v6499_v55  ;;  %8888 = vmatprep.mubr.msk.f32.mxu1 %vm7601_vm8, %v7521_v32  ;;  %v7158_v31 = vld [vmem:[#allocation3 + $0x1a9] sm:$0xff] }
 0x711   :  { %6526 = vrot.lane.b32.xlu0 %v6382_v60, %s9040_s22  ;;  %v6774_v60 = vld [vmem:[#allocation3 + $0x1b0] sm:$0xff] }
 0x712   :  { %v6886_v43 = vpop.permute.xlu1 %6885 }
 0x713   :  { %7075 = vst.msk [vmem:[#allocation5 + $0x18] sm:$0xff] %vm7071_vm6, %v6886_v43  ;;  %v6884_v63 = vpop.permute.xlu0 %6883  ;;  %v7522_v24 = vld [vmem:[#allocation5 + $0x8] sm:$0xff] }
 0x714   :  { %5759 = vrot.lane.b32.xlu1 %v5613_v62, %s9038_s1  ;;  %7074 = vst.msk [vmem:[#allocation5 + $0x10] sm:$0xff] %vm7071_vm6, %v6884_v63  ;;  %8889 = vmatmul.mubr.msk.f32.vlgmr.msra.gmra.mxu1 %vm7601_vm8, %v7522_v24  ;;  %v6005_v24 = vld [vmem:[#allocation3 + $0x1b1] sm:$0xff] }
 0x715   :  { %6911 = vrot.lane.b32.xlu0 %v5613_v62, %s9041_s28 }
 0x716   :  { %v6117_v46 = vpop.permute.xlu1 %6116 }
 0x717   :  { %6305 = vst.msk [vmem:[#allocation5 + $0x20] sm:$0xff] %vm6300_vm4, %v6117_v46  ;;  %v7269_v47 = vpop.permute.xlu0 %7268 }
 0x718   :  { %7296 = vrot.lane.b32.xlu1 %v7152_v37, %s9042_s24  ;;  %7459 = vst.msk [vmem:[#allocation5 + $0x10] sm:$0xff] %vm7456_vm7, %v7269_v47  ;;  %v6391_v47 = vld [vmem:[#allocation3 + $0x1cf] sm:$0xff] }
 0x719   :  { %6913 = vrot.lane.b32.xlu0 %v6768_v48, %s9041_s28 }
 0x71a   :  { %v6119_v21 = vpop.permute.xlu1 %6118 }
 0x71b   :  { %6306 = vst.msk [vmem:[#allocation5 + $0x28] sm:$0xff] %vm6300_vm4, %v6119_v21  ;;  %v7271_v29 = vpop.permute.xlu0 %7270 }
 0x71c   :  { %6144 = vrot.lane.b32.xlu1 %v7152_v37, %s9039_s0  ;;  %7460 = vst.msk [vmem:[#allocation5 + $0x18] sm:$0xff] %vm7456_vm7, %v7271_v29  ;;  %v6390_v29 = vld [vmem:[#allocation3 + $0x1c7] sm:$0xff] }
 0x71d   :  { %5761 = vrot.lane.b32.xlu0 %v6768_v48, %s9038_s1 }
 0x71e   :  { %v6505_v26 = vpop.permute.xlu1 %6504 }
 0x71f   :  { %6692 = vst.msk [vmem:[#allocation5 + $0x28] sm:$0xff] %vm6686_vm5, %v6505_v26  ;;  %v6503_v15 = vpop.permute.xlu0 %6502  ;;  %v7523_v20 = vld [vmem:[#allocation5 + $0x10] sm:$0xff] }
 0x720   :  { %6146 = vrot.lane.b32.xlu1 %v5999_v27, %s9039_s0  ;;  %6691 = vst.msk [vmem:[#allocation5 + $0x20] sm:$0xff] %vm6686_vm5, %v6503_v15  ;;  %8891 = vmatprep.mubr.msk.f32.mxu1 %vm7601_vm8, %v7523_v20 }
 0x721   :  { %7298 = vrot.lane.b32.xlu0 %v5999_v27, %s9042_s24  ;;  %v5621_v27 = vld [vmem:[#allocation3 + $0x1c8] sm:$0xff] }
 0x722   :  { %v6890_v38 = vpop.permute.xlu1 %6889 }
 0x723   :  { %7077 = vst.msk [vmem:[#allocation5 + $0x28] sm:$0xff] %vm7071_vm6, %v6890_v38  ;;  %v6888_v14 = vpop.permute.xlu0 %6887  ;;  %v7524_v49 = vld [vmem:[#allocation5 + $0x18] sm:$0xff] }
 0x724   :  { %6532 = vrot.lane.b32.xlu1 %v6385_v39, %s9040_s22  ;;  %7076 = vst.msk [vmem:[#allocation5 + $0x20] sm:$0xff] %vm7071_vm6, %v6888_v14  ;;  %8892 = vmatmul.mubr.msk.f32.gmra.mxu1 %vm7601_vm8, %v7524_v49  ;;  %v7160_v39 = vld [vmem:[#allocation3 + $0x1c9] sm:$0xff] }
 0x725   :  { %6530 = vrot.lane.b32.xlu0 %v6384_v3, %s9040_s22  ;;  %v6776_v49 = vld [vmem:[#allocation3 + $0x1d0] sm:$0xff] }
 0x726   :  { %v6121_v56 = vpop.permute.xlu1 %6120 }
 0x727   :  { %6307 = vst.msk [vmem:[#allocation5 + $0x30] sm:$0xff] %vm6300_vm4, %v6121_v56  ;;  %v7273_v11 = vpop.permute.xlu0 %7272 }
 0x728   :  { %5763 = vrot.lane.b32.xlu1 %v5615_v57, %s9038_s1  ;;  %7461 = vst.msk [vmem:[#allocation5 + $0x20] sm:$0xff] %vm7456_vm7, %v7273_v11  ;;  %v6007_v11 = vld [vmem:[#allocation3 + $0x1d1] sm:$0xff] }
 0x729   :  { %6915 = vrot.lane.b32.xlu0 %v5615_v57, %s9041_s28 }
 0x72a   :  { %v6123_v19 = vpop.permute.xlu1 %6122 }
 0x72b   :  { %6308 = vst.msk [vmem:[#allocation5 + $0x38] sm:$0xff] %vm6300_vm4, %v6123_v19  ;;  %v7275_v30 = vpop.permute.xlu0 %7274 }
 0x72c   :  { %7300 = vrot.lane.b32.xlu1 %v7154_v17, %s9042_s24  ;;  %7462 = vst.msk [vmem:[#allocation5 + $0x28] sm:$0xff] %vm7456_vm7, %v7275_v30 }
 0x72d   :  { %6917 = vrot.lane.b32.xlu0 %v6770_v42, %s9041_s28 }
 0x72e   :  { %v6509_v9 = vpop.permute.xlu1 %6508 }
 0x72f   :  { %6694 = vst.msk [vmem:[#allocation5 + $0x38] sm:$0xff] %vm6686_vm5, %v6509_v9  ;;  %v6507_v7 = vpop.permute.xlu0 %6506  ;;  %v7525_v18 = vld [vmem:[#allocation5 + $0x20] sm:$0xff] }
 0x730   :  { %6148 = vrot.lane.b32.xlu1 %v7154_v17, %s9039_s0  ;;  %6693 = vst.msk [vmem:[#allocation5 + $0x30] sm:$0xff] %vm6686_vm5, %v6507_v7  ;;  %8894 = vmatprep.mubr.msk.f32.mxu1 %vm7601_vm8, %v7525_v18  ;;  %v6392_v18 = vld [vmem:[#allocation3 + $0x1e7] sm:$0xff] }
 0x731   :  { %5765 = vrot.lane.b32.xlu0 %v6770_v42, %s9038_s1  ;;  %v6393_v42 = vld [vmem:[#allocation3 + $0x1ef] sm:$0xff] }
 0x732   :  { %v6894_v54 = vpop.permute.xlu1 %6893 }
 0x733   :  { %7079 = vst.msk [vmem:[#allocation5 + $0x38] sm:$0xff] %vm7071_vm6, %v6894_v54  ;;  %v6892_v61 = vpop.permute.xlu0 %6891  ;;  %v7526_v5 = vld [vmem:[#allocation5 + $0x28] sm:$0xff] }
 0x734   :  { %6150 = vrot.lane.b32.xlu1 %v6001_v36, %s9039_s0  ;;  %7078 = vst.msk [vmem:[#allocation5 + $0x30] sm:$0xff] %vm7071_vm6, %v6892_v61  ;;  %8895 = vmatmul.mubr.msk.f32.gmra.mxu1 %vm7601_vm8, %v7526_v5 }
 0x735   :  { %7302 = vrot.lane.b32.xlu0 %v6001_v36, %s9042_s24  ;;  %v5623_v36 = vld [vmem:[#allocation3 + $0x1e8] sm:$0xff] }
 0x736   :  { %v6125_v8 = vpop.permute.xlu1 %6124 }
 0x737   :  { %6309 = vst.msk [vmem:[#allocation5 + $0x40] sm:$0xff] %vm6300_vm4, %v6125_v8  ;;  %v7277_v58 = vpop.permute.xlu0 %7276  ;;  %v7162_v8 = vld [vmem:[#allocation3 + $0x1e9] sm:$0xff] }
 0x738   :  { %6536 = vrot.lane.b32.xlu1 %v6387_v45, %s9040_s22  ;;  %7463 = vst.msk [vmem:[#allocation5 + $0x30] sm:$0xff] %vm7456_vm7, %v7277_v58  ;;  %v6778_v58 = vld [vmem:[#allocation3 + $0x1f0] sm:$0xff] }
 0x739   :  { %6534 = vrot.lane.b32.xlu0 %v6386_v25, %s9040_s22 }
 0x73a   :  { %v6127_v50 = vpop.permute.xlu1 %6126 }
 0x73b   :  { %6310 = vst.msk [vmem:[#allocation5 + $0x48] sm:$0xff] %vm6300_vm4, %v6127_v50  ;;  %v7279_v23 = vpop.permute.xlu0 %7278 }
 0x73c   :  { %5767 = vrot.lane.b32.xlu1 %v5617_v22, %s9038_s1  ;;  %7464 = vst.msk [vmem:[#allocation5 + $0x38] sm:$0xff] %vm7456_vm7, %v7279_v23 }
 0x73d   :  { %6919 = vrot.lane.b32.xlu0 %v5617_v22, %s9041_s28 }
 0x73e   :  { %v6513_v40 = vpop.permute.xlu1 %6512 }
 0x73f   :  { %6696 = vst.msk [vmem:[#allocation5 + $0x48] sm:$0xff] %vm6686_vm5, %v6513_v40  ;;  %v6511_v41 = vpop.permute.xlu0 %6510  ;;  %v7527_v12 = vld [vmem:[#allocation5 + $0x30] sm:$0xff] }
 0x740   :  { %7304 = vrot.lane.b32.xlu1 %v7156_v44, %s9042_s24  ;;  %6695 = vst.msk [vmem:[#allocation5 + $0x40] sm:$0xff] %vm6686_vm5, %v6511_v41  ;;  %8897 = vmatprep.mubr.msk.f32.mxu1 %vm7601_vm8, %v7527_v12  ;;  %v6009_v40 = vld [vmem:[#allocation3 + $0x1f1] sm:$0xff] }
 0x741   :  { %6921 = vrot.lane.b32.xlu0 %v6772_v34, %s9041_s28  ;;  %v6395_v12 = vld [vmem:[#allocation3 + $0x20f] sm:$0xff] }
 0x742   :  { %v6898_v2 = vpop.permute.xlu1 %6897 }
 0x743   :  { %7081 = vst.msk [vmem:[#allocation5 + $0x48] sm:$0xff] %vm7071_vm6, %v6898_v2  ;;  %v6896_v0 = vpop.permute.xlu0 %6895  ;;  %v7528_v4 = vld [vmem:[#allocation5 + $0x38] sm:$0xff] }
 0x744   :  { %6152 = vrot.lane.b32.xlu1 %v7156_v44, %s9039_s0  ;;  %7080 = vst.msk [vmem:[#allocation5 + $0x40] sm:$0xff] %vm7071_vm6, %v6896_v0  ;;  %8898 = vmatmul.mubr.msk.f32.gmra.mxu1 %vm7601_vm8, %v7528_v4  ;;  %v6394_v0 = vld [vmem:[#allocation3 + $0x207] sm:$0xff] }
 0x745   :  { %5769 = vrot.lane.b32.xlu0 %v6772_v34, %s9038_s1 }
 0x746   :  { %v6129_v59 = vpop.permute.xlu1 %6128 }
 0x747   :  { %6311 = vst.msk [vmem:[#allocation5 + $0x50] sm:$0xff] %vm6300_vm4, %v6129_v59  ;;  %v7281_v16 = vpop.permute.xlu0 %7280  ;;  %v5625_v59 = vld [vmem:[#allocation3 + $0x208] sm:$0xff] }
 0x748   :  { %6154 = vrot.lane.b32.xlu1 %v6003_v1, %s9039_s0  ;;  %7465 = vst.msk [vmem:[#allocation5 + $0x40] sm:$0xff] %vm7456_vm7, %v7281_v16 }
 0x749   :  { %7306 = vrot.lane.b32.xlu0 %v6003_v1, %s9042_s24 }
 0x74a   :  { %v6131_v53 = vpop.permute.xlu1 %6130 }
 0x74b   :  { %6312 = vst.msk [vmem:[#allocation5 + $0x58] sm:$0xff] %vm6300_vm4, %v6131_v53  ;;  %v7283_v35 = vpop.permute.xlu0 %7282  ;;  %v7164_v53 = vld [vmem:[#allocation3 + $0x209] sm:$0xff] }
 0x74c   :  { %6540 = vrot.lane.b32.xlu1 %v6389_v33, %s9040_s22  ;;  %7466 = vst.msk [vmem:[#allocation5 + $0x48] sm:$0xff] %vm7456_vm7, %v7283_v35  ;;  %v6780_v35 = vld [vmem:[#allocation3 + $0x210] sm:$0xff] }
 0x74d   :  { %6538 = vrot.lane.b32.xlu0 %v6388_v51, %s9040_s22 }
 0x74e   :  { %v6517_v10 = vpop.permute.xlu1 %6516 }
 0x74f   :  { %6698 = vst.msk [vmem:[#allocation5 + $0x58] sm:$0xff] %vm6686_vm5, %v6517_v10  ;;  %v6515_v52 = vpop.permute.xlu0 %6514  ;;  %v7529_v28 = vld [vmem:[#allocation5 + $0x40] sm:$0xff] }
 0x750   :  { %5771 = vrot.lane.b32.xlu1 %v5619_v6, %s9038_s1  ;;  %6697 = vst.msk [vmem:[#allocation5 + $0x50] sm:$0xff] %vm6686_vm5, %v6515_v52  ;;  %8900 = vmatprep.mubr.msk.f32.mxu1 %vm7601_vm8, %v7529_v28  ;;  %v6011_v28 = vld [vmem:[#allocation3 + $0x211] sm:$0xff] }
 0x751   :  { %6923 = vrot.lane.b32.xlu0 %v5619_v6, %s9041_s28 }
 0x752   :  { %v6902_v13 = vpop.permute.xlu1 %6901 }
 0x753   :  { %7083 = vst.msk [vmem:[#allocation5 + $0x58] sm:$0xff] %vm7071_vm6, %v6902_v13  ;;  %v6900_v55 = vpop.permute.xlu0 %6899  ;;  %v7530_v32 = vld [vmem:[#allocation5 + $0x48] sm:$0xff] }
 0x754   :  { %7308 = vrot.lane.b32.xlu1 %v7158_v31, %s9042_s24  ;;  %7082 = vst.msk [vmem:[#allocation5 + $0x50] sm:$0xff] %vm7071_vm6, %v6900_v55  ;;  %8901 = vmatmul.mubr.msk.f32.gmra.mxu1 %vm7601_vm8, %v7530_v32  ;;  %v6396_v32 = vld [vmem:[#allocation3 + $0x227] sm:$0xff] }
 0x755   :  { %6925 = vrot.lane.b32.xlu0 %v6774_v60, %s9041_s28 }
 0x756   :  { %v6133_v43 = vpop.permute.xlu1 %6132 }
 0x757   :  { %6313 = vst.msk [vmem:[#allocation5 + $0x60] sm:$0xff] %vm6300_vm4, %v6133_v43  ;;  %v7285_v62 = vpop.permute.xlu0 %7284 }
 0x758   :  { %6156 = vrot.lane.b32.xlu1 %v7158_v31, %s9039_s0  ;;  %7467 = vst.msk [vmem:[#allocation5 + $0x50] sm:$0xff] %vm7456_vm7, %v7285_v62  ;;  %v6397_v31 = vld [vmem:[#allocation3 + $0x22f] sm:$0xff] }
 0x759   :  { %5773 = vrot.lane.b32.xlu0 %v6774_v60, %s9038_s1 }
 0x75a   :  { %v6135_v63 = vpop.permute.xlu1 %6134 }
 0x75b   :  { %6314 = vst.msk [vmem:[#allocation5 + $0x68] sm:$0xff] %vm6300_vm4, %v6135_v63  ;;  %v7287_v46 = vpop.permute.xlu0 %7286  ;;  %v5627_v63 = vld [vmem:[#allocation3 + $0x268] sm:$0xff] }
 0x75c   :  { %6158 = vrot.lane.b32.xlu1 %v6005_v24, %s9039_s0  ;;  %7468 = vst.msk [vmem:[#allocation5 + $0x58] sm:$0xff] %vm7456_vm7, %v7287_v46 }
 0x75d   :  { %7310 = vrot.lane.b32.xlu0 %v6005_v24, %s9042_s24  ;;  %v6781_v24 = vld [vmem:[#allocation3 + $0x228] sm:$0xff] }
 0x75e   :  { %v6521_v37 = vpop.permute.xlu1 %6520 }
 0x75f   :  { %6700 = vst.msk [vmem:[#allocation5 + $0x68] sm:$0xff] %vm6686_vm5, %v6521_v37  ;;  %v6519_v48 = vpop.permute.xlu0 %6518  ;;  %v7531_v21 = vld [vmem:[#allocation5 + $0x50] sm:$0xff] }
 0x760   :  { %6544 = vrot.lane.b32.xlu1 %v6391_v47, %s9040_s22  ;;  %6699 = vst.msk [vmem:[#allocation5 + $0x60] sm:$0xff] %vm6686_vm5, %v6519_v48  ;;  %8903 = vmatprep.mubr.msk.f32.mxu1 %vm7601_vm8, %v7531_v21  ;;  %v7166_v37 = vld [vmem:[#allocation3 + $0x229] sm:$0xff] }
 0x761   :  { %6542 = vrot.lane.b32.xlu0 %v6390_v29, %s9040_s22  ;;  %v6782_v48 = vld [vmem:[#allocation3 + $0x230] sm:$0xff] }
 0x762   :  { %v6906_v26 = vpop.permute.xlu1 %6905 }
 0x763   :  { %7085 = vst.msk [vmem:[#allocation5 + $0x68] sm:$0xff] %vm7071_vm6, %v6906_v26  ;;  %v6904_v15 = vpop.permute.xlu0 %6903  ;;  %v7532_v20 = vld [vmem:[#allocation5 + $0x58] sm:$0xff] }
 0x764   :  { %5775 = vrot.lane.b32.xlu1 %v5621_v27, %s9038_s1  ;;  %7084 = vst.msk [vmem:[#allocation5 + $0x60] sm:$0xff] %vm7071_vm6, %v6904_v15  ;;  %8904 = vmatmul.mubr.msk.f32.gmra.mxu1 %vm7601_vm8, %v7532_v20  ;;  %v5628_v20 = vld [vmem:[#allocation3 + $0x270] sm:$0xff] }
 0x765   :  { %6927 = vrot.lane.b32.xlu0 %v5621_v27, %s9041_s28  ;;  %v6012_v27 = vld [vmem:[#allocation3 + $0x269] sm:$0xff] }
 0x766   :  { %v6137_v38 = vpop.permute.xlu1 %6136 }
 0x767   :  { %6315 = vst.msk [vmem:[#allocation5 + $0x70] sm:$0xff] %vm6300_vm4, %v6137_v38  ;;  %v7289_v14 = vpop.permute.xlu0 %7288 }
 0x768   :  { %7312 = vrot.lane.b32.xlu1 %v7160_v39, %s9042_s24  ;;  %7469 = vst.msk [vmem:[#allocation5 + $0x60] sm:$0xff] %vm7456_vm7, %v7289_v14  ;;  %v7167_v14 = vld [vmem:[#allocation3 + $0x231] sm:$0xff] }
 0x769   :  { %6929 = vrot.lane.b32.xlu0 %v6776_v49, %s9041_s28 }
 0x76a   :  { %v6139_v3 = vpop.permute.xlu1 %6138 }
 0x76b   :  { %6316 = vst.msk [vmem:[#allocation5 + $0x78] sm:$0xff] %vm6300_vm4, %v6139_v3  ;;  %v7291_v56 = vpop.permute.xlu0 %7290 }
 0x76c   :  { %6160 = vrot.lane.b32.xlu1 %v7160_v39, %s9039_s0  ;;  %7470 = vst.msk [vmem:[#allocation5 + $0x68] sm:$0xff] %vm7456_vm7, %v7291_v56  ;;  %v6013_v39 = vld [vmem:[#allocation3 + $0x271] sm:$0xff] }
 0x76d   :  { %5777 = vrot.lane.b32.xlu0 %v6776_v49, %s9038_s1  ;;  %v6399_v56 = vld [vmem:[#allocation3 + $0x28f] sm:$0xff] }
 0x76e   :  { %v6525_v57 = vpop.permute.xlu1 %6524 }
 0x76f   :  { %6702 = vst.msk [vmem:[#allocation5 + $0x78] sm:$0xff] %vm6686_vm5, %v6525_v57  ;;  %v6523_v19 = vpop.permute.xlu0 %6522  ;;  %v7533_v17 = vld [vmem:[#allocation5 + $0x60] sm:$0xff] }
 0x770   :  { %6162 = vrot.lane.b32.xlu1 %v6007_v11, %s9039_s0  ;;  %6701 = vst.msk [vmem:[#allocation5 + $0x70] sm:$0xff] %vm6686_vm5, %v6523_v19  ;;  %8906 = vmatprep.mubr.msk.f32.mxu1 %vm7601_vm8, %v7533_v17  ;;  %v6398_v19 = vld [vmem:[#allocation3 + $0x287] sm:$0xff] }
 0x771   :  { %7314 = vrot.lane.b32.xlu0 %v6007_v11, %s9042_s24 }
 0x772   :  { %v5756_v30 = vpop.permute.xlu1 %5755 }
 0x773   :  { %5932 = vst.msk [vmem:[#allocation5 + $0x80] sm:$0xff] %vm5915_vm3, %v5756_v30  ;;  %v6908_v9 = vpop.permute.xlu0 %6907  ;;  %v7534_v7 = vld [vmem:[#allocation5 + $0x68] sm:$0xff] }
 0x774   :  { %6548 = vrot.lane.b32.xlu1 %v6393_v42, %s9040_s22  ;;  %7086 = vst.msk [vmem:[#allocation5 + $0x70] sm:$0xff] %vm7071_vm6, %v6908_v9  ;;  %8907 = vmatmul.mubr.msk.f32.gmra.mxu1 %vm7601_vm8, %v7534_v7  ;;  %v5629_v30 = vld [vmem:[#allocation3 + $0x288] sm:$0xff] }
 0x775   :  { %6546 = vrot.lane.b32.xlu0 %v6392_v18, %s9040_s22  ;;  %v7168_v7 = vld [vmem:[#allocation3 + $0x289] sm:$0xff] }
 0x776   :  { %v7293_v54 = vpop.permute.xlu1 %7292 }
 0x777   :  { %7471 = vst.msk [vmem:[#allocation5 + $0x70] sm:$0xff] %vm7456_vm7, %v7293_v54  ;;  %v6910_v61 = vpop.permute.xlu0 %6909  ;;  %v6784_v54 = vld [vmem:[#allocation3 + $0x290] sm:$0xff] }
 0x778   :  { %5779 = vrot.lane.b32.xlu1 %v5623_v36, %s9038_s1  ;;  %7087 = vst.msk [vmem:[#allocation5 + $0x78] sm:$0xff] %vm7071_vm6, %v6910_v61 }
 0x779   :  { %6931 = vrot.lane.b32.xlu0 %v5623_v36, %s9041_s28 }
 0x77a   :  { %v6141_v5 = vpop.permute.xlu1 %6140 }
 0x77b   :  { %6317 = vst.msk [vmem:[#allocation5 + $0x80] sm:$0xff] %vm6300_vm4, %v6141_v5  ;;  %v5758_v45 = vpop.permute.xlu0 %5757 }
 0x77c   :  { %7316 = vrot.lane.b32.xlu1 %v7162_v8, %s9042_s24  ;;  %5933 = vst.msk [vmem:[#allocation5 + $0x88] sm:$0xff] %vm5915_vm3, %v5758_v45  ;;  %v6015_v45 = vld [vmem:[#allocation3 + $0x291] sm:$0xff] }
 0x77d   :  { %6933 = vrot.lane.b32.xlu0 %v6778_v58, %s9041_s28 }
 0x77e   :  { %v6143_v25 = vpop.permute.xlu1 %6142  ;;  %v7535_v50 = vld [vmem:[#allocation5 + $0x70] sm:$0xff] }
 0x77f   :  { %6318 = vst.msk [vmem:[#allocation5 + $0x88] sm:$0xff] %vm6300_vm4, %v6143_v25  ;;  %8909 = vmatprep.mubr.msk.f32.mxu1 %vm7601_vm8, %v7535_v50  ;;  %v7295_v22 = vpop.permute.xlu0 %7294  ;;  %v6401_v50 = vld [vmem:[#allocation3 + $0x2af] sm:$0xff] }
 0x780   :  { %6164 = vrot.lane.b32.xlu1 %v7162_v8, %s9039_s0  ;;  %7472 = vst.msk [vmem:[#allocation5 + $0x78] sm:$0xff] %vm7456_vm7, %v7295_v22 }
 0x781   :  { %5781 = vrot.lane.b32.xlu0 %v6778_v58, %s9038_s1 }
 0x782   :  { %v6529_v23 = vpop.permute.xlu1 %6528 }
 0x783   :  { %6704 = vst.msk [vmem:[#allocation5 + $0x88] sm:$0xff] %vm6686_vm5, %v6529_v23  ;;  %v6527_v44 = vpop.permute.xlu0 %6526 }
 0x784   :  { %6166 = vrot.lane.b32.xlu1 %v6009_v40, %s9039_s0  ;;  %6703 = vst.msk [vmem:[#allocation5 + $0x80] sm:$0xff] %vm6686_vm5, %v6527_v44 }
 0x785   :  { %7318 = vrot.lane.b32.xlu0 %v6009_v40, %s9042_s24  ;;  %v6400_v40 = vld [vmem:[#allocation3 + $0x2a7] sm:$0xff] }
 0x786   :  { %v5760_v41 = vpop.permute.xlu1 %5759 }
 0x787   :  { %5934 = vst.msk [vmem:[#allocation5 + $0x90] sm:$0xff] %vm5915_vm3, %v5760_v41  ;;  %v6912_v34 = vpop.permute.xlu0 %6911  ;;  %v7536_v2 = vld [vmem:[#allocation5 + $0x78] sm:$0xff]  ;;  %v5631_v41 = vld [vmem:[#allocation3 + $0x2a8] sm:$0xff] }
 0x788   :  { %6552 = vrot.lane.b32.xlu1 %v6395_v12, %s9040_s22  ;;  %7088 = vst.msk [vmem:[#allocation5 + $0x80] sm:$0xff] %vm7071_vm6, %v6912_v34  ;;  %8910 = vmatmul.mubr.msk.f32.gmra.mxu1 %vm7601_vm8, %v7536_v2  ;;  %v7170_v2 = vld [vmem:[#allocation3 + $0x2a9] sm:$0xff] }
 0x789   :  { %6550 = vrot.lane.b32.xlu0 %v6394_v0, %s9040_s22 }
 0x78a   :  { %v7297_v4 = vpop.permute.xlu1 %7296 }
 0x78b   :  { %7473 = vst.msk [vmem:[#allocation5 + $0x80] sm:$0xff] %vm7456_vm7, %v7297_v4  ;;  %v6914_v1 = vpop.permute.xlu0 %6913  ;;  %v6786_v4 = vld [vmem:[#allocation3 + $0x2b0] sm:$0xff] }
 0x78c   :  { %5783 = vrot.lane.b32.xlu1 %v5625_v59, %s9038_s1  ;;  %7089 = vst.msk [vmem:[#allocation5 + $0x88] sm:$0xff] %vm7071_vm6, %v6914_v1 }
 0x78d   :  { %6935 = vrot.lane.b32.xlu0 %v5625_v59, %s9041_s28 }
 0x78e   :  { %v6145_v16 = vpop.permute.xlu1 %6144 }
 0x78f   :  { %6319 = vst.msk [vmem:[#allocation5 + $0x90] sm:$0xff] %vm6300_vm4, %v6145_v16  ;;  %v5762_v33 = vpop.permute.xlu0 %5761 }
 0x790   :  { %7320 = vrot.lane.b32.xlu1 %v7164_v53, %s9042_s24  ;;  %5935 = vst.msk [vmem:[#allocation5 + $0x98] sm:$0xff] %vm5915_vm3, %v5762_v33  ;;  %v6017_v33 = vld [vmem:[#allocation3 + $0x2b1] sm:$0xff] }
 0x791   :  { %6937 = vrot.lane.b32.xlu0 %v6780_v35, %s9041_s28 }
 0x792   :  { %v6147_v51 = vpop.permute.xlu1 %6146  ;;  %v7537_v10 = vld [vmem:[#allocation5 + $0x80] sm:$0xff] }
 0x793   :  { %6320 = vst.msk [vmem:[#allocation5 + $0x98] sm:$0xff] %vm6300_vm4, %v6147_v51  ;;  %8912 = vmatprep.mubr.msk.f32.mxu1 %vm7601_vm8, %v7537_v10  ;;  %v7299_v6 = vpop.permute.xlu0 %7298 }
 0x794   :  { %6168 = vrot.lane.b32.xlu1 %v7164_v53, %s9039_s0  ;;  %7474 = vst.msk [vmem:[#allocation5 + $0x88] sm:$0xff] %vm7456_vm7, %v7299_v6 }
 0x795   :  { %5785 = vrot.lane.b32.xlu0 %v6780_v35, %s9038_s1  ;;  %v12292_v35 = vld [vmem:[%s12824_s4] ss:$0 sm:$0xff] }
 0x796   :  { %v6533_v52 = vpop.permute.xlu1 %6532 }
 0x797   :  { %6706 = vst.msk [vmem:[#allocation5 + $0x98] sm:$0xff] %vm6686_vm5, %v6533_v52  ;;  %v6531_v13 = vpop.permute.xlu0 %6530 }
 0x798   :  { %6170 = vrot.lane.b32.xlu1 %v6011_v28, %s9039_s0  ;;  %6705 = vst.msk [vmem:[#allocation5 + $0x90] sm:$0xff] %vm6686_vm5, %v6531_v13  ;;  %v6403_v13 = vld [vmem:[#allocation3 + $0x2cf] sm:$0xff] }
 0x799   :  { %7322 = vrot.lane.b32.xlu0 %v6011_v28, %s9042_s24 }
 0x79a   :  { %v5764_v55 = vpop.permute.xlu1 %5763 }
 0x79b   :  { %5936 = vst.msk [vmem:[#allocation5 + $0xa0] sm:$0xff] %vm5915_vm3, %v5764_v55  ;;  %v6916_v60 = vpop.permute.xlu0 %6915  ;;  %v7538_v43 = vld [vmem:[#allocation5 + $0x88] sm:$0xff] }
 0x79c   :  { %6556 = vrot.lane.b32.xlu1 %v6397_v31, %s9040_s22  ;;  %7090 = vst.msk [vmem:[#allocation5 + $0x90] sm:$0xff] %vm7071_vm6, %v6916_v60  ;;  %8913 = vmatmul.mubr.msk.f32.gmra.mxu1 %vm7601_vm8, %v7538_v43  ;;  %v6402_v43 = vld [vmem:[#allocation3 + $0x2c7] sm:$0xff] }
 0x79d   :  { %6554 = vrot.lane.b32.xlu0 %v6396_v32, %s9040_s22 }
 0x79e   :  { %v7301_v62 = vpop.permute.xlu1 %7300 }
 0x79f   :  { %7475 = vst.msk [vmem:[#allocation5 + $0x90] sm:$0xff] %vm7456_vm7, %v7301_v62  ;;  %v6918_v46 = vpop.permute.xlu0 %6917 }
 0x7a0   :  { %5787 = vrot.lane.b32.xlu1 %v5627_v63, %s9038_s1  ;;  %7091 = vst.msk [vmem:[#allocation5 + $0x98] sm:$0xff] %vm7071_vm6, %v6918_v46 }
 0x7a1   :  { %6939 = vrot.lane.b32.xlu0 %v6781_v24, %s9041_s28  ;;  %v5633_v24 = vld [vmem:[#allocation3 + $0x2c8] sm:$0xff] }
 0x7a2   :  { %v6149_v47 = vpop.permute.xlu1 %6148 }
 0x7a3   :  { %6321 = vst.msk [vmem:[#allocation5 + $0xa0] sm:$0xff] %vm6300_vm4, %v6149_v47  ;;  %v5766_v21 = vpop.permute.xlu0 %5765 }
 0x7a4   :  { %7324 = vrot.lane.b32.xlu1 %v7166_v37, %s9042_s24  ;;  %5937 = vst.msk [vmem:[#allocation5 + $0xa8] sm:$0xff] %vm5915_vm3, %v5766_v21 }
 0x7a5   :  { %6941 = vrot.lane.b32.xlu0 %v6782_v48, %s9041_s28 }
 0x7a6   :  { %v6151_v29 = vpop.permute.xlu1 %6150  ;;  %v7539_v26 = vld [vmem:[#allocation5 + $0x90] sm:$0xff] }
 0x7a7   :  { %6322 = vst.msk [vmem:[#allocation5 + $0xa8] sm:$0xff] %vm6300_vm4, %v6151_v29  ;;  %8915 = vmatprep.mubr.msk.f32.mxu1 %vm7601_vm8, %v7539_v26  ;;  %v7303_v15 = vpop.permute.xlu0 %7302  ;;  %v7172_v29 = vld [vmem:[#allocation3 + $0x2c9] sm:$0xff] }
 0x7a8   :  { %6172 = vrot.lane.b32.xlu1 %v6012_v27, %s9039_s0  ;;  %7476 = vst.msk [vmem:[#allocation5 + $0x98] sm:$0xff] %vm7456_vm7, %v7303_v15  ;;  %v6788_v27 = vld [vmem:[#allocation3 + $0x2d0] sm:$0xff] }
 0x7a9   :  { %5789 = vrot.lane.b32.xlu0 %v5628_v20, %s9038_s1 }
 0x7aa   :  { %v6537_v38 = vpop.permute.xlu1 %6536 }
 0x7ab   :  { %6708 = vst.msk [vmem:[#allocation5 + $0xa8] sm:$0xff] %vm6686_vm5, %v6537_v38  ;;  %v6535_v49 = vpop.permute.xlu0 %6534 }
 0x7ac   :  { %6174 = vrot.lane.b32.xlu1 %v6013_v39, %s9039_s0  ;;  %6707 = vst.msk [vmem:[#allocation5 + $0xa0] sm:$0xff] %vm6686_vm5, %v6535_v49 }
 0x7ad   :  { %7326 = vrot.lane.b32.xlu0 %v7167_v14, %s9042_s24 }
 0x7ae   :  { %v5768_v3 = vpop.permute.xlu1 %5767 }
 0x7af   :  { %5938 = vst.msk [vmem:[#allocation5 + $0xb0] sm:$0xff] %vm5915_vm3, %v5768_v3  ;;  %v6920_v57 = vpop.permute.xlu0 %6919  ;;  %v7540_v11 = vld [vmem:[#allocation5 + $0x98] sm:$0xff] }
 0x7b0   :  { %6560 = vrot.lane.b32.xlu1 %v6399_v56, %s9040_s22  ;;  %7092 = vst.msk [vmem:[#allocation5 + $0xa0] sm:$0xff] %vm7071_vm6, %v6920_v57  ;;  %8916 = vmatmul.mubr.msk.f32.gmra.mxu1 %vm7601_vm8, %v7540_v11  ;;  %v6019_v56 = vld [vmem:[#allocation3 + $0x2d1] sm:$0xff] }
 0x7b1   :  { %6558 = vrot.lane.b32.xlu0 %v6398_v19, %s9040_s22 }
 0x7b2   :  { %v7305_v17 = vpop.permute.xlu1 %7304 }
 0x7b3   :  { %7477 = vst.msk [vmem:[#allocation5 + $0xa0] sm:$0xff] %vm7456_vm7, %v7305_v17  ;;  %v6922_v42 = vpop.permute.xlu0 %6921 }
 0x7b4   :  { %5791 = vrot.lane.b32.xlu1 %v5629_v30, %s9038_s1  ;;  %7093 = vst.msk [vmem:[#allocation5 + $0xa8] sm:$0xff] %vm7071_vm6, %v6922_v42  ;;  %v6405_v42 = vld [vmem:[#allocation3 + $0x2ef] sm:$0xff] }
 0x7b5   :  { %6943 = vrot.lane.b32.xlu0 %v5629_v30, %s9041_s28 }
 0x7b6   :  { %v6153_v9 = vpop.permute.xlu1 %6152 }
 0x7b7   :  { %6323 = vst.msk [vmem:[#allocation5 + $0xb0] sm:$0xff] %vm6300_vm4, %v6153_v9  ;;  %v5770_v18 = vpop.permute.xlu0 %5769 }
 0x7b8   :  { %7328 = vrot.lane.b32.xlu1 %v7168_v7, %s9042_s24  ;;  %5939 = vst.msk [vmem:[#allocation5 + $0xb8] sm:$0xff] %vm5915_vm3, %v5770_v18 }
 0x7b9   :  { %6945 = vrot.lane.b32.xlu0 %v6784_v54, %s9041_s28 }
 0x7ba   :  { %v6155_v36 = vpop.permute.xlu1 %6154  ;;  %v7541_v61 = vld [vmem:[#allocation5 + $0xa0] sm:$0xff] }
 0x7bb   :  { %6324 = vst.msk [vmem:[#allocation5 + $0xb8] sm:$0xff] %vm6300_vm4, %v6155_v36  ;;  %8918 = vmatprep.mubr.msk.f32.mxu1 %vm7601_vm8, %v7541_v61  ;;  %v7307_v5 = vpop.permute.xlu0 %7306  ;;  %v6404_v36 = vld [vmem:[#allocation3 + $0x2e7] sm:$0xff] }
 0x7bc   :  { %6176 = vrot.lane.b32.xlu1 %v7168_v7, %s9039_s0  ;;  %7478 = vst.msk [vmem:[#allocation5 + $0xa8] sm:$0xff] %vm7456_vm7, %v7307_v5 }
 0x7bd   :  { %5793 = vrot.lane.b32.xlu0 %v6784_v54, %s9038_s1 }
 0x7be   :  { %v6541_v8 = vpop.permute.xlu1 %6540 }
 0x7bf   :  { %6710 = vst.msk [vmem:[#allocation5 + $0xb8] sm:$0xff] %vm6686_vm5, %v6541_v8  ;;  %v6539_v58 = vpop.permute.xlu0 %6538  ;;  %v5635_v8 = vld [vmem:[#allocation3 + $0x2e8] sm:$0xff] }
 0x7c0   :  { %6178 = vrot.lane.b32.xlu1 %v6015_v45, %s9039_s0  ;;  %6709 = vst.msk [vmem:[#allocation5 + $0xb0] sm:$0xff] %vm6686_vm5, %v6539_v58 }
 0x7c1   :  { %7330 = vrot.lane.b32.xlu0 %v6015_v45, %s9042_s24 }
 0x7c2   :  { %v5772_v25 = vpop.permute.xlu1 %5771 }
 0x7c3   :  { %5940 = vst.msk [vmem:[#allocation5 + $0xc0] sm:$0xff] %vm5915_vm3, %v5772_v25  ;;  %v6924_v22 = vpop.permute.xlu0 %6923  ;;  %v7542_v23 = vld [vmem:[#allocation5 + $0xa8] sm:$0xff] }
 0x7c4   :  { %6564 = vrot.lane.b32.xlu1 %v6401_v50, %s9040_s22  ;;  %7094 = vst.msk [vmem:[#allocation5 + $0xb0] sm:$0xff] %vm7071_vm6, %v6924_v22  ;;  %8919 = vmatmul.mubr.msk.f32.gmra.mxu1 %vm7601_vm8, %v7542_v23  ;;  %v7174_v50 = vld [vmem:[#allocation3 + $0x2e9] sm:$0xff] }
 0x7c5   :  { %6562 = vrot.lane.b32.xlu0 %v6400_v40, %s9040_s22  ;;  %v6790_v40 = vld [vmem:[#allocation3 + $0x2f0] sm:$0xff] }
 0x7c6   :  { %v7309_v44 = vpop.permute.xlu1 %7308 }
 0x7c7   :  { %7479 = vst.msk [vmem:[#allocation5 + $0xb0] sm:$0xff] %vm7456_vm7, %v7309_v44  ;;  %v6926_v12 = vpop.permute.xlu0 %6925 }
 0x7c8   :  { %5795 = vrot.lane.b32.xlu1 %v5631_v41, %s9038_s1  ;;  %7095 = vst.msk [vmem:[#allocation5 + $0xb8] sm:$0xff] %vm7071_vm6, %v6926_v12 }
 0x7c9   :  { %6947 = vrot.lane.b32.xlu0 %v5631_v41, %s9041_s28 }
 0x7ca   :  { %v6157_v34 = vpop.permute.xlu1 %6156 }
 0x7cb   :  { %6325 = vst.msk [vmem:[#allocation5 + $0xc0] sm:$0xff] %vm6300_vm4, %v6157_v34  ;;  %v5774_v0 = vpop.permute.xlu0 %5773 }
 0x7cc   :  { %7332 = vrot.lane.b32.xlu1 %v7170_v2, %s9042_s24  ;;  %5941 = vst.msk [vmem:[#allocation5 + $0xc8] sm:$0xff] %vm5915_vm3, %v5774_v0 }
 0x7cd   :  { %6949 = vrot.lane.b32.xlu0 %v6786_v4, %s9041_s28 }
 0x7ce   :  { %v6159_v59 = vpop.permute.xlu1 %6158  ;;  %v7543_v1 = vld [vmem:[#allocation5 + $0xb0] sm:$0xff] }
 0x7cf   :  { %6326 = vst.msk [vmem:[#allocation5 + $0xc8] sm:$0xff] %vm6300_vm4, %v6159_v59  ;;  %8921 = vmatprep.mubr.msk.f32.mxu1 %vm7601_vm8, %v7543_v1  ;;  %v7311_v16 = vpop.permute.xlu0 %7310 }
 0x7d0   :  { %6180 = vrot.lane.b32.xlu1 %v7170_v2, %s9039_s0  ;;  %7480 = vst.msk [vmem:[#allocation5 + $0xb8] sm:$0xff] %vm7456_vm7, %v7311_v16  ;;  %v6021_v16 = vld [vmem:[#allocation3 + $0x2f1] sm:$0xff] }
 0x7d1   :  { %5797 = vrot.lane.b32.xlu0 %v6786_v4, %s9038_s1 }
 0x7d2   :  { %v6545_v53 = vpop.permute.xlu1 %6544 }
 0x7d3   :  { %6712 = vst.msk [vmem:[#allocation5 + $0xc8] sm:$0xff] %vm6686_vm5, %v6545_v53  ;;  %v6543_v51 = vpop.permute.xlu0 %6542 }
 0x7d4   :  { %6182 = vrot.lane.b32.xlu1 %v6017_v33, %s9039_s0  ;;  %6711 = vst.msk [vmem:[#allocation5 + $0xc0] sm:$0xff] %vm6686_vm5, %v6543_v51  ;;  %v8890_v10 = vpop.f32.mrf.mxu1 }
 0x7d5   :  { %v7866_v6 = vadd.f32 %v8890_v10, %v12292_v35  ;;  %7334 = vrot.lane.b32.xlu0 %v6017_v33, %s9042_s24 }
 0x7d6   :  { %v5776_v52 = vpop.permute.xlu1 %5775  ;;  %v7860_v28 = vpop.f32.mrf.mxu1 }
 0x7d7   :  { %5942 = vst.msk [vmem:[#allocation5 + $0xd0] sm:$0xff] %vm5915_vm3, %v5776_v52  ;;  %v8180_v31 = vmax.f32 %v7866_v6, 0.0  ;;  %v7861_v55 = vadd.f32 %v12292_v35, %v7860_v28  ;;  %v6928_v32 = vpop.permute.xlu0 %6927  ;;  %v7544_v60 = vld [vmem:[#allocation5 + $0xb8] sm:$0xff]  ;;  %v6407_v52 = vld [vmem:[#allocation3 + $0x30f] sm:$0xff] }
 0x7d8   :  { %6568 = vrot.lane.b32.xlu1 %v6403_v13, %s9040_s22  ;;  %7096 = vst.msk [vmem:[#allocation5 + $0xc0] sm:$0xff] %vm7071_vm6, %v6928_v32  ;;  %8922 = vmatmul.mubr.msk.f32.gmra.mxu1 %vm7601_vm8, %v7544_v60  ;;  %v5637_v60 = vld [vmem:[#allocation3 + $0x308] sm:$0xff] }
 0x7d9   :  { %v8179_v62 = vmax.f32 %v7861_v55, 0.0  ;;  %6566 = vrot.lane.b32.xlu0 %v6402_v43, %s9040_s22  ;;  %v8245_v46 = vsel %vm8243_vm9, %v8180_v31, 0.0  ;;  %v6406_v55 = vld [vmem:[#allocation3 + $0x307] sm:$0xff] }
 0x7da   :  { %v7313_v63 = vpop.permute.xlu1 %7312 }
 0x7db   :  { %7481 = vst.msk [vmem:[#allocation5 + $0xc0] sm:$0xff] %vm7456_vm7, %v7313_v63  ;;  %v8244_v37 = vsel %vm8243_vm9, %v8179_v62, 0.0  ;;  %v6930_v47 = vpop.permute.xlu0 %6929 }
 0x7dc   :  { %5799 = vrot.lane.b32.xlu1 %v5633_v24, %s9038_s1  ;;  %v8246_v48 = vadd.f32 %v8245_v46, %v8244_v37  ;;  %7097 = vst.msk [vmem:[#allocation5 + $0xc8] sm:$0xff] %vm7071_vm6, %v6930_v47  ;;  %v7176_v37 = vld [vmem:[#allocation3 + $0x309] sm:$0xff] }
 0x7dd   :  { %6951 = vrot.lane.b32.xlu0 %v5633_v24, %s9041_s28 }
 0x7de   :  { %v6161_v21 = vpop.permute.xlu1 %6160 }
 0x7df   :  { %6327 = vst.msk [vmem:[#allocation5 + $0xd0] sm:$0xff] %vm6300_vm4, %v6161_v21  ;;  %v5778_v26 = vpop.permute.xlu0 %5777  ;;  %v6792_v21 = vld [vmem:[#allocation3 + $0x310] sm:$0xff] }
 0x7e0   :  { %7336 = vrot.lane.b32.xlu1 %v7172_v29, %s9042_s24  ;;  %5943 = vst.msk [vmem:[#allocation5 + $0xd8] sm:$0xff] %vm5915_vm3, %v5778_v26 }
 0x7e1   :  { %6953 = vrot.lane.b32.xlu0 %v6788_v27, %s9041_s28 }
 0x7e2   :  { %v6163_v15 = vpop.permute.xlu1 %6162  ;;  %v7545_v20 = vld [vmem:[#allocation5 + $0xc0] sm:$0xff] }
 0x7e3   :  { %6328 = vst.msk [vmem:[#allocation5 + $0xd8] sm:$0xff] %vm6300_vm4, %v6163_v15  ;;  %8924 = vmatprep.mubr.msk.f32.mxu1 %vm7601_vm8, %v7545_v20  ;;  %v7315_v38 = vpop.permute.xlu0 %7314 }
 0x7e4   :  { %6184 = vrot.lane.b32.xlu1 %v7172_v29, %s9039_s0  ;;  %7482 = vst.msk [vmem:[#allocation5 + $0xc8] sm:$0xff] %vm7456_vm7, %v7315_v38  ;;  %v8893_v39 = vpop.f32.mrf.mxu1 }
 0x7e5   :  { %v7876_v14 = vadd.f32 %v8893_v39, %v12292_v35  ;;  %5801 = vrot.lane.b32.xlu0 %v6788_v27, %s9038_s1 }
 0x7e6   :  { %v6549_v49 = vpop.permute.xlu1 %6548  ;;  %v7870_v3 = vpop.f32.mrf.mxu1 }
 0x7e7   :  { %6714 = vst.msk [vmem:[#allocation5 + $0xd8] sm:$0xff] %vm6686_vm5, %v6549_v49  ;;  %v7871_v57 = vadd.f32 %v12292_v35, %v7870_v3  ;;  %v6547_v11 = vpop.permute.xlu0 %6546  ;;  %v8182_v19 = vmax.f32 %v7876_v14, 0.0  ;;  %v6023_v3 = vld [vmem:[#allocation3 + $0x311] sm:$0xff] }
 0x7e8   :  { %6186 = vrot.lane.b32.xlu1 %v6019_v56, %s9039_s0  ;;  %6713 = vst.msk [vmem:[#allocation5 + $0xd0] sm:$0xff] %vm6686_vm5, %v6547_v11 }
 0x7e9   :  { %v8181_v17 = vmax.f32 %v7871_v57, 0.0  ;;  %7338 = vrot.lane.b32.xlu0 %v6019_v56, %s9042_s24  ;;  %v8249_v61 = vsel %vm8243_vm9, %v8182_v19, 0.0  ;;  %v6409_v19 = vld [vmem:[#allocation3 + $0x32f] sm:$0xff] }
 0x7ea   :  { %v5780_v30 = vpop.permute.xlu1 %5779 }
 0x7eb   :  { %5944 = vst.msk [vmem:[#allocation5 + $0xe0] sm:$0xff] %vm5915_vm3, %v5780_v30  ;;  %v8247_v9 = vsel %vm8243_vm9, %v8181_v17, 0.0  ;;  %v6932_v7 = vpop.permute.xlu0 %6931  ;;  %v7546_v18 = vld [vmem:[#allocation5 + $0xc8] sm:$0xff] }
 0x7ec   :  { %6572 = vrot.lane.b32.xlu1 %v6405_v42, %s9040_s22  ;;  %v8248_v54 = vadd.f32 %v8247_v9, %v8246_v48  ;;  %7098 = vst.msk [vmem:[#allocation5 + $0xd0] sm:$0xff] %vm7071_vm6, %v6932_v7  ;;  %8925 = vmatmul.mubr.msk.f32.gmra.mxu1 %vm7601_vm8, %v7546_v18  ;;  %v6408_v9 = vld [vmem:[#allocation3 + $0x327] sm:$0xff] }
 0x7ed   :  { %6570 = vrot.lane.b32.xlu0 %v6404_v36, %s9040_s22  ;;  %v5639_v36 = vld [vmem:[#allocation3 + $0x328] sm:$0xff] }
 0x7ee   :  { %v7317_v5 = vpop.permute.xlu1 %7316  ;;  %v8250_v45 = vadd.f32 %v8249_v61, %v8248_v54 }
 0x7ef   :  { %7483 = vst.msk [vmem:[#allocation5 + $0xd0] sm:$0xff] %vm7456_vm7, %v7317_v5  ;;  %v6934_v58 = vpop.permute.xlu0 %6933 }
 0x7f0   :  { %5803 = vrot.lane.b32.xlu1 %v5635_v8, %s9038_s1  ;;  %7099 = vst.msk [vmem:[#allocation5 + $0xd8] sm:$0xff] %vm7071_vm6, %v6934_v58 }
 0x7f1   :  { %6955 = vrot.lane.b32.xlu0 %v5635_v8, %s9041_s28 }
 0x7f2   :  { %v6165_v25 = vpop.permute.xlu1 %6164 }
 0x7f3   :  { %6329 = vst.msk [vmem:[#allocation5 + $0xe0] sm:$0xff] %vm6300_vm4, %v6165_v25  ;;  %v5782_v22 = vpop.permute.xlu0 %5781  ;;  %v7178_v25 = vld [vmem:[#allocation3 + $0x329] sm:$0xff] }
 0x7f4   :  { %7340 = vrot.lane.b32.xlu1 %v7174_v50, %s9042_s24  ;;  %5945 = vst.msk [vmem:[#allocation5 + $0xe8] sm:$0xff] %vm5915_vm3, %v5782_v22  ;;  %v8896_v23 = vpop.f32.mrf.mxu1 }
 0x7f5   :  { %v7886_v44 = vadd.f32 %v8896_v23, %v12292_v35  ;;  %6957 = vrot.lane.b32.xlu0 %v6790_v40, %s9041_s28 }
 0x7f6   :  { %v6167_v41 = vpop.permute.xlu1 %6166  ;;  %v7547_v12 = vld [vmem:[#allocation5 + $0xd0] sm:$0xff]  ;;  %v7880_v34 = vpop.f32.mrf.mxu1 }
 0x7f7   :  { %6330 = vst.msk [vmem:[#allocation5 + $0xe8] sm:$0xff] %vm6300_vm4, %v6167_v41  ;;  %8927 = vmatprep.mubr.msk.f32.mxu1 %vm7601_vm8, %v7547_v12  ;;  %v7881_v2 = vadd.f32 %v12292_v35, %v7880_v34  ;;  %v7319_v0 = vpop.permute.xlu0 %7318  ;;  %v8184_v4 = vmax.f32 %v7886_v44, 0.0 }
 0x7f8   :  { %6188 = vrot.lane.b32.xlu1 %v7174_v50, %s9039_s0  ;;  %7484 = vst.msk [vmem:[#allocation5 + $0xd8] sm:$0xff] %vm7456_vm7, %v7319_v0 }
 0x7f9   :  { %v8183_v59 = vmax.f32 %v7881_v2, 0.0  ;;  %5805 = vrot.lane.b32.xlu0 %v6790_v40, %s9038_s1  ;;  %v8253_v10 = vsel %vm8243_vm9, %v8184_v4, 0.0  ;;  %v6794_v40 = vld [vmem:[#allocation3 + $0x330] sm:$0xff] }
 0x7fa   :  { %v6553_v1 = vpop.permute.xlu1 %6552  ;;  %v6025_v4 = vld [vmem:[#allocation3 + $0x331] sm:$0xff] }
 0x7fb   :  { %6716 = vst.msk [vmem:[#allocation5 + $0xe8] sm:$0xff] %vm6686_vm5, %v6553_v1  ;;  %v8251_v53 = vsel %vm8243_vm9, %v8183_v59, 0.0  ;;  %v6551_v33 = vpop.permute.xlu0 %6550 }
 0x7fc   :  { %6190 = vrot.lane.b32.xlu1 %v6021_v16, %s9039_s0  ;;  %v8252_v51 = vadd.f32 %v8251_v53, %v8250_v45  ;;  %6715 = vst.msk [vmem:[#allocation5 + $0xe0] sm:$0xff] %vm6686_vm5, %v6551_v33 }
 0x7fd   :  { %7342 = vrot.lane.b32.xlu0 %v6021_v16, %s9042_s24 }
 0x7fe   :  { %v5784_v6 = vpop.permute.xlu1 %5783  ;;  %v8254_v28 = vadd.f32 %v8253_v10, %v8252_v51  ;;  %v6411_v51 = vld [vmem:[#allocation3 + $0x34f] sm:$0xff] }
 0x7ff   :  { %5946 = vst.msk [vmem:[#allocation5 + $0xf0] sm:$0xff] %vm5915_vm3, %v5784_v6  ;;  %v6936_v13 = vpop.permute.xlu0 %6935  ;;  %v7548_v31 = vld [vmem:[#allocation5 + $0xd8] sm:$0xff] }
 0x800   :  { %6576 = vrot.lane.b32.xlu1 %v6407_v52, %s9040_s22  ;;  %7100 = vst.msk [vmem:[#allocation5 + $0xe0] sm:$0xff] %vm7071_vm6, %v6936_v13  ;;  %8928 = vmatmul.mubr.msk.f32.gmra.mxu1 %vm7601_vm8, %v7548_v31 }
 0x801   :  { %6574 = vrot.lane.b32.xlu0 %v6406_v55, %s9040_s22 }
 0x802   :  { %v7321_v32 = vpop.permute.xlu1 %7320 }
 0x803   :  { %7485 = vst.msk [vmem:[#allocation5 + $0xe0] sm:$0xff] %vm7456_vm7, %v7321_v32  ;;  %v6938_v43 = vpop.permute.xlu0 %6937  ;;  %v5641_v32 = vld [vmem:[#allocation3 + $0x348] sm:$0xff] }
 0x804   :  { %5807 = vrot.lane.b32.xlu1 %v5637_v60, %s9038_s1  ;;  %7101 = vst.msk [vmem:[#allocation5 + $0xe8] sm:$0xff] %vm7071_vm6, %v6938_v43  ;;  %v8899_v62 = vpop.f32.mrf.mxu1 }
 0x805   :  { %v7896_v63 = vadd.f32 %v8899_v62, %v12292_v35  ;;  %6959 = vrot.lane.b32.xlu0 %v5637_v60, %s9041_s28 }
 0x806   :  { %v6169_v24 = vpop.permute.xlu1 %6168  ;;  %v7890_v46 = vpop.f32.mrf.mxu1 }
 0x807   :  { %6331 = vst.msk [vmem:[#allocation5 + $0xf0] sm:$0xff] %vm6300_vm4, %v6169_v24  ;;  %v7891_v47 = vadd.f32 %v12292_v35, %v7890_v46  ;;  %v5786_v48 = vpop.permute.xlu0 %5785  ;;  %v8186_v29 = vmax.f32 %v7896_v63, 0.0  ;;  %v7180_v46 = vld [vmem:[#allocation3 + $0x349] sm:$0xff] }
 0x808   :  { %7344 = vrot.lane.b32.xlu1 %v7176_v37, %s9042_s24  ;;  %5947 = vst.msk [vmem:[#allocation5 + $0xf8] sm:$0xff] %vm5915_vm3, %v5786_v48  ;;  %v6796_v48 = vld [vmem:[#allocation3 + $0x350] sm:$0xff] }
 0x809   :  { %v8185_v26 = vmax.f32 %v7891_v47, 0.0  ;;  %6961 = vrot.lane.b32.xlu0 %v6792_v21, %s9041_s28  ;;  %v8257_v14 = vsel %vm8243_vm9, %v8186_v29, 0.0 }
 0x80a   :  { %v6171_v27 = vpop.permute.xlu1 %6170  ;;  %v7549_v15 = vld [vmem:[#allocation5 + $0xe0] sm:$0xff] }
 0x80b   :  { %6332 = vst.msk [vmem:[#allocation5 + $0xf8] sm:$0xff] %vm6300_vm4, %v6171_v27  ;;  %8930 = vmatprep.mubr.msk.f32.mxu1 %vm7601_vm8, %v7549_v15  ;;  %v8255_v20 = vsel %vm8243_vm9, %v8185_v26, 0.0  ;;  %v7323_v38 = vpop.permute.xlu0 %7322 }
 0x80c   :  { %6192 = vrot.lane.b32.xlu1 %v7176_v37, %s9039_s0  ;;  %v8256_v39 = vadd.f32 %v8255_v20, %v8254_v28  ;;  %7486 = vst.msk [vmem:[#allocation5 + $0xe8] sm:$0xff] %vm7456_vm7, %v7323_v38  ;;  %v6410_v28 = vld [vmem:[#allocation3 + $0x347] sm:$0xff] }
 0x80d   :  { %5809 = vrot.lane.b32.xlu0 %v6792_v21, %s9038_s1 }
 0x80e   :  { %v6557_v49 = vpop.permute.xlu1 %6556  ;;  %v8258_v56 = vadd.f32 %v8257_v14, %v8256_v39  ;;  %v6027_v39 = vld [vmem:[#allocation3 + $0x351] sm:$0xff] }
 0x80f   :  { %6718 = vst.msk [vmem:[#allocation5 + $0xf8] sm:$0xff] %vm6686_vm5, %v6557_v49  ;;  %v6555_v57 = vpop.permute.xlu0 %6554 }
 0x810   :  { %6194 = vrot.lane.b32.xlu1 %v6023_v3, %s9039_s0  ;;  %6717 = vst.msk [vmem:[#allocation5 + $0xf0] sm:$0xff] %vm6686_vm5, %v6555_v57 }
 0x811   :  { %7346 = vrot.lane.b32.xlu0 %v6023_v3, %s9042_s24 }
 0x812   :  { %v5788_v11 = vpop.permute.xlu1 %5787 }
 0x813   :  { %5948 = vst.msk [vmem:[#allocation5 + $0x100] sm:$0xff] %vm5915_vm3, %v5788_v11  ;;  %v6940_v17 = vpop.permute.xlu0 %6939  ;;  %v7550_v30 = vld [vmem:[#allocation5 + $0xe8] sm:$0xff] }
 0x814   :  { %6580 = vrot.lane.b32.xlu1 %v6409_v19, %s9040_s22  ;;  %7102 = vst.msk [vmem:[#allocation5 + $0xf0] sm:$0xff] %vm7071_vm6, %v6940_v17  ;;  %v8902_v42 = vpop.f32.mrf.mxu1  ;;  %8931 = vmatmul.mubr.msk.f32.gmra.mxu1 %vm7601_vm8, %v7550_v30  ;;  %v6413_v11 = vld [vmem:[#allocation3 + $0x36f] sm:$0xff] }
 0x815   :  { %v7906_v7 = vadd.f32 %v8902_v42, %v12292_v35  ;;  %6578 = vrot.lane.b32.xlu0 %v6408_v9, %s9040_s22  ;;  %v6412_v9 = vld [vmem:[#allocation3 + $0x367] sm:$0xff] }
 0x816   :  { %v7325_v18 = vpop.permute.xlu1 %7324  ;;  %v7900_v54 = vpop.f32.mrf.mxu1 }
 0x817   :  { %7487 = vst.msk [vmem:[#allocation5 + $0xf0] sm:$0xff] %vm7456_vm7, %v7325_v18  ;;  %v7901_v61 = vadd.f32 %v12292_v35, %v7900_v54  ;;  %v6942_v5 = vpop.permute.xlu0 %6941  ;;  %v8188_v8 = vmax.f32 %v7906_v7, 0.0  ;;  %v5643_v54 = vld [vmem:[#allocation3 + $0x368] sm:$0xff] }
 0x818   :  { %5811 = vrot.lane.b32.xlu1 %v5639_v36, %s9038_s1  ;;  %7103 = vst.msk [vmem:[#allocation5 + $0xf8] sm:$0xff] %vm7071_vm6, %v6942_v5 }
 0x819   :  { %v8187_v45 = vmax.f32 %v7901_v61, 0.0  ;;  %6963 = vrot.lane.b32.xlu0 %v5639_v36, %s9041_s28  ;;  %v8261_v44 = vsel %vm8243_vm9, %v8188_v8, 0.0  ;;  %v7182_v8 = vld [vmem:[#allocation3 + $0x369] sm:$0xff] }
 0x81a   :  { %v6173_v58 = vpop.permute.xlu1 %6172 }
 0x81b   :  { %6333 = vst.msk [vmem:[#allocation5 + $0x100] sm:$0xff] %vm6300_vm4, %v6173_v58  ;;  %v8259_v50 = vsel %vm8243_vm9, %v8187_v45, 0.0  ;;  %v5790_v22 = vpop.permute.xlu0 %5789  ;;  %v6798_v58 = vld [vmem:[#allocation3 + $0x370] sm:$0xff] }
 0x81c   :  { %7348 = vrot.lane.b32.xlu1 %v7178_v25, %s9042_s24  ;;  %v8260_v23 = vadd.f32 %v8259_v50, %v8258_v56  ;;  %5949 = vst.msk [vmem:[#allocation5 + $0x108] sm:$0xff] %vm5915_vm3, %v5790_v22 }
 0x81d   :  { %6965 = vrot.lane.b32.xlu0 %v6794_v40, %s9041_s28 }
 0x81e   :  { %v6175_v41 = vpop.permute.xlu1 %6174  ;;  %v7551_v12 = vld [vmem:[#allocation5 + $0xf0] sm:$0xff]  ;;  %v8262_v34 = vadd.f32 %v8261_v44, %v8260_v23 }
 0x81f   :  { %6334 = vst.msk [vmem:[#allocation5 + $0x108] sm:$0xff] %vm6300_vm4, %v6175_v41  ;;  %8933 = vmatprep.mubr.msk.f32.mxu1 %vm7601_vm8, %v7551_v12  ;;  %v7327_v2 = vpop.permute.xlu0 %7326  ;;  %v6029_v12 = vld [vmem:[#allocation3 + $0x371] sm:$0xff] }
 0x820   :  { %6196 = vrot.lane.b32.xlu1 %v7178_v25, %s9039_s0  ;;  %7488 = vst.msk [vmem:[#allocation5 + $0xf8] sm:$0xff] %vm7456_vm7, %v7327_v2 }
 0x821   :  { %5813 = vrot.lane.b32.xlu0 %v6794_v40, %s9038_s1 }
 0x822   :  { %v6561_v0 = vpop.permute.xlu1 %6560 }
 0x823   :  { %6720 = vst.msk [vmem:[#allocation5 + $0x108] sm:$0xff] %vm6686_vm5, %v6561_v0  ;;  %v6559_v59 = vpop.permute.xlu0 %6558 }
 0x824   :  { %6198 = vrot.lane.b32.xlu1 %v6025_v4, %s9039_s0  ;;  %6719 = vst.msk [vmem:[#allocation5 + $0x100] sm:$0xff] %vm6686_vm5, %v6559_v59  ;;  %v8905_v1 = vpop.f32.mrf.mxu1 }
 0x825   :  { %v7916_v16 = vadd.f32 %v8905_v1, %v12292_v35  ;;  %7350 = vrot.lane.b32.xlu0 %v6025_v4, %s9042_s24  ;;  %v6415_v1 = vld [vmem:[#allocation3 + $0x38f] sm:$0xff] }
 0x826   :  { %v5792_v53 = vpop.permute.xlu1 %5791  ;;  %v7910_v33 = vpop.f32.mrf.mxu1 }
 0x827   :  { %5950 = vst.msk [vmem:[#allocation5 + $0x110] sm:$0xff] %vm5915_vm3, %v5792_v53  ;;  %v7911_v10 = vadd.f32 %v12292_v35, %v7910_v33  ;;  %v6944_v6 = vpop.permute.xlu0 %6943  ;;  %v7552_v52 = vld [vmem:[#allocation5 + $0xf8] sm:$0xff]  ;;  %v8190_v13 = vmax.f32 %v7916_v16, 0.0 }
 0x828   :  { %6584 = vrot.lane.b32.xlu1 %v6411_v51, %s9040_s22  ;;  %7104 = vst.msk [vmem:[#allocation5 + $0x100] sm:$0xff] %vm7071_vm6, %v6944_v6  ;;  %8934 = vmatmul.mubr.msk.f32.gmra.mxu1 %vm7601_vm8, %v7552_v52 }
 0x829   :  { %v8189_v31 = vmax.f32 %v7911_v10, 0.0  ;;  %6582 = vrot.lane.b32.xlu0 %v6410_v28, %s9040_s22  ;;  %v8265_v63 = vsel %vm8243_vm9, %v8190_v13, 0.0  ;;  %v6414_v10 = vld [vmem:[#allocation3 + $0x387] sm:$0xff] }
 0x82a   :  { %v7329_v55 = vpop.permute.xlu1 %7328  ;;  %v5645_v28 = vld [vmem:[#allocation3 + $0x388] sm:$0xff] }
 0x82b   :  { %7489 = vst.msk [vmem:[#allocation5 + $0x100] sm:$0xff] %vm7456_vm7, %v7329_v55  ;;  %v8263_v60 = vsel %vm8243_vm9, %v8189_v31, 0.0  ;;  %v6946_v43 = vpop.permute.xlu0 %6945 }
 0x82c   :  { %5815 = vrot.lane.b32.xlu1 %v5641_v32, %s9038_s1  ;;  %v8264_v62 = vadd.f32 %v8263_v60, %v8262_v34  ;;  %7105 = vst.msk [vmem:[#allocation5 + $0x108] sm:$0xff] %vm7071_vm6, %v6946_v43  ;;  %v6800_v43 = vld [vmem:[#allocation3 + $0x390] sm:$0xff] }
 0x82d   :  { %6967 = vrot.lane.b32.xlu0 %v5641_v32, %s9041_s28  ;;  %v7184_v32 = vld [vmem:[#allocation3 + $0x389] sm:$0xff] }
 0x82e   :  { %v6177_v24 = vpop.permute.xlu1 %6176  ;;  %v8266_v37 = vadd.f32 %v8265_v63, %v8264_v62 }
 0x82f   :  { %6335 = vst.msk [vmem:[#allocation5 + $0x110] sm:$0xff] %vm6300_vm4, %v6177_v24  ;;  %v5794_v47 = vpop.permute.xlu0 %5793 }
 0x830   :  { %7352 = vrot.lane.b32.xlu1 %v7180_v46, %s9042_s24  ;;  %5951 = vst.msk [vmem:[#allocation5 + $0x118] sm:$0xff] %vm5915_vm3, %v5794_v47 }
 0x831   :  { %6969 = vrot.lane.b32.xlu0 %v6796_v48, %s9041_s28 }
 0x832   :  { %v6179_v21 = vpop.permute.xlu1 %6178  ;;  %v7553_v29 = vld [vmem:[#allocation5 + $0x100] sm:$0xff] }
 0x833   :  { %6336 = vst.msk [vmem:[#allocation5 + $0x118] sm:$0xff] %vm6300_vm4, %v6179_v21  ;;  %8936 = vmatprep.mubr.msk.f32.mxu1 %vm7601_vm8, %v7553_v29  ;;  %v7331_v26 = vpop.permute.xlu0 %7330  ;;  %v6031_v21 = vld [vmem:[#allocation3 + $0x391] sm:$0xff] }
 0x834   :  { %6200 = vrot.lane.b32.xlu1 %v7180_v46, %s9039_s0  ;;  %7490 = vst.msk [vmem:[#allocation5 + $0x108] sm:$0xff] %vm7456_vm7, %v7331_v26  ;;  %v8908_v27 = vpop.f32.mrf.mxu1 }
 0x835   :  { %v7926_v15 = vadd.f32 %v8908_v27, %v12292_v35  ;;  %5817 = vrot.lane.b32.xlu0 %v6796_v48, %s9038_s1 }
 0x836   :  { %v6565_v20 = vpop.permute.xlu1 %6564  ;;  %v7920_v38 = vpop.f32.mrf.mxu1 }
 0x837   :  { %6722 = vst.msk [vmem:[#allocation5 + $0x118] sm:$0xff] %vm6686_vm5, %v6565_v20  ;;  %v7921_v14 = vadd.f32 %v12292_v35, %v7920_v38  ;;  %v6563_v49 = vpop.permute.xlu0 %6562  ;;  %v8192_v3 = vmax.f32 %v7926_v15, 0.0  ;;  %v6417_v38 = vld [vmem:[#allocation3 + $0x3af] sm:$0xff] }
 0x838   :  { %6202 = vrot.lane.b32.xlu1 %v6027_v39, %s9039_s0  ;;  %6721 = vst.msk [vmem:[#allocation5 + $0x110] sm:$0xff] %vm6686_vm5, %v6563_v49 }
 0x839   :  { %v8191_v56 = vmax.f32 %v7921_v14, 0.0  ;;  %7354 = vrot.lane.b32.xlu0 %v6027_v39, %s9042_s24  ;;  %v8269_v7 = vsel %vm8243_vm9, %v8192_v3, 0.0 }
 0x83a   :  { %v5796_v57 = vpop.permute.xlu1 %5795 }
 0x83b   :  { %5952 = vst.msk [vmem:[#allocation5 + $0x120] sm:$0xff] %vm5915_vm3, %v5796_v57  ;;  %v8267_v19 = vsel %vm8243_vm9, %v8191_v56, 0.0  ;;  %v6948_v17 = vpop.permute.xlu0 %6947  ;;  %v7554_v30 = vld [vmem:[#allocation5 + $0x108] sm:$0xff] }
 0x83c   :  { %6588 = vrot.lane.b32.xlu1 %v6413_v11, %s9040_s22  ;;  %v8268_v42 = vadd.f32 %v8267_v19, %v8266_v37  ;;  %7106 = vst.msk [vmem:[#allocation5 + $0x110] sm:$0xff] %vm7071_vm6, %v6948_v17  ;;  %8937 = vmatmul.mubr.msk.f32.gmra.mxu1 %vm7601_vm8, %v7554_v30  ;;  %v6416_v56 = vld [vmem:[#allocation3 + $0x3a7] sm:$0xff] }
 0x83d   :  { %6586 = vrot.lane.b32.xlu0 %v6412_v9, %s9040_s22  ;;  %v5647_v19 = vld [vmem:[#allocation3 + $0x3a8] sm:$0xff] }
 0x83e   :  { %v7333_v18 = vpop.permute.xlu1 %7332  ;;  %v8270_v36 = vadd.f32 %v8269_v7, %v8268_v42  ;;  %v7186_v9 = vld [vmem:[#allocation3 + $0x3a9] sm:$0xff] }
 0x83f   :  { %7491 = vst.msk [vmem:[#allocation5 + $0x110] sm:$0xff] %vm7456_vm7, %v7333_v18  ;;  %v6950_v61 = vpop.permute.xlu0 %6949  ;;  %v6802_v18 = vld [vmem:[#allocation3 + $0x3b0] sm:$0xff] }
 0x840   :  { %5819 = vrot.lane.b32.xlu1 %v5643_v54, %s9038_s1  ;;  %7107 = vst.msk [vmem:[#allocation5 + $0x118] sm:$0xff] %vm7071_vm6, %v6950_v61 }
 0x841   :  { %6971 = vrot.lane.b32.xlu0 %v5643_v54, %s9041_s28 }
 0x842   :  { %v6181_v5 = vpop.permute.xlu1 %6180 }
 0x843   :  { %6337 = vst.msk [vmem:[#allocation5 + $0x120] sm:$0xff] %vm6300_vm4, %v6181_v5  ;;  %v5798_v45 = vpop.permute.xlu0 %5797 }
 0x844   :  { %7356 = vrot.lane.b32.xlu1 %v7182_v8, %s9042_s24  ;;  %5953 = vst.msk [vmem:[#allocation5 + $0x128] sm:$0xff] %vm5915_vm3, %v5798_v45 }
 0x845   :  { %6973 = vrot.lane.b32.xlu0 %v6798_v58, %s9041_s28 }
 0x846   :  { %v6183_v25 = vpop.permute.xlu1 %6182  ;;  %v7555_v50 = vld [vmem:[#allocation5 + $0x110] sm:$0xff] }
 0x847   :  { %6338 = vst.msk [vmem:[#allocation5 + $0x128] sm:$0xff] %vm6300_vm4, %v6183_v25  ;;  %8939 = vmatprep.mubr.msk.f32.mxu1 %vm7601_vm8, %v7555_v50  ;;  %v7335_v22 = vpop.permute.xlu0 %7334  ;;  %v6033_v25 = vld [vmem:[#allocation3 + $0x3b1] sm:$0xff] }
 0x848   :  { %6204 = vrot.lane.b32.xlu1 %v7182_v8, %s9039_s0  ;;  %7492 = vst.msk [vmem:[#allocation5 + $0x118] sm:$0xff] %vm7456_vm7, %v7335_v22  ;;  %v8911_v23 = vpop.f32.mrf.mxu1 }
 0x849   :  { %v7936_v40 = vadd.f32 %v8911_v23, %v12292_v35  ;;  %5821 = vrot.lane.b32.xlu0 %v6798_v58, %s9038_s1 }
 0x84a   :  { %v6569_v44 = vpop.permute.xlu1 %6568  ;;  %v7930_v41 = vpop.f32.mrf.mxu1 }
 0x84b   :  { %6724 = vst.msk [vmem:[#allocation5 + $0x128] sm:$0xff] %vm6686_vm5, %v6569_v44  ;;  %v7931_v34 = vadd.f32 %v12292_v35, %v7930_v41  ;;  %v6567_v2 = vpop.permute.xlu0 %6566  ;;  %v8194_v0 = vmax.f32 %v7936_v40, 0.0  ;;  %v6419_v41 = vld [vmem:[#allocation3 + $0x3cf] sm:$0xff] }
 0x84c   :  { %6206 = vrot.lane.b32.xlu1 %v6029_v12, %s9039_s0  ;;  %6723 = vst.msk [vmem:[#allocation5 + $0x120] sm:$0xff] %vm6686_vm5, %v6567_v2 }
 0x84d   :  { %v8193_v4 = vmax.f32 %v7931_v34, 0.0  ;;  %7358 = vrot.lane.b32.xlu0 %v6029_v12, %s9042_s24  ;;  %v8273_v6 = vsel %vm8243_vm9, %v8194_v0, 0.0 }
 0x84e   :  { %v5800_v59 = vpop.permute.xlu1 %5799 }
 0x84f   :  { %5954 = vst.msk [vmem:[#allocation5 + $0x130] sm:$0xff] %vm5915_vm3, %v5800_v59  ;;  %v8271_v16 = vsel %vm8243_vm9, %v8193_v4, 0.0  ;;  %v6952_v53 = vpop.permute.xlu0 %6951  ;;  %v7556_v33 = vld [vmem:[#allocation5 + $0x118] sm:$0xff]  ;;  %v6418_v4 = vld [vmem:[#allocation3 + $0x3c7] sm:$0xff] }
 0x850   :  { %6592 = vrot.lane.b32.xlu1 %v6415_v1, %s9040_s22  ;;  %v8272_v51 = vadd.f32 %v8271_v16, %v8270_v36  ;;  %7108 = vst.msk [vmem:[#allocation5 + $0x120] sm:$0xff] %vm7071_vm6, %v6952_v53  ;;  %8940 = vmatmul.mubr.msk.f32.gmra.mxu1 %vm7601_vm8, %v7556_v33  ;;  %v5649_v16 = vld [vmem:[#allocation3 + $0x3c8] sm:$0xff] }
 0x851   :  { %6590 = vrot.lane.b32.xlu0 %v6414_v10, %s9040_s22  ;;  %v7188_v10 = vld [vmem:[#allocation3 + $0x3c9] sm:$0xff] }
 0x852   :  { %v7337_v52 = vpop.permute.xlu1 %7336  ;;  %v8274_v13 = vadd.f32 %v8273_v6, %v8272_v51 }
 0x853   :  { %7493 = vst.msk [vmem:[#allocation5 + $0x120] sm:$0xff] %vm7456_vm7, %v7337_v52  ;;  %v6954_v31 = vpop.permute.xlu0 %6953  ;;  %v6804_v52 = vld [vmem:[#allocation3 + $0x3d0] sm:$0xff] }
 0x854   :  { %5823 = vrot.lane.b32.xlu1 %v5645_v28, %s9038_s1  ;;  %7109 = vst.msk [vmem:[#allocation5 + $0x128] sm:$0xff] %vm7071_vm6, %v6954_v31 }
 0x855   :  { %6975 = vrot.lane.b32.xlu0 %v5645_v28, %s9041_s28 }
 0x856   :  { %v6185_v55 = vpop.permute.xlu1 %6184 }
 0x857   :  { %6339 = vst.msk [vmem:[#allocation5 + $0x130] sm:$0xff] %vm6300_vm4, %v6185_v55  ;;  %v5802_v60 = vpop.permute.xlu0 %5801 }
 0x858   :  { %7360 = vrot.lane.b32.xlu1 %v7184_v32, %s9042_s24  ;;  %5955 = vst.msk [vmem:[#allocation5 + $0x138] sm:$0xff] %vm5915_vm3, %v5802_v60 }
 0x859   :  { %6977 = vrot.lane.b32.xlu0 %v6800_v43, %s9041_s28 }
 0x85a   :  { %v6187_v62 = vpop.permute.xlu1 %6186  ;;  %v7557_v63 = vld [vmem:[#allocation5 + $0x120] sm:$0xff] }
 0x85b   :  { %6340 = vst.msk [vmem:[#allocation5 + $0x138] sm:$0xff] %vm6300_vm4, %v6187_v62  ;;  %8942 = vmatprep.mubr.msk.f32.mxu1 %vm7601_vm8, %v7557_v63  ;;  %v7339_v24 = vpop.permute.xlu0 %7338  ;;  %v6035_v62 = vld [vmem:[#allocation3 + $0x3d1] sm:$0xff] }
 0x85c   :  { %6208 = vrot.lane.b32.xlu1 %v7184_v32, %s9039_s0  ;;  %7494 = vst.msk [vmem:[#allocation5 + $0x128] sm:$0xff] %vm7456_vm7, %v7339_v24  ;;  %v8914_v46 = vpop.f32.mrf.mxu1 }
 0x85d   :  { %v7946_v37 = vadd.f32 %v8914_v46, %v12292_v35  ;;  %5825 = vrot.lane.b32.xlu0 %v6800_v43, %s9038_s1 }
 0x85e   :  { %v6573_v47 = vpop.permute.xlu1 %6572  ;;  %v7940_v48 = vpop.f32.mrf.mxu1 }
 0x85f   :  { %6726 = vst.msk [vmem:[#allocation5 + $0x138] sm:$0xff] %vm6686_vm5, %v6573_v47  ;;  %v7941_v29 = vadd.f32 %v12292_v35, %v7940_v48  ;;  %v6571_v26 = vpop.permute.xlu0 %6570  ;;  %v8196_v27 = vmax.f32 %v7946_v37, 0.0  ;;  %v6421_v48 = vld [vmem:[#allocation3 + $0x3ef] sm:$0xff] }
 0x860   :  { %6210 = vrot.lane.b32.xlu1 %v6031_v21, %s9039_s0  ;;  %6725 = vst.msk [vmem:[#allocation5 + $0x130] sm:$0xff] %vm6686_vm5, %v6571_v26 }
 0x861   :  { %v8195_v15 = vmax.f32 %v7941_v29, 0.0  ;;  %7362 = vrot.lane.b32.xlu0 %v6031_v21, %s9042_s24  ;;  %v8277_v57 = vsel %vm8243_vm9, %v8196_v27, 0.0 }
 0x862   :  { %v5804_v20 = vpop.permute.xlu1 %5803 }
 0x863   :  { %5956 = vst.msk [vmem:[#allocation5 + $0x140] sm:$0xff] %vm5915_vm3, %v5804_v20  ;;  %v8275_v39 = vsel %vm8243_vm9, %v8195_v15, 0.0  ;;  %v6956_v14 = vpop.permute.xlu0 %6955  ;;  %v7558_v49 = vld [vmem:[#allocation5 + $0x128] sm:$0xff] }
 0x864   :  { %6596 = vrot.lane.b32.xlu1 %v6417_v38, %s9040_s22  ;;  %v8276_v3 = vadd.f32 %v8275_v39, %v8274_v13  ;;  %7110 = vst.msk [vmem:[#allocation5 + $0x130] sm:$0xff] %vm7071_vm6, %v6956_v14  ;;  %8943 = vmatmul.mubr.msk.f32.gmra.mxu1 %vm7601_vm8, %v7558_v49  ;;  %v6420_v15 = vld [vmem:[#allocation3 + $0x3e7] sm:$0xff] }
 0x865   :  { %6594 = vrot.lane.b32.xlu0 %v6416_v56, %s9040_s22  ;;  %v5651_v39 = vld [vmem:[#allocation3 + $0x3e8] sm:$0xff] }
 0x866   :  { %v7341_v11 = vpop.permute.xlu1 %7340  ;;  %v8278_v17 = vadd.f32 %v8277_v57, %v8276_v3  ;;  %v7190_v56 = vld [vmem:[#allocation3 + $0x3e9] sm:$0xff] }
 0x867   :  { %7495 = vst.msk [vmem:[#allocation5 + $0x130] sm:$0xff] %vm7456_vm7, %v7341_v11  ;;  %v6958_v30 = vpop.permute.xlu0 %6957  ;;  %v6806_v11 = vld [vmem:[#allocation3 + $0x3f0] sm:$0xff] }
 0x868   :  { %5827 = vrot.lane.b32.xlu1 %v5647_v19, %s9038_s1  ;;  %7111 = vst.msk [vmem:[#allocation5 + $0x138] sm:$0xff] %vm7071_vm6, %v6958_v30 }
 0x869   :  { %6979 = vrot.lane.b32.xlu0 %v5647_v19, %s9041_s28 }
 0x86a   :  { %v6189_v42 = vpop.permute.xlu1 %6188 }
 0x86b   :  { %6341 = vst.msk [vmem:[#allocation5 + $0x140] sm:$0xff] %vm6300_vm4, %v6189_v42  ;;  %v5806_v7 = vpop.permute.xlu0 %5805 }
 0x86c   :  { %7364 = vrot.lane.b32.xlu1 %v7186_v9, %s9042_s24  ;;  %5957 = vst.msk [vmem:[#allocation5 + $0x148] sm:$0xff] %vm5915_vm3, %v5806_v7 }
 0x86d   :  { %6981 = vrot.lane.b32.xlu0 %v6802_v18, %s9041_s28 }
 0x86e   :  { %v6191_v54 = vpop.permute.xlu1 %6190  ;;  %v7559_v36 = vld [vmem:[#allocation5 + $0x130] sm:$0xff] }
 0x86f   :  { %6342 = vst.msk [vmem:[#allocation5 + $0x148] sm:$0xff] %vm6300_vm4, %v6191_v54  ;;  %8945 = vmatprep.mubr.msk.f32.mxu1 %vm7601_vm8, %v7559_v36  ;;  %v7343_v61 = vpop.permute.xlu0 %7342  ;;  %v6037_v54 = vld [vmem:[#allocation3 + $0x3f1] sm:$0xff]  ;;  %v12562_v36 = vld [vmem:[%s12824_s4] ss:$0 sm:$0xff] }
 0x870   :  { %6212 = vrot.lane.b32.xlu1 %v7186_v9, %s9039_s0  ;;  %7496 = vst.msk [vmem:[#allocation5 + $0x138] sm:$0xff] %vm7456_vm7, %v7343_v61  ;;  %v8917_v5 = vpop.f32.mrf.mxu1 }
 0x871   :  { %v7956_v8 = vadd.f32 %v8917_v5, %v12292_v35  ;;  %5829 = vrot.lane.b32.xlu0 %v6802_v18, %s9038_s1 }
 0x872   :  { %v6577_v45 = vpop.permute.xlu1 %6576  ;;  %v7950_v58 = vpop.f32.mrf.mxu1 }
 0x873   :  { %6728 = vst.msk [vmem:[#allocation5 + $0x148] sm:$0xff] %vm6686_vm5, %v6577_v45  ;;  %v7951_v50 = vadd.f32 %v12292_v35, %v7950_v58  ;;  %v6575_v22 = vpop.permute.xlu0 %6574  ;;  %v8198_v23 = vmax.f32 %v7956_v8, 0.0  ;;  %v6423_v58 = vld [vmem:[#allocation3 + $0x40f] sm:$0xff] }
 0x874   :  { %6214 = vrot.lane.b32.xlu1 %v6033_v25, %s9039_s0  ;;  %6727 = vst.msk [vmem:[#allocation5 + $0x140] sm:$0xff] %vm6686_vm5, %v6575_v22 }
 0x875   :  { %v8197_v40 = vmax.f32 %v7951_v50, 0.0  ;;  %7366 = vrot.lane.b32.xlu0 %v6033_v25, %s9042_s24  ;;  %v8281_v59 = vsel %vm8243_vm9, %v8198_v23, 0.0 }
 0x876   :  { %v5808_v44 = vpop.permute.xlu1 %5807 }
 0x877   :  { %5958 = vst.msk [vmem:[#allocation5 + $0x150] sm:$0xff] %vm5915_vm3, %v5808_v44  ;;  %v8279_v12 = vsel %vm8243_vm9, %v8197_v40, 0.0  ;;  %v6960_v34 = vpop.permute.xlu0 %6959  ;;  %v7560_v2 = vld [vmem:[#allocation5 + $0x138] sm:$0xff]  ;;  %v6422_v40 = vld [vmem:[#allocation3 + $0x407] sm:$0xff] }
 0x878   :  { %6600 = vrot.lane.b32.xlu1 %v6419_v41, %s9040_s22  ;;  %v8280_v0 = vadd.f32 %v8279_v12, %v8278_v17  ;;  %7112 = vst.msk [vmem:[#allocation5 + $0x140] sm:$0xff] %vm7071_vm6, %v6960_v34  ;;  %8946 = vmatmul.mubr.msk.f32.gmra.mxu1 %vm7601_vm8, %v7560_v2  ;;  %v5653_v12 = vld [vmem:[#allocation3 + $0x408] sm:$0xff] }
 0x879   :  { %6598 = vrot.lane.b32.xlu0 %v6418_v4, %s9040_s22  ;;  %v7192_v4 = vld [vmem:[#allocation3 + $0x409] sm:$0xff] }
 0x87a   :  { %v7345_v1 = vpop.permute.xlu1 %7344  ;;  %v8282_v53 = vadd.f32 %v8281_v59, %v8280_v0 }
 0x87b   :  { %7497 = vst.msk [vmem:[#allocation5 + $0x140] sm:$0xff] %vm7456_vm7, %v7345_v1  ;;  %v6962_v33 = vpop.permute.xlu0 %6961  ;;  %v6808_v1 = vld [vmem:[#allocation3 + $0x410] sm:$0xff] }
 0x87c   :  { %5831 = vrot.lane.b32.xlu1 %v5649_v16, %s9038_s1  ;;  %7113 = vst.msk [vmem:[#allocation5 + $0x148] sm:$0xff] %vm7071_vm6, %v6962_v33 }
 0x87d   :  { %6983 = vrot.lane.b32.xlu0 %v5649_v16, %s9041_s28 }
 0x87e   :  { %v6193_v51 = vpop.permute.xlu1 %6192 }
 0x87f   :  { %6343 = vst.msk [vmem:[#allocation5 + $0x150] sm:$0xff] %vm6300_vm4, %v6193_v51  ;;  %v5810_v6 = vpop.permute.xlu0 %5809 }
 0x880   :  { %7368 = vrot.lane.b32.xlu1 %v7188_v10, %s9042_s24  ;;  %5959 = vst.msk [vmem:[#allocation5 + $0x158] sm:$0xff] %vm5915_vm3, %v5810_v6 }
 0x881   :  { %6985 = vrot.lane.b32.xlu0 %v6804_v52, %s9041_s28 }
 0x882   :  { %v6195_v28 = vpop.permute.xlu1 %6194  ;;  %v7561_v13 = vld [vmem:[#allocation5 + $0x140] sm:$0xff] }
 0x883   :  { %6344 = vst.msk [vmem:[#allocation5 + $0x158] sm:$0xff] %vm6300_vm4, %v6195_v28  ;;  %8948 = vmatprep.mubr.msk.f32.mxu1 %vm7601_vm8, %v7561_v13  ;;  %v7347_v31 = vpop.permute.xlu0 %7346  ;;  %v6039_v28 = vld [vmem:[#allocation3 + $0x411] sm:$0xff] }
 0x884   :  { %6216 = vrot.lane.b32.xlu1 %v7188_v10, %s9039_s0  ;;  %7498 = vst.msk [vmem:[#allocation5 + $0x148] sm:$0xff] %vm7456_vm7, %v7347_v31  ;;  %v8920_v55 = vpop.f32.mrf.mxu1 }
 0x885   :  { %v7966_v32 = vadd.f32 %v8920_v55, %v12292_v35  ;;  %5833 = vrot.lane.b32.xlu0 %v6804_v52, %s9038_s1 }
 0x886   :  { %v6581_v60 = vpop.permute.xlu1 %6580  ;;  %v7960_v43 = vpop.f32.mrf.mxu1 }
 0x887   :  { %6730 = vst.msk [vmem:[#allocation5 + $0x158] sm:$0xff] %vm6686_vm5, %v6581_v60  ;;  %v7961_v63 = vadd.f32 %v12292_v35, %v7960_v43  ;;  %v6579_v24 = vpop.permute.xlu0 %6578  ;;  %v8200_v46 = vmax.f32 %v7966_v32, 0.0  ;;  %v6425_v43 = vld [vmem:[#allocation3 + $0x42f] sm:$0xff] }
 0x888   :  { %6218 = vrot.lane.b32.xlu1 %v6035_v62, %s9039_s0  ;;  %6729 = vst.msk [vmem:[#allocation5 + $0x150] sm:$0xff] %vm6686_vm5, %v6579_v24 }
 0x889   :  { %v8199_v37 = vmax.f32 %v7961_v63, 0.0  ;;  %7370 = vrot.lane.b32.xlu0 %v6035_v62, %s9042_s24  ;;  %v8285_v20 = vsel %vm8243_vm9, %v8200_v46, 0.0 }
 0x88a   :  { %v5812_v47 = vpop.permute.xlu1 %5811 }
 0x88b   :  { %5960 = vst.msk [vmem:[#allocation5 + $0x160] sm:$0xff] %vm5915_vm3, %v5812_v47  ;;  %v8283_v21 = vsel %vm8243_vm9, %v8199_v37, 0.0  ;;  %v6964_v29 = vpop.permute.xlu0 %6963  ;;  %v7562_v26 = vld [vmem:[#allocation5 + $0x148] sm:$0xff] }
 0x88c   :  { %6604 = vrot.lane.b32.xlu1 %v6421_v48, %s9040_s22  ;;  %v8284_v27 = vadd.f32 %v8283_v21, %v8282_v53  ;;  %7114 = vst.msk [vmem:[#allocation5 + $0x150] sm:$0xff] %vm7071_vm6, %v6964_v29  ;;  %8949 = vmatmul.mubr.msk.f32.gmra.mxu1 %vm7601_vm8, %v7562_v26  ;;  %v6424_v37 = vld [vmem:[#allocation3 + $0x427] sm:$0xff] }
 0x88d   :  { %6602 = vrot.lane.b32.xlu0 %v6420_v15, %s9040_s22  ;;  %v5655_v21 = vld [vmem:[#allocation3 + $0x428] sm:$0xff] }
 0x88e   :  { %v7349_v38 = vpop.permute.xlu1 %7348  ;;  %v8286_v14 = vadd.f32 %v8285_v20, %v8284_v27  ;;  %v7194_v15 = vld [vmem:[#allocation3 + $0x429] sm:$0xff] }
 0x88f   :  { %7499 = vst.msk [vmem:[#allocation5 + $0x150] sm:$0xff] %vm7456_vm7, %v7349_v38  ;;  %v6966_v49 = vpop.permute.xlu0 %6965  ;;  %v6810_v38 = vld [vmem:[#allocation3 + $0x430] sm:$0xff] }
 0x890   :  { %5835 = vrot.lane.b32.xlu1 %v5651_v39, %s9038_s1  ;;  %7115 = vst.msk [vmem:[#allocation5 + $0x158] sm:$0xff] %vm7071_vm6, %v6966_v49 }
 0x891   :  { %6987 = vrot.lane.b32.xlu0 %v5651_v39, %s9041_s28 }
 0x892   :  { %v6197_v3 = vpop.permute.xlu1 %6196 }
 0x893   :  { %6345 = vst.msk [vmem:[#allocation5 + $0x160] sm:$0xff] %vm6300_vm4, %v6197_v3  ;;  %v5814_v57 = vpop.permute.xlu0 %5813 }
 0x894   :  { %7372 = vrot.lane.b32.xlu1 %v7190_v56, %s9042_s24  ;;  %5961 = vst.msk [vmem:[#allocation5 + $0x168] sm:$0xff] %vm5915_vm3, %v5814_v57 }
 0x895   :  { %6989 = vrot.lane.b32.xlu0 %v6806_v11, %s9041_s28 }
 0x896   :  { %v6199_v19 = vpop.permute.xlu1 %6198  ;;  %v7563_v17 = vld [vmem:[#allocation5 + $0x150] sm:$0xff] }
 0x897   :  { %6346 = vst.msk [vmem:[#allocation5 + $0x168] sm:$0xff] %vm6300_vm4, %v6199_v19  ;;  %8951 = vmatprep.mubr.msk.f32.mxu1 %vm7601_vm8, %v7563_v17  ;;  %v7351_v30 = vpop.permute.xlu0 %7350  ;;  %v6041_v19 = vld [vmem:[#allocation3 + $0x431] sm:$0xff] }
 0x898   :  { %6220 = vrot.lane.b32.xlu1 %v7190_v56, %s9039_s0  ;;  %7500 = vst.msk [vmem:[#allocation5 + $0x158] sm:$0xff] %vm7456_vm7, %v7351_v30  ;;  %v8923_v42 = vpop.f32.mrf.mxu1 }
 0x899   :  { %v7976_v9 = vadd.f32 %v8923_v42, %v12292_v35  ;;  %5837 = vrot.lane.b32.xlu0 %v6806_v11, %s9038_s1 }
 0x89a   :  { %v6585_v7 = vpop.permute.xlu1 %6584  ;;  %v7970_v18 = vpop.f32.mrf.mxu1 }
 0x89b   :  { %6732 = vst.msk [vmem:[#allocation5 + $0x168] sm:$0xff] %vm6686_vm5, %v6585_v7  ;;  %v7971_v61 = vadd.f32 %v12562_v36, %v7970_v18  ;;  %v6583_v5 = vpop.permute.xlu0 %6582  ;;  %v8202_v35 = vmax.f32 %v7976_v9, 0.0  ;;  %v6427_v18 = vld [vmem:[#allocation3 + $0x44f] sm:$0xff] }
 0x89c   :  { %6222 = vrot.lane.b32.xlu1 %v6037_v54, %s9039_s0  ;;  %6731 = vst.msk [vmem:[#allocation5 + $0x160] sm:$0xff] %vm6686_vm5, %v6583_v5 }
 0x89d   :  { %v8201_v8 = vmax.f32 %v7971_v61, 0.0  ;;  %7374 = vrot.lane.b32.xlu0 %v6037_v54, %s9042_s24  ;;  %v8289_v44 = vsel %vm8243_vm9, %v8202_v35, 0.0 }
 0x89e   :  { %v5816_v45 = vpop.permute.xlu1 %5815 }
 0x89f   :  { %5962 = vst.msk [vmem:[#allocation5 + $0x170] sm:$0xff] %vm5915_vm3, %v5816_v45  ;;  %v8287_v25 = vsel %vm8243_vm9, %v8201_v8, 0.0  ;;  %v6968_v50 = vpop.permute.xlu0 %6967  ;;  %v7564_v22 = vld [vmem:[#allocation5 + $0x158] sm:$0xff]  ;;  %v6426_v8 = vld [vmem:[#allocation3 + $0x447] sm:$0xff] }
 0x8a0   :  { %6608 = vrot.lane.b32.xlu1 %v6423_v58, %s9040_s22  ;;  %v8288_v23 = vadd.f32 %v8287_v25, %v8286_v14  ;;  %7116 = vst.msk [vmem:[#allocation5 + $0x160] sm:$0xff] %vm7071_vm6, %v6968_v50  ;;  %8952 = vmatmul.mubr.msk.f32.gmra.mxu1 %vm7601_vm8, %v7564_v22  ;;  %v5657_v25 = vld [vmem:[#allocation3 + $0x448] sm:$0xff] }
 0x8a1   :  { %6606 = vrot.lane.b32.xlu0 %v6422_v40, %s9040_s22  ;;  %v7196_v40 = vld [vmem:[#allocation3 + $0x449] sm:$0xff] }
 0x8a2   :  { %v7353_v41 = vpop.permute.xlu1 %7352  ;;  %v8290_v34 = vadd.f32 %v8289_v44, %v8288_v23 }
 0x8a3   :  { %7501 = vst.msk [vmem:[#allocation5 + $0x160] sm:$0xff] %vm7456_vm7, %v7353_v41  ;;  %v6970_v2 = vpop.permute.xlu0 %6969  ;;  %v6812_v41 = vld [vmem:[#allocation3 + $0x450] sm:$0xff] }
 0x8a4   :  { %5839 = vrot.lane.b32.xlu1 %v5653_v12, %s9038_s1  ;;  %7117 = vst.msk [vmem:[#allocation5 + $0x168] sm:$0xff] %vm7071_vm6, %v6970_v2 }
 0x8a5   :  { %6991 = vrot.lane.b32.xlu0 %v5653_v12, %s9041_s28 }
 0x8a6   :  { %v6201_v0 = vpop.permute.xlu1 %6200 }
 0x8a7   :  { %6347 = vst.msk [vmem:[#allocation5 + $0x170] sm:$0xff] %vm6300_vm4, %v6201_v0  ;;  %v5818_v59 = vpop.permute.xlu0 %5817 }
 0x8a8   :  { %7376 = vrot.lane.b32.xlu1 %v7192_v4, %s9042_s24  ;;  %5963 = vst.msk [vmem:[#allocation5 + $0x178] sm:$0xff] %vm5915_vm3, %v5818_v59 }
 0x8a9   :  { %6993 = vrot.lane.b32.xlu0 %v6808_v1, %s9041_s28 }
 0x8aa   :  { %v6203_v16 = vpop.permute.xlu1 %6202  ;;  %v7565_v53 = vld [vmem:[#allocation5 + $0x160] sm:$0xff] }
 0x8ab   :  { %6348 = vst.msk [vmem:[#allocation5 + $0x178] sm:$0xff] %vm6300_vm4, %v6203_v16  ;;  %8954 = vmatprep.mubr.msk.f32.mxu1 %vm7601_vm8, %v7565_v53  ;;  %v7355_v33 = vpop.permute.xlu0 %7354  ;;  %v6043_v16 = vld [vmem:[#allocation3 + $0x451] sm:$0xff] }
 0x8ac   :  { %6224 = vrot.lane.b32.xlu1 %v7192_v4, %s9039_s0  ;;  %7502 = vst.msk [vmem:[#allocation5 + $0x168] sm:$0xff] %vm7456_vm7, %v7355_v33  ;;  %v8926_v51 = vpop.f32.mrf.mxu1 }
 0x8ad   :  { %v7986_v10 = vadd.f32 %v12562_v36, %v8926_v51  ;;  %5841 = vrot.lane.b32.xlu0 %v6808_v1, %s9038_s1  ;;  %v6429_v51 = vld [vmem:[#allocation3 + $0x46f] sm:$0xff] }
 0x8ae   :  { %v6589_v6 = vpop.permute.xlu1 %6588  ;;  %v7980_v52 = vpop.f32.mrf.mxu1 }
 0x8af   :  { %6734 = vst.msk [vmem:[#allocation5 + $0x178] sm:$0xff] %vm6686_vm5, %v6589_v6  ;;  %v7981_v13 = vadd.f32 %v12562_v36, %v7980_v52  ;;  %v6587_v31 = vpop.permute.xlu0 %6586  ;;  %v8204_v55 = vmax.f32 %v7986_v10, 0.0 }
 0x8b0   :  { %6226 = vrot.lane.b32.xlu1 %v6039_v28, %s9039_s0  ;;  %6733 = vst.msk [vmem:[#allocation5 + $0x170] sm:$0xff] %vm6686_vm5, %v6587_v31 }
 0x8b1   :  { %v8203_v32 = vmax.f32 %v7981_v13, 0.0  ;;  %7378 = vrot.lane.b32.xlu0 %v6039_v28, %s9042_s24  ;;  %v8293_v47 = vsel %vm8243_vm9, %v8204_v55, 0.0  ;;  %v6428_v28 = vld [vmem:[#allocation3 + $0x467] sm:$0xff] }
 0x8b2   :  { %v5820_v60 = vpop.permute.xlu1 %5819 }
 0x8b3   :  { %5964 = vst.msk [vmem:[#allocation5 + $0x180] sm:$0xff] %vm5915_vm3, %v5820_v60  ;;  %v8291_v62 = vsel %vm8243_vm9, %v8203_v32, 0.0  ;;  %v6972_v63 = vpop.permute.xlu0 %6971  ;;  %v7566_v24 = vld [vmem:[#allocation5 + $0x168] sm:$0xff]  ;;  %v6814_v60 = vld [vmem:[#allocation3 + $0x470] sm:$0xff] }
 0x8b4   :  { %6612 = vrot.lane.b32.xlu1 %v6425_v43, %s9040_s22  ;;  %v8292_v46 = vadd.f32 %v8291_v62, %v8290_v34  ;;  %7118 = vst.msk [vmem:[#allocation5 + $0x170] sm:$0xff] %vm7071_vm6, %v6972_v63  ;;  %8955 = vmatmul.mubr.msk.f32.gmra.mxu1 %vm7601_vm8, %v7566_v24  ;;  %v6813_v63 = vld [vmem:[#allocation3 + $0x468] sm:$0xff] }
 0x8b5   :  { %6610 = vrot.lane.b32.xlu0 %v6424_v37, %s9040_s22  ;;  %v7199_v37 = vld [vmem:[#allocation3 + $0x471] sm:$0xff] }
 0x8b6   :  { %v7357_v48 = vpop.permute.xlu1 %7356  ;;  %v8294_v29 = vadd.f32 %v8293_v47, %v8292_v46 }
 0x8b7   :  { %7503 = vst.msk [vmem:[#allocation5 + $0x170] sm:$0xff] %vm7456_vm7, %v7357_v48  ;;  %v6974_v26 = vpop.permute.xlu0 %6973  ;;  %v7198_v48 = vld [vmem:[#allocation3 + $0x469] sm:$0xff] }
 0x8b8   :  { %5843 = vrot.lane.b32.xlu1 %v5655_v21, %s9038_s1  ;;  %7119 = vst.msk [vmem:[#allocation5 + $0x178] sm:$0xff] %vm7071_vm6, %v6974_v26 }
 0x8b9   :  { %6995 = vrot.lane.b32.xlu0 %v5655_v21, %s9041_s28 }
 0x8ba   :  { %v6205_v27 = vpop.permute.xlu1 %6204 }
 0x8bb   :  { %6349 = vst.msk [vmem:[#allocation5 + $0x180] sm:$0xff] %vm6300_vm4, %v6205_v27  ;;  %v5822_v20 = vpop.permute.xlu0 %5821 }
 0x8bc   :  { %7380 = vrot.lane.b32.xlu1 %v7194_v15, %s9042_s24  ;;  %5965 = vst.msk [vmem:[#allocation5 + $0x188] sm:$0xff] %vm5915_vm3, %v5822_v20 }
 0x8bd   :  { %6997 = vrot.lane.b32.xlu0 %v6810_v38, %s9041_s28 }
 0x8be   :  { %v6207_v39 = vpop.permute.xlu1 %6206  ;;  %v7567_v14 = vld [vmem:[#allocation5 + $0x170] sm:$0xff] }
 0x8bf   :  { %6350 = vst.msk [vmem:[#allocation5 + $0x188] sm:$0xff] %vm6300_vm4, %v6207_v39  ;;  %8957 = vmatprep.mubr.msk.f32.mxu1 %vm7601_vm8, %v7567_v14  ;;  %v7359_v49 = vpop.permute.xlu0 %7358 }
 0x8c0   :  { %6228 = vrot.lane.b32.xlu1 %v7194_v15, %s9039_s0  ;;  %7504 = vst.msk [vmem:[#allocation5 + $0x178] sm:$0xff] %vm7456_vm7, %v7359_v49  ;;  %v8929_v3 = vpop.f32.mrf.mxu1 }
 0x8c1   :  { %v7996_v56 = vadd.f32 %v12562_v36, %v8929_v3  ;;  %5845 = vrot.lane.b32.xlu0 %v6810_v38, %s9038_s1 }
 0x8c2   :  { %v6593_v57 = vpop.permute.xlu1 %6592  ;;  %v7990_v11 = vpop.f32.mrf.mxu1 }
 0x8c3   :  { %6736 = vst.msk [vmem:[#allocation5 + $0x188] sm:$0xff] %vm6686_vm5, %v6593_v57  ;;  %v7991_v17 = vadd.f32 %v12562_v36, %v7990_v11  ;;  %v6591_v30 = vpop.permute.xlu0 %6590  ;;  %v8206_v42 = vmax.f32 %v7996_v56, 0.0 }
 0x8c4   :  { %6230 = vrot.lane.b32.xlu1 %v6041_v19, %s9039_s0  ;;  %6735 = vst.msk [vmem:[#allocation5 + $0x180] sm:$0xff] %vm6686_vm5, %v6591_v30 }
 0x8c5   :  { %v8205_v9 = vmax.f32 %v7991_v17, 0.0  ;;  %7382 = vrot.lane.b32.xlu0 %v6041_v19, %s9042_s24  ;;  %v8297_v45 = vsel %vm8243_vm9, %v8206_v42, 0.0 }
 0x8c6   :  { %v5824_v7 = vpop.permute.xlu1 %5823 }
 0x8c7   :  { %5966 = vst.msk [vmem:[#allocation5 + $0x190] sm:$0xff] %vm5915_vm3, %v5824_v7  ;;  %v8295_v54 = vsel %vm8243_vm9, %v8205_v9, 0.0  ;;  %v6976_v61 = vpop.permute.xlu0 %6975  ;;  %v7568_v5 = vld [vmem:[#allocation5 + $0x178] sm:$0xff] }
 0x8c8   :  { %6616 = vrot.lane.b32.xlu1 %v6427_v18, %s9040_s22  ;;  %v8296_v35 = vadd.f32 %v8295_v54, %v8294_v29  ;;  %7120 = vst.msk [vmem:[#allocation5 + $0x180] sm:$0xff] %vm7071_vm6, %v6976_v61  ;;  %8958 = vmatmul.mubr.msk.f32.gmra.mxu1 %vm7601_vm8, %v7568_v5 }
 0x8c9   :  { %6614 = vrot.lane.b32.xlu0 %v6426_v8, %s9040_s22 }
 0x8ca   :  { %v7361_v58 = vpop.permute.xlu1 %7360  ;;  %v8298_v50 = vadd.f32 %v8297_v45, %v8296_v35 }
 0x8cb   :  { %7505 = vst.msk [vmem:[#allocation5 + $0x180] sm:$0xff] %vm7456_vm7, %v7361_v58  ;;  %v6978_v22 = vpop.permute.xlu0 %6977 }
 0x8cc   :  { %5847 = vrot.lane.b32.xlu1 %v5657_v25, %s9038_s1  ;;  %7121 = vst.msk [vmem:[#allocation5 + $0x188] sm:$0xff] %vm7071_vm6, %v6978_v22 }
 0x8cd   :  { %6999 = vrot.lane.b32.xlu0 %v5657_v25, %s9041_s28 }
 0x8ce   :  { %v6209_v23 = vpop.permute.xlu1 %6208 }
 0x8cf   :  { %6351 = vst.msk [vmem:[#allocation5 + $0x190] sm:$0xff] %vm6300_vm4, %v6209_v23  ;;  %v5826_v44 = vpop.permute.xlu0 %5825 }
 0x8d0   :  { %7384 = vrot.lane.b32.xlu1 %v7196_v40, %s9042_s24  ;;  %5967 = vst.msk [vmem:[#allocation5 + $0x198] sm:$0xff] %vm5915_vm3, %v5826_v44 }
 0x8d1   :  { %7001 = vrot.lane.b32.xlu0 %v6812_v41, %s9041_s28 }
 0x8d2   :  { %v6211_v12 = vpop.permute.xlu1 %6210  ;;  %v7569_v34 = vld [vmem:[#allocation5 + $0x180] sm:$0xff] }
 0x8d3   :  { %6352 = vst.msk [vmem:[#allocation5 + $0x198] sm:$0xff] %vm6300_vm4, %v6211_v12  ;;  %8960 = vmatprep.mubr.msk.f32.mxu1 %vm7601_vm8, %v7569_v34  ;;  %v7363_v2 = vpop.permute.xlu0 %7362 }
 0x8d4   :  { %6232 = vrot.lane.b32.xlu1 %v7196_v40, %s9039_s0  ;;  %7506 = vst.msk [vmem:[#allocation5 + $0x188] sm:$0xff] %vm7456_vm7, %v7363_v2  ;;  %v8932_v0 = vpop.f32.mrf.mxu1 }
 0x8d5   :  { %v8006_v4 = vadd.f32 %v12562_v36, %v8932_v0  ;;  %5849 = vrot.lane.b32.xlu0 %v6812_v41, %s9038_s1 }
 0x8d6   :  { %v6597_v59 = vpop.permute.xlu1 %6596  ;;  %v8000_v1 = vpop.f32.mrf.mxu1 }
 0x8d7   :  { %6738 = vst.msk [vmem:[#allocation5 + $0x198] sm:$0xff] %vm6686_vm5, %v6597_v59  ;;  %v8001_v53 = vadd.f32 %v12562_v36, %v8000_v1  ;;  %v6595_v33 = vpop.permute.xlu0 %6594  ;;  %v8208_v10 = vmax.f32 %v8006_v4, 0.0 }
 0x8d8   :  { %6234 = vrot.lane.b32.xlu1 %v6043_v16, %s9039_s0  ;;  %6737 = vst.msk [vmem:[#allocation5 + $0x190] sm:$0xff] %vm6686_vm5, %v6595_v33 }
 0x8d9   :  { %v8207_v6 = vmax.f32 %v8001_v53, 0.0  ;;  %7386 = vrot.lane.b32.xlu0 %v6043_v16, %s9042_s24  ;;  %v8301_v43 = vsel %vm8243_vm9, %v8208_v10, 0.0 }
 0x8da   :  { %v5828_v52 = vpop.permute.xlu1 %5827 }
 0x8db   :  { %5968 = vst.msk [vmem:[#allocation5 + $0x1a0] sm:$0xff] %vm5915_vm3, %v5828_v52  ;;  %v8299_v13 = vsel %vm8243_vm9, %v8207_v6, 0.0  ;;  %v6980_v31 = vpop.permute.xlu0 %6979  ;;  %v7570_v55 = vld [vmem:[#allocation5 + $0x188] sm:$0xff] }
 0x8dc   :  { %6620 = vrot.lane.b32.xlu1 %v6429_v51, %s9040_s22  ;;  %v8300_v32 = vadd.f32 %v8299_v13, %v8298_v50  ;;  %7122 = vst.msk [vmem:[#allocation5 + $0x190] sm:$0xff] %vm7071_vm6, %v6980_v31  ;;  %8961 = vmatmul.mubr.msk.f32.gmra.mxu1 %vm7601_vm8, %v7570_v55 }
 0x8dd   :  { %6618 = vrot.lane.b32.xlu0 %v6428_v28, %s9040_s22 }
 0x8de   :  { %v7365_v62 = vpop.permute.xlu1 %7364  ;;  %v8302_v24 = vadd.f32 %v8301_v43, %v8300_v32 }
 0x8df   :  { %7507 = vst.msk [vmem:[#allocation5 + $0x190] sm:$0xff] %vm7456_vm7, %v7365_v62  ;;  %v6982_v46 = vpop.permute.xlu0 %6981 }
 0x8e0   :  { %7005 = vrot.lane.b32.xlu1 %v6814_v60, %s9041_s28  ;;  %7123 = vst.msk [vmem:[#allocation5 + $0x198] sm:$0xff] %vm7071_vm6, %v6982_v46 }
 0x8e1   :  { %7003 = vrot.lane.b32.xlu0 %v6813_v63, %s9041_s28 }
 0x8e2   :  { %v6213_v47 = vpop.permute.xlu1 %6212 }
 0x8e3   :  { %6353 = vst.msk [vmem:[#allocation5 + $0x1a0] sm:$0xff] %vm6300_vm4, %v6213_v47  ;;  %v5830_v21 = vpop.permute.xlu0 %5829 }
 0x8e4   :  { %7390 = vrot.lane.b32.xlu1 %v7199_v37, %s9042_s24  ;;  %5969 = vst.msk [vmem:[#allocation5 + $0x1a8] sm:$0xff] %vm5915_vm3, %v5830_v21 }
 0x8e5   :  { %7388 = vrot.lane.b32.xlu0 %v7198_v48, %s9042_s24  ;;  %v8386_v48 = vld [vmem:[%s12825_s5 + $0x8] sm:$0xff] }
 0x8e6   :  { %v6215_v29 = vpop.permute.xlu1 %6214  ;;  %v7571_v26 = vld [vmem:[#allocation5 + $0x190] sm:$0xff]  ;;  %8985 = vmatpush3.msra.mxu0 %v8386_v48 }
 0x8e7   :  { %6354 = vst.msk [vmem:[#allocation5 + $0x1a8] sm:$0xff] %vm6300_vm4, %v6215_v29  ;;  %8963 = vmatprep.mubr.msk.f32.mxu1 %vm7601_vm8, %v7571_v26  ;;  %v7367_v27 = vpop.permute.xlu0 %7366  ;;  %v12877_v29 = vmov 0.0  }
 0x8e8   :  { %7508 = vst.msk [vmem:[#allocation5 + $0x198] sm:$0xff] %vm7456_vm7, %v7367_v27  ;;  %v8935_v15 = vpop.f32.mrf.mxu1  ;;  %8986 = vmatprep.subr.mxu0 %v12877_v29  ;;  %8988 = vmatprep.mubr.msk.f32.mxu0 %vm9043_vm10, %v12877_v29 }
 0x8e9   :  { %v8016_v20 = vadd.f32 %v12562_v36, %v8935_v15 }
 0x8ea   :  { %v6601_v38 = vpop.permute.xlu1 %6600  ;;  %v8010_v39 = vpop.f32.mrf.mxu1 }
 0x8eb   :  { %6740 = vst.msk [vmem:[#allocation5 + $0x1a8] sm:$0xff] %vm6686_vm5, %v6601_v38  ;;  %v8011_v14 = vadd.f32 %v12562_v36, %v8010_v39  ;;  %v6599_v49 = vpop.permute.xlu0 %6598  ;;  %v8210_v3 = vmax.f32 %v8016_v20, 0.0 }
 0x8ec   :  { %6739 = vst.msk [vmem:[#allocation5 + $0x1a0] sm:$0xff] %vm6686_vm5, %v6599_v49 }
 0x8ed   :  { %v8209_v56 = vmax.f32 %v8011_v14, 0.0  ;;  %v8305_v42 = vsel %vm8243_vm9, %v8210_v3, 0.0 }
 0x8ee   :  { %v5832_v57 = vpop.permute.xlu1 %5831 }
 0x8ef   :  { %5970 = vst.msk [vmem:[#allocation5 + $0x1b0] sm:$0xff] %vm5915_vm3, %v5832_v57  ;;  %v8303_v11 = vsel %vm8243_vm9, %v8209_v56, 0.0  ;;  %v6984_v19 = vpop.permute.xlu0 %6983  ;;  %v7572_v17 = vld [vmem:[#allocation5 + $0x198] sm:$0xff] }
 0x8f0   :  { %v8304_v30 = vadd.f32 %v8303_v11, %v8302_v24  ;;  %7124 = vst.msk [vmem:[#allocation5 + $0x1a0] sm:$0xff] %vm7071_vm6, %v6984_v19  ;;  %8964 = vmatmul.mubr.msk.f32.gmra.mxu1 %vm7601_vm8, %v7572_v17 }
 0x8f2   :  { %v7369_v9 = vpop.permute.xlu1 %7368  ;;  %v12673_v7 = vadd.f32 %v8305_v42, %v8304_v30 }
 0x8f3   :  { %7509 = vst.msk [vmem:[#allocation5 + $0x1a0] sm:$0xff] %vm7456_vm7, %v7369_v9  ;;  %v6986_v18 = vpop.permute.xlu0 %6985 }
 0x8f4   :  { %7125 = vst.msk [vmem:[#allocation5 + $0x1a8] sm:$0xff] %vm7071_vm6, %v6986_v18 }
 0x8f6   :  { %v6217_v54 = vpop.permute.xlu1 %6216 }
 0x8f7   :  { %6355 = vst.msk [vmem:[#allocation5 + $0x1b0] sm:$0xff] %vm6300_vm4, %v6217_v54  ;;  %v5834_v61 = vpop.permute.xlu0 %5833 }
 0x8f8   :  { %5971 = vst.msk [vmem:[#allocation5 + $0x1b8] sm:$0xff] %vm5915_vm3, %v5834_v61 }
 0x8fa   :  { %v6219_v5 = vpop.permute.xlu1 %6218  ;;  %v7573_v35 = vld [vmem:[#allocation5 + $0x1a0] sm:$0xff] }
 0x8fb   :  { %6356 = vst.msk [vmem:[#allocation5 + $0x1b8] sm:$0xff] %vm6300_vm4, %v6219_v5  ;;  %8966 = vmatprep.mubr.msk.f32.mxu1 %vm7601_vm8, %v7573_v35  ;;  %v7371_v8 = vpop.permute.xlu0 %7370  ;;  %v8385_v5 = vld [vmem:[%s12825_s5] sm:$0xff] }
 0x8fc   :  { %7510 = vst.msk [vmem:[#allocation5 + $0x1a8] sm:$0xff] %vm7456_vm7, %v7371_v8  ;;  %8987 = vmatpush3.msra.mxu0 %v8385_v5  ;;  %v8938_v35 = vpop.f32.mrf.mxu1 }
 0x8fe   :  { %v6605_v45 = vpop.permute.xlu1 %6604  ;;  %v8020_v8 = vpop.f32.mrf.mxu1 }
 0x8ff   :  { %6742 = vst.msk [vmem:[#allocation5 + $0x1b8] sm:$0xff] %vm6686_vm5, %v6605_v45  ;;  %v6603_v58 = vpop.permute.xlu0 %6602 }
 0x900   :  { %6741 = vst.msk [vmem:[#allocation5 + $0x1b0] sm:$0xff] %vm6686_vm5, %v6603_v58 }
 0x902   :  { %v5836_v25 = vpop.permute.xlu1 %5835 }
 0x903   :  { %5972 = vst.msk [vmem:[#allocation5 + $0x1c0] sm:$0xff] %vm5915_vm3, %v5836_v25  ;;  %v6988_v50 = vpop.permute.xlu0 %6987  ;;  %v7574_v22 = vld [vmem:[#allocation5 + $0x1a8] sm:$0xff]  ;;  %v8021_v25 = vadd.f32 %v12562_v36, %v8020_v8 }
 0x904   :  { %7126 = vst.msk [vmem:[#allocation5 + $0x1b0] sm:$0xff] %vm7071_vm6, %v6988_v50  ;;  %8967 = vmatmul.mubr.msk.f32.gmra.mxu1 %vm7601_vm8, %v7574_v22  ;;  %v8026_v22 = vadd.f32 %v12562_v36, %v8938_v35 }
 0x906   :  { %v7373_v23 = vpop.permute.xlu1 %7372 }
 0x907   :  { %7511 = vst.msk [vmem:[#allocation5 + $0x1b0] sm:$0xff] %vm7456_vm7, %v7373_v23  ;;  %v6990_v40 = vpop.permute.xlu0 %6989 }
 0x908   :  { %7127 = vst.msk [vmem:[#allocation5 + $0x1b8] sm:$0xff] %vm7071_vm6, %v6990_v40  ;;  %v8211_v40 = vmax.f32 %v8021_v25, 0.0 }
 0x90a   :  { %v6221_v44 = vpop.permute.xlu1 %6220 }
 0x90b   :  { %6357 = vst.msk [vmem:[#allocation5 + $0x1c0] sm:$0xff] %vm6300_vm4, %v6221_v44  ;;  %v5838_v41 = vpop.permute.xlu0 %5837 }
 0x90c   :  { %5973 = vst.msk [vmem:[#allocation5 + $0x1c8] sm:$0xff] %vm5915_vm3, %v5838_v41  ;;  %v8212_v41 = vmax.f32 %v8026_v22, 0.0 }
 0x90e   :  { %v6223_v12 = vpop.permute.xlu1 %6222  ;;  %v7575_v34 = vld [vmem:[#allocation5 + $0x1b0] sm:$0xff] }
 0x90f   :  { %6358 = vst.msk [vmem:[#allocation5 + $0x1c8] sm:$0xff] %vm6300_vm4, %v6223_v12  ;;  %8969 = vmatprep.mubr.msk.f32.mxu1 %vm7601_vm8, %v7575_v34  ;;  %v7375_v2 = vpop.permute.xlu0 %7374 }
 0x910   :  { %7512 = vst.msk [vmem:[#allocation5 + $0x1b8] sm:$0xff] %vm7456_vm7, %v7375_v2  ;;  %v8941_v45 = vpop.f32.mrf.mxu1  ;;  %v8313_v2 = vsel %vm8243_vm9, %v8211_v40, 0.0 }
 0x912   :  { %v6609_v0 = vpop.permute.xlu1 %6608  ;;  %v8030_v58 = vpop.f32.mrf.mxu1 }
 0x913   :  { %6744 = vst.msk [vmem:[#allocation5 + $0x1c8] sm:$0xff] %vm6686_vm5, %v6609_v0  ;;  %v6607_v4 = vpop.permute.xlu0 %6606  ;;  %v8031_v23 = vadd.f32 %v12562_v36, %v8030_v58  ;;  %v8036_v0 = vadd.f32 %v12562_v36, %v8941_v45 }
 0x914   :  { %6743 = vst.msk [vmem:[#allocation5 + $0x1c0] sm:$0xff] %vm6686_vm5, %v6607_v4 }
 0x915   :  { %v8213_v12 = vmax.f32 %v8031_v23, 0.0 }
 0x916   :  { %v5840_v59 = vpop.permute.xlu1 %5839 }
 0x917   :  { %5974 = vst.msk [vmem:[#allocation5 + $0x1d0] sm:$0xff] %vm5915_vm3, %v5840_v59  ;;  %v6992_v1 = vpop.permute.xlu0 %6991  ;;  %v7576_v16 = vld [vmem:[#allocation5 + $0x1b8] sm:$0xff]  ;;  %v8314_v59 = vsel %vm8243_vm9, %v8212_v41, 0.0 }
 0x918   :  { %7128 = vst.msk [vmem:[#allocation5 + $0x1c0] sm:$0xff] %vm7071_vm6, %v6992_v1  ;;  %8970 = vmatmul.mubr.msk.f32.gmra.mxu1 %vm7601_vm8, %v7576_v16  ;;  %v8316_v1 = vsel %vm8243_vm9, %v8213_v12, 0.0  ;;  %v8315_v16 = vadd.f32 %v8314_v59, %v8313_v2 }
 0x91a   :  { %v7377_v53 = vpop.permute.xlu1 %7376 }
 0x91b   :  { %7513 = vst.msk [vmem:[#allocation5 + $0x1c0] sm:$0xff] %vm7456_vm7, %v7377_v53  ;;  %v6994_v33 = vpop.permute.xlu0 %6993 }
 0x91c   :  { %7129 = vst.msk [vmem:[#allocation5 + $0x1c8] sm:$0xff] %vm7071_vm6, %v6994_v33  ;;  %v8214_v33 = vmax.f32 %v8036_v0, 0.0 }
 0x91e   :  { %v6225_v51 = vpop.permute.xlu1 %6224 }
 0x91f   :  { %6359 = vst.msk [vmem:[#allocation5 + $0x1d0] sm:$0xff] %vm6300_vm4, %v6225_v51  ;;  %v5842_v10 = vpop.permute.xlu0 %5841 }
 0x920   :  { %5975 = vst.msk [vmem:[#allocation5 + $0x1d8] sm:$0xff] %vm5915_vm3, %v5842_v10  ;;  %v8317_v10 = vadd.f32 %v8316_v1, %v8315_v16 }
 0x922   :  { %v6227_v6 = vpop.permute.xlu1 %6226  ;;  %v7577_v52 = vld [vmem:[#allocation5 + $0x1c0] sm:$0xff] }
 0x923   :  { %6360 = vst.msk [vmem:[#allocation5 + $0x1d8] sm:$0xff] %vm6300_vm4, %v6227_v6  ;;  %8972 = vmatprep.mubr.msk.f32.mxu1 %vm7601_vm8, %v7577_v52  ;;  %v7379_v28 = vpop.permute.xlu0 %7378 }
 0x924   :  { %7514 = vst.msk [vmem:[#allocation5 + $0x1c8] sm:$0xff] %vm7456_vm7, %v7379_v28  ;;  %v8944_v50 = vpop.f32.mrf.mxu1 }
 0x925   :  { %v8046_v52 = vadd.f32 %v12562_v36, %v8944_v50 }
 0x926   :  { %v6613_v13 = vpop.permute.xlu1 %6612  ;;  %v8040_v44 = vpop.f32.mrf.mxu1 }
 0x927   :  { %6746 = vst.msk [vmem:[#allocation5 + $0x1d8] sm:$0xff] %vm6686_vm5, %v6613_v13  ;;  %v6611_v31 = vpop.permute.xlu0 %6610  ;;  %v8041_v4 = vadd.f32 %v12562_v36, %v8040_v44  ;;  %v8318_v13 = vsel %vm8243_vm9, %v8214_v33, 0.0 }
 0x928   :  { %6745 = vst.msk [vmem:[#allocation5 + $0x1d0] sm:$0xff] %vm6686_vm5, %v6611_v31 }
 0x929   :  { %v8215_v51 = vmax.f32 %v8041_v4, 0.0 }
 0x92a   :  { %v5844_v55 = vpop.permute.xlu1 %5843 }
 0x92b   :  { %5976 = vst.msk [vmem:[#allocation5 + $0x1e0] sm:$0xff] %vm5915_vm3, %v5844_v55  ;;  %v6996_v32 = vpop.permute.xlu0 %6995  ;;  %v7578_v60 = vld [vmem:[#allocation5 + $0x1c8] sm:$0xff]  ;;  %v8320_v31 = vsel %vm8243_vm9, %v8215_v51, 0.0  ;;  %v8319_v55 = vadd.f32 %v8318_v13, %v8317_v10 }
 0x92c   :  { %7130 = vst.msk [vmem:[#allocation5 + $0x1d0] sm:$0xff] %vm7071_vm6, %v6996_v32  ;;  %8973 = vmatmul.mubr.msk.f32.gmra.mxu1 %vm7601_vm8, %v7578_v60  ;;  %v8216_v60 = vmax.f32 %v8046_v52, 0.0 }
 0x92e   :  { %v7381_v43 = vpop.permute.xlu1 %7380 }
 0x92f   :  { %7515 = vst.msk [vmem:[#allocation5 + $0x1d0] sm:$0xff] %vm7456_vm7, %v7381_v43  ;;  %v6998_v62 = vpop.permute.xlu0 %6997 }
 0x930   :  { %7131 = vst.msk [vmem:[#allocation5 + $0x1d8] sm:$0xff] %vm7071_vm6, %v6998_v62  ;;  %v8321_v62 = vadd.f32 %v8320_v31, %v8319_v55 }
 0x932   :  { %v6229_v63 = vpop.permute.xlu1 %6228 }
 0x933   :  { %6361 = vst.msk [vmem:[#allocation5 + $0x1e0] sm:$0xff] %vm6300_vm4, %v6229_v63  ;;  %v5846_v24 = vpop.permute.xlu0 %5845 }
 0x934   :  { %5977 = vst.msk [vmem:[#allocation5 + $0x1e8] sm:$0xff] %vm5915_vm3, %v5846_v24 }
 0x936   :  { %v6231_v46 = vpop.permute.xlu1 %6230  ;;  %v7579_v37 = vld [vmem:[#allocation5 + $0x1d0] sm:$0xff] }
 0x937   :  { %6362 = vst.msk [vmem:[#allocation5 + $0x1e8] sm:$0xff] %vm6300_vm4, %v6231_v46  ;;  %8975 = vmatprep.mubr.msk.f32.mxu1 %vm7601_vm8, %v7579_v37  ;;  %v7383_v47 = vpop.permute.xlu0 %7382  ;;  %v8322_v37 = vsel %vm8243_vm9, %v8216_v60, 0.0 }
 0x938   :  { %7516 = vst.msk [vmem:[#allocation5 + $0x1d8] sm:$0xff] %vm7456_vm7, %v7383_v47  ;;  %v8947_v34 = vpop.f32.mrf.mxu1  ;;  %v8323_v48 = vadd.f32 %v8322_v37, %v8321_v62 }
 0x939   :  { %v8056_v24 = vadd.f32 %v12562_v36, %v8947_v34 }
 0x93a   :  { %v6617_v21 = vpop.permute.xlu1 %6616  ;;  %v8050_v53 = vpop.f32.mrf.mxu1 }
 0x93b   :  { %6748 = vst.msk [vmem:[#allocation5 + $0x1e8] sm:$0xff] %vm6686_vm5, %v6617_v21  ;;  %v6615_v26 = vpop.permute.xlu0 %6614  ;;  %v8051_v28 = vadd.f32 %v12562_v36, %v8050_v53  ;;  %v8218_v29 = vmax.f32 %v8056_v24, 0.0 }
 0x93c   :  { %6747 = vst.msk [vmem:[#allocation5 + $0x1e0] sm:$0xff] %vm6686_vm5, %v6615_v26 }
 0x93d   :  { %v8217_v43 = vmax.f32 %v8051_v28, 0.0 }
 0x93e   :  { %v5848_v27 = vpop.permute.xlu1 %5847 }
 0x93f   :  { %5978 = vst.msk [vmem:[#allocation5 + $0x1f0] sm:$0xff] %vm5915_vm3, %v5848_v27  ;;  %v7000_v15 = vpop.permute.xlu0 %6999  ;;  %v7580_v20 = vld [vmem:[#allocation5 + $0x1d8] sm:$0xff]  ;;  %v8324_v47 = vsel %vm8243_vm9, %v8217_v43, 0.0 }
 0x940   :  { %7132 = vst.msk [vmem:[#allocation5 + $0x1e0] sm:$0xff] %vm7071_vm6, %v7000_v15  ;;  %8976 = vmatmul.mubr.msk.f32.gmra.mxu1 %vm7601_vm8, %v7580_v20  ;;  %v8325_v27 = vadd.f32 %v8324_v47, %v8323_v48 }
 0x942   :  { %v7385_v38 = vpop.permute.xlu1 %7384 }
 0x943   :  { %7517 = vst.msk [vmem:[#allocation5 + $0x1e0] sm:$0xff] %vm7456_vm7, %v7385_v38  ;;  %v7002_v39 = vpop.permute.xlu0 %7001 }
 0x944   :  { %7133 = vst.msk [vmem:[#allocation5 + $0x1e8] sm:$0xff] %vm7071_vm6, %v7002_v39  ;;  %v8326_v39 = vsel %vm8243_vm9, %v8218_v29, 0.0 }
 0x946   :  { %v6233_v14 = vpop.permute.xlu1 %6232 }
 0x947   :  { %6363 = vst.msk [vmem:[#allocation5 + $0x1f0] sm:$0xff] %vm6300_vm4, %v6233_v14  ;;  %v5850_v49 = vpop.permute.xlu0 %5849 }
 0x948   :  { %5979 = vst.msk [vmem:[#allocation5 + $0x1f8] sm:$0xff] %vm5915_vm3, %v5850_v49  ;;  %v8327_v49 = vadd.f32 %v8326_v39, %v8325_v27 }
 0x94a   :  { %v6235_v3 = vpop.permute.xlu1 %6234  ;;  %v7581_v56 = vld [vmem:[#allocation5 + $0x1e0] sm:$0xff] }
 0x94b   :  { %6364 = vst.msk [vmem:[#allocation5 + $0x1f8] sm:$0xff] %vm6300_vm4, %v6235_v3  ;;  %8978 = vmatprep.mubr.msk.f32.mxu1 %vm7601_vm8, %v7581_v56  ;;  %v7387_v57 = vpop.permute.xlu0 %7386 }
 0x94c   :  { %7518 = vst.msk [vmem:[#allocation5 + $0x1e8] sm:$0xff] %vm7456_vm7, %v7387_v57  ;;  %v8950_v6 = vpop.f32.mrf.mxu1 }
 0x94d   :  { %v8066_v20 = vadd.f32 %v12562_v36, %v8950_v6 }
 0x94e   :  { %v6621_v11 = vpop.permute.xlu1 %6620  ;;  %v8060_v32 = vpop.f32.mrf.mxu1 }
 0x94f   :  { %6750 = vst.msk [vmem:[#allocation5 + $0x1f8] sm:$0xff] %vm6686_vm5, %v6621_v11  ;;  %v6619_v19 = vpop.permute.xlu0 %6618  ;;  %v8061_v46 = vadd.f32 %v12562_v36, %v8060_v32  ;;  %v8220_v56 = vmax.f32 %v8066_v20, 0.0 }
 0x950   :  { %6749 = vst.msk [vmem:[#allocation5 + $0x1f0] sm:$0xff] %vm6686_vm5, %v6619_v19 }
 0x951   :  { %v8219_v26 = vmax.f32 %v8061_v46, 0.0 }
 0x952   :  { %v7006_v17 = vpop.permute.xlu1 %7005 }
 0x953   :  { %7135 = vst.msk [vmem:[#allocation5 + $0x1f8] sm:$0xff] %vm7071_vm6, %v7006_v17  ;;  %v7004_v30 = vpop.permute.xlu0 %7003  ;;  %v7582_v42 = vld [vmem:[#allocation5 + $0x1e8] sm:$0xff]  ;;  %v8328_v14 = vsel %vm8243_vm9, %v8219_v26, 0.0 }
 0x954   :  { %7134 = vst.msk [vmem:[#allocation5 + $0x1f0] sm:$0xff] %vm7071_vm6, %v7004_v30  ;;  %8979 = vmatmul.mubr.msk.f32.gmra.mxu1 %vm7601_vm8, %v7582_v42  ;;  %v8329_v11 = vadd.f32 %v8328_v14, %v8327_v49  ;;  %v8330_v42 = vsel %vm8243_vm9, %v8220_v56, 0.0 }
 0x956   :  { %v7391_v9 = vpop.permute.xlu1 %7390 }
 0x957   :  { %7520 = vst.msk [vmem:[#allocation5 + $0x1f8] sm:$0xff] %vm7456_vm7, %v7391_v9  ;;  %v7389_v18 = vpop.permute.xlu0 %7388 }
 0x958   :  { %7519 = vst.msk [vmem:[#allocation5 + $0x1f0] sm:$0xff] %vm7456_vm7, %v7389_v18  ;;  %v8331_v18 = vadd.f32 %v8330_v42, %v8329_v11 }
 0x95e   :  { %v7584_v54 = vld [vmem:[#allocation5 + $0x1f8] sm:$0xff] }
 0x95f   :  { %v7583_v61 = vld [vmem:[#allocation5 + $0x1f0] sm:$0xff] }
 0x960   :  { %8981 = vmatprep.mubr.msk.f32.mxu1 %vm7601_vm8, %v7583_v61  ;;  %v8953_v63 = vpop.f32.mrf.mxu1 }
 0x961   :  { %8982 = vmatmul.mubr.msk.f32.gmra.mxu1 %vm7601_vm8, %v7584_v54  ;;  %v8076_v17 = vadd.f32 %v12562_v36, %v8953_v63 }
 0x962   :  { %v8070_v21 = vpop.f32.mrf.mxu1 }
 0x963   :  { %v8071_v38 = vadd.f32 %v12562_v36, %v8070_v21  ;;  %v8222_v61 = vmax.f32 %v8076_v17, 0.0 }
 0x965   :  { %v8221_v57 = vmax.f32 %v8071_v38, 0.0  ;;  %v8334_v25 = vsel %vm8243_vm9, %v8222_v61, 0.0 }
 0x967   :  { %v8332_v9 = vsel %vm8243_vm9, %v8221_v57, 0.0 }
 0x968   :  { %v8333_v35 = vadd.f32 %v8332_v9, %v8331_v18 }
 0x96a   :  { %v8335_v22 = vadd.f32 %v8334_v25, %v8333_v35 }
 0x974   :  { %v8956_v15 = vpop.f32.mrf.mxu1 }
 0x975   :  { %v8086_v45 = vadd.f32 %v12562_v36, %v8956_v15 }
 0x976   :  { %v8080_v3 = vpop.f32.mrf.mxu1 }
 0x977   :  { %v8081_v30 = vadd.f32 %v12562_v36, %v8080_v3  ;;  %v8224_v40 = vmax.f32 %v8086_v45, 0.0 }
 0x979   :  { %v8223_v5 = vmax.f32 %v8081_v30, 0.0  ;;  %v8338_v0 = vsel %vm8243_vm9, %v8224_v40, 0.0 }
 0x97b   :  { %v8336_v50 = vsel %vm8243_vm9, %v8223_v5, 0.0 }
 0x97c   :  { %v8337_v41 = vadd.f32 %v8336_v50, %v8335_v22 }
 0x97e   :  { %v8339_v59 = vadd.f32 %v8338_v0, %v8337_v41 }
 0x988   :  { %v8959_v19 = vpop.f32.mrf.mxu1 }
 0x989   :  { %v8096_v34 = vadd.f32 %v12562_v36, %v8959_v19 }
 0x98a   :  { %v8090_v54 = vpop.f32.mrf.mxu1 }
 0x98b   :  { %v8091_v58 = vadd.f32 %v12562_v36, %v8090_v54  ;;  %v8226_v16 = vmax.f32 %v8096_v34, 0.0 }
 0x98d   :  { %v8225_v44 = vmax.f32 %v8091_v58, 0.0  ;;  %v8342_v52 = vsel %vm8243_vm9, %v8226_v16, 0.0 }
 0x98f   :  { %v8340_v4 = vsel %vm8243_vm9, %v8225_v44, 0.0 }
 0x990   :  { %v8341_v33 = vadd.f32 %v8340_v4, %v8339_v59 }
 0x992   :  { %v8343_v13 = vadd.f32 %v8342_v52, %v8341_v33  ;;  %v8307_v33 = vrot.slane %v12673_v7, 4 }
 0x99c   :  { %v8962_v8 = vpop.f32.mrf.mxu1 }
 0x99d   :  { %v8106_v10 = vadd.f32 %v12562_v36, %v8962_v8 }
 0x99e   :  { %v8100_v23 = vpop.f32.mrf.mxu1 }
 0x99f   :  { %v8101_v2 = vadd.f32 %v12562_v36, %v8100_v23  ;;  %v8228_v55 = vmax.f32 %v8106_v10, 0.0 }
 0x9a1   :  { %v8227_v53 = vmax.f32 %v8101_v2, 0.0  ;;  %v8346_v24 = vsel %vm8243_vm9, %v8228_v55, 0.0  ;;  %v8308_v55 = vadd.f32 %v8307_v33, %v12673_v7 }
 0x9a3   :  { %v8344_v28 = vsel %vm8243_vm9, %v8227_v53, 0.0 }
 0x9a4   :  { %v8345_v60 = vadd.f32 %v8344_v28, %v8343_v13 }
 0x9a6   :  { %v8347_v37 = vadd.f32 %v8346_v24, %v8345_v60  ;;  %v8309_v24 = vrot.slane %v8308_v55, 2 }
 0x9b0   :  { %v8965_v12 = vpop.f32.mrf.mxu1 }
 0x9b1   :  { %v8116_v62 = vadd.f32 %v12562_v36, %v8965_v12 }
 0x9b2   :  { %v8110_v1 = vpop.f32.mrf.mxu1 }
 0x9b3   :  { %v8111_v6 = vadd.f32 %v12562_v36, %v8110_v1  ;;  %v8230_v48 = vmax.f32 %v8116_v62, 0.0 }
 0x9b5   :  { %v8229_v32 = vmax.f32 %v8111_v6, 0.0  ;;  %v8350_v20 = vsel %vm8243_vm9, %v8230_v48, 0.0  ;;  %v8310_v48 = vadd.f32 %v8309_v24, %v8308_v55 }
 0x9b7   :  { %v8348_v46 = vsel %vm8243_vm9, %v8229_v32, 0.0 }
 0x9b8   :  { %v8349_v29 = vadd.f32 %v8348_v46, %v8347_v37 }
 0x9ba   :  { %v8351_v39 = vadd.f32 %v8350_v20, %v8349_v29 }
 0x9c4   :  { %v8968_v51 = vpop.f32.mrf.mxu1 }
 0x9c5   :  { %v8126_v27 = vadd.f32 %v12562_v36, %v8968_v51 }
 0x9c6   :  { %v8120_v31 = vpop.f32.mrf.mxu1 }
 0x9c7   :  { %v8121_v63 = vadd.f32 %v12562_v36, %v8120_v31  ;;  %v8232_v49 = vmax.f32 %v8126_v27, 0.0 }
 0x9c9   :  { %v8231_v21 = vmax.f32 %v8121_v63, 0.0  ;;  %v8354_v17 = vsel %vm8243_vm9, %v8232_v49, 0.0  ;;  %v8617_v49 = vld [vmem:[%s12826_s6] ss:$0 sm:$0xff] }
 0x9cb   :  { %v8352_v38 = vsel %vm8243_vm9, %v8231_v21, 0.0 }
 0x9cc   :  { %v8353_v56 = vadd.f32 %v8352_v38, %v8351_v39 }
 0x9ce   :  { %v8355_v42 = vadd.f32 %v8354_v17, %v8353_v56 }
 0x9d8   :  { %v8971_v43 = vpop.f32.mrf.mxu1 }
 0x9d9   :  { %v8136_v11 = vadd.f32 %v12562_v36, %v8971_v43 }
 0x9da   :  { %v8130_v47 = vpop.f32.mrf.mxu1 }
 0x9db   :  { %v8131_v15 = vadd.f32 %v12562_v36, %v8130_v47  ;;  %v8234_v18 = vmax.f32 %v8136_v11, 0.0 }
 0x9dd   :  { %v8233_v3 = vmax.f32 %v8131_v15, 0.0  ;;  %v8358_v8 = vsel %vm8243_vm9, %v8234_v18, 0.0 }
 0x9df   :  { %v8356_v30 = vsel %vm8243_vm9, %v8233_v3, 0.0 }
 0x9e0   :  { %v8357_v61 = vadd.f32 %v8356_v30, %v8355_v42 }
 0x9e2   :  { %v8359_v25 = vadd.f32 %v8358_v8, %v8357_v61 }
 0x9ec   :  { %v8974_v26 = vpop.f32.mrf.mxu1 }
 0x9ed   :  { %v8146_v5 = vadd.f32 %v12562_v36, %v8974_v26  ;;  %v8311_v26 = vrot.slane %v8310_v48, 1 }
 0x9ee   :  { %v8140_v14 = vpop.f32.mrf.mxu1 }
 0x9ef   :  { %v8141_v19 = vadd.f32 %v12562_v36, %v8140_v14  ;;  %v8236_v50 = vmax.f32 %v8146_v5, 0.0  ;;  %v8312_v15 = vadd.f32 %v8311_v26, %v8310_v48 }
 0x9f1   :  { %v8235_v54 = vmax.f32 %v8141_v19, 0.0  ;;  %v8362_v12 = vsel %vm8243_vm9, %v8236_v50, 0.0  ;;  %v8383_v38 = vmul.f32 0.00390625, %v8312_v15 }
 0x9f3   :  { %v8360_v45 = vsel %vm8243_vm9, %v8235_v54, 0.0 }
 0x9f4   :  { %v8361_v40 = vadd.f32 %v8360_v45, %v8359_v25 }
 0x9f6   :  { %v8363_v2 = vadd.f32 %v8362_v12, %v8361_v40 }
 0xa00   :  { %v8977_v57 = vpop.f32.mrf.mxu1 }
 0xa01   :  { %v8156_v44 = vadd.f32 %v12562_v36, %v8977_v57 }
 0xa02   :  { %v8150_v9 = vpop.f32.mrf.mxu1 }
 0xa03   :  { %v8151_v35 = vadd.f32 %v12562_v36, %v8150_v9  ;;  %v8238_v0 = vmax.f32 %v8156_v44, 0.0 }
 0xa05   :  { %v8237_v22 = vmax.f32 %v8151_v35, 0.0  ;;  %v8366_v16 = vsel %vm8243_vm9, %v8238_v0, 0.0 }
 0xa07   :  { %v8364_v34 = vsel %vm8243_vm9, %v8237_v22, 0.0 }
 0xa08   :  { %v8365_v59 = vadd.f32 %v8364_v34, %v8363_v2 }
 0xa0a   :  { %v8367_v51 = vadd.f32 %v8366_v16, %v8365_v59 }
 0xa14   :  { %v8980_v58 = vpop.f32.mrf.mxu1 }
 0xa15   :  { %v8166_v1 = vadd.f32 %v12562_v36, %v8980_v58 }
 0xa16   :  { %v8160_v23 = vpop.f32.mrf.mxu1 }
 0xa17   :  { %v8161_v41 = vadd.f32 %v12562_v36, %v8160_v23  ;;  %v8240_v6 = vmax.f32 %v8166_v1, 0.0 }
 0xa19   :  { %v8239_v4 = vmax.f32 %v8161_v41, 0.0  ;;  %v8370_v32 = vsel %vm8243_vm9, %v8240_v6, 0.0 }
 0xa1b   :  { %v8368_v53 = vsel %vm8243_vm9, %v8239_v4, 0.0 }
 0xa1c   :  { %v8369_v28 = vadd.f32 %v8368_v53, %v8367_v51 }
 0xa1e   :  { %v8371_v62 = vadd.f32 %v8370_v32, %v8369_v28 }
 0xa21   :  { %v8983_v10 = vpop.f32.mrf.mxu1 }
 0xa22   :  { %v8176_v52 = vadd.f32 %v12562_v36, %v8983_v10 }
 0xa23   :  { %v8170_v13 = vpop.f32.mrf.mxu1 }
 0xa24   :  { %v8171_v31 = vadd.f32 %v12562_v36, %v8170_v13  ;;  %v8242_v60 = vmax.f32 %v8176_v52, 0.0 }
 0xa26   :  { %v8241_v43 = vmax.f32 %v8171_v31, 0.0  ;;  %v8374_v37 = vsel %vm8243_vm9, %v8242_v60, 0.0 }
 0xa28   :  { %v8372_v63 = vsel %vm8243_vm9, %v8241_v43, 0.0 }
 0xa29   :  { %v8373_v46 = vadd.f32 %v8372_v63, %v8371_v62 }
 0xa2b   :  { %v8375_v47 = vadd.f32 %v8374_v37, %v8373_v46 }
 0xa2d   :  { %v8376_v21 = vrot.slane %v8375_v47, 4 }
 0xa2f   :  { %v8377_v29 = vadd.f32 %v8376_v21, %v8375_v47 }
 0xa31   :  { %v8378_v27 = vrot.slane %v8377_v29, 2 }
 0xa33   :  { %v8379_v36 = vadd.f32 %v8378_v27, %v8377_v29 }
 0xa35   :  { %v8380_v7 = vrot.slane %v8379_v36, 1 }
 0xa37   :  { %v8381_v20 = vadd.f32 %v8380_v7, %v8379_v36 }
 0xa39   :  { %v8384_v39 = vmul.f32 0.00390625, %v8381_v20 }
 0xa3b   :  { %v8397_v14 = vsel %vm8396_vm11, %v8384_v39, %v8383_v38 }
 0xa3c   :  { %8989 = vmatmul.mubr.msk.f32.vlgmr.msra.gmra.mxu0 %vm8243_vm9, %v8397_v14 }
 0xafc   :  { %v8466_v3 = vpop.f32.mrf.mxu0 }
 0xafd   :  { %v8467_v56 = vadd.f32 %v8617_v49, %v8466_v3 }
 0xafe   :  { %v8990_v57 = vpop.f32.mrf.mxu0 }
 0xaff   :  { %8471 = vst.msk [vmem:[#allocation6] sm:$0x3] %vm8470_vm12, %v8467_v56 }
 0xb00   :  { %9019 = shalt.err (!%p9016_p4)
}
 0xb01   :  { %8481 = dma.vmem_to_hbm [thread:$0]  %s8479_s16, 32, %s12827_s7, [#allocation7]  }
 0xb02   :  { %9028 = dma.done.wait [#allocation7], 32  }
 0xb03   :  { %9029 = vsyncadd [#allocation7], 4294967264 }
 0xb04   :  { %8485 = vsyncpa [#allocation7], 1 }

</bundles_post_ra>
